<compile_context>
chip_gen: v7x
topology: tpu7x:2x2x1
jax: 0.10.0
libtpu: 0.0.40
codegen_flags: <defaults>
</compile_context>

<pallas_src>
import jax
import jax.numpy as jnp
from jax import lax
from jax.experimental import pallas as pl
from jax.experimental.pallas import tpu as pltpu

DIM_EMBEDDING = 100
LSTM_HIDDEN = 100

LANE = 128
B_TILE = 8
NEG_BIG = -1e30


def _round_up(x, m):
    return (x + m - 1) // m * m


def tagger_kernel(emb_ref, len_ref, lab_ref,
                  wih_f_ref, whh_f_ref, b_f_ref,
                  wih_b_ref, whh_b_ref, b_b_ref,
                  wout_ref, bout_ref,
                  loss_ref, pred_ref,
                  xw_f, xw_b, hf, cf, hb, cb, out_b):
    T, Bt, Dp = emb_ref.shape
    Hp = whh_f_ref.shape[0]
    G = whh_f_ref.shape[1]            # == 4 * Hp
    NTp = bout_ref.shape[1]
    unroll = bool(T <= 32)

    # ---- hoisted input projections: one large MXU matmul per direction ----
    x2d = emb_ref[...].reshape(T * Bt, Dp)
    xw_f[...] = (jnp.dot(x2d, wih_f_ref[...], preferred_element_type=jnp.float32)
                 + b_f_ref[...]).reshape(T, Bt, G)
    xw_b[...] = (jnp.dot(x2d, wih_b_ref[...], preferred_element_type=jnp.float32)
                 + b_b_ref[...]).reshape(T, Bt, G)

    # ---- init recurrent state / loss accumulator (output block) ----
    hf[...] = jnp.zeros_like(hf)
    cf[...] = jnp.zeros_like(cf)
    hb[...] = jnp.zeros_like(hb)
    cb[...] = jnp.zeros_like(cb)
    loss_ref[...] = jnp.zeros_like(loss_ref)

    lengths = len_ref[...]                                    # [Bt, 1] int32

    def lstm_update(pre, h, c, whh_ref):
        # pre: precomputed x @ W_ih + b, shape [Bt, 4*Hp]
        gates = pre + jnp.dot(h, whh_ref[...], preferred_element_type=jnp.float32)
        i = jax.nn.sigmoid(gates[:, 0 * Hp:1 * Hp])
        f = jax.nn.sigmoid(gates[:, 1 * Hp:2 * Hp])
        g = jnp.tanh(gates[:, 2 * Hp:3 * Hp])
        o = jax.nn.sigmoid(gates[:, 3 * Hp:4 * Hp])
        c_new = f * c + i * g
        h_new = o * jnp.tanh(c_new)
        return h_new, c_new

    # ---- backward direction (t = T-1 .. 0), emulates pack_padded_sequence ----
    def bwd_body(s, carry):
        t = T - 1 - s
        mask = lengths > t                                    # [Bt, 1] bool
        h_new, c_new = lstm_update(xw_b[t], hb[...], cb[...], whh_b_ref)
        hb[...] = jnp.where(mask, h_new, hb[...])
        cb[...] = jnp.where(mask, c_new, cb[...])
        out_b[t] = jnp.where(mask, hb[...], 0.0)              # padded positions -> 0
        return carry

    lax.fori_loop(0, T, bwd_body, 0, unroll=unroll)

    # ---- forward direction fused with projection + CE + argmax ----
    iota_t = lax.broadcasted_iota(jnp.int32, (Bt, NTp), 1)

    def fwd_body(t, carry):
        mask = lengths > t                                    # [Bt, 1] bool
        h_new, c_new = lstm_update(xw_f[t], hf[...], cf[...], whh_f_ref)
        hf[...] = jnp.where(mask, h_new, hf[...])
        cf[...] = jnp.where(mask, c_new, cf[...])
        hf_t = jnp.where(mask, hf[...], 0.0)                  # padded positions -> 0

        h_cat = jnp.concatenate([hf_t, out_b[t]], axis=-1)    # [Bt, 2*Hp]
        scores = (jnp.dot(h_cat, wout_ref[...], preferred_element_type=jnp.float32)
                  + bout_ref[...])                            # [Bt, NTp]

        lab = lab_ref[t]                                      # [Bt, 1] int32
        mx = jnp.max(scores, axis=-1, keepdims=True)
        lse = jnp.log(jnp.sum(jnp.exp(scores - mx), axis=-1, keepdims=True)) + mx
        picked = jnp.sum(jnp.where(iota_t == lab, scores, 0.0),
                         axis=-1, keepdims=True)
        valid = (lab != 0).astype(jnp.float32)                # ignore_index == 0
        loss_ref[...] += valid * (lse - picked)

        # argmax (first occurrence); padded tag columns carry -1e30 bias -> never win
        pred_ref[t] = jnp.min(jnp.where(scores == mx, iota_t, NTp),
                              axis=-1, keepdims=True)
        return carry

    lax.fori_loop(0, T, fwd_body, 0, unroll=unroll)


def _pad_gate_weight(w, din_p, h_p):
    # w: [4, din, H]  ->  fused [din_p, 4*h_p]; gate k in columns [k*h_p, k*h_p+H)
    _, din, h = w.shape
    w = jnp.pad(w, ((0, 0), (0, din_p - din), (0, h_p - h)))
    return jnp.transpose(w, (1, 0, 2)).reshape(din_p, 4 * h_p)


def _pad_gate_bias(b, h_p):
    # b: [4, H] -> [1, 4*h_p]   (bias_ih + bias_hh combined)
    _, h = b.shape
    b = jnp.pad(b, ((0, 0), (0, h_p - h)))
    return b.reshape(1, 4 * h_p)


def tagger_forward(sentences, labels, lengths, params):
    """sentences/labels: [B, T] int32, lengths: [B] int32."""
    B, T = sentences.shape
    D = params["embedding"].shape[1]
    H = params["whh_f"].shape[2]
    ntags = params["wout_f"].shape[1]

    Dp = _round_up(D, LANE)
    Hp = _round_up(H, LANE)
    NTp = _round_up(ntags, LANE)
    Bp = _round_up(max(B, B_TILE), B_TILE)
    nb = Bp // B_TILE
    G = 4 * Hp

    # ---- glue: embedding gather, lane/sublane padding, gate/output fusion ----
    emb = jnp.take(params["embedding"], sentences, axis=0).astype(jnp.float32)  # [B,T,D]
    emb = jnp.pad(emb, ((0, Bp - B), (0, 0), (0, Dp - D)))
    emb_tbd = jnp.transpose(emb, (1, 0, 2))                                     # [T,Bp,Dp]

    labels_p = jnp.pad(labels.astype(jnp.int32), ((0, Bp - B), (0, 0)))
    labels_tb1 = jnp.transpose(labels_p, (1, 0))[:, :, None]                    # [T,Bp,1]
    lengths_p = jnp.pad(lengths.astype(jnp.int32), ((0, Bp - B),))[:, None]     # [Bp,1]

    wih_f = _pad_gate_weight(params["wih_f"], Dp, Hp)
    whh_f = _pad_gate_weight(params["whh_f"], Hp, Hp)
    b_f = _pad_gate_bias(params["b_f"], Hp)
    wih_b = _pad_gate_weight(params["wih_b"], Dp, Hp)
    whh_b = _pad_gate_weight(params["whh_b"], Hp, Hp)
    b_b = _pad_gate_bias(params["b_b"], Hp)

    wout = jnp.zeros((2 * Hp, NTp), jnp.float32)
    wout = wout.at[:H, :ntags].set(params["wout_f"])
    wout = wout.at[Hp:Hp + H, :ntags].set(params["wout_b"])
    # padded tag columns get a huge negative bias so they never win LSE / argmax
    bout = jnp.full((1, NTp), NEG_BIG, jnp.float32)
    bout = bout.at[:, :ntags].set(params["bout"].reshape(1, ntags))

    def weight_spec(shape):
        return pl.BlockSpec(shape, lambda b, _s=shape: (0,) * len(_s))

    in_specs = [
        pl.BlockSpec((T, B_TILE, Dp), lambda b: (0, b, 0)),   # embeddings
        pl.BlockSpec((B_TILE, 1), lambda b: (b, 0)),          # lengths
        pl.BlockSpec((T, B_TILE, 1), lambda b: (0, b, 0)),    # labels
        weight_spec((Dp, G)), weight_spec((Hp, G)), weight_spec((1, G)),
        weight_spec((Dp, G)), weight_spec((Hp, G)), weight_spec((1, G)),
        weight_spec((2 * Hp, NTp)), weight_spec((1, NTp)),
    ]
    out_specs = (
        pl.BlockSpec((B_TILE, 1), lambda b: (b, 0)),          # per-example loss
        pl.BlockSpec((T, B_TILE, 1), lambda b: (0, b, 0)),    # predictions
    )
    out_shape = (
        jax.ShapeDtypeStruct((Bp, 1), jnp.float32),
        jax.ShapeDtypeStruct((T, Bp, 1), jnp.int32),
    )
    scratch_shapes = [
        pltpu.VMEM((T, B_TILE, G), jnp.float32),   # xw_f : hoisted x @ Wih_f + b
        pltpu.VMEM((T, B_TILE, G), jnp.float32),   # xw_b : hoisted x @ Wih_b + b
        pltpu.VMEM((B_TILE, Hp), jnp.float32),     # hf
        pltpu.VMEM((B_TILE, Hp), jnp.float32),     # cf
        pltpu.VMEM((B_TILE, Hp), jnp.float32),     # hb
        pltpu.VMEM((B_TILE, Hp), jnp.float32),     # cb
        pltpu.VMEM((T, B_TILE, Hp), jnp.float32),  # out_b (backward hidden states)
    ]

    loss_vec, pred = pl.pallas_call(
        tagger_kernel,
        grid=(nb,),
        out_shape=out_shape,
        in_specs=in_specs,
        out_specs=out_specs,
        scratch_shapes=scratch_shapes,
        compiler_params=pltpu.CompilerParams(
            dimension_semantics=("parallel",)),
    )(emb_tbd, lengths_p, labels_tb1,
      wih_f, whh_f, b_f,
      wih_b, whh_b, b_b,
      wout, bout)

    loss = jnp.sum(loss_vec)                                  # padded rows contribute 0
    predicted_tags = jnp.transpose(pred[:, :B, 0], (1, 0))    # [B, T]
    return loss, predicted_tags


def init_params(key, nwords, ntags, D=DIM_EMBEDDING, H=LSTM_HIDDEN):
    ks = jax.random.split(key, 12)
    u = lambda k, shape, s=0.1: jax.random.uniform(k, shape, jnp.float32, -s, s)
    return {
        "embedding": u(ks[0], (nwords, D)),
        # per-gate stacked LSTM weights, gate order (i, f, g, o)
        "wih_f": u(ks[1], (4, D, H)),
        "whh_f": u(ks[2], (4, H, H)),
        "b_f":   u(ks[3], (4, H)),
        "wih_b": u(ks[4], (4, D, H)),
        "whh_b": u(ks[5], (4, H, H)),
        "b_b":   u(ks[6], (4, H)),
        "wout_f": u(ks[7], (H, ntags)),
        "wout_b": u(ks[8], (H, ntags)),
        "bout":   u(ks[9], (ntags,)),
    }


if __name__ == "__main__":
    key = jax.random.PRNGKey(0)
    k_param, k_sent, k_lab = jax.random.split(key, 3)

    nwords, ntags = 50, 6
    B, T = 2, 8

    params = init_params(k_param, nwords, ntags)

    lengths = jnp.array([8, 5], dtype=jnp.int32)  # descending, like pack_padded_sequence
    pos = jnp.arange(T, dtype=jnp.int32)[None, :]
    valid_mask = pos < lengths[:, None]

    sentences = jax.random.randint(k_sent, (B, T), 0, nwords, dtype=jnp.int32)
    sentences = jnp.where(valid_mask, sentences, 0)
    labels = jax.random.randint(k_lab, (B, T), 1, ntags, dtype=jnp.int32)
    labels = jnp.where(valid_mask, labels, 0)     # 0 == padding == ignore_index

    loss, predicted_tags = jax.jit(tagger_forward)(sentences, labels, lengths, params)
    loss = jax.block_until_ready(loss)
    predicted_tags = jax.block_until_ready(predicted_tags)

    assert loss.shape == () and predicted_tags.shape == (B, T)
    assert bool(jnp.isfinite(loss))
    print("KERNEL_OK")
</pallas_src>

<mosaic_0001>
module attributes {stable_mosaic.version = 11 : i64} {
  func.func @tagger_kernel(%arg0: i32, %arg1: memref<8x8x128xf32, #tpu.memory_space<vmem>>, %arg2: memref<8x1xi32, #tpu.memory_space<vmem>>, %arg3: memref<8x8x1xi32, #tpu.memory_space<vmem>>, %arg4: memref<128x512xf32, #tpu.memory_space<vmem>>, %arg5: memref<128x512xf32, #tpu.memory_space<vmem>>, %arg6: memref<1x512xf32, #tpu.memory_space<vmem>>, %arg7: memref<128x512xf32, #tpu.memory_space<vmem>>, %arg8: memref<128x512xf32, #tpu.memory_space<vmem>>, %arg9: memref<1x512xf32, #tpu.memory_space<vmem>>, %arg10: memref<256x128xf32, #tpu.memory_space<vmem>>, %arg11: memref<1x128xf32, #tpu.memory_space<vmem>>, %arg12: memref<8x1xf32, #tpu.memory_space<vmem>>, %arg13: memref<8x8x1xi32, #tpu.memory_space<vmem>>, %arg14: memref<8x8x512xf32, #tpu.memory_space<vmem>>, %arg15: memref<8x8x512xf32, #tpu.memory_space<vmem>>, %arg16: memref<8x128xf32, #tpu.memory_space<vmem>>, %arg17: memref<8x128xf32, #tpu.memory_space<vmem>>, %arg18: memref<8x128xf32, #tpu.memory_space<vmem>>, %arg19: memref<8x128xf32, #tpu.memory_space<vmem>>, %arg20: memref<8x8x128xf32, #tpu.memory_space<vmem>>) attributes {dimension_semantics = [#tpu.dimension_semantics<parallel>], iteration_bounds = array<i64: 1>, scalar_prefetch = 0 : i64, scratch_operands = 7 : i64, tpu.core_type = #tpu.core_type<tc>, window_params = [{transform_indices = @transform_0, window_bounds = array<i64: 8, 8, 128>}, {transform_indices = @transform_1, window_bounds = array<i64: 8, 1>}, {transform_indices = @transform_2, window_bounds = array<i64: 8, 8, 1>}, {pipeline_mode = #tpu.pipeline_mode<synchronous>, transform_indices = @transform_3, window_bounds = array<i64: 128, 512>}, {pipeline_mode = #tpu.pipeline_mode<synchronous>, transform_indices = @transform_4, window_bounds = array<i64: 128, 512>}, {pipeline_mode = #tpu.pipeline_mode<synchronous>, transform_indices = @transform_5, window_bounds = array<i64: 1, 512>}, {pipeline_mode = #tpu.pipeline_mode<synchronous>, transform_indices = @transform_6, window_bounds = array<i64: 128, 512>}, {pipeline_mode = #tpu.pipeline_mode<synchronous>, transform_indices = @transform_7, window_bounds = array<i64: 128, 512>}, {pipeline_mode = #tpu.pipeline_mode<synchronous>, transform_indices = @transform_8, window_bounds = array<i64: 1, 512>}, {pipeline_mode = #tpu.pipeline_mode<synchronous>, transform_indices = @transform_9, window_bounds = array<i64: 256, 128>}, {pipeline_mode = #tpu.pipeline_mode<synchronous>, transform_indices = @transform_10, window_bounds = array<i64: 1, 128>}, {transform_indices = @transform_11, window_bounds = array<i64: 8, 1>}, {transform_indices = @transform_12, window_bounds = array<i64: 8, 8, 1>}]} {
    %c0 = arith.constant 0 : index
    %c0_0 = arith.constant 0 : index
    %c0_1 = arith.constant 0 : index
    %0 = vector.load %arg1[%c0, %c0_0, %c0_1] : memref<8x8x128xf32, #tpu.memory_space<vmem>>, vector<8x8x128xf32>
    %1 = vector.shape_cast %0 : vector<8x8x128xf32> to vector<64x128xf32>
    %c0_2 = arith.constant 0 : index
    %c0_3 = arith.constant 0 : index
    %2 = vector.load %arg4[%c0_2, %c0_3] : memref<128x512xf32, #tpu.memory_space<vmem>>, vector<128x512xf32>
    %cst = arith.constant dense<0.000000e+00> : vector<64x512xf32>
    %3 = tpu.matmul %1, %2, %cst {dimension_numbers = #tpu.dot_dimension_numbers<[1], [0], [0], [1], [0, 0, 1, 1], [], []>} : vector<64x128xf32>, vector<128x512xf32>, vector<64x512xf32> -> vector<64x512xf32>
    %c0_4 = arith.constant 0 : index
    %c0_5 = arith.constant 0 : index
    %4 = vector.load %arg6[%c0_4, %c0_5] : memref<1x512xf32, #tpu.memory_space<vmem>>, vector<1x512xf32>
    %5 = vector.broadcast %4 : vector<1x512xf32> to vector<64x512xf32>
    %6 = arith.addf %3, %5 : vector<64x512xf32>
    %7 = vector.shape_cast %6 : vector<64x512xf32> to vector<8x8x512xf32>
    %c0_6 = arith.constant 0 : index
    %c0_7 = arith.constant 0 : index
    %c0_8 = arith.constant 0 : index
    %8 = vector.load %arg14[%c0_6, %c0_7, %c0_8] : memref<8x8x512xf32, #tpu.memory_space<vmem>>, vector<8x8x512xf32>
    tpu.vector_store %arg14[%c0_6, %c0_7, %c0_8], %7 {strides = array<i32>} : memref<8x8x512xf32, #tpu.memory_space<vmem>>, vector<8x8x512xf32>,
    %c0_9 = arith.constant 0 : index
    %c0_10 = arith.constant 0 : index
    %9 = vector.load %arg7[%c0_9, %c0_10] : memref<128x512xf32, #tpu.memory_space<vmem>>, vector<128x512xf32>
    %cst_11 = arith.constant dense<0.000000e+00> : vector<64x512xf32>
    %10 = tpu.matmul %1, %9, %cst_11 {dimension_numbers = #tpu.dot_dimension_numbers<[1], [0], [0], [1], [0, 0, 1, 1], [], []>} : vector<64x128xf32>, vector<128x512xf32>, vector<64x512xf32> -> vector<64x512xf32>
    %c0_12 = arith.constant 0 : index
    %c0_13 = arith.constant 0 : index
    %11 = vector.load %arg9[%c0_12, %c0_13] : memref<1x512xf32, #tpu.memory_space<vmem>>, vector<1x512xf32>
    %12 = vector.broadcast %11 : vector<1x512xf32> to vector<64x512xf32>
    %13 = arith.addf %10, %12 : vector<64x512xf32>
    %14 = vector.shape_cast %13 : vector<64x512xf32> to vector<8x8x512xf32>
    %c0_14 = arith.constant 0 : index
    %c0_15 = arith.constant 0 : index
    %c0_16 = arith.constant 0 : index
    %15 = vector.load %arg15[%c0_14, %c0_15, %c0_16] : memref<8x8x512xf32, #tpu.memory_space<vmem>>, vector<8x8x512xf32>
    tpu.vector_store %arg15[%c0_14, %c0_15, %c0_16], %14 {strides = array<i32>} : memref<8x8x512xf32, #tpu.memory_space<vmem>>, vector<8x8x512xf32>,
    %cst_17 = arith.constant 0.000000e+00 : f32
    %16 = vector.broadcast %cst_17 : f32 to vector<8x128xf32>
    %c0_18 = arith.constant 0 : index
    %c0_19 = arith.constant 0 : index
    %17 = vector.load %arg16[%c0_18, %c0_19] : memref<8x128xf32, #tpu.memory_space<vmem>>, vector<8x128xf32>
    tpu.vector_store %arg16[%c0_18, %c0_19], %16 {strides = array<i32>} : memref<8x128xf32, #tpu.memory_space<vmem>>, vector<8x128xf32>,
    %cst_20 = arith.constant 0.000000e+00 : f32
    %18 = vector.broadcast %cst_20 : f32 to vector<8x128xf32>
    %c0_21 = arith.constant 0 : index
    %c0_22 = arith.constant 0 : index
    %19 = vector.load %arg17[%c0_21, %c0_22] : memref<8x128xf32, #tpu.memory_space<vmem>>, vector<8x128xf32>
    tpu.vector_store %arg17[%c0_21, %c0_22], %18 {strides = array<i32>} : memref<8x128xf32, #tpu.memory_space<vmem>>, vector<8x128xf32>,
    %cst_23 = arith.constant 0.000000e+00 : f32
    %20 = vector.broadcast %cst_23 : f32 to vector<8x128xf32>
    %c0_24 = arith.constant 0 : index
    %c0_25 = arith.constant 0 : index
    %21 = vector.load %arg18[%c0_24, %c0_25] : memref<8x128xf32, #tpu.memory_space<vmem>>, vector<8x128xf32>
    tpu.vector_store %arg18[%c0_24, %c0_25], %20 {strides = array<i32>} : memref<8x128xf32, #tpu.memory_space<vmem>>, vector<8x128xf32>,
    %cst_26 = arith.constant 0.000000e+00 : f32
    %22 = vector.broadcast %cst_26 : f32 to vector<8x128xf32>
    %c0_27 = arith.constant 0 : index
    %c0_28 = arith.constant 0 : index
    %23 = vector.load %arg19[%c0_27, %c0_28] : memref<8x128xf32, #tpu.memory_space<vmem>>, vector<8x128xf32>
    tpu.vector_store %arg19[%c0_27, %c0_28], %22 {strides = array<i32>} : memref<8x128xf32, #tpu.memory_space<vmem>>, vector<8x128xf32>,
    %cst_29 = arith.constant 0.000000e+00 : f32
    %24 = vector.broadcast %cst_29 : f32 to vector<8x1xf32>
    %c0_30 = arith.constant 0 : index
    %c0_31 = arith.constant 0 : index
    %25 = vector.load %arg12[%c0_30, %c0_31] : memref<8x1xf32, #tpu.memory_space<vmem>>, vector<8x1xf32>
    tpu.vector_store %arg12[%c0_30, %c0_31], %24 {strides = array<i32>} : memref<8x1xf32, #tpu.memory_space<vmem>>, vector<8x1xf32>,
    %c0_32 = arith.constant 0 : index
    %c0_33 = arith.constant 0 : index
    %26 = vector.load %arg2[%c0_32, %c0_33] : memref<8x1xi32, #tpu.memory_space<vmem>>, vector<8x1xi32>
    %c0_i32 = arith.constant 0 : i32
    %c7_i32 = arith.constant 7 : i32
    %27 = arith.subi %c7_i32, %c0_i32 : i32
    %28 = vector.broadcast %27 : i32 to vector<8x1xi32>
    %29 = arith.cmpi sgt, %26, %28 : vector<8x1xi32>
    %30 = arith.index_cast %27 : i32 to index
    %c0_34 = arith.constant 0 : index
    %c0_35 = arith.constant 0 : index
    %31 = vector.load %arg15[%30, %c0_34, %c0_35] : memref<8x8x512xf32, #tpu.memory_space<vmem>>, vector<1x8x512xf32>
    %32 = vector.shape_cast %31 : vector<1x8x512xf32> to vector<8x512xf32>
    %c0_36 = arith.constant 0 : index
    %c0_37 = arith.constant 0 : index
    %33 = vector.load %arg18[%c0_36, %c0_37] : memref<8x128xf32, #tpu.memory_space<vmem>>, vector<8x128xf32>
    %c0_38 = arith.constant 0 : index
    %c0_39 = arith.constant 0 : index
    %34 = vector.load %arg19[%c0_38, %c0_39] : memref<8x128xf32, #tpu.memory_space<vmem>>, vector<8x128xf32>
    %c0_40 = arith.constant 0 : index
    %c0_41 = arith.constant 0 : index
    %35 = vector.load %arg8[%c0_40, %c0_41] : memref<128x512xf32, #tpu.memory_space<vmem>>, vector<128x512xf32>
    %cst_42 = arith.constant dense<0.000000e+00> : vector<8x512xf32>
    %36 = tpu.matmul %33, %35, %cst_42 {dimension_numbers = #tpu.dot_dimension_numbers<[1], [0], [0], [1], [0, 0, 1, 1], [], []>} : vector<8x128xf32>, vector<128x512xf32>, vector<8x512xf32> -> vector<8x512xf32>
    %37 = arith.addf %32, %36 : vector<8x512xf32>
    %38 = vector.extract_strided_slice %37 {offsets = [0, 0], sizes = [8, 128], strides = [1, 1]} : vector<8x512xf32> to vector<8x128xf32>
    %39 = arith.negf %38 : vector<8x128xf32>
    %40 = math.exp %39 : vector<8x128xf32>
    %cst_43 = arith.constant 1.000000e+00 : f32
    %41 = vector.broadcast %cst_43 : f32 to vector<8x128xf32>
    %42 = arith.addf %41, %40 : vector<8x128xf32>
    %43 = arith.divf %41, %42 : vector<8x128xf32>
    %44 = vector.extract_strided_slice %37 {offsets = [0, 128], sizes = [8, 128], strides = [1, 1]} : vector<8x512xf32> to vector<8x128xf32>
    %45 = arith.negf %44 : vector<8x128xf32>
    %46 = math.exp %45 : vector<8x128xf32>
    %cst_44 = arith.constant 1.000000e+00 : f32
    %47 = vector.broadcast %cst_44 : f32 to vector<8x128xf32>
    %48 = arith.addf %47, %46 : vector<8x128xf32>
    %49 = arith.divf %47, %48 : vector<8x128xf32>
    %50 = vector.extract_strided_slice %37 {offsets = [0, 256], sizes = [8, 128], strides = [1, 1]} : vector<8x512xf32> to vector<8x128xf32>
    %51 = math.tanh %50 : vector<8x128xf32>
    %52 = vector.extract_strided_slice %37 {offsets = [0, 384], sizes = [8, 128], strides = [1, 1]} : vector<8x512xf32> to vector<8x128xf32>
    %53 = arith.negf %52 : vector<8x128xf32>
    %54 = math.exp %53 : vector<8x128xf32>
    %cst_45 = arith.constant 1.000000e+00 : f32
    %55 = vector.broadcast %cst_45 : f32 to vector<8x128xf32>
    %56 = arith.addf %55, %54 : vector<8x128xf32>
    %57 = arith.divf %55, %56 : vector<8x128xf32>
    %58 = arith.mulf %49, %34 : vector<8x128xf32>
    %59 = arith.mulf %43, %51 : vector<8x128xf32>
    %60 = arith.addf %58, %59 : vector<8x128xf32>
    %61 = math.tanh %60 : vector<8x128xf32>
    %62 = arith.mulf %57, %61 : vector<8x128xf32>
    %c0_46 = arith.constant 0 : index
    %c0_47 = arith.constant 0 : index
    %63 = vector.load %arg18[%c0_46, %c0_47] : memref<8x128xf32, #tpu.memory_space<vmem>>, vector<8x128xf32>
    %64 = vector.shape_cast %29 : vector<8x1xi1> to vector<8x1xi1>
    %65 = vector.broadcast %64 : vector<8x1xi1> to vector<8x128xi1>
    %66 = arith.select %65, %62, %63 : vector<8x128xi1>, vector<8x128xf32>
    %c0_48 = arith.constant 0 : index
    %c0_49 = arith.constant 0 : index
    %67 = vector.load %arg18[%c0_48, %c0_49] : memref<8x128xf32, #tpu.memory_space<vmem>>, vector<8x128xf32>
    tpu.vector_store %arg18[%c0_48, %c0_49], %66 {strides = array<i32>} : memref<8x128xf32, #tpu.memory_space<vmem>>, vector<8x128xf32>,
    %c0_50 = arith.constant 0 : index
    %c0_51 = arith.constant 0 : index
    %68 = vector.load %arg19[%c0_50, %c0_51] : memref<8x128xf32, #tpu.memory_space<vmem>>, vector<8x128xf32>
    %69 = vector.shape_cast %29 : vector<8x1xi1> to vector<8x1xi1>
    %70 = vector.broadcast %69 : vector<8x1xi1> to vector<8x128xi1>
    %71 = arith.select %70, %60, %68 : vector<8x128xi1>, vector<8x128xf32>
    %c0_52 = arith.constant 0 : index
    %c0_53 = arith.constant 0 : index
    %72 = vector.load %arg19[%c0_52, %c0_53] : memref<8x128xf32, #tpu.memory_space<vmem>>, vector<8x128xf32>
    tpu.vector_store %arg19[%c0_52, %c0_53], %71 {strides = array<i32>} : memref<8x128xf32, #tpu.memory_space<vmem>>, vector<8x128xf32>,
    %c0_54 = arith.constant 0 : index
    %c0_55 = arith.constant 0 : index
    %73 = vector.load %arg18[%c0_54, %c0_55] : memref<8x128xf32, #tpu.memory_space<vmem>>, vector<8x128xf32>
    %cst_56 = arith.constant 0.000000e+00 : f32
    %74 = vector.shape_cast %29 : vector<8x1xi1> to vector<8x1xi1>
    %75 = vector.broadcast %74 : vector<8x1xi1> to vector<8x128xi1>
    %76 = vector.broadcast %cst_56 : f32 to vector<8x128xf32>
    %77 = arith.select %75, %73, %76 : vector<8x128xi1>, vector<8x128xf32>
    %78 = arith.index_cast %27 : i32 to index
    %c0_57 = arith.constant 0 : index
    %c0_58 = arith.constant 0 : index
    %79 = vector.load %arg20[%78, %c0_57, %c0_58] : memref<8x8x128xf32, #tpu.memory_space<vmem>>, vector<1x8x128xf32>
    %80 = vector.shape_cast %79 : vector<1x8x128xf32> to vector<8x128xf32>
    %81 = vector.shape_cast %77 : vector<8x128xf32> to vector<1x8x128xf32>
    tpu.vector_store %arg20[%78, %c0_57, %c0_58], %81 {strides = array<i32>} : memref<8x8x128xf32, #tpu.memory_space<vmem>>, vector<1x8x128xf32>,
    %c1_i32 = arith.constant 1 : i32
    %c7_i32_59 = arith.constant 7 : i32
    %82 = arith.subi %c7_i32_59, %c1_i32 : i32
    %83 = vector.broadcast %82 : i32 to vector<8x1xi32>
    %84 = arith.cmpi sgt, %26, %83 : vector<8x1xi32>
    %85 = arith.index_cast %82 : i32 to index
    %c0_60 = arith.constant 0 : index
    %c0_61 = arith.constant 0 : index
    %86 = vector.load %arg15[%85, %c0_60, %c0_61] : memref<8x8x512xf32, #tpu.memory_space<vmem>>, vector<1x8x512xf32>
    %87 = vector.shape_cast %86 : vector<1x8x512xf32> to vector<8x512xf32>
    %c0_62 = arith.constant 0 : index
    %c0_63 = arith.constant 0 : index
    %88 = vector.load %arg18[%c0_62, %c0_63] : memref<8x128xf32, #tpu.memory_space<vmem>>, vector<8x128xf32>
    %c0_64 = arith.constant 0 : index
    %c0_65 = arith.constant 0 : index
    %89 = vector.load %arg19[%c0_64, %c0_65] : memref<8x128xf32, #tpu.memory_space<vmem>>, vector<8x128xf32>
    %c0_66 = arith.constant 0 : index
    %c0_67 = arith.constant 0 : index
    %90 = vector.load %arg8[%c0_66, %c0_67] : memref<128x512xf32, #tpu.memory_space<vmem>>, vector<128x512xf32>
    %cst_68 = arith.constant dense<0.000000e+00> : vector<8x512xf32>
    %91 = tpu.matmul %88, %90, %cst_68 {dimension_numbers = #tpu.dot_dimension_numbers<[1], [0], [0], [1], [0, 0, 1, 1], [], []>} : vector<8x128xf32>, vector<128x512xf32>, vector<8x512xf32> -> vector<8x512xf32>
    %92 = arith.addf %87, %91 : vector<8x512xf32>
    %93 = vector.extract_strided_slice %92 {offsets = [0, 0], sizes = [8, 128], strides = [1, 1]} : vector<8x512xf32> to vector<8x128xf32>
    %94 = arith.negf %93 : vector<8x128xf32>
    %95 = math.exp %94 : vector<8x128xf32>
    %cst_69 = arith.constant 1.000000e+00 : f32
    %96 = vector.broadcast %cst_69 : f32 to vector<8x128xf32>
    %97 = arith.addf %96, %95 : vector<8x128xf32>
    %98 = arith.divf %96, %97 : vector<8x128xf32>
    %99 = vector.extract_strided_slice %92 {offsets = [0, 128], sizes = [8, 128], strides = [1, 1]} : vector<8x512xf32> to vector<8x128xf32>
    %100 = arith.negf %99 : vector<8x128xf32>
    %101 = math.exp %100 : vector<8x128xf32>
    %cst_70 = arith.constant 1.000000e+00 : f32
    %102 = vector.broadcast %cst_70 : f32 to vector<8x128xf32>
    %103 = arith.addf %102, %101 : vector<8x128xf32>
    %104 = arith.divf %102, %103 : vector<8x128xf32>
    %105 = vector.extract_strided_slice %92 {offsets = [0, 256], sizes = [8, 128], strides = [1, 1]} : vector<8x512xf32> to vector<8x128xf32>
    %106 = math.tanh %105 : vector<8x128xf32>
    %107 = vector.extract_strided_slice %92 {offsets = [0, 384], sizes = [8, 128], strides = [1, 1]} : vector<8x512xf32> to vector<8x128xf32>
    %108 = arith.negf %107 : vector<8x128xf32>
    %109 = math.exp %108 : vector<8x128xf32>
    %cst_71 = arith.constant 1.000000e+00 : f32
    %110 = vector.broadcast %cst_71 : f32 to vector<8x128xf32>
    %111 = arith.addf %110, %109 : vector<8x128xf32>
    %112 = arith.divf %110, %111 : vector<8x128xf32>
    %113 = arith.mulf %104, %89 : vector<8x128xf32>
    %114 = arith.mulf %98, %106 : vector<8x128xf32>
    %115 = arith.addf %113, %114 : vector<8x128xf32>
    %116 = math.tanh %115 : vector<8x128xf32>
    %117 = arith.mulf %112, %116 : vector<8x128xf32>
    %c0_72 = arith.constant 0 : index
    %c0_73 = arith.constant 0 : index
    %118 = vector.load %arg18[%c0_72, %c0_73] : memref<8x128xf32, #tpu.memory_space<vmem>>, vector<8x128xf32>
    %119 = vector.shape_cast %84 : vector<8x1xi1> to vector<8x1xi1>
    %120 = vector.broadcast %119 : vector<8x1xi1> to vector<8x128xi1>
    %121 = arith.select %120, %117, %118 : vector<8x128xi1>, vector<8x128xf32>
    %c0_74 = arith.constant 0 : index
    %c0_75 = arith.constant 0 : index
    %122 = vector.load %arg18[%c0_74, %c0_75] : memref<8x128xf32, #tpu.memory_space<vmem>>, vector<8x128xf32>
    tpu.vector_store %arg18[%c0_74, %c0_75], %121 {strides = array<i32>} : memref<8x128xf32, #tpu.memory_space<vmem>>, vector<8x128xf32>,
    %c0_76 = arith.constant 0 : index
    %c0_77 = arith.constant 0 : index
    %123 = vector.load %arg19[%c0_76, %c0_77] : memref<8x128xf32, #tpu.memory_space<vmem>>, vector<8x128xf32>
    %124 = vector.shape_cast %84 : vector<8x1xi1> to vector<8x1xi1>
    %125 = vector.broadcast %124 : vector<8x1xi1> to vector<8x128xi1>
    %126 = arith.select %125, %115, %123 : vector<8x128xi1>, vector<8x128xf32>
    %c0_78 = arith.constant 0 : index
    %c0_79 = arith.constant 0 : index
    %127 = vector.load %arg19[%c0_78, %c0_79] : memref<8x128xf32, #tpu.memory_space<vmem>>, vector<8x128xf32>
    tpu.vector_store %arg19[%c0_78, %c0_79], %126 {strides = array<i32>} : memref<8x128xf32, #tpu.memory_space<vmem>>, vector<8x128xf32>,
    %c0_80 = arith.constant 0 : index
    %c0_81 = arith.constant 0 : index
    %128 = vector.load %arg18[%c0_80, %c0_81] : memref<8x128xf32, #tpu.memory_space<vmem>>, vector<8x128xf32>
    %cst_82 = arith.constant 0.000000e+00 : f32
    %129 = vector.shape_cast %84 : vector<8x1xi1> to vector<8x1xi1>
    %130 = vector.broadcast %129 : vector<8x1xi1> to vector<8x128xi1>
    %131 = vector.broadcast %cst_82 : f32 to vector<8x128xf32>
    %132 = arith.select %130, %128, %131 : vector<8x128xi1>, vector<8x128xf32>
    %133 = arith.index_cast %82 : i32 to index
    %c0_83 = arith.constant 0 : index
    %c0_84 = arith.constant 0 : index
    %134 = vector.load %arg20[%133, %c0_83, %c0_84] : memref<8x8x128xf32, #tpu.memory_space<vmem>>, vector<1x8x128xf32>
    %135 = vector.shape_cast %134 : vector<1x8x128xf32> to vector<8x128xf32>
    %136 = vector.shape_cast %132 : vector<8x128xf32> to vector<1x8x128xf32>
    tpu.vector_store %arg20[%133, %c0_83, %c0_84], %136 {strides = array<i32>} : memref<8x8x128xf32, #tpu.memory_space<vmem>>, vector<1x8x128xf32>,
    %c2_i32 = arith.constant 2 : i32
    %c7_i32_85 = arith.constant 7 : i32
    %137 = arith.subi %c7_i32_85, %c2_i32 : i32
    %138 = vector.broadcast %137 : i32 to vector<8x1xi32>
    %139 = arith.cmpi sgt, %26, %138 : vector<8x1xi32>
    %140 = arith.index_cast %137 : i32 to index
    %c0_86 = arith.constant 0 : index
    %c0_87 = arith.constant 0 : index
    %141 = vector.load %arg15[%140, %c0_86, %c0_87] : memref<8x8x512xf32, #tpu.memory_space<vmem>>, vector<1x8x512xf32>
    %142 = vector.shape_cast %141 : vector<1x8x512xf32> to vector<8x512xf32>
    %c0_88 = arith.constant 0 : index
    %c0_89 = arith.constant 0 : index
    %143 = vector.load %arg18[%c0_88, %c0_89] : memref<8x128xf32, #tpu.memory_space<vmem>>, vector<8x128xf32>
    %c0_90 = arith.constant 0 : index
    %c0_91 = arith.constant 0 : index
    %144 = vector.load %arg19[%c0_90, %c0_91] : memref<8x128xf32, #tpu.memory_space<vmem>>, vector<8x128xf32>
    %c0_92 = arith.constant 0 : index
    %c0_93 = arith.constant 0 : index
    %145 = vector.load %arg8[%c0_92, %c0_93] : memref<128x512xf32, #tpu.memory_space<vmem>>, vector<128x512xf32>
    %cst_94 = arith.constant dense<0.000000e+00> : vector<8x512xf32>
    %146 = tpu.matmul %143, %145, %cst_94 {dimension_numbers = #tpu.dot_dimension_numbers<[1], [0], [0], [1], [0, 0, 1, 1], [], []>} : vector<8x128xf32>, vector<128x512xf32>, vector<8x512xf32> -> vector<8x512xf32>
    %147 = arith.addf %142, %146 : vector<8x512xf32>
    %148 = vector.extract_strided_slice %147 {offsets = [0, 0], sizes = [8, 128], strides = [1, 1]} : vector<8x512xf32> to vector<8x128xf32>
    %149 = arith.negf %148 : vector<8x128xf32>
    %150 = math.exp %149 : vector<8x128xf32>
    %cst_95 = arith.constant 1.000000e+00 : f32
    %151 = vector.broadcast %cst_95 : f32 to vector<8x128xf32>
    %152 = arith.addf %151, %150 : vector<8x128xf32>
    %153 = arith.divf %151, %152 : vector<8x128xf32>
    %154 = vector.extract_strided_slice %147 {offsets = [0, 128], sizes = [8, 128], strides = [1, 1]} : vector<8x512xf32> to vector<8x128xf32>
    %155 = arith.negf %154 : vector<8x128xf32>
    %156 = math.exp %155 : vector<8x128xf32>
    %cst_96 = arith.constant 1.000000e+00 : f32
    %157 = vector.broadcast %cst_96 : f32 to vector<8x128xf32>
    %158 = arith.addf %157, %156 : vector<8x128xf32>
    %159 = arith.divf %157, %158 : vector<8x128xf32>
    %160 = vector.extract_strided_slice %147 {offsets = [0, 256], sizes = [8, 128], strides = [1, 1]} : vector<8x512xf32> to vector<8x128xf32>
    %161 = math.tanh %160 : vector<8x128xf32>
    %162 = vector.extract_strided_slice %147 {offsets = [0, 384], sizes = [8, 128], strides = [1, 1]} : vector<8x512xf32> to vector<8x128xf32>
    %163 = arith.negf %162 : vector<8x128xf32>
    %164 = math.exp %163 : vector<8x128xf32>
    %cst_97 = arith.constant 1.000000e+00 : f32
    %165 = vector.broadcast %cst_97 : f32 to vector<8x128xf32>
    %166 = arith.addf %165, %164 : vector<8x128xf32>
    %167 = arith.divf %165, %166 : vector<8x128xf32>
    %168 = arith.mulf %159, %144 : vector<8x128xf32>
    %169 = arith.mulf %153, %161 : vector<8x128xf32>
    %170 = arith.addf %168, %169 : vector<8x128xf32>
    %171 = math.tanh %170 : vector<8x128xf32>
    %172 = arith.mulf %167, %171 : vector<8x128xf32>
    %c0_98 = arith.constant 0 : index
    %c0_99 = arith.constant 0 : index
    %173 = vector.load %arg18[%c0_98, %c0_99] : memref<8x128xf32, #tpu.memory_space<vmem>>, vector<8x128xf32>
    %174 = vector.shape_cast %139 : vector<8x1xi1> to vector<8x1xi1>
    %175 = vector.broadcast %174 : vector<8x1xi1> to vector<8x128xi1>
    %176 = arith.select %175, %172, %173 : vector<8x128xi1>, vector<8x128xf32>
    %c0_100 = arith.constant 0 : index
    %c0_101 = arith.constant 0 : index
    %177 = vector.load %arg18[%c0_100, %c0_101] : memref<8x128xf32, #tpu.memory_space<vmem>>, vector<8x128xf32>
    tpu.vector_store %arg18[%c0_100, %c0_101], %176 {strides = array<i32>} : memref<8x128xf32, #tpu.memory_space<vmem>>, vector<8x128xf32>,
    %c0_102 = arith.constant 0 : index
    %c0_103 = arith.constant 0 : index
    %178 = vector.load %arg19[%c0_102, %c0_103] : memref<8x128xf32, #tpu.memory_space<vmem>>, vector<8x128xf32>
    %179 = vector.shape_cast %139 : vector<8x1xi1> to vector<8x1xi1>
    %180 = vector.broadcast %179 : vector<8x1xi1> to vector<8x128xi1>
    %181 = arith.select %180, %170, %178 : vector<8x128xi1>, vector<8x128xf32>
    %c0_104 = arith.constant 0 : index
    %c0_105 = arith.constant 0 : index
    %182 = vector.load %arg19[%c0_104, %c0_105] : memref<8x128xf32, #tpu.memory_space<vmem>>, vector<8x128xf32>
    tpu.vector_store %arg19[%c0_104, %c0_105], %181 {strides = array<i32>} : memref<8x128xf32, #tpu.memory_space<vmem>>, vector<8x128xf32>,
    %c0_106 = arith.constant 0 : index
    %c0_107 = arith.constant 0 : index
    %183 = vector.load %arg18[%c0_106, %c0_107] : memref<8x128xf32, #tpu.memory_space<vmem>>, vector<8x128xf32>
    %cst_108 = arith.constant 0.000000e+00 : f32
    %184 = vector.shape_cast %139 : vector<8x1xi1> to vector<8x1xi1>
    %185 = vector.broadcast %184 : vector<8x1xi1> to vector<8x128xi1>
    %186 = vector.broadcast %cst_108 : f32 to vector<8x128xf32>
    %187 = arith.select %185, %183, %186 : vector<8x128xi1>, vector<8x128xf32>
    %188 = arith.index_cast %137 : i32 to index
    %c0_109 = arith.constant 0 : index
    %c0_110 = arith.constant 0 : index
    %189 = vector.load %arg20[%188, %c0_109, %c0_110] : memref<8x8x128xf32, #tpu.memory_space<vmem>>, vector<1x8x128xf32>
    %190 = vector.shape_cast %189 : vector<1x8x128xf32> to vector<8x128xf32>
    %191 = vector.shape_cast %187 : vector<8x128xf32> to vector<1x8x128xf32>
    tpu.vector_store %arg20[%188, %c0_109, %c0_110], %191 {strides = array<i32>} : memref<8x8x128xf32, #tpu.memory_space<vmem>>, vector<1x8x128xf32>,
    %c3_i32 = arith.constant 3 : i32
    %c7_i32_111 = arith.constant 7 : i32
    %192 = arith.subi %c7_i32_111, %c3_i32 : i32
    %193 = vector.broadcast %192 : i32 to vector<8x1xi32>
    %194 = arith.cmpi sgt, %26, %193 : vector<8x1xi32>
    %195 = arith.index_cast %192 : i32 to index
    %c0_112 = arith.constant 0 : index
    %c0_113 = arith.constant 0 : index
    %196 = vector.load %arg15[%195, %c0_112, %c0_113] : memref<8x8x512xf32, #tpu.memory_space<vmem>>, vector<1x8x512xf32>
    %197 = vector.shape_cast %196 : vector<1x8x512xf32> to vector<8x512xf32>
    %c0_114 = arith.constant 0 : index
    %c0_115 = arith.constant 0 : index
    %198 = vector.load %arg18[%c0_114, %c0_115] : memref<8x128xf32, #tpu.memory_space<vmem>>, vector<8x128xf32>
    %c0_116 = arith.constant 0 : index
    %c0_117 = arith.constant 0 : index
    %199 = vector.load %arg19[%c0_116, %c0_117] : memref<8x128xf32, #tpu.memory_space<vmem>>, vector<8x128xf32>
    %c0_118 = arith.constant 0 : index
    %c0_119 = arith.constant 0 : index
    %200 = vector.load %arg8[%c0_118, %c0_119] : memref<128x512xf32, #tpu.memory_space<vmem>>, vector<128x512xf32>
    %cst_120 = arith.constant dense<0.000000e+00> : vector<8x512xf32>
    %201 = tpu.matmul %198, %200, %cst_120 {dimension_numbers = #tpu.dot_dimension_numbers<[1], [0], [0], [1], [0, 0, 1, 1], [], []>} : vector<8x128xf32>, vector<128x512xf32>, vector<8x512xf32> -> vector<8x512xf32>
    %202 = arith.addf %197, %201 : vector<8x512xf32>
    %203 = vector.extract_strided_slice %202 {offsets = [0, 0], sizes = [8, 128], strides = [1, 1]} : vector<8x512xf32> to vector<8x128xf32>
    %204 = arith.negf %203 : vector<8x128xf32>
    %205 = math.exp %204 : vector<8x128xf32>
    %cst_121 = arith.constant 1.000000e+00 : f32
    %206 = vector.broadcast %cst_121 : f32 to vector<8x128xf32>
    %207 = arith.addf %206, %205 : vector<8x128xf32>
    %208 = arith.divf %206, %207 : vector<8x128xf32>
    %209 = vector.extract_strided_slice %202 {offsets = [0, 128], sizes = [8, 128], strides = [1, 1]} : vector<8x512xf32> to vector<8x128xf32>
    %210 = arith.negf %209 : vector<8x128xf32>
    %211 = math.exp %210 : vector<8x128xf32>
    %cst_122 = arith.constant 1.000000e+00 : f32
    %212 = vector.broadcast %cst_122 : f32 to vector<8x128xf32>
    %213 = arith.addf %212, %211 : vector<8x128xf32>
    %214 = arith.divf %212, %213 : vector<8x128xf32>
    %215 = vector.extract_strided_slice %202 {offsets = [0, 256], sizes = [8, 128], strides = [1, 1]} : vector<8x512xf32> to vector<8x128xf32>
    %216 = math.tanh %215 : vector<8x128xf32>
    %217 = vector.extract_strided_slice %202 {offsets = [0, 384], sizes = [8, 128], strides = [1, 1]} : vector<8x512xf32> to vector<8x128xf32>
    %218 = arith.negf %217 : vector<8x128xf32>
    %219 = math.exp %218 : vector<8x128xf32>
    %cst_123 = arith.constant 1.000000e+00 : f32
    %220 = vector.broadcast %cst_123 : f32 to vector<8x128xf32>
    %221 = arith.addf %220, %219 : vector<8x128xf32>
    %222 = arith.divf %220, %221 : vector<8x128xf32>
    %223 = arith.mulf %214, %199 : vector<8x128xf32>
    %224 = arith.mulf %208, %216 : vector<8x128xf32>
    %225 = arith.addf %223, %224 : vector<8x128xf32>
    %226 = math.tanh %225 : vector<8x128xf32>
    %227 = arith.mulf %222, %226 : vector<8x128xf32>
    %c0_124 = arith.constant 0 : index
    %c0_125 = arith.constant 0 : index
    %228 = vector.load %arg18[%c0_124, %c0_125] : memref<8x128xf32, #tpu.memory_space<vmem>>, vector<8x128xf32>
    %229 = vector.shape_cast %194 : vector<8x1xi1> to vector<8x1xi1>
    %230 = vector.broadcast %229 : vector<8x1xi1> to vector<8x128xi1>
    %231 = arith.select %230, %227, %228 : vector<8x128xi1>, vector<8x128xf32>
    %c0_126 = arith.constant 0 : index
    %c0_127 = arith.constant 0 : index
    %232 = vector.load %arg18[%c0_126, %c0_127] : memref<8x128xf32, #tpu.memory_space<vmem>>, vector<8x128xf32>
    tpu.vector_store %arg18[%c0_126, %c0_127], %231 {strides = array<i32>} : memref<8x128xf32, #tpu.memory_space<vmem>>, vector<8x128xf32>,
    %c0_128 = arith.constant 0 : index
    %c0_129 = arith.constant 0 : index
    %233 = vector.load %arg19[%c0_128, %c0_129] : memref<8x128xf32, #tpu.memory_space<vmem>>, vector<8x128xf32>
    %234 = vector.shape_cast %194 : vector<8x1xi1> to vector<8x1xi1>
    %235 = vector.broadcast %234 : vector<8x1xi1> to vector<8x128xi1>
    %236 = arith.select %235, %225, %233 : vector<8x128xi1>, vector<8x128xf32>
    %c0_130 = arith.constant 0 : index
    %c0_131 = arith.constant 0 : index
    %237 = vector.load %arg19[%c0_130, %c0_131] : memref<8x128xf32, #tpu.memory_space<vmem>>, vector<8x128xf32>
    tpu.vector_store %arg19[%c0_130, %c0_131], %236 {strides = array<i32>} : memref<8x128xf32, #tpu.memory_space<vmem>>, vector<8x128xf32>,
    %c0_132 = arith.constant 0 : index
    %c0_133 = arith.constant 0 : index
    %238 = vector.load %arg18[%c0_132, %c0_133] : memref<8x128xf32, #tpu.memory_space<vmem>>, vector<8x128xf32>
    %cst_134 = arith.constant 0.000000e+00 : f32
    %239 = vector.shape_cast %194 : vector<8x1xi1> to vector<8x1xi1>
    %240 = vector.broadcast %239 : vector<8x1xi1> to vector<8x128xi1>
    %241 = vector.broadcast %cst_134 : f32 to vector<8x128xf32>
    %242 = arith.select %240, %238, %241 : vector<8x128xi1>, vector<8x128xf32>
    %243 = arith.index_cast %192 : i32 to index
    %c0_135 = arith.constant 0 : index
    %c0_136 = arith.constant 0 : index
    %244 = vector.load %arg20[%243, %c0_135, %c0_136] : memref<8x8x128xf32, #tpu.memory_space<vmem>>, vector<1x8x128xf32>
    %245 = vector.shape_cast %244 : vector<1x8x128xf32> to vector<8x128xf32>
    %246 = vector.shape_cast %242 : vector<8x128xf32> to vector<1x8x128xf32>
    tpu.vector_store %arg20[%243, %c0_135, %c0_136], %246 {strides = array<i32>} : memref<8x8x128xf32, #tpu.memory_space<vmem>>, vector<1x8x128xf32>,
    %c4_i32 = arith.constant 4 : i32
    %c7_i32_137 = arith.constant 7 : i32
    %247 = arith.subi %c7_i32_137, %c4_i32 : i32
    %248 = vector.broadcast %247 : i32 to vector<8x1xi32>
    %249 = arith.cmpi sgt, %26, %248 : vector<8x1xi32>
    %250 = arith.index_cast %247 : i32 to index
    %c0_138 = arith.constant 0 : index
    %c0_139 = arith.constant 0 : index
    %251 = vector.load %arg15[%250, %c0_138, %c0_139] : memref<8x8x512xf32, #tpu.memory_space<vmem>>, vector<1x8x512xf32>
    %252 = vector.shape_cast %251 : vector<1x8x512xf32> to vector<8x512xf32>
    %c0_140 = arith.constant 0 : index
    %c0_141 = arith.constant 0 : index
    %253 = vector.load %arg18[%c0_140, %c0_141] : memref<8x128xf32, #tpu.memory_space<vmem>>, vector<8x128xf32>
    %c0_142 = arith.constant 0 : index
    %c0_143 = arith.constant 0 : index
    %254 = vector.load %arg19[%c0_142, %c0_143] : memref<8x128xf32, #tpu.memory_space<vmem>>, vector<8x128xf32>
    %c0_144 = arith.constant 0 : index
    %c0_145 = arith.constant 0 : index
    %255 = vector.load %arg8[%c0_144, %c0_145] : memref<128x512xf32, #tpu.memory_space<vmem>>, vector<128x512xf32>
    %cst_146 = arith.constant dense<0.000000e+00> : vector<8x512xf32>
    %256 = tpu.matmul %253, %255, %cst_146 {dimension_numbers = #tpu.dot_dimension_numbers<[1], [0], [0], [1], [0, 0, 1, 1], [], []>} : vector<8x128xf32>, vector<128x512xf32>, vector<8x512xf32> -> vector<8x512xf32>
    %257 = arith.addf %252, %256 : vector<8x512xf32>
    %258 = vector.extract_strided_slice %257 {offsets = [0, 0], sizes = [8, 128], strides = [1, 1]} : vector<8x512xf32> to vector<8x128xf32>
    %259 = arith.negf %258 : vector<8x128xf32>
    %260 = math.exp %259 : vector<8x128xf32>
    %cst_147 = arith.constant 1.000000e+00 : f32
    %261 = vector.broadcast %cst_147 : f32 to vector<8x128xf32>
    %262 = arith.addf %261, %260 : vector<8x128xf32>
    %263 = arith.divf %261, %262 : vector<8x128xf32>
    %264 = vector.extract_strided_slice %257 {offsets = [0, 128], sizes = [8, 128], strides = [1, 1]} : vector<8x512xf32> to vector<8x128xf32>
    %265 = arith.negf %264 : vector<8x128xf32>
    %266 = math.exp %265 : vector<8x128xf32>
    %cst_148 = arith.constant 1.000000e+00 : f32
    %267 = vector.broadcast %cst_148 : f32 to vector<8x128xf32>
    %268 = arith.addf %267, %266 : vector<8x128xf32>
    %269 = arith.divf %267, %268 : vector<8x128xf32>
    %270 = vector.extract_strided_slice %257 {offsets = [0, 256], sizes = [8, 128], strides = [1, 1]} : vector<8x512xf32> to vector<8x128xf32>
    %271 = math.tanh %270 : vector<8x128xf32>
    %272 = vector.extract_strided_slice %257 {offsets = [0, 384], sizes = [8, 128], strides = [1, 1]} : vector<8x512xf32> to vector<8x128xf32>
    %273 = arith.negf %272 : vector<8x128xf32>
    %274 = math.exp %273 : vector<8x128xf32>
    %cst_149 = arith.constant 1.000000e+00 : f32
    %275 = vector.broadcast %cst_149 : f32 to vector<8x128xf32>
    %276 = arith.addf %275, %274 : vector<8x128xf32>
    %277 = arith.divf %275, %276 : vector<8x128xf32>
    %278 = arith.mulf %269, %254 : vector<8x128xf32>
    %279 = arith.mulf %263, %271 : vector<8x128xf32>
    %280 = arith.addf %278, %279 : vector<8x128xf32>
    %281 = math.tanh %280 : vector<8x128xf32>
    %282 = arith.mulf %277, %281 : vector<8x128xf32>
    %c0_150 = arith.constant 0 : index
    %c0_151 = arith.constant 0 : index
    %283 = vector.load %arg18[%c0_150, %c0_151] : memref<8x128xf32, #tpu.memory_space<vmem>>, vector<8x128xf32>
    %284 = vector.shape_cast %249 : vector<8x1xi1> to vector<8x1xi1>
    %285 = vector.broadcast %284 : vector<8x1xi1> to vector<8x128xi1>
    %286 = arith.select %285, %282, %283 : vector<8x128xi1>, vector<8x128xf32>
    %c0_152 = arith.constant 0 : index
    %c0_153 = arith.constant 0 : index
    %287 = vector.load %arg18[%c0_152, %c0_153] : memref<8x128xf32, #tpu.memory_space<vmem>>, vector<8x128xf32>
    tpu.vector_store %arg18[%c0_152, %c0_153], %286 {strides = array<i32>} : memref<8x128xf32, #tpu.memory_space<vmem>>, vector<8x128xf32>,
    %c0_154 = arith.constant 0 : index
    %c0_155 = arith.constant 0 : index
    %288 = vector.load %arg19[%c0_154, %c0_155] : memref<8x128xf32, #tpu.memory_space<vmem>>, vector<8x128xf32>
    %289 = vector.shape_cast %249 : vector<8x1xi1> to vector<8x1xi1>
    %290 = vector.broadcast %289 : vector<8x1xi1> to vector<8x128xi1>
    %291 = arith.select %290, %280, %288 : vector<8x128xi1>, vector<8x128xf32>
    %c0_156 = arith.constant 0 : index
    %c0_157 = arith.constant 0 : index
    %292 = vector.load %arg19[%c0_156, %c0_157] : memref<8x128xf32, #tpu.memory_space<vmem>>, vector<8x128xf32>
    tpu.vector_store %arg19[%c0_156, %c0_157], %291 {strides = array<i32>} : memref<8x128xf32, #tpu.memory_space<vmem>>, vector<8x128xf32>,
    %c0_158 = arith.constant 0 : index
    %c0_159 = arith.constant 0 : index
    %293 = vector.load %arg18[%c0_158, %c0_159] : memref<8x128xf32, #tpu.memory_space<vmem>>, vector<8x128xf32>
    %cst_160 = arith.constant 0.000000e+00 : f32
    %294 = vector.shape_cast %249 : vector<8x1xi1> to vector<8x1xi1>
    %295 = vector.broadcast %294 : vector<8x1xi1> to vector<8x128xi1>
    %296 = vector.broadcast %cst_160 : f32 to vector<8x128xf32>
    %297 = arith.select %295, %293, %296 : vector<8x128xi1>, vector<8x128xf32>
    %298 = arith.index_cast %247 : i32 to index
    %c0_161 = arith.constant 0 : index
    %c0_162 = arith.constant 0 : index
    %299 = vector.load %arg20[%298, %c0_161, %c0_162] : memref<8x8x128xf32, #tpu.memory_space<vmem>>, vector<1x8x128xf32>
    %300 = vector.shape_cast %299 : vector<1x8x128xf32> to vector<8x128xf32>
    %301 = vector.shape_cast %297 : vector<8x128xf32> to vector<1x8x128xf32>
    tpu.vector_store %arg20[%298, %c0_161, %c0_162], %301 {strides = array<i32>} : memref<8x8x128xf32, #tpu.memory_space<vmem>>, vector<1x8x128xf32>,
    %c5_i32 = arith.constant 5 : i32
    %c7_i32_163 = arith.constant 7 : i32
    %302 = arith.subi %c7_i32_163, %c5_i32 : i32
    %303 = vector.broadcast %302 : i32 to vector<8x1xi32>
    %304 = arith.cmpi sgt, %26, %303 : vector<8x1xi32>
    %305 = arith.index_cast %302 : i32 to index
    %c0_164 = arith.constant 0 : index
    %c0_165 = arith.constant 0 : index
    %306 = vector.load %arg15[%305, %c0_164, %c0_165] : memref<8x8x512xf32, #tpu.memory_space<vmem>>, vector<1x8x512xf32>
    %307 = vector.shape_cast %306 : vector<1x8x512xf32> to vector<8x512xf32>
    %c0_166 = arith.constant 0 : index
    %c0_167 = arith.constant 0 : index
    %308 = vector.load %arg18[%c0_166, %c0_167] : memref<8x128xf32, #tpu.memory_space<vmem>>, vector<8x128xf32>
    %c0_168 = arith.constant 0 : index
    %c0_169 = arith.constant 0 : index
    %309 = vector.load %arg19[%c0_168, %c0_169] : memref<8x128xf32, #tpu.memory_space<vmem>>, vector<8x128xf32>
    %c0_170 = arith.constant 0 : index
    %c0_171 = arith.constant 0 : index
    %310 = vector.load %arg8[%c0_170, %c0_171] : memref<128x512xf32, #tpu.memory_space<vmem>>, vector<128x512xf32>
    %cst_172 = arith.constant dense<0.000000e+00> : vector<8x512xf32>
    %311 = tpu.matmul %308, %310, %cst_172 {dimension_numbers = #tpu.dot_dimension_numbers<[1], [0], [0], [1], [0, 0, 1, 1], [], []>} : vector<8x128xf32>, vector<128x512xf32>, vector<8x512xf32> -> vector<8x512xf32>
    %312 = arith.addf %307, %311 : vector<8x512xf32>
    %313 = vector.extract_strided_slice %312 {offsets = [0, 0], sizes = [8, 128], strides = [1, 1]} : vector<8x512xf32> to vector<8x128xf32>
    %314 = arith.negf %313 : vector<8x128xf32>
    %315 = math.exp %314 : vector<8x128xf32>
    %cst_173 = arith.constant 1.000000e+00 : f32
    %316 = vector.broadcast %cst_173 : f32 to vector<8x128xf32>
    %317 = arith.addf %316, %315 : vector<8x128xf32>
    %318 = arith.divf %316, %317 : vector<8x128xf32>
    %319 = vector.extract_strided_slice %312 {offsets = [0, 128], sizes = [8, 128], strides = [1, 1]} : vector<8x512xf32> to vector<8x128xf32>
    %320 = arith.negf %319 : vector<8x128xf32>
    %321 = math.exp %320 : vector<8x128xf32>
    %cst_174 = arith.constant 1.000000e+00 : f32
    %322 = vector.broadcast %cst_174 : f32 to vector<8x128xf32>
    %323 = arith.addf %322, %321 : vector<8x128xf32>
    %324 = arith.divf %322, %323 : vector<8x128xf32>
    %325 = vector.extract_strided_slice %312 {offsets = [0, 256], sizes = [8, 128], strides = [1, 1]} : vector<8x512xf32> to vector<8x128xf32>
    %326 = math.tanh %325 : vector<8x128xf32>
    %327 = vector.extract_strided_slice %312 {offsets = [0, 384], sizes = [8, 128], strides = [1, 1]} : vector<8x512xf32> to vector<8x128xf32>
    %328 = arith.negf %327 : vector<8x128xf32>
    %329 = math.exp %328 : vector<8x128xf32>
    %cst_175 = arith.constant 1.000000e+00 : f32
    %330 = vector.broadcast %cst_175 : f32 to vector<8x128xf32>
    %331 = arith.addf %330, %329 : vector<8x128xf32>
    %332 = arith.divf %330, %331 : vector<8x128xf32>
    %333 = arith.mulf %324, %309 : vector<8x128xf32>
    %334 = arith.mulf %318, %326 : vector<8x128xf32>
    %335 = arith.addf %333, %334 : vector<8x128xf32>
    %336 = math.tanh %335 : vector<8x128xf32>
    %337 = arith.mulf %332, %336 : vector<8x128xf32>
    %c0_176 = arith.constant 0 : index
    %c0_177 = arith.constant 0 : index
    %338 = vector.load %arg18[%c0_176, %c0_177] : memref<8x128xf32, #tpu.memory_space<vmem>>, vector<8x128xf32>
    %339 = vector.shape_cast %304 : vector<8x1xi1> to vector<8x1xi1>
    %340 = vector.broadcast %339 : vector<8x1xi1> to vector<8x128xi1>
    %341 = arith.select %340, %337, %338 : vector<8x128xi1>, vector<8x128xf32>
    %c0_178 = arith.constant 0 : index
    %c0_179 = arith.constant 0 : index
    %342 = vector.load %arg18[%c0_178, %c0_179] : memref<8x128xf32, #tpu.memory_space<vmem>>, vector<8x128xf32>
    tpu.vector_store %arg18[%c0_178, %c0_179], %341 {strides = array<i32>} : memref<8x128xf32, #tpu.memory_space<vmem>>, vector<8x128xf32>,
    %c0_180 = arith.constant 0 : index
    %c0_181 = arith.constant 0 : index
    %343 = vector.load %arg19[%c0_180, %c0_181] : memref<8x128xf32, #tpu.memory_space<vmem>>, vector<8x128xf32>
    %344 = vector.shape_cast %304 : vector<8x1xi1> to vector<8x1xi1>
    %345 = vector.broadcast %344 : vector<8x1xi1> to vector<8x128xi1>
    %346 = arith.select %345, %335, %343 : vector<8x128xi1>, vector<8x128xf32>
    %c0_182 = arith.constant 0 : index
    %c0_183 = arith.constant 0 : index
    %347 = vector.load %arg19[%c0_182, %c0_183] : memref<8x128xf32, #tpu.memory_space<vmem>>, vector<8x128xf32>
    tpu.vector_store %arg19[%c0_182, %c0_183], %346 {strides = array<i32>} : memref<8x128xf32, #tpu.memory_space<vmem>>, vector<8x128xf32>,
    %c0_184 = arith.constant 0 : index
    %c0_185 = arith.constant 0 : index
    %348 = vector.load %arg18[%c0_184, %c0_185] : memref<8x128xf32, #tpu.memory_space<vmem>>, vector<8x128xf32>
    %cst_186 = arith.constant 0.000000e+00 : f32
    %349 = vector.shape_cast %304 : vector<8x1xi1> to vector<8x1xi1>
    %350 = vector.broadcast %349 : vector<8x1xi1> to vector<8x128xi1>
    %351 = vector.broadcast %cst_186 : f32 to vector<8x128xf32>
    %352 = arith.select %350, %348, %351 : vector<8x128xi1>, vector<8x128xf32>
    %353 = arith.index_cast %302 : i32 to index
    %c0_187 = arith.constant 0 : index
    %c0_188 = arith.constant 0 : index
    %354 = vector.load %arg20[%353, %c0_187, %c0_188] : memref<8x8x128xf32, #tpu.memory_space<vmem>>, vector<1x8x128xf32>
    %355 = vector.shape_cast %354 : vector<1x8x128xf32> to vector<8x128xf32>
    %356 = vector.shape_cast %352 : vector<8x128xf32> to vector<1x8x128xf32>
    tpu.vector_store %arg20[%353, %c0_187, %c0_188], %356 {strides = array<i32>} : memref<8x8x128xf32, #tpu.memory_space<vmem>>, vector<1x8x128xf32>,
    %c6_i32 = arith.constant 6 : i32
    %c7_i32_189 = arith.constant 7 : i32
    %357 = arith.subi %c7_i32_189, %c6_i32 : i32
    %358 = vector.broadcast %357 : i32 to vector<8x1xi32>
    %359 = arith.cmpi sgt, %26, %358 : vector<8x1xi32>
    %360 = arith.index_cast %357 : i32 to index
    %c0_190 = arith.constant 0 : index
    %c0_191 = arith.constant 0 : index
    %361 = vector.load %arg15[%360, %c0_190, %c0_191] : memref<8x8x512xf32, #tpu.memory_space<vmem>>, vector<1x8x512xf32>
    %362 = vector.shape_cast %361 : vector<1x8x512xf32> to vector<8x512xf32>
    %c0_192 = arith.constant 0 : index
    %c0_193 = arith.constant 0 : index
    %363 = vector.load %arg18[%c0_192, %c0_193] : memref<8x128xf32, #tpu.memory_space<vmem>>, vector<8x128xf32>
    %c0_194 = arith.constant 0 : index
    %c0_195 = arith.constant 0 : index
    %364 = vector.load %arg19[%c0_194, %c0_195] : memref<8x128xf32, #tpu.memory_space<vmem>>, vector<8x128xf32>
    %c0_196 = arith.constant 0 : index
    %c0_197 = arith.constant 0 : index
    %365 = vector.load %arg8[%c0_196, %c0_197] : memref<128x512xf32, #tpu.memory_space<vmem>>, vector<128x512xf32>
    %cst_198 = arith.constant dense<0.000000e+00> : vector<8x512xf32>
    %366 = tpu.matmul %363, %365, %cst_198 {dimension_numbers = #tpu.dot_dimension_numbers<[1], [0], [0], [1], [0, 0, 1, 1], [], []>} : vector<8x128xf32>, vector<128x512xf32>, vector<8x512xf32> -> vector<8x512xf32>
    %367 = arith.addf %362, %366 : vector<8x512xf32>
    %368 = vector.extract_strided_slice %367 {offsets = [0, 0], sizes = [8, 128], strides = [1, 1]} : vector<8x512xf32> to vector<8x128xf32>
    %369 = arith.negf %368 : vector<8x128xf32>
    %370 = math.exp %369 : vector<8x128xf32>
    %cst_199 = arith.constant 1.000000e+00 : f32
    %371 = vector.broadcast %cst_199 : f32 to vector<8x128xf32>
    %372 = arith.addf %371, %370 : vector<8x128xf32>
    %373 = arith.divf %371, %372 : vector<8x128xf32>
    %374 = vector.extract_strided_slice %367 {offsets = [0, 128], sizes = [8, 128], strides = [1, 1]} : vector<8x512xf32> to vector<8x128xf32>
    %375 = arith.negf %374 : vector<8x128xf32>
    %376 = math.exp %375 : vector<8x128xf32>
    %cst_200 = arith.constant 1.000000e+00 : f32
    %377 = vector.broadcast %cst_200 : f32 to vector<8x128xf32>
    %378 = arith.addf %377, %376 : vector<8x128xf32>
    %379 = arith.divf %377, %378 : vector<8x128xf32>
    %380 = vector.extract_strided_slice %367 {offsets = [0, 256], sizes = [8, 128], strides = [1, 1]} : vector<8x512xf32> to vector<8x128xf32>
    %381 = math.tanh %380 : vector<8x128xf32>
    %382 = vector.extract_strided_slice %367 {offsets = [0, 384], sizes = [8, 128], strides = [1, 1]} : vector<8x512xf32> to vector<8x128xf32>
    %383 = arith.negf %382 : vector<8x128xf32>
    %384 = math.exp %383 : vector<8x128xf32>
    %cst_201 = arith.constant 1.000000e+00 : f32
    %385 = vector.broadcast %cst_201 : f32 to vector<8x128xf32>
    %386 = arith.addf %385, %384 : vector<8x128xf32>
    %387 = arith.divf %385, %386 : vector<8x128xf32>
    %388 = arith.mulf %379, %364 : vector<8x128xf32>
    %389 = arith.mulf %373, %381 : vector<8x128xf32>
    %390 = arith.addf %388, %389 : vector<8x128xf32>
    %391 = math.tanh %390 : vector<8x128xf32>
    %392 = arith.mulf %387, %391 : vector<8x128xf32>
    %c0_202 = arith.constant 0 : index
    %c0_203 = arith.constant 0 : index
    %393 = vector.load %arg18[%c0_202, %c0_203] : memref<8x128xf32, #tpu.memory_space<vmem>>, vector<8x128xf32>
    %394 = vector.shape_cast %359 : vector<8x1xi1> to vector<8x1xi1>
    %395 = vector.broadcast %394 : vector<8x1xi1> to vector<8x128xi1>
    %396 = arith.select %395, %392, %393 : vector<8x128xi1>, vector<8x128xf32>
    %c0_204 = arith.constant 0 : index
    %c0_205 = arith.constant 0 : index
    %397 = vector.load %arg18[%c0_204, %c0_205] : memref<8x128xf32, #tpu.memory_space<vmem>>, vector<8x128xf32>
    tpu.vector_store %arg18[%c0_204, %c0_205], %396 {strides = array<i32>} : memref<8x128xf32, #tpu.memory_space<vmem>>, vector<8x128xf32>,
    %c0_206 = arith.constant 0 : index
    %c0_207 = arith.constant 0 : index
    %398 = vector.load %arg19[%c0_206, %c0_207] : memref<8x128xf32, #tpu.memory_space<vmem>>, vector<8x128xf32>
    %399 = vector.shape_cast %359 : vector<8x1xi1> to vector<8x1xi1>
    %400 = vector.broadcast %399 : vector<8x1xi1> to vector<8x128xi1>
    %401 = arith.select %400, %390, %398 : vector<8x128xi1>, vector<8x128xf32>
    %c0_208 = arith.constant 0 : index
    %c0_209 = arith.constant 0 : index
    %402 = vector.load %arg19[%c0_208, %c0_209] : memref<8x128xf32, #tpu.memory_space<vmem>>, vector<8x128xf32>
    tpu.vector_store %arg19[%c0_208, %c0_209], %401 {strides = array<i32>} : memref<8x128xf32, #tpu.memory_space<vmem>>, vector<8x128xf32>,
    %c0_210 = arith.constant 0 : index
    %c0_211 = arith.constant 0 : index
    %403 = vector.load %arg18[%c0_210, %c0_211] : memref<8x128xf32, #tpu.memory_space<vmem>>, vector<8x128xf32>
    %cst_212 = arith.constant 0.000000e+00 : f32
    %404 = vector.shape_cast %359 : vector<8x1xi1> to vector<8x1xi1>
    %405 = vector.broadcast %404 : vector<8x1xi1> to vector<8x128xi1>
    %406 = vector.broadcast %cst_212 : f32 to vector<8x128xf32>
    %407 = arith.select %405, %403, %406 : vector<8x128xi1>, vector<8x128xf32>
    %408 = arith.index_cast %357 : i32 to index
    %c0_213 = arith.constant 0 : index
    %c0_214 = arith.constant 0 : index
    %409 = vector.load %arg20[%408, %c0_213, %c0_214] : memref<8x8x128xf32, #tpu.memory_space<vmem>>, vector<1x8x128xf32>
    %410 = vector.shape_cast %409 : vector<1x8x128xf32> to vector<8x128xf32>
    %411 = vector.shape_cast %407 : vector<8x128xf32> to vector<1x8x128xf32>
    tpu.vector_store %arg20[%408, %c0_213, %c0_214], %411 {strides = array<i32>} : memref<8x8x128xf32, #tpu.memory_space<vmem>>, vector<1x8x128xf32>,
    %c7_i32_215 = arith.constant 7 : i32
    %c7_i32_216 = arith.constant 7 : i32
    %412 = arith.subi %c7_i32_216, %c7_i32_215 : i32
    %413 = vector.broadcast %412 : i32 to vector<8x1xi32>
    %414 = arith.cmpi sgt, %26, %413 : vector<8x1xi32>
    %415 = arith.index_cast %412 : i32 to index
    %c0_217 = arith.constant 0 : index
    %c0_218 = arith.constant 0 : index
    %416 = vector.load %arg15[%415, %c0_217, %c0_218] : memref<8x8x512xf32, #tpu.memory_space<vmem>>, vector<1x8x512xf32>
    %417 = vector.shape_cast %416 : vector<1x8x512xf32> to vector<8x512xf32>
    %c0_219 = arith.constant 0 : index
    %c0_220 = arith.constant 0 : index
    %418 = vector.load %arg18[%c0_219, %c0_220] : memref<8x128xf32, #tpu.memory_space<vmem>>, vector<8x128xf32>
    %c0_221 = arith.constant 0 : index
    %c0_222 = arith.constant 0 : index
    %419 = vector.load %arg19[%c0_221, %c0_222] : memref<8x128xf32, #tpu.memory_space<vmem>>, vector<8x128xf32>
    %c0_223 = arith.constant 0 : index
    %c0_224 = arith.constant 0 : index
    %420 = vector.load %arg8[%c0_223, %c0_224] : memref<128x512xf32, #tpu.memory_space<vmem>>, vector<128x512xf32>
    %cst_225 = arith.constant dense<0.000000e+00> : vector<8x512xf32>
    %421 = tpu.matmul %418, %420, %cst_225 {dimension_numbers = #tpu.dot_dimension_numbers<[1], [0], [0], [1], [0, 0, 1, 1], [], []>} : vector<8x128xf32>, vector<128x512xf32>, vector<8x512xf32> -> vector<8x512xf32>
    %422 = arith.addf %417, %421 : vector<8x512xf32>
    %423 = vector.extract_strided_slice %422 {offsets = [0, 0], sizes = [8, 128], strides = [1, 1]} : vector<8x512xf32> to vector<8x128xf32>
    %424 = arith.negf %423 : vector<8x128xf32>
    %425 = math.exp %424 : vector<8x128xf32>
    %cst_226 = arith.constant 1.000000e+00 : f32
    %426 = vector.broadcast %cst_226 : f32 to vector<8x128xf32>
    %427 = arith.addf %426, %425 : vector<8x128xf32>
    %428 = arith.divf %426, %427 : vector<8x128xf32>
    %429 = vector.extract_strided_slice %422 {offsets = [0, 128], sizes = [8, 128], strides = [1, 1]} : vector<8x512xf32> to vector<8x128xf32>
    %430 = arith.negf %429 : vector<8x128xf32>
    %431 = math.exp %430 : vector<8x128xf32>
    %cst_227 = arith.constant 1.000000e+00 : f32
    %432 = vector.broadcast %cst_227 : f32 to vector<8x128xf32>
    %433 = arith.addf %432, %431 : vector<8x128xf32>
    %434 = arith.divf %432, %433 : vector<8x128xf32>
    %435 = vector.extract_strided_slice %422 {offsets = [0, 256], sizes = [8, 128], strides = [1, 1]} : vector<8x512xf32> to vector<8x128xf32>
    %436 = math.tanh %435 : vector<8x128xf32>
    %437 = vector.extract_strided_slice %422 {offsets = [0, 384], sizes = [8, 128], strides = [1, 1]} : vector<8x512xf32> to vector<8x128xf32>
    %438 = arith.negf %437 : vector<8x128xf32>
    %439 = math.exp %438 : vector<8x128xf32>
    %cst_228 = arith.constant 1.000000e+00 : f32
    %440 = vector.broadcast %cst_228 : f32 to vector<8x128xf32>
    %441 = arith.addf %440, %439 : vector<8x128xf32>
    %442 = arith.divf %440, %441 : vector<8x128xf32>
    %443 = arith.mulf %434, %419 : vector<8x128xf32>
    %444 = arith.mulf %428, %436 : vector<8x128xf32>
    %445 = arith.addf %443, %444 : vector<8x128xf32>
    %446 = math.tanh %445 : vector<8x128xf32>
    %447 = arith.mulf %442, %446 : vector<8x128xf32>
    %c0_229 = arith.constant 0 : index
    %c0_230 = arith.constant 0 : index
    %448 = vector.load %arg18[%c0_229, %c0_230] : memref<8x128xf32, #tpu.memory_space<vmem>>, vector<8x128xf32>
    %449 = vector.shape_cast %414 : vector<8x1xi1> to vector<8x1xi1>
    %450 = vector.broadcast %449 : vector<8x1xi1> to vector<8x128xi1>
    %451 = arith.select %450, %447, %448 : vector<8x128xi1>, vector<8x128xf32>
    %c0_231 = arith.constant 0 : index
    %c0_232 = arith.constant 0 : index
    %452 = vector.load %arg18[%c0_231, %c0_232] : memref<8x128xf32, #tpu.memory_space<vmem>>, vector<8x128xf32>
    tpu.vector_store %arg18[%c0_231, %c0_232], %451 {strides = array<i32>} : memref<8x128xf32, #tpu.memory_space<vmem>>, vector<8x128xf32>,
    %c0_233 = arith.constant 0 : index
    %c0_234 = arith.constant 0 : index
    %453 = vector.load %arg19[%c0_233, %c0_234] : memref<8x128xf32, #tpu.memory_space<vmem>>, vector<8x128xf32>
    %454 = vector.shape_cast %414 : vector<8x1xi1> to vector<8x1xi1>
    %455 = vector.broadcast %454 : vector<8x1xi1> to vector<8x128xi1>
    %456 = arith.select %455, %445, %453 : vector<8x128xi1>, vector<8x128xf32>
    %c0_235 = arith.constant 0 : index
    %c0_236 = arith.constant 0 : index
    %457 = vector.load %arg19[%c0_235, %c0_236] : memref<8x128xf32, #tpu.memory_space<vmem>>, vector<8x128xf32>
    tpu.vector_store %arg19[%c0_235, %c0_236], %456 {strides = array<i32>} : memref<8x128xf32, #tpu.memory_space<vmem>>, vector<8x128xf32>,
    %c0_237 = arith.constant 0 : index
    %c0_238 = arith.constant 0 : index
    %458 = vector.load %arg18[%c0_237, %c0_238] : memref<8x128xf32, #tpu.memory_space<vmem>>, vector<8x128xf32>
    %cst_239 = arith.constant 0.000000e+00 : f32
    %459 = vector.shape_cast %414 : vector<8x1xi1> to vector<8x1xi1>
    %460 = vector.broadcast %459 : vector<8x1xi1> to vector<8x128xi1>
    %461 = vector.broadcast %cst_239 : f32 to vector<8x128xf32>
    %462 = arith.select %460, %458, %461 : vector<8x128xi1>, vector<8x128xf32>
    %463 = arith.index_cast %412 : i32 to index
    %c0_240 = arith.constant 0 : index
    %c0_241 = arith.constant 0 : index
    %464 = vector.load %arg20[%463, %c0_240, %c0_241] : memref<8x8x128xf32, #tpu.memory_space<vmem>>, vector<1x8x128xf32>
    %465 = vector.shape_cast %464 : vector<1x8x128xf32> to vector<8x128xf32>
    %466 = vector.shape_cast %462 : vector<8x128xf32> to vector<1x8x128xf32>
    tpu.vector_store %arg20[%463, %c0_240, %c0_241], %466 {strides = array<i32>} : memref<8x8x128xf32, #tpu.memory_space<vmem>>, vector<1x8x128xf32>,
    %c8_i32 = arith.constant 8 : i32
    %467 = tpu.iota {dimensions = array<i32: 1>} : vector<8x128xi32>
    %c0_i32_242 = arith.constant 0 : i32
    %468 = vector.broadcast %c0_i32_242 : i32 to vector<8x1xi32>
    %469 = arith.cmpi sgt, %26, %468 : vector<8x1xi32>
    %470 = arith.index_cast %c0_i32_242 : i32 to index
    %c0_243 = arith.constant 0 : index
    %c0_244 = arith.constant 0 : index
    %471 = vector.load %arg14[%470, %c0_243, %c0_244] : memref<8x8x512xf32, #tpu.memory_space<vmem>>, vector<1x8x512xf32>
    %472 = vector.shape_cast %471 : vector<1x8x512xf32> to vector<8x512xf32>
    %c0_245 = arith.constant 0 : index
    %c0_246 = arith.constant 0 : index
    %473 = vector.load %arg16[%c0_245, %c0_246] : memref<8x128xf32, #tpu.memory_space<vmem>>, vector<8x128xf32>
    %c0_247 = arith.constant 0 : index
    %c0_248 = arith.constant 0 : index
    %474 = vector.load %arg17[%c0_247, %c0_248] : memref<8x128xf32, #tpu.memory_space<vmem>>, vector<8x128xf32>
    %c0_249 = arith.constant 0 : index
    %c0_250 = arith.constant 0 : index
    %475 = vector.load %arg5[%c0_249, %c0_250] : memref<128x512xf32, #tpu.memory_space<vmem>>, vector<128x512xf32>
    %cst_251 = arith.constant dense<0.000000e+00> : vector<8x512xf32>
    %476 = tpu.matmul %473, %475, %cst_251 {dimension_numbers = #tpu.dot_dimension_numbers<[1], [0], [0], [1], [0, 0, 1, 1], [], []>} : vector<8x128xf32>, vector<128x512xf32>, vector<8x512xf32> -> vector<8x512xf32>
    %477 = arith.addf %472, %476 : vector<8x512xf32>
    %478 = vector.extract_strided_slice %477 {offsets = [0, 0], sizes = [8, 128], strides = [1, 1]} : vector<8x512xf32> to vector<8x128xf32>
    %479 = arith.negf %478 : vector<8x128xf32>
    %480 = math.exp %479 : vector<8x128xf32>
    %cst_252 = arith.constant 1.000000e+00 : f32
    %481 = vector.broadcast %cst_252 : f32 to vector<8x128xf32>
    %482 = arith.addf %481, %480 : vector<8x128xf32>
    %483 = arith.divf %481, %482 : vector<8x128xf32>
    %484 = vector.extract_strided_slice %477 {offsets = [0, 128], sizes = [8, 128], strides = [1, 1]} : vector<8x512xf32> to vector<8x128xf32>
    %485 = arith.negf %484 : vector<8x128xf32>
    %486 = math.exp %485 : vector<8x128xf32>
    %cst_253 = arith.constant 1.000000e+00 : f32
    %487 = vector.broadcast %cst_253 : f32 to vector<8x128xf32>
    %488 = arith.addf %487, %486 : vector<8x128xf32>
    %489 = arith.divf %487, %488 : vector<8x128xf32>
    %490 = vector.extract_strided_slice %477 {offsets = [0, 256], sizes = [8, 128], strides = [1, 1]} : vector<8x512xf32> to vector<8x128xf32>
    %491 = math.tanh %490 : vector<8x128xf32>
    %492 = vector.extract_strided_slice %477 {offsets = [0, 384], sizes = [8, 128], strides = [1, 1]} : vector<8x512xf32> to vector<8x128xf32>
    %493 = arith.negf %492 : vector<8x128xf32>
    %494 = math.exp %493 : vector<8x128xf32>
    %cst_254 = arith.constant 1.000000e+00 : f32
    %495 = vector.broadcast %cst_254 : f32 to vector<8x128xf32>
    %496 = arith.addf %495, %494 : vector<8x128xf32>
    %497 = arith.divf %495, %496 : vector<8x128xf32>
    %498 = arith.mulf %489, %474 : vector<8x128xf32>
    %499 = arith.mulf %483, %491 : vector<8x128xf32>
    %500 = arith.addf %498, %499 : vector<8x128xf32>
    %501 = math.tanh %500 : vector<8x128xf32>
    %502 = arith.mulf %497, %501 : vector<8x128xf32>
    %c0_255 = arith.constant 0 : index
    %c0_256 = arith.constant 0 : index
    %503 = vector.load %arg16[%c0_255, %c0_256] : memref<8x128xf32, #tpu.memory_space<vmem>>, vector<8x128xf32>
    %504 = vector.shape_cast %469 : vector<8x1xi1> to vector<8x1xi1>
    %505 = vector.broadcast %504 : vector<8x1xi1> to vector<8x128xi1>
    %506 = arith.select %505, %502, %503 : vector<8x128xi1>, vector<8x128xf32>
    %c0_257 = arith.constant 0 : index
    %c0_258 = arith.constant 0 : index
    %507 = vector.load %arg16[%c0_257, %c0_258] : memref<8x128xf32, #tpu.memory_space<vmem>>, vector<8x128xf32>
    tpu.vector_store %arg16[%c0_257, %c0_258], %506 {strides = array<i32>} : memref<8x128xf32, #tpu.memory_space<vmem>>, vector<8x128xf32>,
    %c0_259 = arith.constant 0 : index
    %c0_260 = arith.constant 0 : index
    %508 = vector.load %arg17[%c0_259, %c0_260] : memref<8x128xf32, #tpu.memory_space<vmem>>, vector<8x128xf32>
    %509 = vector.shape_cast %469 : vector<8x1xi1> to vector<8x1xi1>
    %510 = vector.broadcast %509 : vector<8x1xi1> to vector<8x128xi1>
    %511 = arith.select %510, %500, %508 : vector<8x128xi1>, vector<8x128xf32>
    %c0_261 = arith.constant 0 : index
    %c0_262 = arith.constant 0 : index
    %512 = vector.load %arg17[%c0_261, %c0_262] : memref<8x128xf32, #tpu.memory_space<vmem>>, vector<8x128xf32>
    tpu.vector_store %arg17[%c0_261, %c0_262], %511 {strides = array<i32>} : memref<8x128xf32, #tpu.memory_space<vmem>>, vector<8x128xf32>,
    %c0_263 = arith.constant 0 : index
    %c0_264 = arith.constant 0 : index
    %513 = vector.load %arg16[%c0_263, %c0_264] : memref<8x128xf32, #tpu.memory_space<vmem>>, vector<8x128xf32>
    %cst_265 = arith.constant 0.000000e+00 : f32
    %514 = vector.shape_cast %469 : vector<8x1xi1> to vector<8x1xi1>
    %515 = vector.broadcast %514 : vector<8x1xi1> to vector<8x128xi1>
    %516 = vector.broadcast %cst_265 : f32 to vector<8x128xf32>
    %517 = arith.select %515, %513, %516 : vector<8x128xi1>, vector<8x128xf32>
    %518 = arith.index_cast %c0_i32_242 : i32 to index
    %c0_266 = arith.constant 0 : index
    %c0_267 = arith.constant 0 : index
    %519 = vector.load %arg20[%518, %c0_266, %c0_267] : memref<8x8x128xf32, #tpu.memory_space<vmem>>, vector<1x8x128xf32>
    %520 = vector.shape_cast %519 : vector<1x8x128xf32> to vector<8x128xf32>
    %521 = tpu.concatenate %517, %520 in 1 : vector<8x128xf32>, vector<8x128xf32> -> vector<8x256xf32>
    %c0_268 = arith.constant 0 : index
    %c0_269 = arith.constant 0 : index
    %522 = vector.load %arg10[%c0_268, %c0_269] : memref<256x128xf32, #tpu.memory_space<vmem>>, vector<256x128xf32>
    %cst_270 = arith.constant dense<0.000000e+00> : vector<8x128xf32>
    %523 = tpu.matmul %521, %522, %cst_270 {dimension_numbers = #tpu.dot_dimension_numbers<[1], [0], [0], [1], [0, 0, 1, 1], [], []>} : vector<8x256xf32>, vector<256x128xf32>, vector<8x128xf32> -> vector<8x128xf32>
    %c0_271 = arith.constant 0 : index
    %c0_272 = arith.constant 0 : index
    %524 = vector.load %arg11[%c0_271, %c0_272] : memref<1x128xf32, #tpu.memory_space<vmem>>, vector<1x128xf32>
    %525 = vector.broadcast %524 : vector<1x128xf32> to vector<8x128xf32>
    %526 = arith.addf %523, %525 : vector<8x128xf32>
    %527 = arith.index_cast %c0_i32_242 : i32 to index
    %c0_273 = arith.constant 0 : index
    %c0_274 = arith.constant 0 : index
    %528 = vector.load %arg3[%527, %c0_273, %c0_274] : memref<8x8x1xi32, #tpu.memory_space<vmem>>, vector<1x8x1xi32>
    %529 = vector.shape_cast %528 : vector<1x8x1xi32> to vector<8x1xi32>
    %cst_275 = arith.constant dense<0xFF800000> : vector<8xf32>
    %530 = vector.multi_reduction <maximumf>, %526, %cst_275 [1] : vector<8x128xf32> to vector<8xf32>
    %531 = vector.shape_cast %530 : vector<8xf32> to vector<8x1xf32>
    %532 = vector.broadcast %531 : vector<8x1xf32> to vector<8x128xf32>
    %533 = arith.subf %526, %532 : vector<8x128xf32>
    %534 = math.exp %533 : vector<8x128xf32>
    %cst_276 = arith.constant dense<0.000000e+00> : vector<8xf32>
    %535 = vector.multi_reduction <add>, %534, %cst_276 [1] : vector<8x128xf32> to vector<8xf32>
    %536 = vector.shape_cast %535 : vector<8xf32> to vector<8x1xf32>
    %537 = math.log %536 : vector<8x1xf32>
    %538 = arith.addf %537, %531 : vector<8x1xf32>
    %539 = vector.broadcast %529 : vector<8x1xi32> to vector<8x128xi32>
    %540 = arith.cmpi eq, %467, %539 : vector<8x128xi32>
    %cst_277 = arith.constant 0.000000e+00 : f32
    %541 = vector.broadcast %cst_277 : f32 to vector<8x128xf32>
    %542 = arith.select %540, %526, %541 : vector<8x128xi1>, vector<8x128xf32>
    %cst_278 = arith.constant dense<0.000000e+00> : vector<8xf32>
    %543 = vector.multi_reduction <add>, %542, %cst_278 [1] : vector<8x128xf32> to vector<8xf32>
    %544 = vector.shape_cast %543 : vector<8xf32> to vector<8x1xf32>
    %c0_i32_279 = arith.constant 0 : i32
    %545 = vector.broadcast %c0_i32_279 : i32 to vector<8x1xi32>
    %546 = arith.cmpi ne, %529, %545 : vector<8x1xi32>
    %547 = arith.extui %546 : vector<8x1xi1> to vector<8x1xi32>
    %548 = arith.sitofp %547 : vector<8x1xi32> to vector<8x1xf32>
    %c0_280 = arith.constant 0 : index
    %c0_281 = arith.constant 0 : index
    %549 = vector.load %arg12[%c0_280, %c0_281] : memref<8x1xf32, #tpu.memory_space<vmem>>, vector<8x1xf32>
    %550 = arith.subf %538, %544 : vector<8x1xf32>
    %551 = arith.mulf %548, %550 : vector<8x1xf32>
    %552 = arith.addf %549, %551 : vector<8x1xf32>
    %c0_282 = arith.constant 0 : index
    %c0_283 = arith.constant 0 : index
    %553 = vector.load %arg12[%c0_282, %c0_283] : memref<8x1xf32, #tpu.memory_space<vmem>>, vector<8x1xf32>
    tpu.vector_store %arg12[%c0_282, %c0_283], %552 {strides = array<i32>} : memref<8x1xf32, #tpu.memory_space<vmem>>, vector<8x1xf32>,
    %554 = vector.broadcast %531 : vector<8x1xf32> to vector<8x128xf32>
    %555 = arith.cmpf oeq, %526, %554 : vector<8x128xf32>
    %c128_i32 = arith.constant 128 : i32
    %556 = vector.broadcast %c128_i32 : i32 to vector<8x128xi32>
    %557 = arith.select %555, %467, %556 : vector<8x128xi1>, vector<8x128xi32>
    %cst_284 = arith.constant dense<2147483647> : vector<8xi32>
    %558 = vector.multi_reduction <minsi>, %557, %cst_284 [1] : vector<8x128xi32> to vector<8xi32>
    %559 = vector.shape_cast %558 : vector<8xi32> to vector<8x1xi32>
    %560 = arith.index_cast %c0_i32_242 : i32 to index
    %c0_285 = arith.constant 0 : index
    %c0_286 = arith.constant 0 : index
    %561 = vector.load %arg13[%560, %c0_285, %c0_286] : memref<8x8x1xi32, #tpu.memory_space<vmem>>, vector<1x8x1xi32>
    %562 = vector.shape_cast %561 : vector<1x8x1xi32> to vector<8x1xi32>
    %563 = vector.shape_cast %559 : vector<8x1xi32> to vector<1x8x1xi32>
    tpu.vector_store %arg13[%560, %c0_285, %c0_286], %563 {strides = array<i32>} : memref<8x8x1xi32, #tpu.memory_space<vmem>>, vector<1x8x1xi32>,
    %c1_i32_287 = arith.constant 1 : i32
    %564 = vector.broadcast %c1_i32_287 : i32 to vector<8x1xi32>
    %565 = arith.cmpi sgt, %26, %564 : vector<8x1xi32>
    %566 = arith.index_cast %c1_i32_287 : i32 to index
    %c0_288 = arith.constant 0 : index
    %c0_289 = arith.constant 0 : index
    %567 = vector.load %arg14[%566, %c0_288, %c0_289] : memref<8x8x512xf32, #tpu.memory_space<vmem>>, vector<1x8x512xf32>
    %568 = vector.shape_cast %567 : vector<1x8x512xf32> to vector<8x512xf32>
    %c0_290 = arith.constant 0 : index
    %c0_291 = arith.constant 0 : index
    %569 = vector.load %arg16[%c0_290, %c0_291] : memref<8x128xf32, #tpu.memory_space<vmem>>, vector<8x128xf32>
    %c0_292 = arith.constant 0 : index
    %c0_293 = arith.constant 0 : index
    %570 = vector.load %arg17[%c0_292, %c0_293] : memref<8x128xf32, #tpu.memory_space<vmem>>, vector<8x128xf32>
    %c0_294 = arith.constant 0 : index
    %c0_295 = arith.constant 0 : index
    %571 = vector.load %arg5[%c0_294, %c0_295] : memref<128x512xf32, #tpu.memory_space<vmem>>, vector<128x512xf32>
    %cst_296 = arith.constant dense<0.000000e+00> : vector<8x512xf32>
    %572 = tpu.matmul %569, %571, %cst_296 {dimension_numbers = #tpu.dot_dimension_numbers<[1], [0], [0], [1], [0, 0, 1, 1], [], []>} : vector<8x128xf32>, vector<128x512xf32>, vector<8x512xf32> -> vector<8x512xf32>
    %573 = arith.addf %568, %572 : vector<8x512xf32>
    %574 = vector.extract_strided_slice %573 {offsets = [0, 0], sizes = [8, 128], strides = [1, 1]} : vector<8x512xf32> to vector<8x128xf32>
    %575 = arith.negf %574 : vector<8x128xf32>
    %576 = math.exp %575 : vector<8x128xf32>
    %cst_297 = arith.constant 1.000000e+00 : f32
    %577 = vector.broadcast %cst_297 : f32 to vector<8x128xf32>
    %578 = arith.addf %577, %576 : vector<8x128xf32>
    %579 = arith.divf %577, %578 : vector<8x128xf32>
    %580 = vector.extract_strided_slice %573 {offsets = [0, 128], sizes = [8, 128], strides = [1, 1]} : vector<8x512xf32> to vector<8x128xf32>
    %581 = arith.negf %580 : vector<8x128xf32>
    %582 = math.exp %581 : vector<8x128xf32>
    %cst_298 = arith.constant 1.000000e+00 : f32
    %583 = vector.broadcast %cst_298 : f32 to vector<8x128xf32>
    %584 = arith.addf %583, %582 : vector<8x128xf32>
    %585 = arith.divf %583, %584 : vector<8x128xf32>
    %586 = vector.extract_strided_slice %573 {offsets = [0, 256], sizes = [8, 128], strides = [1, 1]} : vector<8x512xf32> to vector<8x128xf32>
    %587 = math.tanh %586 : vector<8x128xf32>
    %588 = vector.extract_strided_slice %573 {offsets = [0, 384], sizes = [8, 128], strides = [1, 1]} : vector<8x512xf32> to vector<8x128xf32>
    %589 = arith.negf %588 : vector<8x128xf32>
    %590 = math.exp %589 : vector<8x128xf32>
    %cst_299 = arith.constant 1.000000e+00 : f32
    %591 = vector.broadcast %cst_299 : f32 to vector<8x128xf32>
    %592 = arith.addf %591, %590 : vector<8x128xf32>
    %593 = arith.divf %591, %592 : vector<8x128xf32>
    %594 = arith.mulf %585, %570 : vector<8x128xf32>
    %595 = arith.mulf %579, %587 : vector<8x128xf32>
    %596 = arith.addf %594, %595 : vector<8x128xf32>
    %597 = math.tanh %596 : vector<8x128xf32>
    %598 = arith.mulf %593, %597 : vector<8x128xf32>
    %c0_300 = arith.constant 0 : index
    %c0_301 = arith.constant 0 : index
    %599 = vector.load %arg16[%c0_300, %c0_301] : memref<8x128xf32, #tpu.memory_space<vmem>>, vector<8x128xf32>
    %600 = vector.shape_cast %565 : vector<8x1xi1> to vector<8x1xi1>
    %601 = vector.broadcast %600 : vector<8x1xi1> to vector<8x128xi1>
    %602 = arith.select %601, %598, %599 : vector<8x128xi1>, vector<8x128xf32>
    %c0_302 = arith.constant 0 : index
    %c0_303 = arith.constant 0 : index
    %603 = vector.load %arg16[%c0_302, %c0_303] : memref<8x128xf32, #tpu.memory_space<vmem>>, vector<8x128xf32>
    tpu.vector_store %arg16[%c0_302, %c0_303], %602 {strides = array<i32>} : memref<8x128xf32, #tpu.memory_space<vmem>>, vector<8x128xf32>,
    %c0_304 = arith.constant 0 : index
    %c0_305 = arith.constant 0 : index
    %604 = vector.load %arg17[%c0_304, %c0_305] : memref<8x128xf32, #tpu.memory_space<vmem>>, vector<8x128xf32>
    %605 = vector.shape_cast %565 : vector<8x1xi1> to vector<8x1xi1>
    %606 = vector.broadcast %605 : vector<8x1xi1> to vector<8x128xi1>
    %607 = arith.select %606, %596, %604 : vector<8x128xi1>, vector<8x128xf32>
    %c0_306 = arith.constant 0 : index
    %c0_307 = arith.constant 0 : index
    %608 = vector.load %arg17[%c0_306, %c0_307] : memref<8x128xf32, #tpu.memory_space<vmem>>, vector<8x128xf32>
    tpu.vector_store %arg17[%c0_306, %c0_307], %607 {strides = array<i32>} : memref<8x128xf32, #tpu.memory_space<vmem>>, vector<8x128xf32>,
    %c0_308 = arith.constant 0 : index
    %c0_309 = arith.constant 0 : index
    %609 = vector.load %arg16[%c0_308, %c0_309] : memref<8x128xf32, #tpu.memory_space<vmem>>, vector<8x128xf32>
    %cst_310 = arith.constant 0.000000e+00 : f32
    %610 = vector.shape_cast %565 : vector<8x1xi1> to vector<8x1xi1>
    %611 = vector.broadcast %610 : vector<8x1xi1> to vector<8x128xi1>
    %612 = vector.broadcast %cst_310 : f32 to vector<8x128xf32>
    %613 = arith.select %611, %609, %612 : vector<8x128xi1>, vector<8x128xf32>
    %614 = arith.index_cast %c1_i32_287 : i32 to index
    %c0_311 = arith.constant 0 : index
    %c0_312 = arith.constant 0 : index
    %615 = vector.load %arg20[%614, %c0_311, %c0_312] : memref<8x8x128xf32, #tpu.memory_space<vmem>>, vector<1x8x128xf32>
    %616 = vector.shape_cast %615 : vector<1x8x128xf32> to vector<8x128xf32>
    %617 = tpu.concatenate %613, %616 in 1 : vector<8x128xf32>, vector<8x128xf32> -> vector<8x256xf32>
    %c0_313 = arith.constant 0 : index
    %c0_314 = arith.constant 0 : index
    %618 = vector.load %arg10[%c0_313, %c0_314] : memref<256x128xf32, #tpu.memory_space<vmem>>, vector<256x128xf32>
    %cst_315 = arith.constant dense<0.000000e+00> : vector<8x128xf32>
    %619 = tpu.matmul %617, %618, %cst_315 {dimension_numbers = #tpu.dot_dimension_numbers<[1], [0], [0], [1], [0, 0, 1, 1], [], []>} : vector<8x256xf32>, vector<256x128xf32>, vector<8x128xf32> -> vector<8x128xf32>
    %c0_316 = arith.constant 0 : index
    %c0_317 = arith.constant 0 : index
    %620 = vector.load %arg11[%c0_316, %c0_317] : memref<1x128xf32, #tpu.memory_space<vmem>>, vector<1x128xf32>
    %621 = vector.broadcast %620 : vector<1x128xf32> to vector<8x128xf32>
    %622 = arith.addf %619, %621 : vector<8x128xf32>
    %623 = arith.index_cast %c1_i32_287 : i32 to index
    %c0_318 = arith.constant 0 : index
    %c0_319 = arith.constant 0 : index
    %624 = vector.load %arg3[%623, %c0_318, %c0_319] : memref<8x8x1xi32, #tpu.memory_space<vmem>>, vector<1x8x1xi32>
    %625 = vector.shape_cast %624 : vector<1x8x1xi32> to vector<8x1xi32>
    %cst_320 = arith.constant dense<0xFF800000> : vector<8xf32>
    %626 = vector.multi_reduction <maximumf>, %622, %cst_320 [1] : vector<8x128xf32> to vector<8xf32>
    %627 = vector.shape_cast %626 : vector<8xf32> to vector<8x1xf32>
    %628 = vector.broadcast %627 : vector<8x1xf32> to vector<8x128xf32>
    %629 = arith.subf %622, %628 : vector<8x128xf32>
    %630 = math.exp %629 : vector<8x128xf32>
    %cst_321 = arith.constant dense<0.000000e+00> : vector<8xf32>
    %631 = vector.multi_reduction <add>, %630, %cst_321 [1] : vector<8x128xf32> to vector<8xf32>
    %632 = vector.shape_cast %631 : vector<8xf32> to vector<8x1xf32>
    %633 = math.log %632 : vector<8x1xf32>
    %634 = arith.addf %633, %627 : vector<8x1xf32>
    %635 = vector.broadcast %625 : vector<8x1xi32> to vector<8x128xi32>
    %636 = arith.cmpi eq, %467, %635 : vector<8x128xi32>
    %cst_322 = arith.constant 0.000000e+00 : f32
    %637 = vector.broadcast %cst_322 : f32 to vector<8x128xf32>
    %638 = arith.select %636, %622, %637 : vector<8x128xi1>, vector<8x128xf32>
    %cst_323 = arith.constant dense<0.000000e+00> : vector<8xf32>
    %639 = vector.multi_reduction <add>, %638, %cst_323 [1] : vector<8x128xf32> to vector<8xf32>
    %640 = vector.shape_cast %639 : vector<8xf32> to vector<8x1xf32>
    %c0_i32_324 = arith.constant 0 : i32
    %641 = vector.broadcast %c0_i32_324 : i32 to vector<8x1xi32>
    %642 = arith.cmpi ne, %625, %641 : vector<8x1xi32>
    %643 = arith.extui %642 : vector<8x1xi1> to vector<8x1xi32>
    %644 = arith.sitofp %643 : vector<8x1xi32> to vector<8x1xf32>
    %c0_325 = arith.constant 0 : index
    %c0_326 = arith.constant 0 : index
    %645 = vector.load %arg12[%c0_325, %c0_326] : memref<8x1xf32, #tpu.memory_space<vmem>>, vector<8x1xf32>
    %646 = arith.subf %634, %640 : vector<8x1xf32>
    %647 = arith.mulf %644, %646 : vector<8x1xf32>
    %648 = arith.addf %645, %647 : vector<8x1xf32>
    %c0_327 = arith.constant 0 : index
    %c0_328 = arith.constant 0 : index
    %649 = vector.load %arg12[%c0_327, %c0_328] : memref<8x1xf32, #tpu.memory_space<vmem>>, vector<8x1xf32>
    tpu.vector_store %arg12[%c0_327, %c0_328], %648 {strides = array<i32>} : memref<8x1xf32, #tpu.memory_space<vmem>>, vector<8x1xf32>,
    %650 = vector.broadcast %627 : vector<8x1xf32> to vector<8x128xf32>
    %651 = arith.cmpf oeq, %622, %650 : vector<8x128xf32>
    %c128_i32_329 = arith.constant 128 : i32
    %652 = vector.broadcast %c128_i32_329 : i32 to vector<8x128xi32>
    %653 = arith.select %651, %467, %652 : vector<8x128xi1>, vector<8x128xi32>
    %cst_330 = arith.constant dense<2147483647> : vector<8xi32>
    %654 = vector.multi_reduction <minsi>, %653, %cst_330 [1] : vector<8x128xi32> to vector<8xi32>
    %655 = vector.shape_cast %654 : vector<8xi32> to vector<8x1xi32>
    %656 = arith.index_cast %c1_i32_287 : i32 to index
    %c0_331 = arith.constant 0 : index
    %c0_332 = arith.constant 0 : index
    %657 = vector.load %arg13[%656, %c0_331, %c0_332] : memref<8x8x1xi32, #tpu.memory_space<vmem>>, vector<1x8x1xi32>
    %658 = vector.shape_cast %657 : vector<1x8x1xi32> to vector<8x1xi32>
    %659 = vector.shape_cast %655 : vector<8x1xi32> to vector<1x8x1xi32>
    tpu.vector_store %arg13[%656, %c0_331, %c0_332], %659 {strides = array<i32>} : memref<8x8x1xi32, #tpu.memory_space<vmem>>, vector<1x8x1xi32>,
    %c2_i32_333 = arith.constant 2 : i32
    %660 = vector.broadcast %c2_i32_333 : i32 to vector<8x1xi32>
    %661 = arith.cmpi sgt, %26, %660 : vector<8x1xi32>
    %662 = arith.index_cast %c2_i32_333 : i32 to index
    %c0_334 = arith.constant 0 : index
    %c0_335 = arith.constant 0 : index
    %663 = vector.load %arg14[%662, %c0_334, %c0_335] : memref<8x8x512xf32, #tpu.memory_space<vmem>>, vector<1x8x512xf32>
    %664 = vector.shape_cast %663 : vector<1x8x512xf32> to vector<8x512xf32>
    %c0_336 = arith.constant 0 : index
    %c0_337 = arith.constant 0 : index
    %665 = vector.load %arg16[%c0_336, %c0_337] : memref<8x128xf32, #tpu.memory_space<vmem>>, vector<8x128xf32>
    %c0_338 = arith.constant 0 : index
    %c0_339 = arith.constant 0 : index
    %666 = vector.load %arg17[%c0_338, %c0_339] : memref<8x128xf32, #tpu.memory_space<vmem>>, vector<8x128xf32>
    %c0_340 = arith.constant 0 : index
    %c0_341 = arith.constant 0 : index
    %667 = vector.load %arg5[%c0_340, %c0_341] : memref<128x512xf32, #tpu.memory_space<vmem>>, vector<128x512xf32>
    %cst_342 = arith.constant dense<0.000000e+00> : vector<8x512xf32>
    %668 = tpu.matmul %665, %667, %cst_342 {dimension_numbers = #tpu.dot_dimension_numbers<[1], [0], [0], [1], [0, 0, 1, 1], [], []>} : vector<8x128xf32>, vector<128x512xf32>, vector<8x512xf32> -> vector<8x512xf32>
    %669 = arith.addf %664, %668 : vector<8x512xf32>
    %670 = vector.extract_strided_slice %669 {offsets = [0, 0], sizes = [8, 128], strides = [1, 1]} : vector<8x512xf32> to vector<8x128xf32>
    %671 = arith.negf %670 : vector<8x128xf32>
    %672 = math.exp %671 : vector<8x128xf32>
    %cst_343 = arith.constant 1.000000e+00 : f32
    %673 = vector.broadcast %cst_343 : f32 to vector<8x128xf32>
    %674 = arith.addf %673, %672 : vector<8x128xf32>
    %675 = arith.divf %673, %674 : vector<8x128xf32>
    %676 = vector.extract_strided_slice %669 {offsets = [0, 128], sizes = [8, 128], strides = [1, 1]} : vector<8x512xf32> to vector<8x128xf32>
    %677 = arith.negf %676 : vector<8x128xf32>
    %678 = math.exp %677 : vector<8x128xf32>
    %cst_344 = arith.constant 1.000000e+00 : f32
    %679 = vector.broadcast %cst_344 : f32 to vector<8x128xf32>
    %680 = arith.addf %679, %678 : vector<8x128xf32>
    %681 = arith.divf %679, %680 : vector<8x128xf32>
    %682 = vector.extract_strided_slice %669 {offsets = [0, 256], sizes = [8, 128], strides = [1, 1]} : vector<8x512xf32> to vector<8x128xf32>
    %683 = math.tanh %682 : vector<8x128xf32>
    %684 = vector.extract_strided_slice %669 {offsets = [0, 384], sizes = [8, 128], strides = [1, 1]} : vector<8x512xf32> to vector<8x128xf32>
    %685 = arith.negf %684 : vector<8x128xf32>
    %686 = math.exp %685 : vector<8x128xf32>
    %cst_345 = arith.constant 1.000000e+00 : f32
    %687 = vector.broadcast %cst_345 : f32 to vector<8x128xf32>
    %688 = arith.addf %687, %686 : vector<8x128xf32>
    %689 = arith.divf %687, %688 : vector<8x128xf32>
    %690 = arith.mulf %681, %666 : vector<8x128xf32>
    %691 = arith.mulf %675, %683 : vector<8x128xf32>
    %692 = arith.addf %690, %691 : vector<8x128xf32>
    %693 = math.tanh %692 : vector<8x128xf32>
    %694 = arith.mulf %689, %693 : vector<8x128xf32>
    %c0_346 = arith.constant 0 : index
    %c0_347 = arith.constant 0 : index
    %695 = vector.load %arg16[%c0_346, %c0_347] : memref<8x128xf32, #tpu.memory_space<vmem>>, vector<8x128xf32>
    %696 = vector.shape_cast %661 : vector<8x1xi1> to vector<8x1xi1>
    %697 = vector.broadcast %696 : vector<8x1xi1> to vector<8x128xi1>
    %698 = arith.select %697, %694, %695 : vector<8x128xi1>, vector<8x128xf32>
    %c0_348 = arith.constant 0 : index
    %c0_349 = arith.constant 0 : index
    %699 = vector.load %arg16[%c0_348, %c0_349] : memref<8x128xf32, #tpu.memory_space<vmem>>, vector<8x128xf32>
    tpu.vector_store %arg16[%c0_348, %c0_349], %698 {strides = array<i32>} : memref<8x128xf32, #tpu.memory_space<vmem>>, vector<8x128xf32>,
    %c0_350 = arith.constant 0 : index
    %c0_351 = arith.constant 0 : index
    %700 = vector.load %arg17[%c0_350, %c0_351] : memref<8x128xf32, #tpu.memory_space<vmem>>, vector<8x128xf32>
    %701 = vector.shape_cast %661 : vector<8x1xi1> to vector<8x1xi1>
    %702 = vector.broadcast %701 : vector<8x1xi1> to vector<8x128xi1>
    %703 = arith.select %702, %692, %700 : vector<8x128xi1>, vector<8x128xf32>
    %c0_352 = arith.constant 0 : index
    %c0_353 = arith.constant 0 : index
    %704 = vector.load %arg17[%c0_352, %c0_353] : memref<8x128xf32, #tpu.memory_space<vmem>>, vector<8x128xf32>
    tpu.vector_store %arg17[%c0_352, %c0_353], %703 {strides = array<i32>} : memref<8x128xf32, #tpu.memory_space<vmem>>, vector<8x128xf32>,
    %c0_354 = arith.constant 0 : index
    %c0_355 = arith.constant 0 : index
    %705 = vector.load %arg16[%c0_354, %c0_355] : memref<8x128xf32, #tpu.memory_space<vmem>>, vector<8x128xf32>
    %cst_356 = arith.constant 0.000000e+00 : f32
    %706 = vector.shape_cast %661 : vector<8x1xi1> to vector<8x1xi1>
    %707 = vector.broadcast %706 : vector<8x1xi1> to vector<8x128xi1>
    %708 = vector.broadcast %cst_356 : f32 to vector<8x128xf32>
    %709 = arith.select %707, %705, %708 : vector<8x128xi1>, vector<8x128xf32>
    %710 = arith.index_cast %c2_i32_333 : i32 to index
    %c0_357 = arith.constant 0 : index
    %c0_358 = arith.constant 0 : index
    %711 = vector.load %arg20[%710, %c0_357, %c0_358] : memref<8x8x128xf32, #tpu.memory_space<vmem>>, vector<1x8x128xf32>
    %712 = vector.shape_cast %711 : vector<1x8x128xf32> to vector<8x128xf32>
    %713 = tpu.concatenate %709, %712 in 1 : vector<8x128xf32>, vector<8x128xf32> -> vector<8x256xf32>
    %c0_359 = arith.constant 0 : index
    %c0_360 = arith.constant 0 : index
    %714 = vector.load %arg10[%c0_359, %c0_360] : memref<256x128xf32, #tpu.memory_space<vmem>>, vector<256x128xf32>
    %cst_361 = arith.constant dense<0.000000e+00> : vector<8x128xf32>
    %715 = tpu.matmul %713, %714, %cst_361 {dimension_numbers = #tpu.dot_dimension_numbers<[1], [0], [0], [1], [0, 0, 1, 1], [], []>} : vector<8x256xf32>, vector<256x128xf32>, vector<8x128xf32> -> vector<8x128xf32>
    %c0_362 = arith.constant 0 : index
    %c0_363 = arith.constant 0 : index
    %716 = vector.load %arg11[%c0_362, %c0_363] : memref<1x128xf32, #tpu.memory_space<vmem>>, vector<1x128xf32>
    %717 = vector.broadcast %716 : vector<1x128xf32> to vector<8x128xf32>
    %718 = arith.addf %715, %717 : vector<8x128xf32>
    %719 = arith.index_cast %c2_i32_333 : i32 to index
    %c0_364 = arith.constant 0 : index
    %c0_365 = arith.constant 0 : index
    %720 = vector.load %arg3[%719, %c0_364, %c0_365] : memref<8x8x1xi32, #tpu.memory_space<vmem>>, vector<1x8x1xi32>
    %721 = vector.shape_cast %720 : vector<1x8x1xi32> to vector<8x1xi32>
    %cst_366 = arith.constant dense<0xFF800000> : vector<8xf32>
    %722 = vector.multi_reduction <maximumf>, %718, %cst_366 [1] : vector<8x128xf32> to vector<8xf32>
    %723 = vector.shape_cast %722 : vector<8xf32> to vector<8x1xf32>
    %724 = vector.broadcast %723 : vector<8x1xf32> to vector<8x128xf32>
    %725 = arith.subf %718, %724 : vector<8x128xf32>
    %726 = math.exp %725 : vector<8x128xf32>
    %cst_367 = arith.constant dense<0.000000e+00> : vector<8xf32>
    %727 = vector.multi_reduction <add>, %726, %cst_367 [1] : vector<8x128xf32> to vector<8xf32>
    %728 = vector.shape_cast %727 : vector<8xf32> to vector<8x1xf32>
    %729 = math.log %728 : vector<8x1xf32>
    %730 = arith.addf %729, %723 : vector<8x1xf32>
    %731 = vector.broadcast %721 : vector<8x1xi32> to vector<8x128xi32>
    %732 = arith.cmpi eq, %467, %731 : vector<8x128xi32>
    %cst_368 = arith.constant 0.000000e+00 : f32
    %733 = vector.broadcast %cst_368 : f32 to vector<8x128xf32>
    %734 = arith.select %732, %718, %733 : vector<8x128xi1>, vector<8x128xf32>
    %cst_369 = arith.constant dense<0.000000e+00> : vector<8xf32>
    %735 = vector.multi_reduction <add>, %734, %cst_369 [1] : vector<8x128xf32> to vector<8xf32>
    %736 = vector.shape_cast %735 : vector<8xf32> to vector<8x1xf32>
    %c0_i32_370 = arith.constant 0 : i32
    %737 = vector.broadcast %c0_i32_370 : i32 to vector<8x1xi32>
    %738 = arith.cmpi ne, %721, %737 : vector<8x1xi32>
    %739 = arith.extui %738 : vector<8x1xi1> to vector<8x1xi32>
    %740 = arith.sitofp %739 : vector<8x1xi32> to vector<8x1xf32>
    %c0_371 = arith.constant 0 : index
    %c0_372 = arith.constant 0 : index
    %741 = vector.load %arg12[%c0_371, %c0_372] : memref<8x1xf32, #tpu.memory_space<vmem>>, vector<8x1xf32>
    %742 = arith.subf %730, %736 : vector<8x1xf32>
    %743 = arith.mulf %740, %742 : vector<8x1xf32>
    %744 = arith.addf %741, %743 : vector<8x1xf32>
    %c0_373 = arith.constant 0 : index
    %c0_374 = arith.constant 0 : index
    %745 = vector.load %arg12[%c0_373, %c0_374] : memref<8x1xf32, #tpu.memory_space<vmem>>, vector<8x1xf32>
    tpu.vector_store %arg12[%c0_373, %c0_374], %744 {strides = array<i32>} : memref<8x1xf32, #tpu.memory_space<vmem>>, vector<8x1xf32>,
    %746 = vector.broadcast %723 : vector<8x1xf32> to vector<8x128xf32>
    %747 = arith.cmpf oeq, %718, %746 : vector<8x128xf32>
    %c128_i32_375 = arith.constant 128 : i32
    %748 = vector.broadcast %c128_i32_375 : i32 to vector<8x128xi32>
    %749 = arith.select %747, %467, %748 : vector<8x128xi1>, vector<8x128xi32>
    %cst_376 = arith.constant dense<2147483647> : vector<8xi32>
    %750 = vector.multi_reduction <minsi>, %749, %cst_376 [1] : vector<8x128xi32> to vector<8xi32>
    %751 = vector.shape_cast %750 : vector<8xi32> to vector<8x1xi32>
    %752 = arith.index_cast %c2_i32_333 : i32 to index
    %c0_377 = arith.constant 0 : index
    %c0_378 = arith.constant 0 : index
    %753 = vector.load %arg13[%752, %c0_377, %c0_378] : memref<8x8x1xi32, #tpu.memory_space<vmem>>, vector<1x8x1xi32>
    %754 = vector.shape_cast %753 : vector<1x8x1xi32> to vector<8x1xi32>
    %755 = vector.shape_cast %751 : vector<8x1xi32> to vector<1x8x1xi32>
    tpu.vector_store %arg13[%752, %c0_377, %c0_378], %755 {strides = array<i32>} : memref<8x8x1xi32, #tpu.memory_space<vmem>>, vector<1x8x1xi32>,
    %c3_i32_379 = arith.constant 3 : i32
    %756 = vector.broadcast %c3_i32_379 : i32 to vector<8x1xi32>
    %757 = arith.cmpi sgt, %26, %756 : vector<8x1xi32>
    %758 = arith.index_cast %c3_i32_379 : i32 to index
    %c0_380 = arith.constant 0 : index
    %c0_381 = arith.constant 0 : index
    %759 = vector.load %arg14[%758, %c0_380, %c0_381] : memref<8x8x512xf32, #tpu.memory_space<vmem>>, vector<1x8x512xf32>
    %760 = vector.shape_cast %759 : vector<1x8x512xf32> to vector<8x512xf32>
    %c0_382 = arith.constant 0 : index
    %c0_383 = arith.constant 0 : index
    %761 = vector.load %arg16[%c0_382, %c0_383] : memref<8x128xf32, #tpu.memory_space<vmem>>, vector<8x128xf32>
    %c0_384 = arith.constant 0 : index
    %c0_385 = arith.constant 0 : index
    %762 = vector.load %arg17[%c0_384, %c0_385] : memref<8x128xf32, #tpu.memory_space<vmem>>, vector<8x128xf32>
    %c0_386 = arith.constant 0 : index
    %c0_387 = arith.constant 0 : index
    %763 = vector.load %arg5[%c0_386, %c0_387] : memref<128x512xf32, #tpu.memory_space<vmem>>, vector<128x512xf32>
    %cst_388 = arith.constant dense<0.000000e+00> : vector<8x512xf32>
    %764 = tpu.matmul %761, %763, %cst_388 {dimension_numbers = #tpu.dot_dimension_numbers<[1], [0], [0], [1], [0, 0, 1, 1], [], []>} : vector<8x128xf32>, vector<128x512xf32>, vector<8x512xf32> -> vector<8x512xf32>
    %765 = arith.addf %760, %764 : vector<8x512xf32>
    %766 = vector.extract_strided_slice %765 {offsets = [0, 0], sizes = [8, 128], strides = [1, 1]} : vector<8x512xf32> to vector<8x128xf32>
    %767 = arith.negf %766 : vector<8x128xf32>
    %768 = math.exp %767 : vector<8x128xf32>
    %cst_389 = arith.constant 1.000000e+00 : f32
    %769 = vector.broadcast %cst_389 : f32 to vector<8x128xf32>
    %770 = arith.addf %769, %768 : vector<8x128xf32>
    %771 = arith.divf %769, %770 : vector<8x128xf32>
    %772 = vector.extract_strided_slice %765 {offsets = [0, 128], sizes = [8, 128], strides = [1, 1]} : vector<8x512xf32> to vector<8x128xf32>
    %773 = arith.negf %772 : vector<8x128xf32>
    %774 = math.exp %773 : vector<8x128xf32>
    %cst_390 = arith.constant 1.000000e+00 : f32
    %775 = vector.broadcast %cst_390 : f32 to vector<8x128xf32>
    %776 = arith.addf %775, %774 : vector<8x128xf32>
    %777 = arith.divf %775, %776 : vector<8x128xf32>
    %778 = vector.extract_strided_slice %765 {offsets = [0, 256], sizes = [8, 128], strides = [1, 1]} : vector<8x512xf32> to vector<8x128xf32>
    %779 = math.tanh %778 : vector<8x128xf32>
    %780 = vector.extract_strided_slice %765 {offsets = [0, 384], sizes = [8, 128], strides = [1, 1]} : vector<8x512xf32> to vector<8x128xf32>
    %781 = arith.negf %780 : vector<8x128xf32>
    %782 = math.exp %781 : vector<8x128xf32>
    %cst_391 = arith.constant 1.000000e+00 : f32
    %783 = vector.broadcast %cst_391 : f32 to vector<8x128xf32>
    %784 = arith.addf %783, %782 : vector<8x128xf32>
    %785 = arith.divf %783, %784 : vector<8x128xf32>
    %786 = arith.mulf %777, %762 : vector<8x128xf32>
    %787 = arith.mulf %771, %779 : vector<8x128xf32>
    %788 = arith.addf %786, %787 : vector<8x128xf32>
    %789 = math.tanh %788 : vector<8x128xf32>
    %790 = arith.mulf %785, %789 : vector<8x128xf32>
    %c0_392 = arith.constant 0 : index
    %c0_393 = arith.constant 0 : index
    %791 = vector.load %arg16[%c0_392, %c0_393] : memref<8x128xf32, #tpu.memory_space<vmem>>, vector<8x128xf32>
    %792 = vector.shape_cast %757 : vector<8x1xi1> to vector<8x1xi1>
    %793 = vector.broadcast %792 : vector<8x1xi1> to vector<8x128xi1>
    %794 = arith.select %793, %790, %791 : vector<8x128xi1>, vector<8x128xf32>
    %c0_394 = arith.constant 0 : index
    %c0_395 = arith.constant 0 : index
    %795 = vector.load %arg16[%c0_394, %c0_395] : memref<8x128xf32, #tpu.memory_space<vmem>>, vector<8x128xf32>
    tpu.vector_store %arg16[%c0_394, %c0_395], %794 {strides = array<i32>} : memref<8x128xf32, #tpu.memory_space<vmem>>, vector<8x128xf32>,
    %c0_396 = arith.constant 0 : index
    %c0_397 = arith.constant 0 : index
    %796 = vector.load %arg17[%c0_396, %c0_397] : memref<8x128xf32, #tpu.memory_space<vmem>>, vector<8x128xf32>
    %797 = vector.shape_cast %757 : vector<8x1xi1> to vector<8x1xi1>
    %798 = vector.broadcast %797 : vector<8x1xi1> to vector<8x128xi1>
    %799 = arith.select %798, %788, %796 : vector<8x128xi1>, vector<8x128xf32>
    %c0_398 = arith.constant 0 : index
    %c0_399 = arith.constant 0 : index
    %800 = vector.load %arg17[%c0_398, %c0_399] : memref<8x128xf32, #tpu.memory_space<vmem>>, vector<8x128xf32>
    tpu.vector_store %arg17[%c0_398, %c0_399], %799 {strides = array<i32>} : memref<8x128xf32, #tpu.memory_space<vmem>>, vector<8x128xf32>,
    %c0_400 = arith.constant 0 : index
    %c0_401 = arith.constant 0 : index
    %801 = vector.load %arg16[%c0_400, %c0_401] : memref<8x128xf32, #tpu.memory_space<vmem>>, vector<8x128xf32>
    %cst_402 = arith.constant 0.000000e+00 : f32
    %802 = vector.shape_cast %757 : vector<8x1xi1> to vector<8x1xi1>
    %803 = vector.broadcast %802 : vector<8x1xi1> to vector<8x128xi1>
    %804 = vector.broadcast %cst_402 : f32 to vector<8x128xf32>
    %805 = arith.select %803, %801, %804 : vector<8x128xi1>, vector<8x128xf32>
    %806 = arith.index_cast %c3_i32_379 : i32 to index
    %c0_403 = arith.constant 0 : index
    %c0_404 = arith.constant 0 : index
    %807 = vector.load %arg20[%806, %c0_403, %c0_404] : memref<8x8x128xf32, #tpu.memory_space<vmem>>, vector<1x8x128xf32>
    %808 = vector.shape_cast %807 : vector<1x8x128xf32> to vector<8x128xf32>
    %809 = tpu.concatenate %805, %808 in 1 : vector<8x128xf32>, vector<8x128xf32> -> vector<8x256xf32>
    %c0_405 = arith.constant 0 : index
    %c0_406 = arith.constant 0 : index
    %810 = vector.load %arg10[%c0_405, %c0_406] : memref<256x128xf32, #tpu.memory_space<vmem>>, vector<256x128xf32>
    %cst_407 = arith.constant dense<0.000000e+00> : vector<8x128xf32>
    %811 = tpu.matmul %809, %810, %cst_407 {dimension_numbers = #tpu.dot_dimension_numbers<[1], [0], [0], [1], [0, 0, 1, 1], [], []>} : vector<8x256xf32>, vector<256x128xf32>, vector<8x128xf32> -> vector<8x128xf32>
    %c0_408 = arith.constant 0 : index
    %c0_409 = arith.constant 0 : index
    %812 = vector.load %arg11[%c0_408, %c0_409] : memref<1x128xf32, #tpu.memory_space<vmem>>, vector<1x128xf32>
    %813 = vector.broadcast %812 : vector<1x128xf32> to vector<8x128xf32>
    %814 = arith.addf %811, %813 : vector<8x128xf32>
    %815 = arith.index_cast %c3_i32_379 : i32 to index
    %c0_410 = arith.constant 0 : index
    %c0_411 = arith.constant 0 : index
    %816 = vector.load %arg3[%815, %c0_410, %c0_411] : memref<8x8x1xi32, #tpu.memory_space<vmem>>, vector<1x8x1xi32>
    %817 = vector.shape_cast %816 : vector<1x8x1xi32> to vector<8x1xi32>
    %cst_412 = arith.constant dense<0xFF800000> : vector<8xf32>
    %818 = vector.multi_reduction <maximumf>, %814, %cst_412 [1] : vector<8x128xf32> to vector<8xf32>
    %819 = vector.shape_cast %818 : vector<8xf32> to vector<8x1xf32>
    %820 = vector.broadcast %819 : vector<8x1xf32> to vector<8x128xf32>
    %821 = arith.subf %814, %820 : vector<8x128xf32>
    %822 = math.exp %821 : vector<8x128xf32>
    %cst_413 = arith.constant dense<0.000000e+00> : vector<8xf32>
    %823 = vector.multi_reduction <add>, %822, %cst_413 [1] : vector<8x128xf32> to vector<8xf32>
    %824 = vector.shape_cast %823 : vector<8xf32> to vector<8x1xf32>
    %825 = math.log %824 : vector<8x1xf32>
    %826 = arith.addf %825, %819 : vector<8x1xf32>
    %827 = vector.broadcast %817 : vector<8x1xi32> to vector<8x128xi32>
    %828 = arith.cmpi eq, %467, %827 : vector<8x128xi32>
    %cst_414 = arith.constant 0.000000e+00 : f32
    %829 = vector.broadcast %cst_414 : f32 to vector<8x128xf32>
    %830 = arith.select %828, %814, %829 : vector<8x128xi1>, vector<8x128xf32>
    %cst_415 = arith.constant dense<0.000000e+00> : vector<8xf32>
    %831 = vector.multi_reduction <add>, %830, %cst_415 [1] : vector<8x128xf32> to vector<8xf32>
    %832 = vector.shape_cast %831 : vector<8xf32> to vector<8x1xf32>
    %c0_i32_416 = arith.constant 0 : i32
    %833 = vector.broadcast %c0_i32_416 : i32 to vector<8x1xi32>
    %834 = arith.cmpi ne, %817, %833 : vector<8x1xi32>
    %835 = arith.extui %834 : vector<8x1xi1> to vector<8x1xi32>
    %836 = arith.sitofp %835 : vector<8x1xi32> to vector<8x1xf32>
    %c0_417 = arith.constant 0 : index
    %c0_418 = arith.constant 0 : index
    %837 = vector.load %arg12[%c0_417, %c0_418] : memref<8x1xf32, #tpu.memory_space<vmem>>, vector<8x1xf32>
    %838 = arith.subf %826, %832 : vector<8x1xf32>
    %839 = arith.mulf %836, %838 : vector<8x1xf32>
    %840 = arith.addf %837, %839 : vector<8x1xf32>
    %c0_419 = arith.constant 0 : index
    %c0_420 = arith.constant 0 : index
    %841 = vector.load %arg12[%c0_419, %c0_420] : memref<8x1xf32, #tpu.memory_space<vmem>>, vector<8x1xf32>
    tpu.vector_store %arg12[%c0_419, %c0_420], %840 {strides = array<i32>} : memref<8x1xf32, #tpu.memory_space<vmem>>, vector<8x1xf32>,
    %842 = vector.broadcast %819 : vector<8x1xf32> to vector<8x128xf32>
    %843 = arith.cmpf oeq, %814, %842 : vector<8x128xf32>
    %c128_i32_421 = arith.constant 128 : i32
    %844 = vector.broadcast %c128_i32_421 : i32 to vector<8x128xi32>
    %845 = arith.select %843, %467, %844 : vector<8x128xi1>, vector<8x128xi32>
    %cst_422 = arith.constant dense<2147483647> : vector<8xi32>
    %846 = vector.multi_reduction <minsi>, %845, %cst_422 [1] : vector<8x128xi32> to vector<8xi32>
    %847 = vector.shape_cast %846 : vector<8xi32> to vector<8x1xi32>
    %848 = arith.index_cast %c3_i32_379 : i32 to index
    %c0_423 = arith.constant 0 : index
    %c0_424 = arith.constant 0 : index
    %849 = vector.load %arg13[%848, %c0_423, %c0_424] : memref<8x8x1xi32, #tpu.memory_space<vmem>>, vector<1x8x1xi32>
    %850 = vector.shape_cast %849 : vector<1x8x1xi32> to vector<8x1xi32>
    %851 = vector.shape_cast %847 : vector<8x1xi32> to vector<1x8x1xi32>
    tpu.vector_store %arg13[%848, %c0_423, %c0_424], %851 {strides = array<i32>} : memref<8x8x1xi32, #tpu.memory_space<vmem>>, vector<1x8x1xi32>,
    %c4_i32_425 = arith.constant 4 : i32
    %852 = vector.broadcast %c4_i32_425 : i32 to vector<8x1xi32>
    %853 = arith.cmpi sgt, %26, %852 : vector<8x1xi32>
    %854 = arith.index_cast %c4_i32_425 : i32 to index
    %c0_426 = arith.constant 0 : index
    %c0_427 = arith.constant 0 : index
    %855 = vector.load %arg14[%854, %c0_426, %c0_427] : memref<8x8x512xf32, #tpu.memory_space<vmem>>, vector<1x8x512xf32>
    %856 = vector.shape_cast %855 : vector<1x8x512xf32> to vector<8x512xf32>
    %c0_428 = arith.constant 0 : index
    %c0_429 = arith.constant 0 : index
    %857 = vector.load %arg16[%c0_428, %c0_429] : memref<8x128xf32, #tpu.memory_space<vmem>>, vector<8x128xf32>
    %c0_430 = arith.constant 0 : index
    %c0_431 = arith.constant 0 : index
    %858 = vector.load %arg17[%c0_430, %c0_431] : memref<8x128xf32, #tpu.memory_space<vmem>>, vector<8x128xf32>
    %c0_432 = arith.constant 0 : index
    %c0_433 = arith.constant 0 : index
    %859 = vector.load %arg5[%c0_432, %c0_433] : memref<128x512xf32, #tpu.memory_space<vmem>>, vector<128x512xf32>
    %cst_434 = arith.constant dense<0.000000e+00> : vector<8x512xf32>
    %860 = tpu.matmul %857, %859, %cst_434 {dimension_numbers = #tpu.dot_dimension_numbers<[1], [0], [0], [1], [0, 0, 1, 1], [], []>} : vector<8x128xf32>, vector<128x512xf32>, vector<8x512xf32> -> vector<8x512xf32>
    %861 = arith.addf %856, %860 : vector<8x512xf32>
    %862 = vector.extract_strided_slice %861 {offsets = [0, 0], sizes = [8, 128], strides = [1, 1]} : vector<8x512xf32> to vector<8x128xf32>
    %863 = arith.negf %862 : vector<8x128xf32>
    %864 = math.exp %863 : vector<8x128xf32>
    %cst_435 = arith.constant 1.000000e+00 : f32
    %865 = vector.broadcast %cst_435 : f32 to vector<8x128xf32>
    %866 = arith.addf %865, %864 : vector<8x128xf32>
    %867 = arith.divf %865, %866 : vector<8x128xf32>
    %868 = vector.extract_strided_slice %861 {offsets = [0, 128], sizes = [8, 128], strides = [1, 1]} : vector<8x512xf32> to vector<8x128xf32>
    %869 = arith.negf %868 : vector<8x128xf32>
    %870 = math.exp %869 : vector<8x128xf32>
    %cst_436 = arith.constant 1.000000e+00 : f32
    %871 = vector.broadcast %cst_436 : f32 to vector<8x128xf32>
    %872 = arith.addf %871, %870 : vector<8x128xf32>
    %873 = arith.divf %871, %872 : vector<8x128xf32>
    %874 = vector.extract_strided_slice %861 {offsets = [0, 256], sizes = [8, 128], strides = [1, 1]} : vector<8x512xf32> to vector<8x128xf32>
    %875 = math.tanh %874 : vector<8x128xf32>
    %876 = vector.extract_strided_slice %861 {offsets = [0, 384], sizes = [8, 128], strides = [1, 1]} : vector<8x512xf32> to vector<8x128xf32>
    %877 = arith.negf %876 : vector<8x128xf32>
    %878 = math.exp %877 : vector<8x128xf32>
    %cst_437 = arith.constant 1.000000e+00 : f32
    %879 = vector.broadcast %cst_437 : f32 to vector<8x128xf32>
    %880 = arith.addf %879, %878 : vector<8x128xf32>
    %881 = arith.divf %879, %880 : vector<8x128xf32>
    %882 = arith.mulf %873, %858 : vector<8x128xf32>
    %883 = arith.mulf %867, %875 : vector<8x128xf32>
    %884 = arith.addf %882, %883 : vector<8x128xf32>
    %885 = math.tanh %884 : vector<8x128xf32>
    %886 = arith.mulf %881, %885 : vector<8x128xf32>
    %c0_438 = arith.constant 0 : index
    %c0_439 = arith.constant 0 : index
    %887 = vector.load %arg16[%c0_438, %c0_439] : memref<8x128xf32, #tpu.memory_space<vmem>>, vector<8x128xf32>
    %888 = vector.shape_cast %853 : vector<8x1xi1> to vector<8x1xi1>
    %889 = vector.broadcast %888 : vector<8x1xi1> to vector<8x128xi1>
    %890 = arith.select %889, %886, %887 : vector<8x128xi1>, vector<8x128xf32>
    %c0_440 = arith.constant 0 : index
    %c0_441 = arith.constant 0 : index
    %891 = vector.load %arg16[%c0_440, %c0_441] : memref<8x128xf32, #tpu.memory_space<vmem>>, vector<8x128xf32>
    tpu.vector_store %arg16[%c0_440, %c0_441], %890 {strides = array<i32>} : memref<8x128xf32, #tpu.memory_space<vmem>>, vector<8x128xf32>,
    %c0_442 = arith.constant 0 : index
    %c0_443 = arith.constant 0 : index
    %892 = vector.load %arg17[%c0_442, %c0_443] : memref<8x128xf32, #tpu.memory_space<vmem>>, vector<8x128xf32>
    %893 = vector.shape_cast %853 : vector<8x1xi1> to vector<8x1xi1>
    %894 = vector.broadcast %893 : vector<8x1xi1> to vector<8x128xi1>
    %895 = arith.select %894, %884, %892 : vector<8x128xi1>, vector<8x128xf32>
    %c0_444 = arith.constant 0 : index
    %c0_445 = arith.constant 0 : index
    %896 = vector.load %arg17[%c0_444, %c0_445] : memref<8x128xf32, #tpu.memory_space<vmem>>, vector<8x128xf32>
    tpu.vector_store %arg17[%c0_444, %c0_445], %895 {strides = array<i32>} : memref<8x128xf32, #tpu.memory_space<vmem>>, vector<8x128xf32>,
    %c0_446 = arith.constant 0 : index
    %c0_447 = arith.constant 0 : index
    %897 = vector.load %arg16[%c0_446, %c0_447] : memref<8x128xf32, #tpu.memory_space<vmem>>, vector<8x128xf32>
    %cst_448 = arith.constant 0.000000e+00 : f32
    %898 = vector.shape_cast %853 : vector<8x1xi1> to vector<8x1xi1>
    %899 = vector.broadcast %898 : vector<8x1xi1> to vector<8x128xi1>
    %900 = vector.broadcast %cst_448 : f32 to vector<8x128xf32>
    %901 = arith.select %899, %897, %900 : vector<8x128xi1>, vector<8x128xf32>
    %902 = arith.index_cast %c4_i32_425 : i32 to index
    %c0_449 = arith.constant 0 : index
    %c0_450 = arith.constant 0 : index
    %903 = vector.load %arg20[%902, %c0_449, %c0_450] : memref<8x8x128xf32, #tpu.memory_space<vmem>>, vector<1x8x128xf32>
    %904 = vector.shape_cast %903 : vector<1x8x128xf32> to vector<8x128xf32>
    %905 = tpu.concatenate %901, %904 in 1 : vector<8x128xf32>, vector<8x128xf32> -> vector<8x256xf32>
    %c0_451 = arith.constant 0 : index
    %c0_452 = arith.constant 0 : index
    %906 = vector.load %arg10[%c0_451, %c0_452] : memref<256x128xf32, #tpu.memory_space<vmem>>, vector<256x128xf32>
    %cst_453 = arith.constant dense<0.000000e+00> : vector<8x128xf32>
    %907 = tpu.matmul %905, %906, %cst_453 {dimension_numbers = #tpu.dot_dimension_numbers<[1], [0], [0], [1], [0, 0, 1, 1], [], []>} : vector<8x256xf32>, vector<256x128xf32>, vector<8x128xf32> -> vector<8x128xf32>
    %c0_454 = arith.constant 0 : index
    %c0_455 = arith.constant 0 : index
    %908 = vector.load %arg11[%c0_454, %c0_455] : memref<1x128xf32, #tpu.memory_space<vmem>>, vector<1x128xf32>
    %909 = vector.broadcast %908 : vector<1x128xf32> to vector<8x128xf32>
    %910 = arith.addf %907, %909 : vector<8x128xf32>
    %911 = arith.index_cast %c4_i32_425 : i32 to index
    %c0_456 = arith.constant 0 : index
    %c0_457 = arith.constant 0 : index
    %912 = vector.load %arg3[%911, %c0_456, %c0_457] : memref<8x8x1xi32, #tpu.memory_space<vmem>>, vector<1x8x1xi32>
    %913 = vector.shape_cast %912 : vector<1x8x1xi32> to vector<8x1xi32>
    %cst_458 = arith.constant dense<0xFF800000> : vector<8xf32>
    %914 = vector.multi_reduction <maximumf>, %910, %cst_458 [1] : vector<8x128xf32> to vector<8xf32>
    %915 = vector.shape_cast %914 : vector<8xf32> to vector<8x1xf32>
    %916 = vector.broadcast %915 : vector<8x1xf32> to vector<8x128xf32>
    %917 = arith.subf %910, %916 : vector<8x128xf32>
    %918 = math.exp %917 : vector<8x128xf32>
    %cst_459 = arith.constant dense<0.000000e+00> : vector<8xf32>
    %919 = vector.multi_reduction <add>, %918, %cst_459 [1] : vector<8x128xf32> to vector<8xf32>
    %920 = vector.shape_cast %919 : vector<8xf32> to vector<8x1xf32>
    %921 = math.log %920 : vector<8x1xf32>
    %922 = arith.addf %921, %915 : vector<8x1xf32>
    %923 = vector.broadcast %913 : vector<8x1xi32> to vector<8x128xi32>
    %924 = arith.cmpi eq, %467, %923 : vector<8x128xi32>
    %cst_460 = arith.constant 0.000000e+00 : f32
    %925 = vector.broadcast %cst_460 : f32 to vector<8x128xf32>
    %926 = arith.select %924, %910, %925 : vector<8x128xi1>, vector<8x128xf32>
    %cst_461 = arith.constant dense<0.000000e+00> : vector<8xf32>
    %927 = vector.multi_reduction <add>, %926, %cst_461 [1] : vector<8x128xf32> to vector<8xf32>
    %928 = vector.shape_cast %927 : vector<8xf32> to vector<8x1xf32>
    %c0_i32_462 = arith.constant 0 : i32
    %929 = vector.broadcast %c0_i32_462 : i32 to vector<8x1xi32>
    %930 = arith.cmpi ne, %913, %929 : vector<8x1xi32>
    %931 = arith.extui %930 : vector<8x1xi1> to vector<8x1xi32>
    %932 = arith.sitofp %931 : vector<8x1xi32> to vector<8x1xf32>
    %c0_463 = arith.constant 0 : index
    %c0_464 = arith.constant 0 : index
    %933 = vector.load %arg12[%c0_463, %c0_464] : memref<8x1xf32, #tpu.memory_space<vmem>>, vector<8x1xf32>
    %934 = arith.subf %922, %928 : vector<8x1xf32>
    %935 = arith.mulf %932, %934 : vector<8x1xf32>
    %936 = arith.addf %933, %935 : vector<8x1xf32>
    %c0_465 = arith.constant 0 : index
    %c0_466 = arith.constant 0 : index
    %937 = vector.load %arg12[%c0_465, %c0_466] : memref<8x1xf32, #tpu.memory_space<vmem>>, vector<8x1xf32>
    tpu.vector_store %arg12[%c0_465, %c0_466], %936 {strides = array<i32>} : memref<8x1xf32, #tpu.memory_space<vmem>>, vector<8x1xf32>,
    %938 = vector.broadcast %915 : vector<8x1xf32> to vector<8x128xf32>
    %939 = arith.cmpf oeq, %910, %938 : vector<8x128xf32>
    %c128_i32_467 = arith.constant 128 : i32
    %940 = vector.broadcast %c128_i32_467 : i32 to vector<8x128xi32>
    %941 = arith.select %939, %467, %940 : vector<8x128xi1>, vector<8x128xi32>
    %cst_468 = arith.constant dense<2147483647> : vector<8xi32>
    %942 = vector.multi_reduction <minsi>, %941, %cst_468 [1] : vector<8x128xi32> to vector<8xi32>
    %943 = vector.shape_cast %942 : vector<8xi32> to vector<8x1xi32>
    %944 = arith.index_cast %c4_i32_425 : i32 to index
    %c0_469 = arith.constant 0 : index
    %c0_470 = arith.constant 0 : index
    %945 = vector.load %arg13[%944, %c0_469, %c0_470] : memref<8x8x1xi32, #tpu.memory_space<vmem>>, vector<1x8x1xi32>
    %946 = vector.shape_cast %945 : vector<1x8x1xi32> to vector<8x1xi32>
    %947 = vector.shape_cast %943 : vector<8x1xi32> to vector<1x8x1xi32>
    tpu.vector_store %arg13[%944, %c0_469, %c0_470], %947 {strides = array<i32>} : memref<8x8x1xi32, #tpu.memory_space<vmem>>, vector<1x8x1xi32>,
    %c5_i32_471 = arith.constant 5 : i32
    %948 = vector.broadcast %c5_i32_471 : i32 to vector<8x1xi32>
    %949 = arith.cmpi sgt, %26, %948 : vector<8x1xi32>
    %950 = arith.index_cast %c5_i32_471 : i32 to index
    %c0_472 = arith.constant 0 : index
    %c0_473 = arith.constant 0 : index
    %951 = vector.load %arg14[%950, %c0_472, %c0_473] : memref<8x8x512xf32, #tpu.memory_space<vmem>>, vector<1x8x512xf32>
    %952 = vector.shape_cast %951 : vector<1x8x512xf32> to vector<8x512xf32>
    %c0_474 = arith.constant 0 : index
    %c0_475 = arith.constant 0 : index
    %953 = vector.load %arg16[%c0_474, %c0_475] : memref<8x128xf32, #tpu.memory_space<vmem>>, vector<8x128xf32>
    %c0_476 = arith.constant 0 : index
    %c0_477 = arith.constant 0 : index
    %954 = vector.load %arg17[%c0_476, %c0_477] : memref<8x128xf32, #tpu.memory_space<vmem>>, vector<8x128xf32>
    %c0_478 = arith.constant 0 : index
    %c0_479 = arith.constant 0 : index
    %955 = vector.load %arg5[%c0_478, %c0_479] : memref<128x512xf32, #tpu.memory_space<vmem>>, vector<128x512xf32>
    %cst_480 = arith.constant dense<0.000000e+00> : vector<8x512xf32>
    %956 = tpu.matmul %953, %955, %cst_480 {dimension_numbers = #tpu.dot_dimension_numbers<[1], [0], [0], [1], [0, 0, 1, 1], [], []>} : vector<8x128xf32>, vector<128x512xf32>, vector<8x512xf32> -> vector<8x512xf32>
    %957 = arith.addf %952, %956 : vector<8x512xf32>
    %958 = vector.extract_strided_slice %957 {offsets = [0, 0], sizes = [8, 128], strides = [1, 1]} : vector<8x512xf32> to vector<8x128xf32>
    %959 = arith.negf %958 : vector<8x128xf32>
    %960 = math.exp %959 : vector<8x128xf32>
    %cst_481 = arith.constant 1.000000e+00 : f32
    %961 = vector.broadcast %cst_481 : f32 to vector<8x128xf32>
    %962 = arith.addf %961, %960 : vector<8x128xf32>
    %963 = arith.divf %961, %962 : vector<8x128xf32>
    %964 = vector.extract_strided_slice %957 {offsets = [0, 128], sizes = [8, 128], strides = [1, 1]} : vector<8x512xf32> to vector<8x128xf32>
    %965 = arith.negf %964 : vector<8x128xf32>
    %966 = math.exp %965 : vector<8x128xf32>
    %cst_482 = arith.constant 1.000000e+00 : f32
    %967 = vector.broadcast %cst_482 : f32 to vector<8x128xf32>
    %968 = arith.addf %967, %966 : vector<8x128xf32>
    %969 = arith.divf %967, %968 : vector<8x128xf32>
    %970 = vector.extract_strided_slice %957 {offsets = [0, 256], sizes = [8, 128], strides = [1, 1]} : vector<8x512xf32> to vector<8x128xf32>
    %971 = math.tanh %970 : vector<8x128xf32>
    %972 = vector.extract_strided_slice %957 {offsets = [0, 384], sizes = [8, 128], strides = [1, 1]} : vector<8x512xf32> to vector<8x128xf32>
    %973 = arith.negf %972 : vector<8x128xf32>
    %974 = math.exp %973 : vector<8x128xf32>
    %cst_483 = arith.constant 1.000000e+00 : f32
    %975 = vector.broadcast %cst_483 : f32 to vector<8x128xf32>
    %976 = arith.addf %975, %974 : vector<8x128xf32>
    %977 = arith.divf %975, %976 : vector<8x128xf32>
    %978 = arith.mulf %969, %954 : vector<8x128xf32>
    %979 = arith.mulf %963, %971 : vector<8x128xf32>
    %980 = arith.addf %978, %979 : vector<8x128xf32>
    %981 = math.tanh %980 : vector<8x128xf32>
    %982 = arith.mulf %977, %981 : vector<8x128xf32>
    %c0_484 = arith.constant 0 : index
    %c0_485 = arith.constant 0 : index
    %983 = vector.load %arg16[%c0_484, %c0_485] : memref<8x128xf32, #tpu.memory_space<vmem>>, vector<8x128xf32>
    %984 = vector.shape_cast %949 : vector<8x1xi1> to vector<8x1xi1>
    %985 = vector.broadcast %984 : vector<8x1xi1> to vector<8x128xi1>
    %986 = arith.select %985, %982, %983 : vector<8x128xi1>, vector<8x128xf32>
    %c0_486 = arith.constant 0 : index
    %c0_487 = arith.constant 0 : index
    %987 = vector.load %arg16[%c0_486, %c0_487] : memref<8x128xf32, #tpu.memory_space<vmem>>, vector<8x128xf32>
    tpu.vector_store %arg16[%c0_486, %c0_487], %986 {strides = array<i32>} : memref<8x128xf32, #tpu.memory_space<vmem>>, vector<8x128xf32>,
    %c0_488 = arith.constant 0 : index
    %c0_489 = arith.constant 0 : index
    %988 = vector.load %arg17[%c0_488, %c0_489] : memref<8x128xf32, #tpu.memory_space<vmem>>, vector<8x128xf32>
    %989 = vector.shape_cast %949 : vector<8x1xi1> to vector<8x1xi1>
    %990 = vector.broadcast %989 : vector<8x1xi1> to vector<8x128xi1>
    %991 = arith.select %990, %980, %988 : vector<8x128xi1>, vector<8x128xf32>
    %c0_490 = arith.constant 0 : index
    %c0_491 = arith.constant 0 : index
    %992 = vector.load %arg17[%c0_490, %c0_491] : memref<8x128xf32, #tpu.memory_space<vmem>>, vector<8x128xf32>
    tpu.vector_store %arg17[%c0_490, %c0_491], %991 {strides = array<i32>} : memref<8x128xf32, #tpu.memory_space<vmem>>, vector<8x128xf32>,
    %c0_492 = arith.constant 0 : index
    %c0_493 = arith.constant 0 : index
    %993 = vector.load %arg16[%c0_492, %c0_493] : memref<8x128xf32, #tpu.memory_space<vmem>>, vector<8x128xf32>
    %cst_494 = arith.constant 0.000000e+00 : f32
    %994 = vector.shape_cast %949 : vector<8x1xi1> to vector<8x1xi1>
    %995 = vector.broadcast %994 : vector<8x1xi1> to vector<8x128xi1>
    %996 = vector.broadcast %cst_494 : f32 to vector<8x128xf32>
    %997 = arith.select %995, %993, %996 : vector<8x128xi1>, vector<8x128xf32>
    %998 = arith.index_cast %c5_i32_471 : i32 to index
    %c0_495 = arith.constant 0 : index
    %c0_496 = arith.constant 0 : index
    %999 = vector.load %arg20[%998, %c0_495, %c0_496] : memref<8x8x128xf32, #tpu.memory_space<vmem>>, vector<1x8x128xf32>
    %1000 = vector.shape_cast %999 : vector<1x8x128xf32> to vector<8x128xf32>
    %1001 = tpu.concatenate %997, %1000 in 1 : vector<8x128xf32>, vector<8x128xf32> -> vector<8x256xf32>
    %c0_497 = arith.constant 0 : index
    %c0_498 = arith.constant 0 : index
    %1002 = vector.load %arg10[%c0_497, %c0_498] : memref<256x128xf32, #tpu.memory_space<vmem>>, vector<256x128xf32>
    %cst_499 = arith.constant dense<0.000000e+00> : vector<8x128xf32>
    %1003 = tpu.matmul %1001, %1002, %cst_499 {dimension_numbers = #tpu.dot_dimension_numbers<[1], [0], [0], [1], [0, 0, 1, 1], [], []>} : vector<8x256xf32>, vector<256x128xf32>, vector<8x128xf32> -> vector<8x128xf32>
    %c0_500 = arith.constant 0 : index
    %c0_501 = arith.constant 0 : index
    %1004 = vector.load %arg11[%c0_500, %c0_501] : memref<1x128xf32, #tpu.memory_space<vmem>>, vector<1x128xf32>
    %1005 = vector.broadcast %1004 : vector<1x128xf32> to vector<8x128xf32>
    %1006 = arith.addf %1003, %1005 : vector<8x128xf32>
    %1007 = arith.index_cast %c5_i32_471 : i32 to index
    %c0_502 = arith.constant 0 : index
    %c0_503 = arith.constant 0 : index
    %1008 = vector.load %arg3[%1007, %c0_502, %c0_503] : memref<8x8x1xi32, #tpu.memory_space<vmem>>, vector<1x8x1xi32>
    %1009 = vector.shape_cast %1008 : vector<1x8x1xi32> to vector<8x1xi32>
    %cst_504 = arith.constant dense<0xFF800000> : vector<8xf32>
    %1010 = vector.multi_reduction <maximumf>, %1006, %cst_504 [1] : vector<8x128xf32> to vector<8xf32>
    %1011 = vector.shape_cast %1010 : vector<8xf32> to vector<8x1xf32>
    %1012 = vector.broadcast %1011 : vector<8x1xf32> to vector<8x128xf32>
    %1013 = arith.subf %1006, %1012 : vector<8x128xf32>
    %1014 = math.exp %1013 : vector<8x128xf32>
    %cst_505 = arith.constant dense<0.000000e+00> : vector<8xf32>
    %1015 = vector.multi_reduction <add>, %1014, %cst_505 [1] : vector<8x128xf32> to vector<8xf32>
    %1016 = vector.shape_cast %1015 : vector<8xf32> to vector<8x1xf32>
    %1017 = math.log %1016 : vector<8x1xf32>
    %1018 = arith.addf %1017, %1011 : vector<8x1xf32>
    %1019 = vector.broadcast %1009 : vector<8x1xi32> to vector<8x128xi32>
    %1020 = arith.cmpi eq, %467, %1019 : vector<8x128xi32>
    %cst_506 = arith.constant 0.000000e+00 : f32
    %1021 = vector.broadcast %cst_506 : f32 to vector<8x128xf32>
    %1022 = arith.select %1020, %1006, %1021 : vector<8x128xi1>, vector<8x128xf32>
    %cst_507 = arith.constant dense<0.000000e+00> : vector<8xf32>
    %1023 = vector.multi_reduction <add>, %1022, %cst_507 [1] : vector<8x128xf32> to vector<8xf32>
    %1024 = vector.shape_cast %1023 : vector<8xf32> to vector<8x1xf32>
    %c0_i32_508 = arith.constant 0 : i32
    %1025 = vector.broadcast %c0_i32_508 : i32 to vector<8x1xi32>
    %1026 = arith.cmpi ne, %1009, %1025 : vector<8x1xi32>
    %1027 = arith.extui %1026 : vector<8x1xi1> to vector<8x1xi32>
    %1028 = arith.sitofp %1027 : vector<8x1xi32> to vector<8x1xf32>
    %c0_509 = arith.constant 0 : index
    %c0_510 = arith.constant 0 : index
    %1029 = vector.load %arg12[%c0_509, %c0_510] : memref<8x1xf32, #tpu.memory_space<vmem>>, vector<8x1xf32>
    %1030 = arith.subf %1018, %1024 : vector<8x1xf32>
    %1031 = arith.mulf %1028, %1030 : vector<8x1xf32>
    %1032 = arith.addf %1029, %1031 : vector<8x1xf32>
    %c0_511 = arith.constant 0 : index
    %c0_512 = arith.constant 0 : index
    %1033 = vector.load %arg12[%c0_511, %c0_512] : memref<8x1xf32, #tpu.memory_space<vmem>>, vector<8x1xf32>
    tpu.vector_store %arg12[%c0_511, %c0_512], %1032 {strides = array<i32>} : memref<8x1xf32, #tpu.memory_space<vmem>>, vector<8x1xf32>,
    %1034 = vector.broadcast %1011 : vector<8x1xf32> to vector<8x128xf32>
    %1035 = arith.cmpf oeq, %1006, %1034 : vector<8x128xf32>
    %c128_i32_513 = arith.constant 128 : i32
    %1036 = vector.broadcast %c128_i32_513 : i32 to vector<8x128xi32>
    %1037 = arith.select %1035, %467, %1036 : vector<8x128xi1>, vector<8x128xi32>
    %cst_514 = arith.constant dense<2147483647> : vector<8xi32>
    %1038 = vector.multi_reduction <minsi>, %1037, %cst_514 [1] : vector<8x128xi32> to vector<8xi32>
    %1039 = vector.shape_cast %1038 : vector<8xi32> to vector<8x1xi32>
    %1040 = arith.index_cast %c5_i32_471 : i32 to index
    %c0_515 = arith.constant 0 : index
    %c0_516 = arith.constant 0 : index
    %1041 = vector.load %arg13[%1040, %c0_515, %c0_516] : memref<8x8x1xi32, #tpu.memory_space<vmem>>, vector<1x8x1xi32>
    %1042 = vector.shape_cast %1041 : vector<1x8x1xi32> to vector<8x1xi32>
    %1043 = vector.shape_cast %1039 : vector<8x1xi32> to vector<1x8x1xi32>
    tpu.vector_store %arg13[%1040, %c0_515, %c0_516], %1043 {strides = array<i32>} : memref<8x8x1xi32, #tpu.memory_space<vmem>>, vector<1x8x1xi32>,
    %c6_i32_517 = arith.constant 6 : i32
    %1044 = vector.broadcast %c6_i32_517 : i32 to vector<8x1xi32>
    %1045 = arith.cmpi sgt, %26, %1044 : vector<8x1xi32>
    %1046 = arith.index_cast %c6_i32_517 : i32 to index
    %c0_518 = arith.constant 0 : index
    %c0_519 = arith.constant 0 : index
    %1047 = vector.load %arg14[%1046, %c0_518, %c0_519] : memref<8x8x512xf32, #tpu.memory_space<vmem>>, vector<1x8x512xf32>
    %1048 = vector.shape_cast %1047 : vector<1x8x512xf32> to vector<8x512xf32>
    %c0_520 = arith.constant 0 : index
    %c0_521 = arith.constant 0 : index
    %1049 = vector.load %arg16[%c0_520, %c0_521] : memref<8x128xf32, #tpu.memory_space<vmem>>, vector<8x128xf32>
    %c0_522 = arith.constant 0 : index
    %c0_523 = arith.constant 0 : index
    %1050 = vector.load %arg17[%c0_522, %c0_523] : memref<8x128xf32, #tpu.memory_space<vmem>>, vector<8x128xf32>
    %c0_524 = arith.constant 0 : index
    %c0_525 = arith.constant 0 : index
    %1051 = vector.load %arg5[%c0_524, %c0_525] : memref<128x512xf32, #tpu.memory_space<vmem>>, vector<128x512xf32>
    %cst_526 = arith.constant dense<0.000000e+00> : vector<8x512xf32>
    %1052 = tpu.matmul %1049, %1051, %cst_526 {dimension_numbers = #tpu.dot_dimension_numbers<[1], [0], [0], [1], [0, 0, 1, 1], [], []>} : vector<8x128xf32>, vector<128x512xf32>, vector<8x512xf32> -> vector<8x512xf32>
    %1053 = arith.addf %1048, %1052 : vector<8x512xf32>
    %1054 = vector.extract_strided_slice %1053 {offsets = [0, 0], sizes = [8, 128], strides = [1, 1]} : vector<8x512xf32> to vector<8x128xf32>
    %1055 = arith.negf %1054 : vector<8x128xf32>
    %1056 = math.exp %1055 : vector<8x128xf32>
    %cst_527 = arith.constant 1.000000e+00 : f32
    %1057 = vector.broadcast %cst_527 : f32 to vector<8x128xf32>
    %1058 = arith.addf %1057, %1056 : vector<8x128xf32>
    %1059 = arith.divf %1057, %1058 : vector<8x128xf32>
    %1060 = vector.extract_strided_slice %1053 {offsets = [0, 128], sizes = [8, 128], strides = [1, 1]} : vector<8x512xf32> to vector<8x128xf32>
    %1061 = arith.negf %1060 : vector<8x128xf32>
    %1062 = math.exp %1061 : vector<8x128xf32>
    %cst_528 = arith.constant 1.000000e+00 : f32
    %1063 = vector.broadcast %cst_528 : f32 to vector<8x128xf32>
    %1064 = arith.addf %1063, %1062 : vector<8x128xf32>
    %1065 = arith.divf %1063, %1064 : vector<8x128xf32>
    %1066 = vector.extract_strided_slice %1053 {offsets = [0, 256], sizes = [8, 128], strides = [1, 1]} : vector<8x512xf32> to vector<8x128xf32>
    %1067 = math.tanh %1066 : vector<8x128xf32>
    %1068 = vector.extract_strided_slice %1053 {offsets = [0, 384], sizes = [8, 128], strides = [1, 1]} : vector<8x512xf32> to vector<8x128xf32>
    %1069 = arith.negf %1068 : vector<8x128xf32>
    %1070 = math.exp %1069 : vector<8x128xf32>
    %cst_529 = arith.constant 1.000000e+00 : f32
    %1071 = vector.broadcast %cst_529 : f32 to vector<8x128xf32>
    %1072 = arith.addf %1071, %1070 : vector<8x128xf32>
    %1073 = arith.divf %1071, %1072 : vector<8x128xf32>
    %1074 = arith.mulf %1065, %1050 : vector<8x128xf32>
    %1075 = arith.mulf %1059, %1067 : vector<8x128xf32>
    %1076 = arith.addf %1074, %1075 : vector<8x128xf32>
    %1077 = math.tanh %1076 : vector<8x128xf32>
    %1078 = arith.mulf %1073, %1077 : vector<8x128xf32>
    %c0_530 = arith.constant 0 : index
    %c0_531 = arith.constant 0 : index
    %1079 = vector.load %arg16[%c0_530, %c0_531] : memref<8x128xf32, #tpu.memory_space<vmem>>, vector<8x128xf32>
    %1080 = vector.shape_cast %1045 : vector<8x1xi1> to vector<8x1xi1>
    %1081 = vector.broadcast %1080 : vector<8x1xi1> to vector<8x128xi1>
    %1082 = arith.select %1081, %1078, %1079 : vector<8x128xi1>, vector<8x128xf32>
    %c0_532 = arith.constant 0 : index
    %c0_533 = arith.constant 0 : index
    %1083 = vector.load %arg16[%c0_532, %c0_533] : memref<8x128xf32, #tpu.memory_space<vmem>>, vector<8x128xf32>
    tpu.vector_store %arg16[%c0_532, %c0_533], %1082 {strides = array<i32>} : memref<8x128xf32, #tpu.memory_space<vmem>>, vector<8x128xf32>,
    %c0_534 = arith.constant 0 : index
    %c0_535 = arith.constant 0 : index
    %1084 = vector.load %arg17[%c0_534, %c0_535] : memref<8x128xf32, #tpu.memory_space<vmem>>, vector<8x128xf32>
    %1085 = vector.shape_cast %1045 : vector<8x1xi1> to vector<8x1xi1>
    %1086 = vector.broadcast %1085 : vector<8x1xi1> to vector<8x128xi1>
    %1087 = arith.select %1086, %1076, %1084 : vector<8x128xi1>, vector<8x128xf32>
    %c0_536 = arith.constant 0 : index
    %c0_537 = arith.constant 0 : index
    %1088 = vector.load %arg17[%c0_536, %c0_537] : memref<8x128xf32, #tpu.memory_space<vmem>>, vector<8x128xf32>
    tpu.vector_store %arg17[%c0_536, %c0_537], %1087 {strides = array<i32>} : memref<8x128xf32, #tpu.memory_space<vmem>>, vector<8x128xf32>,
    %c0_538 = arith.constant 0 : index
    %c0_539 = arith.constant 0 : index
    %1089 = vector.load %arg16[%c0_538, %c0_539] : memref<8x128xf32, #tpu.memory_space<vmem>>, vector<8x128xf32>
    %cst_540 = arith.constant 0.000000e+00 : f32
    %1090 = vector.shape_cast %1045 : vector<8x1xi1> to vector<8x1xi1>
    %1091 = vector.broadcast %1090 : vector<8x1xi1> to vector<8x128xi1>
    %1092 = vector.broadcast %cst_540 : f32 to vector<8x128xf32>
    %1093 = arith.select %1091, %1089, %1092 : vector<8x128xi1>, vector<8x128xf32>
    %1094 = arith.index_cast %c6_i32_517 : i32 to index
    %c0_541 = arith.constant 0 : index
    %c0_542 = arith.constant 0 : index
    %1095 = vector.load %arg20[%1094, %c0_541, %c0_542] : memref<8x8x128xf32, #tpu.memory_space<vmem>>, vector<1x8x128xf32>
    %1096 = vector.shape_cast %1095 : vector<1x8x128xf32> to vector<8x128xf32>
    %1097 = tpu.concatenate %1093, %1096 in 1 : vector<8x128xf32>, vector<8x128xf32> -> vector<8x256xf32>
    %c0_543 = arith.constant 0 : index
    %c0_544 = arith.constant 0 : index
    %1098 = vector.load %arg10[%c0_543, %c0_544] : memref<256x128xf32, #tpu.memory_space<vmem>>, vector<256x128xf32>
    %cst_545 = arith.constant dense<0.000000e+00> : vector<8x128xf32>
    %1099 = tpu.matmul %1097, %1098, %cst_545 {dimension_numbers = #tpu.dot_dimension_numbers<[1], [0], [0], [1], [0, 0, 1, 1], [], []>} : vector<8x256xf32>, vector<256x128xf32>, vector<8x128xf32> -> vector<8x128xf32>
    %c0_546 = arith.constant 0 : index
    %c0_547 = arith.constant 0 : index
    %1100 = vector.load %arg11[%c0_546, %c0_547] : memref<1x128xf32, #tpu.memory_space<vmem>>, vector<1x128xf32>
    %1101 = vector.broadcast %1100 : vector<1x128xf32> to vector<8x128xf32>
    %1102 = arith.addf %1099, %1101 : vector<8x128xf32>
    %1103 = arith.index_cast %c6_i32_517 : i32 to index
    %c0_548 = arith.constant 0 : index
    %c0_549 = arith.constant 0 : index
    %1104 = vector.load %arg3[%1103, %c0_548, %c0_549] : memref<8x8x1xi32, #tpu.memory_space<vmem>>, vector<1x8x1xi32>
    %1105 = vector.shape_cast %1104 : vector<1x8x1xi32> to vector<8x1xi32>
    %cst_550 = arith.constant dense<0xFF800000> : vector<8xf32>
    %1106 = vector.multi_reduction <maximumf>, %1102, %cst_550 [1] : vector<8x128xf32> to vector<8xf32>
    %1107 = vector.shape_cast %1106 : vector<8xf32> to vector<8x1xf32>
    %1108 = vector.broadcast %1107 : vector<8x1xf32> to vector<8x128xf32>
    %1109 = arith.subf %1102, %1108 : vector<8x128xf32>
    %1110 = math.exp %1109 : vector<8x128xf32>
    %cst_551 = arith.constant dense<0.000000e+00> : vector<8xf32>
    %1111 = vector.multi_reduction <add>, %1110, %cst_551 [1] : vector<8x128xf32> to vector<8xf32>
    %1112 = vector.shape_cast %1111 : vector<8xf32> to vector<8x1xf32>
    %1113 = math.log %1112 : vector<8x1xf32>
    %1114 = arith.addf %1113, %1107 : vector<8x1xf32>
    %1115 = vector.broadcast %1105 : vector<8x1xi32> to vector<8x128xi32>
    %1116 = arith.cmpi eq, %467, %1115 : vector<8x128xi32>
    %cst_552 = arith.constant 0.000000e+00 : f32
    %1117 = vector.broadcast %cst_552 : f32 to vector<8x128xf32>
    %1118 = arith.select %1116, %1102, %1117 : vector<8x128xi1>, vector<8x128xf32>
    %cst_553 = arith.constant dense<0.000000e+00> : vector<8xf32>
    %1119 = vector.multi_reduction <add>, %1118, %cst_553 [1] : vector<8x128xf32> to vector<8xf32>
    %1120 = vector.shape_cast %1119 : vector<8xf32> to vector<8x1xf32>
    %c0_i32_554 = arith.constant 0 : i32
    %1121 = vector.broadcast %c0_i32_554 : i32 to vector<8x1xi32>
    %1122 = arith.cmpi ne, %1105, %1121 : vector<8x1xi32>
    %1123 = arith.extui %1122 : vector<8x1xi1> to vector<8x1xi32>
    %1124 = arith.sitofp %1123 : vector<8x1xi32> to vector<8x1xf32>
    %c0_555 = arith.constant 0 : index
    %c0_556 = arith.constant 0 : index
    %1125 = vector.load %arg12[%c0_555, %c0_556] : memref<8x1xf32, #tpu.memory_space<vmem>>, vector<8x1xf32>
    %1126 = arith.subf %1114, %1120 : vector<8x1xf32>
    %1127 = arith.mulf %1124, %1126 : vector<8x1xf32>
    %1128 = arith.addf %1125, %1127 : vector<8x1xf32>
    %c0_557 = arith.constant 0 : index
    %c0_558 = arith.constant 0 : index
    %1129 = vector.load %arg12[%c0_557, %c0_558] : memref<8x1xf32, #tpu.memory_space<vmem>>, vector<8x1xf32>
    tpu.vector_store %arg12[%c0_557, %c0_558], %1128 {strides = array<i32>} : memref<8x1xf32, #tpu.memory_space<vmem>>, vector<8x1xf32>,
    %1130 = vector.broadcast %1107 : vector<8x1xf32> to vector<8x128xf32>
    %1131 = arith.cmpf oeq, %1102, %1130 : vector<8x128xf32>
    %c128_i32_559 = arith.constant 128 : i32
    %1132 = vector.broadcast %c128_i32_559 : i32 to vector<8x128xi32>
    %1133 = arith.select %1131, %467, %1132 : vector<8x128xi1>, vector<8x128xi32>
    %cst_560 = arith.constant dense<2147483647> : vector<8xi32>
    %1134 = vector.multi_reduction <minsi>, %1133, %cst_560 [1] : vector<8x128xi32> to vector<8xi32>
    %1135 = vector.shape_cast %1134 : vector<8xi32> to vector<8x1xi32>
    %1136 = arith.index_cast %c6_i32_517 : i32 to index
    %c0_561 = arith.constant 0 : index
    %c0_562 = arith.constant 0 : index
    %1137 = vector.load %arg13[%1136, %c0_561, %c0_562] : memref<8x8x1xi32, #tpu.memory_space<vmem>>, vector<1x8x1xi32>
    %1138 = vector.shape_cast %1137 : vector<1x8x1xi32> to vector<8x1xi32>
    %1139 = vector.shape_cast %1135 : vector<8x1xi32> to vector<1x8x1xi32>
    tpu.vector_store %arg13[%1136, %c0_561, %c0_562], %1139 {strides = array<i32>} : memref<8x8x1xi32, #tpu.memory_space<vmem>>, vector<1x8x1xi32>,
    %c7_i32_563 = arith.constant 7 : i32
    %1140 = vector.broadcast %c7_i32_563 : i32 to vector<8x1xi32>
    %1141 = arith.cmpi sgt, %26, %1140 : vector<8x1xi32>
    %1142 = arith.index_cast %c7_i32_563 : i32 to index
    %c0_564 = arith.constant 0 : index
    %c0_565 = arith.constant 0 : index
    %1143 = vector.load %arg14[%1142, %c0_564, %c0_565] : memref<8x8x512xf32, #tpu.memory_space<vmem>>, vector<1x8x512xf32>
    %1144 = vector.shape_cast %1143 : vector<1x8x512xf32> to vector<8x512xf32>
    %c0_566 = arith.constant 0 : index
    %c0_567 = arith.constant 0 : index
    %1145 = vector.load %arg16[%c0_566, %c0_567] : memref<8x128xf32, #tpu.memory_space<vmem>>, vector<8x128xf32>
    %c0_568 = arith.constant 0 : index
    %c0_569 = arith.constant 0 : index
    %1146 = vector.load %arg17[%c0_568, %c0_569] : memref<8x128xf32, #tpu.memory_space<vmem>>, vector<8x128xf32>
    %c0_570 = arith.constant 0 : index
    %c0_571 = arith.constant 0 : index
    %1147 = vector.load %arg5[%c0_570, %c0_571] : memref<128x512xf32, #tpu.memory_space<vmem>>, vector<128x512xf32>
    %cst_572 = arith.constant dense<0.000000e+00> : vector<8x512xf32>
    %1148 = tpu.matmul %1145, %1147, %cst_572 {dimension_numbers = #tpu.dot_dimension_numbers<[1], [0], [0], [1], [0, 0, 1, 1], [], []>} : vector<8x128xf32>, vector<128x512xf32>, vector<8x512xf32> -> vector<8x512xf32>
    %1149 = arith.addf %1144, %1148 : vector<8x512xf32>
    %1150 = vector.extract_strided_slice %1149 {offsets = [0, 0], sizes = [8, 128], strides = [1, 1]} : vector<8x512xf32> to vector<8x128xf32>
    %1151 = arith.negf %1150 : vector<8x128xf32>
    %1152 = math.exp %1151 : vector<8x128xf32>
    %cst_573 = arith.constant 1.000000e+00 : f32
    %1153 = vector.broadcast %cst_573 : f32 to vector<8x128xf32>
    %1154 = arith.addf %1153, %1152 : vector<8x128xf32>
    %1155 = arith.divf %1153, %1154 : vector<8x128xf32>
    %1156 = vector.extract_strided_slice %1149 {offsets = [0, 128], sizes = [8, 128], strides = [1, 1]} : vector<8x512xf32> to vector<8x128xf32>
    %1157 = arith.negf %1156 : vector<8x128xf32>
    %1158 = math.exp %1157 : vector<8x128xf32>
    %cst_574 = arith.constant 1.000000e+00 : f32
    %1159 = vector.broadcast %cst_574 : f32 to vector<8x128xf32>
    %1160 = arith.addf %1159, %1158 : vector<8x128xf32>
    %1161 = arith.divf %1159, %1160 : vector<8x128xf32>
    %1162 = vector.extract_strided_slice %1149 {offsets = [0, 256], sizes = [8, 128], strides = [1, 1]} : vector<8x512xf32> to vector<8x128xf32>
    %1163 = math.tanh %1162 : vector<8x128xf32>
    %1164 = vector.extract_strided_slice %1149 {offsets = [0, 384], sizes = [8, 128], strides = [1, 1]} : vector<8x512xf32> to vector<8x128xf32>
    %1165 = arith.negf %1164 : vector<8x128xf32>
    %1166 = math.exp %1165 : vector<8x128xf32>
    %cst_575 = arith.constant 1.000000e+00 : f32
    %1167 = vector.broadcast %cst_575 : f32 to vector<8x128xf32>
    %1168 = arith.addf %1167, %1166 : vector<8x128xf32>
    %1169 = arith.divf %1167, %1168 : vector<8x128xf32>
    %1170 = arith.mulf %1161, %1146 : vector<8x128xf32>
    %1171 = arith.mulf %1155, %1163 : vector<8x128xf32>
    %1172 = arith.addf %1170, %1171 : vector<8x128xf32>
    %1173 = math.tanh %1172 : vector<8x128xf32>
    %1174 = arith.mulf %1169, %1173 : vector<8x128xf32>
    %c0_576 = arith.constant 0 : index
    %c0_577 = arith.constant 0 : index
    %1175 = vector.load %arg16[%c0_576, %c0_577] : memref<8x128xf32, #tpu.memory_space<vmem>>, vector<8x128xf32>
    %1176 = vector.shape_cast %1141 : vector<8x1xi1> to vector<8x1xi1>
    %1177 = vector.broadcast %1176 : vector<8x1xi1> to vector<8x128xi1>
    %1178 = arith.select %1177, %1174, %1175 : vector<8x128xi1>, vector<8x128xf32>
    %c0_578 = arith.constant 0 : index
    %c0_579 = arith.constant 0 : index
    %1179 = vector.load %arg16[%c0_578, %c0_579] : memref<8x128xf32, #tpu.memory_space<vmem>>, vector<8x128xf32>
    tpu.vector_store %arg16[%c0_578, %c0_579], %1178 {strides = array<i32>} : memref<8x128xf32, #tpu.memory_space<vmem>>, vector<8x128xf32>,
    %c0_580 = arith.constant 0 : index
    %c0_581 = arith.constant 0 : index
    %1180 = vector.load %arg17[%c0_580, %c0_581] : memref<8x128xf32, #tpu.memory_space<vmem>>, vector<8x128xf32>
    %1181 = vector.shape_cast %1141 : vector<8x1xi1> to vector<8x1xi1>
    %1182 = vector.broadcast %1181 : vector<8x1xi1> to vector<8x128xi1>
    %1183 = arith.select %1182, %1172, %1180 : vector<8x128xi1>, vector<8x128xf32>
    %c0_582 = arith.constant 0 : index
    %c0_583 = arith.constant 0 : index
    %1184 = vector.load %arg17[%c0_582, %c0_583] : memref<8x128xf32, #tpu.memory_space<vmem>>, vector<8x128xf32>
    tpu.vector_store %arg17[%c0_582, %c0_583], %1183 {strides = array<i32>} : memref<8x128xf32, #tpu.memory_space<vmem>>, vector<8x128xf32>,
    %c0_584 = arith.constant 0 : index
    %c0_585 = arith.constant 0 : index
    %1185 = vector.load %arg16[%c0_584, %c0_585] : memref<8x128xf32, #tpu.memory_space<vmem>>, vector<8x128xf32>
    %cst_586 = arith.constant 0.000000e+00 : f32
    %1186 = vector.shape_cast %1141 : vector<8x1xi1> to vector<8x1xi1>
    %1187 = vector.broadcast %1186 : vector<8x1xi1> to vector<8x128xi1>
    %1188 = vector.broadcast %cst_586 : f32 to vector<8x128xf32>
    %1189 = arith.select %1187, %1185, %1188 : vector<8x128xi1>, vector<8x128xf32>
    %1190 = arith.index_cast %c7_i32_563 : i32 to index
    %c0_587 = arith.constant 0 : index
    %c0_588 = arith.constant 0 : index
    %1191 = vector.load %arg20[%1190, %c0_587, %c0_588] : memref<8x8x128xf32, #tpu.memory_space<vmem>>, vector<1x8x128xf32>
    %1192 = vector.shape_cast %1191 : vector<1x8x128xf32> to vector<8x128xf32>
    %1193 = tpu.concatenate %1189, %1192 in 1 : vector<8x128xf32>, vector<8x128xf32> -> vector<8x256xf32>
    %c0_589 = arith.constant 0 : index
    %c0_590 = arith.constant 0 : index
    %1194 = vector.load %arg10[%c0_589, %c0_590] : memref<256x128xf32, #tpu.memory_space<vmem>>, vector<256x128xf32>
    %cst_591 = arith.constant dense<0.000000e+00> : vector<8x128xf32>
    %1195 = tpu.matmul %1193, %1194, %cst_591 {dimension_numbers = #tpu.dot_dimension_numbers<[1], [0], [0], [1], [0, 0, 1, 1], [], []>} : vector<8x256xf32>, vector<256x128xf32>, vector<8x128xf32> -> vector<8x128xf32>
    %c0_592 = arith.constant 0 : index
    %c0_593 = arith.constant 0 : index
    %1196 = vector.load %arg11[%c0_592, %c0_593] : memref<1x128xf32, #tpu.memory_space<vmem>>, vector<1x128xf32>
    %1197 = vector.broadcast %1196 : vector<1x128xf32> to vector<8x128xf32>
    %1198 = arith.addf %1195, %1197 : vector<8x128xf32>
    %1199 = arith.index_cast %c7_i32_563 : i32 to index
    %c0_594 = arith.constant 0 : index
    %c0_595 = arith.constant 0 : index
    %1200 = vector.load %arg3[%1199, %c0_594, %c0_595] : memref<8x8x1xi32, #tpu.memory_space<vmem>>, vector<1x8x1xi32>
    %1201 = vector.shape_cast %1200 : vector<1x8x1xi32> to vector<8x1xi32>
    %cst_596 = arith.constant dense<0xFF800000> : vector<8xf32>
    %1202 = vector.multi_reduction <maximumf>, %1198, %cst_596 [1] : vector<8x128xf32> to vector<8xf32>
    %1203 = vector.shape_cast %1202 : vector<8xf32> to vector<8x1xf32>
    %1204 = vector.broadcast %1203 : vector<8x1xf32> to vector<8x128xf32>
    %1205 = arith.subf %1198, %1204 : vector<8x128xf32>
    %1206 = math.exp %1205 : vector<8x128xf32>
    %cst_597 = arith.constant dense<0.000000e+00> : vector<8xf32>
    %1207 = vector.multi_reduction <add>, %1206, %cst_597 [1] : vector<8x128xf32> to vector<8xf32>
    %1208 = vector.shape_cast %1207 : vector<8xf32> to vector<8x1xf32>
    %1209 = math.log %1208 : vector<8x1xf32>
    %1210 = arith.addf %1209, %1203 : vector<8x1xf32>
    %1211 = vector.broadcast %1201 : vector<8x1xi32> to vector<8x128xi32>
    %1212 = arith.cmpi eq, %467, %1211 : vector<8x128xi32>
    %cst_598 = arith.constant 0.000000e+00 : f32
    %1213 = vector.broadcast %cst_598 : f32 to vector<8x128xf32>
    %1214 = arith.select %1212, %1198, %1213 : vector<8x128xi1>, vector<8x128xf32>
    %cst_599 = arith.constant dense<0.000000e+00> : vector<8xf32>
    %1215 = vector.multi_reduction <add>, %1214, %cst_599 [1] : vector<8x128xf32> to vector<8xf32>
    %1216 = vector.shape_cast %1215 : vector<8xf32> to vector<8x1xf32>
    %c0_i32_600 = arith.constant 0 : i32
    %1217 = vector.broadcast %c0_i32_600 : i32 to vector<8x1xi32>
    %1218 = arith.cmpi ne, %1201, %1217 : vector<8x1xi32>
    %1219 = arith.extui %1218 : vector<8x1xi1> to vector<8x1xi32>
    %1220 = arith.sitofp %1219 : vector<8x1xi32> to vector<8x1xf32>
    %c0_601 = arith.constant 0 : index
    %c0_602 = arith.constant 0 : index
    %1221 = vector.load %arg12[%c0_601, %c0_602] : memref<8x1xf32, #tpu.memory_space<vmem>>, vector<8x1xf32>
    %1222 = arith.subf %1210, %1216 : vector<8x1xf32>
    %1223 = arith.mulf %1220, %1222 : vector<8x1xf32>
    %1224 = arith.addf %1221, %1223 : vector<8x1xf32>
    %c0_603 = arith.constant 0 : index
    %c0_604 = arith.constant 0 : index
    %1225 = vector.load %arg12[%c0_603, %c0_604] : memref<8x1xf32, #tpu.memory_space<vmem>>, vector<8x1xf32>
    tpu.vector_store %arg12[%c0_603, %c0_604], %1224 {strides = array<i32>} : memref<8x1xf32, #tpu.memory_space<vmem>>, vector<8x1xf32>,
    %1226 = vector.broadcast %1203 : vector<8x1xf32> to vector<8x128xf32>
    %1227 = arith.cmpf oeq, %1198, %1226 : vector<8x128xf32>
    %c128_i32_605 = arith.constant 128 : i32
    %1228 = vector.broadcast %c128_i32_605 : i32 to vector<8x128xi32>
    %1229 = arith.select %1227, %467, %1228 : vector<8x128xi1>, vector<8x128xi32>
    %cst_606 = arith.constant dense<2147483647> : vector<8xi32>
    %1230 = vector.multi_reduction <minsi>, %1229, %cst_606 [1] : vector<8x128xi32> to vector<8xi32>
    %1231 = vector.shape_cast %1230 : vector<8xi32> to vector<8x1xi32>
    %1232 = arith.index_cast %c7_i32_563 : i32 to index
    %c0_607 = arith.constant 0 : index
    %c0_608 = arith.constant 0 : index
    %1233 = vector.load %arg13[%1232, %c0_607, %c0_608] : memref<8x8x1xi32, #tpu.memory_space<vmem>>, vector<1x8x1xi32>
    %1234 = vector.shape_cast %1233 : vector<1x8x1xi32> to vector<8x1xi32>
    %1235 = vector.shape_cast %1231 : vector<8x1xi32> to vector<1x8x1xi32>
    tpu.vector_store %arg13[%1232, %c0_607, %c0_608], %1235 {strides = array<i32>} : memref<8x8x1xi32, #tpu.memory_space<vmem>>, vector<1x8x1xi32>,
    %c8_i32_609 = arith.constant 8 : i32
    return
  }
  func.func @transform_0(%arg0: i32) -> (i32, i32, i32) {
    %c0_i32 = arith.constant 0 : i32
    %c0_i32_0 = arith.constant 0 : i32
    %c0_i32_1 = arith.constant 0 : i32
    return %c0_i32, %arg0, %c0_i32_0 : i32, i32, i32
  }
  func.func @transform_1(%arg0: i32) -> (i32, i32) {
    %c0_i32 = arith.constant 0 : i32
    %c0_i32_0 = arith.constant 0 : i32
    return %arg0, %c0_i32 : i32, i32
  }
  func.func @transform_2(%arg0: i32) -> (i32, i32, i32) {
    %c0_i32 = arith.constant 0 : i32
    %c0_i32_0 = arith.constant 0 : i32
    %c0_i32_1 = arith.constant 0 : i32
    return %c0_i32, %arg0, %c0_i32_0 : i32, i32, i32
  }
  func.func @transform_3(%arg0: i32) -> (i32, i32) {
    %c0_i32 = arith.constant 0 : i32
    %c0_i32_0 = arith.constant 0 : i32
    %c0_i32_1 = arith.constant 0 : i32
    return %c0_i32, %c0_i32_0 : i32, i32
  }
  func.func @transform_4(%arg0: i32) -> (i32, i32) {
    %c0_i32 = arith.constant 0 : i32
    %c0_i32_0 = arith.constant 0 : i32
    %c0_i32_1 = arith.constant 0 : i32
    return %c0_i32, %c0_i32_0 : i32, i32
  }
  func.func @transform_5(%arg0: i32) -> (i32, i32) {
    %c0_i32 = arith.constant 0 : i32
    %c0_i32_0 = arith.constant 0 : i32
    %c0_i32_1 = arith.constant 0 : i32
    return %c0_i32, %c0_i32_0 : i32, i32
  }
  func.func @transform_6(%arg0: i32) -> (i32, i32) {
    %c0_i32 = arith.constant 0 : i32
    %c0_i32_0 = arith.constant 0 : i32
    %c0_i32_1 = arith.constant 0 : i32
    return %c0_i32, %c0_i32_0 : i32, i32
  }
  func.func @transform_7(%arg0: i32) -> (i32, i32) {
    %c0_i32 = arith.constant 0 : i32
    %c0_i32_0 = arith.constant 0 : i32
    %c0_i32_1 = arith.constant 0 : i32
    return %c0_i32, %c0_i32_0 : i32, i32
  }
  func.func @transform_8(%arg0: i32) -> (i32, i32) {
    %c0_i32 = arith.constant 0 : i32
    %c0_i32_0 = arith.constant 0 : i32
    %c0_i32_1 = arith.constant 0 : i32
    return %c0_i32, %c0_i32_0 : i32, i32
  }
  func.func @transform_9(%arg0: i32) -> (i32, i32) {
    %c0_i32 = arith.constant 0 : i32
    %c0_i32_0 = arith.constant 0 : i32
    %c0_i32_1 = arith.constant 0 : i32
    return %c0_i32, %c0_i32_0 : i32, i32
  }
  func.func @transform_10(%arg0: i32) -> (i32, i32) {
    %c0_i32 = arith.constant 0 : i32
    %c0_i32_0 = arith.constant 0 : i32
    %c0_i32_1 = arith.constant 0 : i32
    return %c0_i32, %c0_i32_0 : i32, i32
  }
  func.func @transform_11(%arg0: i32) -> (i32, i32) {
    %c0_i32 = arith.constant 0 : i32
    %c0_i32_0 = arith.constant 0 : i32
    return %arg0, %c0_i32 : i32, i32
  }
  func.func @transform_12(%arg0: i32) -> (i32, i32, i32) {
    %c0_i32 = arith.constant 0 : i32
    %c0_i32_0 = arith.constant 0 : i32
    %c0_i32_1 = arith.constant 0 : i32
    return %c0_i32, %arg0, %c0_i32_0 : i32, i32, i32
  }
}

</mosaic_0001>

<bundles_post_ra>
// kernel: tagger_forward.1
= control target key start
LH: loop header
LB: loop body
LE: loop exit
PB: predicated region body
PF: predicated region fallthrough
CT: control target
= control target key end

     0   :  { %v11933_v3 = vmov 0.0   ;;  %v8233_v8 = vmov 0   ;;  %s11918_s3 = inlined_call_operand.vmem [shape: f32[128,512], index: 3, kind: input, shape index: {}]   ;;  %s11919_s6 = inlined_call_operand.vmem [shape: f32[128,512], index: 6, kind: input, shape index: {}]   ;;  %s11920_s0 = inlined_call_operand.vmem [shape: f32[8,8,128], index: 0, kind: input, shape index: {}]   ;;  %s11921_s7 = inlined_call_operand.vmem [shape: f32[128,512], index: 7, kind: input, shape index: {}]   ;;  %s11922_s1 = inlined_call_operand.vmem [shape: s32[8,1], index: 1, kind: input, shape index: {}]   ;;  %s11923_s2 = inlined_call_operand.vmem [shape: s32[8,8,1], index: 2, kind: input, shape index: {}]   ;;  %s11924_s8 = inlined_call_operand.vmem [shape: f32[1,512], index: 8, kind: input, shape index: {}]   ;;  %s11925_s4 = inlined_call_operand.vmem [shape: f32[128,512], index: 4, kind: input, shape index: {}]   ;;  %s11926_s9 = inlined_call_operand.vmem [shape: f32[256,128], index: 9, kind: input, shape index: {}]   ;;  %s11927_s5 = inlined_call_operand.vmem [shape: f32[1,512], index: 5, kind: input, shape index: {}]   ;;  %s11928_s10 = inlined_call_operand.vmem [shape: f32[1,128], index: 10, kind: input, shape index: {}]   ;;  %s11929_s11 = inlined_call_operand.vmem [shape: f32[8,1], index: 11, kind: output, shape index: {0}]   ;;  %s11930_s12 = inlined_call_operand.vmem [shape: s32[8,8,1], index: 12, kind: output, shape index: {1}]  }
   0x1   :  { %v49_v0 = vld [vmem:[%s11918_s3 + $0x8] sm:$0xff]  ;;  %v48_v2 = vld [vmem:[%s11918_s3] sm:$0xff]  ;;  %198 = vmatprep.mubr.f32.mxu0 %v11933_v3  ;;  %311 = vmatprep.mubr.f32.mxu1 %v11933_v3  ;;  %v51_v13 = vld [vmem:[%s11918_s3 + $0x18] sm:$0xff] }
   0x2   :  { %v53_v1 = vld [vmem:[%s11918_s3 + $0x28] sm:$0xff]  ;;  %v52_v5 = vld [vmem:[%s11918_s3 + $0x20] sm:$0xff]  ;;  %7936 = vset.pattern.permute.xlu0 %v8233_v8  ;;  %7937 = vset.pattern.permute.xlu1 %v8233_v8  ;;  %v55_v14 = vld [vmem:[%s11918_s3 + $0x38] sm:$0xff] }
   0x3   :  { %v6398_v4 = vpack.c.bf16 %v53_v1, %v49_v0  ;;  %v57_v6 = vld [vmem:[%s11918_s3 + $0x48] sm:$0xff]  ;;  %v6400_v9 = vpack.c.bf16 %v52_v5, %v48_v2  ;;  %v56_v11 = vld [vmem:[%s11918_s3 + $0x40] sm:$0xff]  ;;  %v6430_v18 = vpack.c.bf16 %v55_v14, %v51_v13  ;;  %v50_v19 = vld [vmem:[%s11918_s3 + $0x10] sm:$0xff] }
   0x4   :  { %v61_v7 = vld [vmem:[%s11918_s3 + $0x68] sm:$0xff]  ;;  %v60_v12 = vld [vmem:[%s11918_s3 + $0x60] sm:$0xff]  ;;  %v54_v20 = vld [vmem:[%s11918_s3 + $0x30] sm:$0xff] }
   0x5   :  { %v6402_v10 = vpack.c.bf16 %v61_v7, %v57_v6  ;;  %6399 = vmatprep.subr.bf16.mxu0 %v6398_v4  ;;  %v65_v15 = vld [vmem:[%s11918_s3 + $0x88] sm:$0xff]  ;;  %v6404_v17 = vpack.c.bf16 %v60_v12, %v56_v11  ;;  %v64_v21 = vld [vmem:[%s11918_s3 + $0x80] sm:$0xff]  ;;  %v6432_v23 = vpack.c.bf16 %v54_v20, %v50_v19  ;;  %v59_v25 = vld [vmem:[%s11918_s3 + $0x58] sm:$0xff]  ;;  %6431 = vmatprep.subr.bf16.mxu1 %v6430_v18 }
   0x6   :  { %v69_v16 = vld [vmem:[%s11918_s3 + $0xa8] sm:$0xff]  ;;  %6401 = vmatpush1.bf16.msra.mxu0 %v6400_v9  ;;  %v68_v24 = vld [vmem:[%s11918_s3 + $0xa0] sm:$0xff]  ;;  %v63_v26 = vld [vmem:[%s11918_s3 + $0x78] sm:$0xff] }
   0x7   :  { %6403 = vmatprep.subr.bf16.mxu0 %v6402_v10  ;;  %v6406_v22 = vpack.c.bf16 %v69_v16, %v65_v15  ;;  %v6434_v27 = vpack.c.bf16 %v63_v26, %v59_v25  ;;  %v73_v28 = vld [vmem:[%s11918_s3 + $0xc8] sm:$0xff]  ;;  %v58_v30 = vld [vmem:[%s11918_s3 + $0x50] sm:$0xff]  ;;  %6433 = vmatpush1.bf16.msra.mxu1 %v6432_v23  ;;  %v6408_v32 = vpack.c.bf16 %v68_v24, %v64_v21  ;;  %v72_v34 = vld [vmem:[%s11918_s3 + $0xc0] sm:$0xff] }
   0x8   :  { %v77_v29 = vld [vmem:[%s11918_s3 + $0xe8] sm:$0xff]  ;;  %v62_v31 = vld [vmem:[%s11918_s3 + $0x70] sm:$0xff]  ;;  %v67_v35 = vld [vmem:[%s11918_s3 + $0x98] sm:$0xff] }
   0x9   :  { %6435 = vmatprep.subr.bf16.mxu1 %v6434_v27  ;;  %v6436_v33 = vpack.c.bf16 %v62_v31, %v58_v30  ;;  %v71_v36 = vld [vmem:[%s11918_s3 + $0xb8] sm:$0xff]  ;;  %v6410_v37 = vpack.c.bf16 %v77_v29, %v73_v28  ;;  %v76_v38 = vld [vmem:[%s11918_s3 + $0xe0] sm:$0xff]  ;;  %v66_v40 = vld [vmem:[%s11918_s3 + $0x90] sm:$0xff] }
   0xa   :  { %6405 = vmatpush1.bf16.msra.mxu0 %v6404_v17  ;;  %v6438_v39 = vpack.c.bf16 %v71_v36, %v67_v35  ;;  %v70_v41 = vld [vmem:[%s11918_s3 + $0xb0] sm:$0xff]  ;;  %v81_v42 = vld [vmem:[%s11918_s3 + $0x108] sm:$0xff]  ;;  %v75_v44 = vld [vmem:[%s11918_s3 + $0xd8] sm:$0xff]  ;;  %v6412_v47 = vpack.c.bf16 %v76_v38, %v72_v34 }
   0xb   :  { %6407 = vmatprep.subr.bf16.mxu0 %v6406_v22  ;;  %v85_v43 = vld [vmem:[%s11918_s3 + $0x128] sm:$0xff]  ;;  %6437 = vmatpush1.bf16.msra.mxu1 %v6436_v33  ;;  %v6440_v45 = vpack.c.bf16 %v70_v41, %v66_v40  ;;  %v79_v46 = vld [vmem:[%s11918_s3 + $0xf8] sm:$0xff]  ;;  %v80_v48 = vld [vmem:[%s11918_s3 + $0x100] sm:$0xff] }
   0xc   :  { %6439 = vmatprep.subr.bf16.mxu1 %v6438_v39  ;;  %v6442_v49 = vpack.c.bf16 %v79_v46, %v75_v44  ;;  %v74_v50 = vld [vmem:[%s11918_s3 + $0xd0] sm:$0xff]  ;;  %v6414_v52 = vpack.c.bf16 %v85_v43, %v81_v42  ;;  %v84_v53 = vld [vmem:[%s11918_s3 + $0x120] sm:$0xff]  ;;  %v83_v54 = vld [vmem:[%s11918_s3 + $0x118] sm:$0xff] }
   0xd   :  { %v78_v51 = vld [vmem:[%s11918_s3 + $0xf0] sm:$0xff]  ;;  %v87_v55 = vld [vmem:[%s11918_s3 + $0x138] sm:$0xff]  ;;  %v89_v56 = vld [vmem:[%s11918_s3 + $0x148] sm:$0xff]  ;;  %v6416_v59 = vpack.c.bf16 %v84_v53, %v80_v48 }
   0xe   :  { %6409 = vmatpush1.bf16.msra.mxu0 %v6408_v32  ;;  %v93_v57 = vld [vmem:[%s11918_s3 + $0x168] sm:$0xff]  ;;  %v6444_v58 = vpack.c.bf16 %v78_v51, %v74_v50  ;;  %v88_v60 = vld [vmem:[%s11918_s3 + $0x140] sm:$0xff]  ;;  %v6446_v61 = vpack.c.bf16 %v87_v55, %v83_v54  ;;  %v82_v62 = vld [vmem:[%s11918_s3 + $0x110] sm:$0xff] }
   0xf   :  { %6411 = vmatprep.subr.bf16.mxu0 %v6410_v37  ;;  %6441 = vmatpush1.bf16.msra.mxu1 %v6440_v45  ;;  %v86_v63 = vld [vmem:[%s11918_s3 + $0x130] sm:$0xff]  ;;  %v6418_v0 = vpack.c.bf16 %v93_v57, %v89_v56  ;;  %v92_v1 = vld [vmem:[%s11918_s3 + $0x160] sm:$0xff]  ;;  %v91_v2 = vld [vmem:[%s11918_s3 + $0x158] sm:$0xff] }
  0x10   :  { %6443 = vmatprep.subr.bf16.mxu1 %v6442_v49  ;;  %v95_v4 = vld [vmem:[%s11918_s3 + $0x178] sm:$0xff]  ;;  %v97_v5 = vld [vmem:[%s11918_s3 + $0x188] sm:$0xff]  ;;  %v6448_v7 = vpack.c.bf16 %v86_v63, %v82_v62  ;;  %v6420_v9 = vpack.c.bf16 %v92_v1, %v88_v60  ;;  %v96_v10 = vld [vmem:[%s11918_s3 + $0x180] sm:$0xff] }
  0x11   :  { %v101_v6 = vld [vmem:[%s11918_s3 + $0x1a8] sm:$0xff]  ;;  %v6450_v11 = vpack.c.bf16 %v95_v4, %v91_v2  ;;  %v90_v12 = vld [vmem:[%s11918_s3 + $0x150] sm:$0xff]  ;;  %v100_v15 = vld [vmem:[%s11918_s3 + $0x1a0] sm:$0xff] }
  0x12   :  { %6413 = vmatpush1.bf16.msra.mxu0 %v6412_v47  ;;  %v94_v13 = vld [vmem:[%s11918_s3 + $0x170] sm:$0xff]  ;;  %v6422_v14 = vpack.c.bf16 %v101_v6, %v97_v5  ;;  %v99_v16 = vld [vmem:[%s11918_s3 + $0x198] sm:$0xff]  ;;  %v105_v18 = vld [vmem:[%s11918_s3 + $0x1c8] sm:$0xff]  ;;  %v6424_v21 = vpack.c.bf16 %v100_v15, %v96_v10 }
  0x13   :  { %6415 = vmatprep.subr.bf16.mxu0 %v6414_v52  ;;  %6445 = vmatpush1.bf16.msra.mxu1 %v6444_v58  ;;  %v103_v17 = vld [vmem:[%s11918_s3 + $0x1b8] sm:$0xff]  ;;  %v109_v19 = vld [vmem:[%s11918_s3 + $0x1e8] sm:$0xff]  ;;  %v6452_v20 = vpack.c.bf16 %v94_v13, %v90_v12  ;;  %v104_v22 = vld [vmem:[%s11918_s3 + $0x1c0] sm:$0xff] }
  0x14   :  { %6447 = vmatprep.subr.bf16.mxu1 %v6446_v61  ;;  %v6454_v23 = vpack.c.bf16 %v103_v17, %v99_v16  ;;  %v98_v24 = vld [vmem:[%s11918_s3 + $0x190] sm:$0xff]  ;;  %v6426_v26 = vpack.c.bf16 %v109_v19, %v105_v18  ;;  %v108_v27 = vld [vmem:[%s11918_s3 + $0x1e0] sm:$0xff]  ;;  %v107_v28 = vld [vmem:[%s11918_s3 + $0x1d8] sm:$0xff] }
  0x15   :  { %v102_v25 = vld [vmem:[%s11918_s3 + $0x1b0] sm:$0xff]  ;;  %v111_v29 = vld [vmem:[%s11918_s3 + $0x1f8] sm:$0xff]  ;;  %v393_v30 = vld [vmem:[%s11919_s6 + $0x8] sm:$0xff]  ;;  %v6428_v33 = vpack.c.bf16 %v108_v27, %v104_v22 }
  0x16   :  { %6417 = vmatpush1.bf16.msra.mxu0 %v6416_v59  ;;  %v397_v31 = vld [vmem:[%s11919_s6 + $0x28] sm:$0xff]  ;;  %v6456_v32 = vpack.c.bf16 %v102_v25, %v98_v24  ;;  %v6458_v34 = vpack.c.bf16 %v111_v29, %v107_v28  ;;  %v106_v35 = vld [vmem:[%s11918_s3 + $0x1d0] sm:$0xff]  ;;  %v392_v38 = vld [vmem:[%s11919_s6] sm:$0xff] }
  0x17   :  { %6419 = vmatprep.subr.bf16.mxu0 %v6418_v0  ;;  %6449 = vmatpush1.bf16.msra.mxu1 %v6448_v7  ;;  %v110_v36 = vld [vmem:[%s11918_s3 + $0x1f0] sm:$0xff]  ;;  %v6462_v37 = vpack.c.bf16 %v397_v31, %v393_v30  ;;  %v396_v39 = vld [vmem:[%s11919_s6 + $0x20] sm:$0xff]  ;;  %v401_v40 = vld [vmem:[%s11919_s6 + $0x48] sm:$0xff] }
  0x18   :  { %6451 = vmatprep.subr.bf16.mxu1 %v6450_v11  ;;  %v405_v41 = vld [vmem:[%s11919_s6 + $0x68] sm:$0xff]  ;;  %v395_v42 = vld [vmem:[%s11919_s6 + $0x18] sm:$0xff]  ;;  %v6460_v44 = vpack.c.bf16 %v110_v36, %v106_v35  ;;  %v8522_v45 = vld [vmem:[%s11920_s0] sm:$0xff]  ;;  %v6464_v46 = vpack.c.bf16 %v396_v39, %v392_v38 }
  0x19   :  { %v399_v43 = vld [vmem:[%s11919_s6 + $0x38] sm:$0xff]  ;;  %v394_v47 = vld [vmem:[%s11919_s6 + $0x10] sm:$0xff]  ;;  %v6466_v49 = vpack.c.bf16 %v405_v41, %v401_v40  ;;  %v400_v50 = vld [vmem:[%s11919_s6 + $0x40] sm:$0xff] }
  0x1a   :  { %6421 = vmatpush1.bf16.msra.mxu0 %v6420_v9  ;;  %v398_v48 = vld [vmem:[%s11919_s6 + $0x30] sm:$0xff]  ;;  %v404_v51 = vld [vmem:[%s11919_s6 + $0x60] sm:$0xff]  ;;  %v6494_v52 = vpack.c.bf16 %v399_v43, %v395_v42  ;;  %v409_v53 = vld [vmem:[%s11919_s6 + $0x88] sm:$0xff] }
  0x1b   :  { %6423 = vmatprep.subr.bf16.mxu0 %v6422_v14  ;;  %6453 = vmatpush1.bf16.msra.mxu1 %v6452_v20  ;;  %v413_v54 = vld [vmem:[%s11919_s6 + $0xa8] sm:$0xff]  ;;  %v6496_v55 = vpack.c.bf16 %v398_v48, %v394_v47  ;;  %v403_v56 = vld [vmem:[%s11919_s6 + $0x58] sm:$0xff]  ;;  %v6468_v59 = vpack.c.bf16 %v404_v51, %v400_v50  ;;  %v402_v60 = vld [vmem:[%s11919_s6 + $0x50] sm:$0xff] }
  0x1c   :  { %6455 = vmatprep.subr.bf16.mxu1 %v6454_v23  ;;  %v407_v57 = vld [vmem:[%s11919_s6 + $0x78] sm:$0xff]  ;;  %v8553_v58 = vld [vmem:[%s11920_s0 + $0x8] sm:$0xff]  ;;  %v406_v61 = vld [vmem:[%s11919_s6 + $0x70] sm:$0xff]  ;;  %v6470_v62 = vpack.c.bf16 %v413_v54, %v409_v53 }
  0x1d   :  { %v408_v63 = vld [vmem:[%s11919_s6 + $0x80] sm:$0xff]  ;;  %v6498_v1 = vpack.c.bf16 %v407_v57, %v403_v56  ;;  %v417_v2 = vld [vmem:[%s11919_s6 + $0xc8] sm:$0xff]  ;;  %v6500_v5 = vpack.c.bf16 %v406_v61, %v402_v60  ;;  %v411_v6 = vld [vmem:[%s11919_s6 + $0x98] sm:$0xff] }
  0x1e   :  { %6425 = vmatpush1.bf16.msra.mxu0 %v6424_v21  ;;  %v412_v0 = vld [vmem:[%s11919_s6 + $0xa0] sm:$0xff]  ;;  %v421_v4 = vld [vmem:[%s11919_s6 + $0xe8] sm:$0xff]  ;;  %v415_v7 = vld [vmem:[%s11919_s6 + $0xb8] sm:$0xff] }
  0x1f   :  { %6427 = vmatprep.subr.bf16.mxu0 %v6426_v26  ;;  %6457 = vmatpush1.bf16.msra.mxu1 %v6456_v32  ;;  %v8585_v9 = vld [vmem:[%s11920_s0 + $0x10] sm:$0xff]  ;;  %v6472_v10 = vpack.c.bf16 %v412_v0, %v408_v63  ;;  %v6474_v13 = vpack.c.bf16 %v421_v4, %v417_v2  ;;  %v416_v14 = vld [vmem:[%s11919_s6 + $0xc0] sm:$0xff]  ;;  %v6502_v16 = vpack.c.bf16 %v415_v7, %v411_v6  ;;  %v425_v17 = vld [vmem:[%s11919_s6 + $0x108] sm:$0xff] }
  0x20   :  { %6459 = vmatprep.subr.bf16.mxu1 %v6458_v34  ;;  %v410_v11 = vld [vmem:[%s11919_s6 + $0x90] sm:$0xff]  ;;  %v420_v15 = vld [vmem:[%s11919_s6 + $0xe0] sm:$0xff]  ;;  %v429_v18 = vld [vmem:[%s11919_s6 + $0x128] sm:$0xff] }
  0x21   :  { %v414_v12 = vld [vmem:[%s11919_s6 + $0xb0] sm:$0xff]  ;;  %v419_v20 = vld [vmem:[%s11919_s6 + $0xd8] sm:$0xff]  ;;  %v6476_v23 = vpack.c.bf16 %v420_v15, %v416_v14  ;;  %v6478_v26 = vpack.c.bf16 %v429_v18, %v425_v17  ;;  %v424_v27 = vld [vmem:[%s11919_s6 + $0x100] sm:$0xff] }
  0x22   :  { %6429 = vmatpush1.bf16.msra.mxu0 %v6428_v33  ;;  %v6504_v19 = vpack.c.bf16 %v414_v12, %v410_v11  ;;  %v423_v21 = vld [vmem:[%s11919_s6 + $0xf8] sm:$0xff]  ;;  %v418_v24 = vld [vmem:[%s11919_s6 + $0xd0] sm:$0xff]  ;;  %v428_v28 = vld [vmem:[%s11919_s6 + $0x120] sm:$0xff] }
  0x23   :  { %6463 = vmatprep.subr.bf16.mxu0 %v6462_v37  ;;  %6461 = vmatpush1.bf16.msra.mxu1 %v6460_v44  ;;  %v8618_v22 = vld [vmem:[%s11920_s0 + $0x18] sm:$0xff]  ;;  %v422_v25 = vld [vmem:[%s11919_s6 + $0xf0] sm:$0xff]  ;;  %v6506_v29 = vpack.c.bf16 %v423_v21, %v419_v20  ;;  %v433_v30 = vld [vmem:[%s11919_s6 + $0x148] sm:$0xff]  ;;  %v6480_v36 = vpack.c.bf16 %v428_v28, %v424_v27 }
  0x24   :  { %6495 = vmatprep.subr.bf16.mxu1 %v6494_v52  ;;  %v437_v31 = vld [vmem:[%s11919_s6 + $0x168] sm:$0xff]  ;;  %v6508_v32 = vpack.c.bf16 %v422_v25, %v418_v24  ;;  %v427_v33 = vld [vmem:[%s11919_s6 + $0x118] sm:$0xff]  ;;  %v8651_v35 = vld [vmem:[%s11920_s0 + $0x20] sm:$0xff] }
  0x25   :  { %199 = vmatmul.mubr.f32.vlgmr.msra.gmra.mrb[0].mxu0 %v8522_v45  ;;  %v431_v34 = vld [vmem:[%s11919_s6 + $0x138] sm:$0xff]  ;;  %v426_v37 = vld [vmem:[%s11919_s6 + $0x110] sm:$0xff]  ;;  %v6482_v39 = vpack.c.bf16 %v437_v31, %v433_v30  ;;  %v432_v40 = vld [vmem:[%s11919_s6 + $0x140] sm:$0xff] }
  0x26   :  { %6465 = vmatpush1.bf16.msra.mxu0 %v6464_v46  ;;  %204 = vmatprep.mubr.f32.mxu0 %v11933_v3  ;;  %v430_v38 = vld [vmem:[%s11919_s6 + $0x130] sm:$0xff]  ;;  %v436_v41 = vld [vmem:[%s11919_s6 + $0x160] sm:$0xff]  ;;  %v6510_v42 = vpack.c.bf16 %v431_v34, %v427_v33  ;;  %v441_v43 = vld [vmem:[%s11919_s6 + $0x188] sm:$0xff] }
  0x27   :  { %6467 = vmatprep.subr.bf16.mxu0 %v6466_v49  ;;  %312 = vmatmul.mubr.f32.vlgmr.msra.gmra.mrb[0].mxu1 %v8522_v45  ;;  %v445_v44 = vld [vmem:[%s11919_s6 + $0x1a8] sm:$0xff]  ;;  %v6512_v46 = vpack.c.bf16 %v430_v38, %v426_v37  ;;  %v435_v47 = vld [vmem:[%s11919_s6 + $0x158] sm:$0xff]  ;;  %v6484_v50 = vpack.c.bf16 %v436_v41, %v432_v40  ;;  %v434_v51 = vld [vmem:[%s11919_s6 + $0x150] sm:$0xff] }
  0x28   :  { %6497 = vmatpush1.bf16.msra.mxu1 %v6496_v55  ;;  %317 = vmatprep.mubr.f32.mxu1 %v11933_v3  ;;  %v439_v48 = vld [vmem:[%s11919_s6 + $0x178] sm:$0xff]  ;;  %v8684_v49 = vld [vmem:[%s11920_s0 + $0x28] sm:$0xff]  ;;  %v438_v52 = vld [vmem:[%s11919_s6 + $0x170] sm:$0xff]  ;;  %v6486_v53 = vpack.c.bf16 %v445_v44, %v441_v43 }
  0x29   :  { %205 = vmatmul.mubr.f32.gmra.mrb[2].mxu0 %v8553_v58  ;;  %6499 = vmatprep.subr.bf16.mxu1 %v6498_v1  ;;  %v440_v54 = vld [vmem:[%s11919_s6 + $0x180] sm:$0xff]  ;;  %v6514_v56 = vpack.c.bf16 %v439_v48, %v435_v47  ;;  %v449_v57 = vld [vmem:[%s11919_s6 + $0x1c8] sm:$0xff]  ;;  %v6516_v60 = vpack.c.bf16 %v438_v52, %v434_v51  ;;  %v443_v61 = vld [vmem:[%s11919_s6 + $0x198] sm:$0xff] }
  0x2a   :  { %6469 = vmatpush1.bf16.msra.mxu0 %v6468_v59  ;;  %210 = vmatprep.mubr.f32.mxu0 %v11933_v3  ;;  %v444_v55 = vld [vmem:[%s11919_s6 + $0x1a0] sm:$0xff]  ;;  %v453_v59 = vld [vmem:[%s11919_s6 + $0x1e8] sm:$0xff]  ;;  %v8717_v63 = vld [vmem:[%s11920_s0 + $0x30] sm:$0xff] }
  0x2b   :  { %6471 = vmatprep.subr.bf16.mxu0 %v6470_v62  ;;  %318 = vmatmul.mubr.f32.gmra.mrb[2].mxu1 %v8553_v58  ;;  %v447_v62 = vld [vmem:[%s11919_s6 + $0x1b8] sm:$0xff]  ;;  %v6488_v0 = vpack.c.bf16 %v444_v55, %v440_v54  ;;  %v442_v1 = vld [vmem:[%s11919_s6 + $0x190] sm:$0xff]  ;;  %v6490_v4 = vpack.c.bf16 %v453_v59, %v449_v57  ;;  %v452_v6 = vld [vmem:[%s11919_s6 + $0x1e0] sm:$0xff] }
  0x2c   :  { %6501 = vmatpush1.bf16.msra.mxu1 %v6500_v5  ;;  %323 = vmatprep.mubr.f32.mxu1 %v11933_v3  ;;  %v446_v2 = vld [vmem:[%s11919_s6 + $0x1b0] sm:$0xff]  ;;  %v448_v5 = vld [vmem:[%s11919_s6 + $0x1c0] sm:$0xff]  ;;  %v6518_v7 = vpack.c.bf16 %v447_v62, %v443_v61  ;;  %v756_v11 = vld [vmem:[%s11921_s7 + $0x28] sm:$0xff] }
  0x2d   :  { %211 = vmatmul.mubr.f32.gmra.mrb[4].mxu0 %v8585_v9  ;;  %6503 = vmatprep.subr.bf16.mxu1 %v6502_v16  ;;  %v6520_v12 = vpack.c.bf16 %v446_v2, %v442_v1  ;;  %v455_v14 = vld [vmem:[%s11919_s6 + $0x1f8] sm:$0xff]  ;;  %v6492_v16 = vpack.c.bf16 %v452_v6, %v448_v5  ;;  %v450_v17 = vld [vmem:[%s11919_s6 + $0x1d0] sm:$0xff]  ;;  %v751_v20 = vld [vmem:[%s11921_s7] sm:$0xff] }
  0x2e   :  { %6473 = vmatpush1.bf16.msra.mxu0 %v6472_v10  ;;  %216 = vmatprep.mubr.f32.mxu0 %v11933_v3  ;;  %v752_v10 = vld [vmem:[%s11921_s7 + $0x8] sm:$0xff]  ;;  %v8750_v15 = vld [vmem:[%s11920_s0 + $0x38] sm:$0xff]  ;;  %v454_v18 = vld [vmem:[%s11919_s6 + $0x1f0] sm:$0xff] }
  0x2f   :  { %6475 = vmatprep.subr.bf16.mxu0 %v6474_v13  ;;  %324 = vmatmul.mubr.f32.gmra.mrb[4].mxu1 %v8585_v9  ;;  %v451_v13 = vld [vmem:[%s11919_s6 + $0x1d8] sm:$0xff]  ;;  %v755_v21 = vld [vmem:[%s11921_s7 + $0x20] sm:$0xff]  ;;  %v760_v24 = vld [vmem:[%s11921_s7 + $0x48] sm:$0xff] }
  0x30   :  { %6505 = vmatpush1.bf16.msra.mxu1 %v6504_v19  ;;  %329 = vmatprep.mubr.f32.mxu1 %v11933_v3  ;;  %v8759_v19 = vpack.c.bf16 %v756_v11, %v752_v10  ;;  %v764_v25 = vld [vmem:[%s11921_s7 + $0x68] sm:$0xff]  ;;  %v754_v27 = vld [vmem:[%s11921_s7 + $0x18] sm:$0xff]  ;;  %v759_v31 = vld [vmem:[%s11921_s7 + $0x40] sm:$0xff] }
  0x31   :  { %217 = vmatmul.mubr.f32.gmra.mrb[6].mxu0 %v8618_v22  ;;  %6507 = vmatprep.subr.bf16.mxu1 %v6506_v29  ;;  %v758_v28 = vld [vmem:[%s11921_s7 + $0x38] sm:$0xff]  ;;  %v8782_v29 = vpack.c.bf16 %v755_v21, %v751_v20  ;;  %v8786_v30 = vpack.c.bf16 %v764_v25, %v760_v24  ;;  %v768_v33 = vld [vmem:[%s11921_s7 + $0x88] sm:$0xff]  ;;  %v753_v37 = vld [vmem:[%s11921_s7 + $0x10] sm:$0xff] }
  0x32   :  { %6477 = vmatpush1.bf16.msra.mxu0 %v6476_v23  ;;  %222 = vmatprep.mubr.f32.mxu0 %v11933_v3  ;;  %v6522_v23 = vpack.c.bf16 %v455_v14, %v451_v13  ;;  %v772_v34 = vld [vmem:[%s11921_s7 + $0xa8] sm:$0xff]  ;;  %v757_v38 = vld [vmem:[%s11921_s7 + $0x30] sm:$0xff]  ;;  %v766_v40 = vld [vmem:[%s11921_s7 + $0x78] sm:$0xff] }
  0x33   :  { %6479 = vmatprep.subr.bf16.mxu0 %v6478_v26  ;;  %330 = vmatmul.mubr.f32.gmra.mrb[6].mxu1 %v8618_v22  ;;  %v6524_v26 = vpack.c.bf16 %v454_v18, %v450_v17  ;;  %v767_v43 = vld [vmem:[%s11921_s7 + $0x80] sm:$0xff]  ;;  %v776_v47 = vld [vmem:[%s11921_s7 + $0xc8] sm:$0xff]  ;;  %v761_v51 = vld [vmem:[%s11921_s7 + $0x50] sm:$0xff] }
  0x34   :  { %6509 = vmatpush1.bf16.msra.mxu1 %v6508_v32  ;;  %335 = vmatprep.mubr.f32.mxu1 %v11933_v3  ;;  %v763_v32 = vld [vmem:[%s11921_s7 + $0x60] sm:$0xff]  ;;  %v780_v48 = vld [vmem:[%s11921_s7 + $0xe8] sm:$0xff]  ;;  %v765_v52 = vld [vmem:[%s11921_s7 + $0x70] sm:$0xff] }
  0x35   :  { %223 = vmatmul.mubr.f32.gmra.mrb[8].mxu0 %v8651_v35  ;;  %6511 = vmatprep.subr.bf16.mxu1 %v6510_v42  ;;  %v8818_v41 = vpack.c.bf16 %v763_v32, %v759_v31  ;;  %v8822_v42 = vpack.c.bf16 %v772_v34, %v768_v33  ;;  %v771_v44 = vld [vmem:[%s11921_s7 + $0xa0] sm:$0xff]  ;;  %v8862_v55 = vpack.c.bf16 %v780_v48, %v776_v47  ;;  %v788_v61 = vld [vmem:[%s11921_s7 + $0x128] sm:$0xff]  ;;  %v773_v1 = vld [vmem:[%s11921_s7 + $0xb0] sm:$0xff] }
  0x36   :  { %6481 = vmatpush1.bf16.msra.mxu0 %v6480_v36  ;;  %228 = vmatprep.mubr.f32.mxu0 %v11933_v3  ;;  %v8801_v36 = vpack.c.bf16 %v758_v28, %v754_v27  ;;  %v8858_v54 = vpack.c.bf16 %v771_v44, %v767_v43  ;;  %v779_v57 = vld [vmem:[%s11921_s7 + $0xe0] sm:$0xff]  ;;  %v8870_v59 = vpack.c.bf16 %v765_v52, %v761_v51  ;;  %v782_v2 = vld [vmem:[%s11921_s7 + $0xf8] sm:$0xff]  ;;  %v792_v11 = vld [vmem:[%s11921_s7 + $0x148] sm:$0xff] }
  0x37   :  { %6483 = vmatprep.subr.bf16.mxu0 %v6482_v39  ;;  %336 = vmatmul.mubr.f32.gmra.mrb[8].mxu1 %v8651_v35  ;;  %v762_v39 = vld [vmem:[%s11921_s7 + $0x58] sm:$0xff]  ;;  %v783_v6 = vld [vmem:[%s11921_s7 + $0x100] sm:$0xff]  ;;  %v777_v14 = vld [vmem:[%s11921_s7 + $0xd0] sm:$0xff] }
  0x38   :  { %6513 = vmatpush1.bf16.msra.mxu1 %v6512_v46  ;;  %341 = vmatprep.mubr.f32.mxu1 %v11933_v3  ;;  %v8830_v46 = vpack.c.bf16 %v757_v38, %v753_v37  ;;  %v790_v17 = vld [vmem:[%s11921_s7 + $0x138] sm:$0xff]  ;;  %v791_v21 = vld [vmem:[%s11921_s7 + $0x140] sm:$0xff]  ;;  %v800_v25 = vld [vmem:[%s11921_s7 + $0x188] sm:$0xff] }
  0x39   :  { %229 = vmatmul.mubr.f32.gmra.mrb[10].mxu0 %v8684_v49  ;;  %6515 = vmatprep.subr.bf16.mxu1 %v6514_v56  ;;  %v775_v56 = vld [vmem:[%s11921_s7 + $0xc0] sm:$0xff]  ;;  %v785_v28 = vld [vmem:[%s11921_s7 + $0x110] sm:$0xff]  ;;  %v798_v32 = vld [vmem:[%s11921_s7 + $0x178] sm:$0xff] }
  0x3a   :  { %6485 = vmatpush1.bf16.msra.mxu0 %v6484_v50  ;;  %234 = vmatprep.mubr.f32.mxu0 %v11933_v3  ;;  %v8840_v50 = vpack.c.bf16 %v766_v40, %v762_v39  ;;  %v789_v31 = vld [vmem:[%s11921_s7 + $0x130] sm:$0xff]  ;;  %v799_v37 = vld [vmem:[%s11921_s7 + $0x180] sm:$0xff]  ;;  %v808_v40 = vld [vmem:[%s11921_s7 + $0x1c8] sm:$0xff] }
  0x3b   :  { %6487 = vmatprep.subr.bf16.mxu0 %v6486_v53  ;;  %342 = vmatmul.mubr.f32.gmra.mrb[10].mxu1 %v8684_v49  ;;  %v774_v53 = vld [vmem:[%s11921_s7 + $0xb8] sm:$0xff]  ;;  %v803_v38 = vld [vmem:[%s11921_s7 + $0x1a0] sm:$0xff]  ;;  %v8990_v39 = vpack.c.bf16 %v789_v31, %v785_v28  ;;  %v812_v44 = vld [vmem:[%s11921_s7 + $0x1e8] sm:$0xff] }
  0x3c   :  { %6517 = vmatpush1.bf16.msra.mxu1 %v6516_v60  ;;  %347 = vmatprep.mubr.f32.mxu1 %v11933_v3  ;;  %v784_v60 = vld [vmem:[%s11921_s7 + $0x108] sm:$0xff]  ;;  %v793_v47 = vld [vmem:[%s11921_s7 + $0x150] sm:$0xff]  ;;  %v806_v51 = vld [vmem:[%s11921_s7 + $0x1b8] sm:$0xff]  ;;  %v9018_v52 = vpack.c.bf16 %v803_v38, %v799_v37 }
  0x3d   :  { %235 = vmatmul.mubr.f32.gmra.mrb[12].mxu0 %v8717_v63  ;;  %6519 = vmatprep.subr.bf16.mxu1 %v6518_v7  ;;  %v8902_v5 = vpack.c.bf16 %v788_v61, %v784_v60  ;;  %v787_v7 = vld [vmem:[%s11921_s7 + $0x120] sm:$0xff]  ;;  %v797_v48 = vld [vmem:[%s11921_s7 + $0x170] sm:$0xff] }
  0x3e   :  { %6489 = vmatpush1.bf16.msra.mxu0 %v6488_v0  ;;  %240 = vmatprep.mubr.f32.mxu0 %v11933_v3  ;;  %v769_v0 = vld [vmem:[%s11921_s7 + $0x90] sm:$0xff]  ;;  %v8938_v18 = vpack.c.bf16 %v787_v7, %v783_v6  ;;  %v811_v60 = vld [vmem:[%s11921_s7 + $0x1e0] sm:$0xff] }
  0x3f   :  { %6491 = vmatprep.subr.bf16.mxu0 %v6490_v4  ;;  %348 = vmatmul.mubr.f32.gmra.mrb[12].mxu1 %v8717_v63  ;;  %v8898_v4 = vpack.c.bf16 %v779_v57, %v775_v56  ;;  %v8910_v10 = vpack.c.bf16 %v773_v1, %v769_v0  ;;  %v9029_v56 = vpack.c.bf16 %v797_v48, %v793_v47  ;;  %v807_v57 = vld [vmem:[%s11921_s7 + $0x1c0] sm:$0xff]  ;;  %v801_v0 = vld [vmem:[%s11921_s7 + $0x190] sm:$0xff] }
  0x40   :  { %6521 = vmatpush1.bf16.msra.mxu1 %v6520_v12  ;;  %353 = vmatprep.mubr.f32.mxu1 %v11933_v3  ;;  %v796_v12 = vld [vmem:[%s11921_s7 + $0x168] sm:$0xff]  ;;  %v805_v1 = vld [vmem:[%s11921_s7 + $0x1b0] sm:$0xff]  ;;  %v456_v31 = vld [vmem:[%s11924_s8] sm:$0xf] }
  0x41   :  { %241 = vmatmul.mubr.f32.gmra.mrb[14].mxu0 %v8750_v15  ;;  %6523 = vmatprep.subr.bf16.mxu1 %v6522_v23  ;;  %v8942_v20 = vpack.c.bf16 %v796_v12, %v792_v11  ;;  %v795_v23 = vld [vmem:[%s11921_s7 + $0x160] sm:$0xff]  ;;  %v9062_v6 = vpack.c.bf16 %v805_v1, %v801_v0  ;;  %v809_v11 = vld [vmem:[%s11921_s7 + $0x1d0] sm:$0xff] }
  0x42   :  { %6493 = vmatpush1.bf16.msra.mxu0 %v6492_v16  ;;  %542 = vmatprep.mubr.f32.mxu0 %v11933_v3  ;;  %v781_v16 = vld [vmem:[%s11921_s7 + $0xf0] sm:$0xff]  ;;  %v8978_v33 = vpack.c.bf16 %v795_v23, %v791_v21  ;;  %v6055_v21 = vld [vmem:[%s11923_s2 + $0x8] sm:$0xff]  ;;  %v6071_v23 = vld [vmem:[%s11923_s2 + $0x18] sm:$0xff] }
  0x43   :  { %6527 = vmatprep.subr.bf16.mxu0 %v8759_v19  ;;  %354 = vmatmul.mubr.f32.gmra.mrb[14].mxu1 %v8750_v15  ;;  %v8950_v24 = vpack.c.bf16 %v781_v16, %v777_v14  ;;  %v813_v12 = vld [vmem:[%s11921_s7 + $0x1f0] sm:$0xff] }
  0x44   :  { %6525 = vmatpush1.bf16.msra.mxu1 %v6524_v26  ;;  %655 = vmatprep.mubr.f32.mxu1 %v11933_v3  ;;  %v804_v26 = vld [vmem:[%s11921_s7 + $0x1a8] sm:$0xff] }
  0x45   :  { %543 = vmatmul.mubr.f32.vlgmr.msra.gmra.mrb[16].mxu0 %v8522_v45  ;;  %6559 = vmatprep.subr.bf16.mxu1 %v8801_v36  ;;  %v8982_v34 = vpack.c.bf16 %v804_v26, %v800_v25  ;;  %v11931_v25 = vlaneseq }
  0x46   :  { %6529 = vmatpush1.bf16.msra.mxu0 %v8782_v29  ;;  %548 = vmatprep.mubr.f32.mxu0 %v11933_v3 }
  0x47   :  { %6531 = vmatprep.subr.bf16.mxu0 %v8786_v30  ;;  %656 = vmatmul.mubr.f32.vlgmr.msra.gmra.mrb[16].mxu1 %v8522_v45  ;;  %v770_v45 = vld [vmem:[%s11921_s7 + $0x98] sm:$0xff]  ;;  %v9140_v26 = vshrl.u32 %v11931_v25, 7 }
  0x48   :  { %661 = vmatprep.mubr.f32.mxu1 %v11933_v3  ;;  %6561 = vmatpush1.bf16.msra.mxu1 %v8830_v46  ;;  %v8880_v62 = vpack.c.bf16 %v774_v53, %v770_v45  ;;  %v9023_v45 = vld [vmem:[%s11922_s1] sm:$0xff]  ;;  %v9027_v53 = vpack.c.bf16 %v812_v44, %v808_v40 }
  0x49   :  { %549 = vmatmul.mubr.f32.gmra.mrb[18].mxu0 %v8553_v58  ;;  %6563 = vmatprep.subr.bf16.mxu1 %v8840_v50  ;;  %vm743_vm0 = vcmp.gt.s32.totalorder %v9023_v45, 7  ;;  %vm999_vm1 = vcmp.gt.s32.totalorder %v9023_v45, 6  ;;  %vm1767_vm2 = vcmp.gt.s32.totalorder %v9023_v45, 3  ;;  %vm2279_vm3 = vcmp.gt.s32.totalorder %v9023_v45, 1 }
  0x4a   :  { %6533 = vmatpush1.bf16.msra.mxu0 %v8818_v41  ;;  %554 = vmatprep.mubr.f32.mxu0 %v11933_v3  ;;  %v985_v14 = vsel %vm743_vm0, 1, %v8233_v8  ;;  %v1241_v16 = vsel %vm999_vm1, 1, %v8233_v8  ;;  %v11937_v28 = vsub.s32 0, %v9140_v26  ;;  %v11935_v37 = vsub.s32 3, %v9140_v26 }
  0x4b   :  { %6535 = vmatprep.subr.bf16.mxu0 %v8822_v42  ;;  %662 = vmatmul.mubr.f32.gmra.mrb[18].mxu1 %v8553_v58  ;;  %v778_v58 = vld [vmem:[%s11921_s7 + $0xd8] sm:$0xff]  ;;  %vm1255_vm5 = vcmp.gt.s32.totalorder %v9023_v45, 5  ;;  %vm1511_vm6 = vcmp.gt.s32.totalorder %v9023_v45, 4  ;;  %vm2023_vm7 = vcmp.gt.s32.totalorder %v9023_v45, 2  ;;  %vm2535_vm8 = vcmp.gt.s32.totalorder %v9023_v45, 0 }
  0x4c   :  { %667 = vmatprep.mubr.f32.mxu1 %v11933_v3  ;;  %6565 = vmatpush1.bf16.msra.mxu1 %v8870_v59  ;;  %v8920_v13 = vpack.c.bf16 %v782_v2, %v778_v58  ;;  %v814_v58 = vld [vmem:[%s11921_s7 + $0x1f8] sm:$0xff]  ;;  %v9058_v2 = vpack.c.bf16 %v811_v60, %v807_v57  ;;  %v11932_v60 = vsub.s32 2, %v9140_v26 }
  0x4d   :  { %555 = vmatmul.mubr.f32.gmra.mrb[20].mxu0 %v8585_v9  ;;  %6567 = vmatprep.subr.bf16.mxu1 %v8880_v62 }
  0x4e   :  { %6537 = vmatpush1.bf16.msra.mxu0 %v8858_v54  ;;  %560 = vmatprep.mubr.f32.mxu0 %v11933_v3  ;;  %v9166_v1 = vrot.slane %v456_v31, %v11932_v60 }
  0x4f   :  { %6539 = vmatprep.subr.bf16.mxu0 %v8862_v55  ;;  %668 = vmatmul.mubr.f32.gmra.mrb[20].mxu1 %v8585_v9  ;;  %v786_v9 = vld [vmem:[%s11921_s7 + $0x118] sm:$0xff] }
  0x50   :  { %673 = vmatprep.mubr.f32.mxu1 %v11933_v3  ;;  %6569 = vmatpush1.bf16.msra.mxu1 %v8910_v10  ;;  %v8960_v27 = vpack.c.bf16 %v790_v17, %v786_v9  ;;  %v2009_v9 = vsel %vm1767_vm2, 1, %v8233_v8  ;;  %v3148_v17 = vld [vmem:[%s11923_s2] sm:$0xff]  ;;  %vm740_vm2 = vcmask 7168  }
  0x51   :  { %561 = vmatmul.mubr.f32.gmra.mrb[22].mxu0 %v8618_v22  ;;  %6571 = vmatprep.subr.bf16.mxu1 %v8920_v13 }
  0x52   :  { %566 = vmatprep.mubr.f32.mxu0 %v11933_v3  ;;  %6541 = vmatpush1.bf16.msra.mxu0 %v8898_v4 }
  0x53   :  { %6543 = vmatprep.subr.bf16.mxu0 %v8902_v5  ;;  %674 = vmatmul.mubr.f32.gmra.mrb[22].mxu1 %v8618_v22  ;;  %v794_v22 = vld [vmem:[%s11921_s7 + $0x158] sm:$0xff] }
  0x54   :  { %679 = vmatprep.mubr.f32.mxu1 %v11933_v3  ;;  %6573 = vmatpush1.bf16.msra.mxu1 %v8950_v24  ;;  %v8997_v43 = vpack.c.bf16 %v798_v32, %v794_v22  ;;  %v11936_v22 = vsub.s32 1, %v9140_v26  ;;  %v9149_v32 = vrot.slane %v456_v31, %v11937_v28 }
  0x55   :  { %567 = vmatmul.mubr.f32.gmra.mrb[24].mxu0 %v8651_v35  ;;  %6575 = vmatprep.subr.bf16.mxu1 %v8960_v27 }
  0x56   :  { %572 = vmatprep.mubr.f32.mxu0 %v11933_v3  ;;  %6545 = vmatpush1.bf16.msra.mxu0 %v8938_v18 }
  0x57   :  { %6547 = vmatprep.subr.bf16.mxu0 %v8942_v20  ;;  %680 = vmatmul.mubr.f32.gmra.mrb[24].mxu1 %v8651_v35  ;;  %v802_v35 = vld [vmem:[%s11921_s7 + $0x198] sm:$0xff] }
  0x58   :  { %685 = vmatprep.mubr.f32.mxu1 %v11933_v3  ;;  %6577 = vmatpush1.bf16.msra.mxu1 %v8990_v39  ;;  %v9039_v61 = vpack.c.bf16 %v806_v51, %v802_v35  ;;  %v9160_v51 = vrot.slane %v456_v31, %v11935_v37 }
  0x59   :  { %573 = vmatmul.mubr.f32.gmra.mrb[26].mxu0 %v8684_v49  ;;  %6579 = vmatprep.subr.bf16.mxu1 %v8997_v43 }
  0x5a   :  { %578 = vmatprep.mubr.f32.mxu0 %v11933_v3  ;;  %6549 = vmatpush1.bf16.msra.mxu0 %v8978_v33 }
  0x5b   :  { %6551 = vmatprep.subr.bf16.mxu0 %v8982_v34  ;;  %686 = vmatmul.mubr.f32.gmra.mrb[26].mxu1 %v8684_v49  ;;  %v810_v49 = vld [vmem:[%s11921_s7 + $0x1d8] sm:$0xff] }
  0x5c   :  { %691 = vmatprep.mubr.f32.mxu1 %v11933_v3  ;;  %6581 = vmatpush1.bf16.msra.mxu1 %v9029_v56  ;;  %v9066_v7 = vpack.c.bf16 %v814_v58, %v810_v49 }
  0x5d   :  { %579 = vmatmul.mubr.f32.gmra.mrb[28].mxu0 %v8717_v63  ;;  %6583 = vmatprep.subr.bf16.mxu1 %v9039_v61 }
  0x5e   :  { %584 = vmatprep.mubr.f32.mxu0 %v11933_v3  ;;  %6553 = vmatpush1.bf16.msra.mxu0 %v9018_v52 }
  0x5f   :  { %6555 = vmatprep.subr.bf16.mxu0 %v9027_v53  ;;  %692 = vmatmul.mubr.f32.gmra.mrb[28].mxu1 %v8717_v63  ;;  %v9081_v63 = vpack.c.bf16 %v813_v12, %v809_v11 }
  0x60   :  { %697 = vmatprep.mubr.f32.mxu1 %v11933_v3  ;;  %6585 = vmatpush1.bf16.msra.mxu1 %v9062_v6 }
  0x61   :  { %585 = vmatmul.mubr.f32.gmra.mrb[30].mxu0 %v8750_v15  ;;  %987 = vperm.xlu0 %7936, %v985_v14  }
  0x62   :  { %6557 = vmatpush1.bf16.msra.mxu0 %v9058_v2  ;;  %879 = vmatprep.mubr.f32.mxu0 %v11933_v3 }
  0x63   :  { %698 = vmatmul.mubr.f32.gmra.mrb[30].mxu1 %v8750_v15  ;;  %6587 = vmatprep.subr.bf16.mxu1 %v9066_v7  ;;  %v2521_v15 = vsel %vm2279_vm3, 1, %v8233_v8 }
  0x64   :  { %950 = vmatprep.mubr.f32.mxu1 %v11933_v3  ;;  %6591 = vmatprep.subr.bf16.mxu0 %v8759_v19 }
  0x65   :  { %6589 = vmatpush1.bf16.msra.mxu1 %v9081_v63  ;;  %1243 = vperm.xlu0 %7936, %v1241_v16  }
  0x66   :  { %6623 = vmatprep.subr.bf16.mxu1 %v8801_v36 }
  0x69   :  { %880 = vmatmul.mubr.f32.vlgmr.msra.gmra.mrb[30].mxu0 %v11933_v3  ;;  %2011 = vperm.xlu0 %7936, %v2009_v9  }
  0x6a   :  { %6593 = vmatpush1.bf16.msra.mxu0 %v8782_v29  ;;  %1135 = vmatprep.mubr.f32.mxu0 %v11933_v3 }
  0x6b   :  { %6595 = vmatprep.subr.bf16.mxu0 %v8786_v30  ;;  %951 = vmatmul.mubr.f32.vlgmr.msra.gmra.mrb[30].mxu1 %v11933_v3 }
  0x6c   :  { %6625 = vmatpush1.bf16.msra.mxu1 %v8830_v46  ;;  %1206 = vmatprep.mubr.f32.mxu1 %v11933_v3 }
  0x6d   :  { %6627 = vmatprep.subr.bf16.mxu1 %v8840_v50  ;;  %2523 = vperm.xlu0 %7936, %v2521_v15  }
  0x6e   :  { %6597 = vmatpush1.bf16.msra.mxu0 %v8818_v41 }
  0x6f   :  { %6599 = vmatprep.subr.bf16.mxu0 %v8822_v42 }
  0x70   :  { %6629 = vmatpush1.bf16.msra.mxu1 %v8870_v59 }
  0x71   :  { %6631 = vmatprep.subr.bf16.mxu1 %v8880_v62  ;;  %3160 = vperm.xlu0 %7936, %v3148_v17  }
  0x72   :  { %6601 = vmatpush1.bf16.msra.mxu0 %v8858_v54 }
  0x73   :  { %6603 = vmatprep.subr.bf16.mxu0 %v8862_v55 }
  0x74   :  { %6633 = vmatpush1.bf16.msra.mxu1 %v8910_v10 }
  0x75   :  { %6635 = vmatprep.subr.bf16.mxu1 %v8920_v13  ;;  %3562 = vperm.xlu0 %7936, %v6055_v21  }
  0x76   :  { %6605 = vmatpush1.bf16.msra.mxu0 %v8898_v4 }
  0x77   :  { %6607 = vmatprep.subr.bf16.mxu0 %v8902_v5 }
  0x78   :  { %6637 = vmatpush1.bf16.msra.mxu1 %v8950_v24 }
  0x79   :  { %6639 = vmatprep.subr.bf16.mxu1 %v8960_v27  ;;  %4368 = vperm.xlu0 %7936, %v6071_v23  }
  0x7a   :  { %6609 = vmatpush1.bf16.msra.mxu0 %v8938_v18 }
  0x7b   :  { %6611 = vmatprep.subr.bf16.mxu0 %v8942_v20 }
  0x7c   :  { %6641 = vmatpush1.bf16.msra.mxu1 %v8990_v39 }
  0x7d   :  { %6643 = vmatprep.subr.bf16.mxu1 %v8997_v43 }
  0x7e   :  { %6613 = vmatpush1.bf16.msra.mxu0 %v8978_v33 }
  0x7f   :  { %6615 = vmatprep.subr.bf16.mxu0 %v8982_v34 }
  0x80   :  { %6645 = vmatpush1.bf16.msra.mxu1 %v9029_v56 }
  0x81   :  { %6647 = vmatprep.subr.bf16.mxu1 %v9039_v61 }
  0x82   :  { %6617 = vmatpush1.bf16.msra.mxu0 %v9018_v52 }
  0x83   :  { %6619 = vmatprep.subr.bf16.mxu0 %v9027_v53 }
  0x84   :  { %6649 = vmatpush1.bf16.msra.mxu1 %v9062_v6 }
  0x85   :  { %6651 = vmatprep.subr.bf16.mxu1 %v9066_v7 }
  0x86   :  { %6621 = vmatpush1.bf16.msra.mxu0 %v9058_v2 }
  0x87   :  { %6655 = vmatprep.subr.bf16.mxu0 %v8759_v19  ;;  %v9153_v19 = vrot.slane %v456_v31, %v11936_v22 }
  0x88   :  { %6653 = vmatpush1.bf16.msra.mxu1 %v9081_v63 }
  0x89   :  { %6687 = vmatprep.subr.bf16.mxu1 %v8801_v36 }
 0x13c   :  { %v881_v36 = vpop.f32.mrb[30].mxu0 }
 0x13d   :  { %v7852_v38 = vadd.f32 %v881_v36, %v9149_v32  ;;  %v883_v40 = vpop.f32.mrb[31].mxu0 }
 0x13e   :  { %v7853_v44 = vadd.f32 %v883_v40, %v9153_v19  ;;  %v952_v48 = vpop.f32.mrb[30].mxu1 }
 0x13f   :  { %v6020_v47 = vmul.f32 -1.442695, %v7852_v38  ;;  %v954_v57 = vpop.f32.mrb[31].mxu1  ;;  %v7868_v58 = vadd.f32 %v952_v48, %v9166_v1 }
 0x140   :  { %v6021_v35 = vmul.f32 -1.442695, %v7853_v44  ;;  %v7869_v0 = vadd.f32 %v954_v57, %v9160_v51 }
 0x141   :  { %7938 = vpow2.f32 %v6020_v47  ;;  %v9172_v47 = vpop.permute.xlu0 %987 }
 0x142   :  { %7940 = vpow2.f32 %v6021_v35  ;;  %v6022_v49 = vmul.f32 -1.442695, %v7869_v0  ;;  %11952 = vst [vmem:[#allocation9_spill] sm:$0xff] %v9172_v47  ;;  %vm989_vm4 = vcmp.eq.s32.totalorder %v9172_v47, 1 }
 0x144   :  { %7942 = vpow2.f32 %v6022_v49 }
 0x145   :  { %7944 = vtanh.f32 %v7868_v58  ;;  %v1520_v58 = vld [vmem:[%s11921_s7 + $0x8] sm:$0xff] }
 0x14b   :  { %v7939_v11 = vpop.eup %7938 }
 0x14c   :  { %v7941_v12 = vpop.eup %7940  ;;  %v964_v14 = vadd.f32 1.0, %v7939_v11  ;;  %v1524_v11 = vld [vmem:[%s11921_s7 + $0x28] sm:$0xff] }
 0x14d   :  { %v970_v16 = vadd.f32 1.0, %v7941_v12  ;;  %v1522_v12 = vld [vmem:[%s11921_s7 + $0x18] sm:$0xff] }
 0x14e   :  { %7946 = vrcp.f32 %v964_v14  ;;  %v7943_v9 = vpop.eup %7942  ;;  %v9263_v14 = vpack.c.bf16 %v1524_v11, %v1520_v58  ;;  %v1552_v58 = vld [vmem:[%s11921_s7 + $0x108] sm:$0xff] }
 0x14f   :  { %7948 = vrcp.f32 %v970_v16  ;;  %v7945_v15 = vpop.eup %7944  ;;  %v977_v36 = vadd.f32 1.0, %v7943_v9  ;;  %v1526_v16 = vld [vmem:[%s11921_s7 + $0x38] sm:$0xff]  ;;  %v1519_v9 = vld [vmem:[%s11921_s7] sm:$0xff]  ;;  %v1556_v11 = vld [vmem:[%s11921_s7 + $0x128] sm:$0xff] }
 0x151   :  { %7950 = vrcp.f32 %v977_v36  ;;  %v1525_v36 = vld [vmem:[%s11921_s7 + $0x30] sm:$0xff] }
 0x158   :  { %v7947_v17 = vpop.eup %7946 }
 0x159   :  { %v7949_v21 = vpop.eup %7948  ;;  %v981_v23 = vmul.f32 %v7947_v17, %v7945_v15  ;;  %v1523_v15 = vld [vmem:[%s11921_s7 + $0x20] sm:$0xff]  ;;  %v9274_v17 = vpack.c.bf16 %v1526_v16, %v1522_v12  ;;  %v1554_v12 = vld [vmem:[%s11921_s7 + $0x118] sm:$0xff]  ;;  %v9407_v16 = vpack.c.bf16 %v1556_v11, %v1552_v58  ;;  %v1569_v58 = vld [vmem:[%s11921_s7 + $0x190] sm:$0xff] }
 0x15a   :  { %v980_v38 = vmul.f32 0.0, %v7949_v21  ;;  %v9276_v21 = vpack.c.bf16 %v1523_v15, %v1519_v9  ;;  %v1558_v9 = vld [vmem:[%s11921_s7 + $0x138] sm:$0xff]  ;;  %v1551_v15 = vld [vmem:[%s11921_s7 + $0x100] sm:$0xff] }
 0x15b   :  { %v7951_v40 = vpop.eup %7950 }
 0x15c   :  { %v9169_v31 = vadd.f32 %v981_v23, %v980_v38  ;;  %v1521_v23 = vld [vmem:[%s11921_s7 + $0x10] sm:$0xff] }
 0x15d   :  { %v9285_v38 = vpack.c.bf16 %v1525_v36, %v1521_v23  ;;  %v1555_v23 = vld [vmem:[%s11921_s7 + $0x120] sm:$0xff]  ;;  %v9418_v36 = vpack.c.bf16 %v1558_v9, %v1554_v12  ;;  %v1573_v12 = vld [vmem:[%s11921_s7 + $0x1b0] sm:$0xff]  ;;  %v1576_v9 = vld [vmem:[%s11921_s7 + $0x1c8] sm:$0xff] }
 0x15e   :  { %7952 = vtanh.f32 %v9169_v31  ;;  %v993_v45 = vsel %vm989_vm4, %v9169_v31, 0.0  ;;  %v1528_v31 = vld [vmem:[%s11921_s7 + $0x48] sm:$0xff] }
 0x168   :  { %v7953_v44 = vpop.eup %7952 }
 0x169   :  { %v9174_v48 = vmul.f32 %v7953_v44, %v7951_v40  ;;  %v1532_v40 = vld [vmem:[%s11921_s7 + $0x68] sm:$0xff]  ;;  %v1530_v44 = vld [vmem:[%s11921_s7 + $0x58] sm:$0xff] }
 0x16b   :  { %6106 = vmatmul.mubr.msk.f32.vlgmr.msra.gmra.mrb[28].mxu0 %vm989_vm4, %v9174_v48  ;;  %6107 = vmatmul.mubr.msk.f32.vlgmr.msra.gmra.mrb[28].mxu1 %vm989_vm4, %v9174_v48  ;;  %v9243_v0 = vsel %vm989_vm4, %v9174_v48, 0.0  ;;  %v9299_v48 = vpack.c.bf16 %v1532_v40, %v1528_v31  ;;  %v9420_v31 = vpack.c.bf16 %v1555_v23, %v1551_v15  ;;  %v1553_v40 = vld [vmem:[%s11921_s7 + $0x110] sm:$0xff]  ;;  %v1580_v15 = vld [vmem:[%s11921_s7 + $0x1e8] sm:$0xff]  ;;  %v9508_v23 = vpack.c.bf16 %v1573_v12, %v1569_v58 }
 0x16c   :  { %6657 = vmatpush1.bf16.msra.mxu0 %v8782_v29  ;;  %6689 = vmatpush1.bf16.msra.mxu1 %v8830_v46  ;;  %v1497_v29 = vsel %vm1255_vm5, 1, %v8233_v8  ;;  %v6063_v46 = vld [vmem:[%s11923_s2 + $0x10] sm:$0xff]  ;;  %11954 = vst [vmem:[#allocation11_spill] sm:$0xff] %v9243_v0 }
 0x16d   :  { %6659 = vmatprep.subr.bf16.mxu0 %v8786_v30  ;;  %6691 = vmatprep.subr.bf16.mxu1 %v8840_v50  ;;  %v1753_v30 = vsel %vm1511_vm6, 1, %v8233_v8 }
 0x16e   :  { %1391 = vmatprep.mubr.f32.mxu0 %v11933_v3  ;;  %1462 = vmatprep.mubr.f32.mxu1 %v11933_v3 }
 0x16f   :  { %1499 = vperm.xlu1 %7937, %v1497_v29   ;;  %v1534_v29 = vld [vmem:[%s11921_s7 + $0x78] sm:$0xff] }
 0x170   :  { %6661 = vmatpush1.bf16.msra.mxu0 %v8818_v41  ;;  %6693 = vmatpush1.bf16.msra.mxu1 %v8870_v59  ;;  %v2265_v41 = vsel %vm2023_vm7, 1, %v8233_v8 }
 0x171   :  { %6663 = vmatprep.subr.bf16.mxu0 %v8822_v42  ;;  %6695 = vmatprep.subr.bf16.mxu1 %v8880_v62  ;;  %v2776_v42 = vsel %vm2535_vm8, 1, %v8233_v8 }
 0x173   :  { %1755 = vperm.xlu1 %7937, %v1753_v30   ;;  %v1527_v30 = vld [vmem:[%s11921_s7 + $0x40] sm:$0xff] }
 0x174   :  { %6665 = vmatpush1.bf16.msra.mxu0 %v8858_v54  ;;  %6697 = vmatpush1.bf16.msra.mxu1 %v8910_v10 }
 0x175   :  { %6667 = vmatprep.subr.bf16.mxu0 %v8862_v55  ;;  %6699 = vmatprep.subr.bf16.mxu1 %v8920_v13 }
 0x177   :  { %2267 = vperm.xlu1 %7937, %v2265_v41   ;;  %v1531_v41 = vld [vmem:[%s11921_s7 + $0x60] sm:$0xff] }
 0x178   :  { %6669 = vmatpush1.bf16.msra.mxu0 %v8898_v4  ;;  %6701 = vmatpush1.bf16.msra.mxu1 %v8950_v24 }
 0x179   :  { %6671 = vmatprep.subr.bf16.mxu0 %v8902_v5  ;;  %6703 = vmatprep.subr.bf16.mxu1 %v8960_v27 }
 0x17b   :  { %2778 = vperm.xlu1 %7937, %v2776_v42   ;;  %v9310_v42 = vpack.c.bf16 %v1534_v29, %v1530_v44  ;;  %v1557_v44 = vld [vmem:[%s11921_s7 + $0x130] sm:$0xff] }
 0x17c   :  { %6673 = vmatpush1.bf16.msra.mxu0 %v8938_v18  ;;  %6705 = vmatpush1.bf16.msra.mxu1 %v8990_v39  ;;  %v9429_v29 = vpack.c.bf16 %v1557_v44, %v1553_v40  ;;  %v9510_v40 = vpack.c.bf16 %v1580_v15, %v1576_v9  ;;  %v1578_v44 = vld [vmem:[%s11921_s7 + $0x1d8] sm:$0xff] }
 0x17d   :  { %6675 = vmatprep.subr.bf16.mxu0 %v8942_v20  ;;  %6707 = vmatprep.subr.bf16.mxu1 %v8997_v43 }
 0x17f   :  { %3965 = vperm.xlu1 %7937, %v6063_v46   ;;  %v9312_v46 = vpack.c.bf16 %v1531_v41, %v1527_v30  ;;  %v1560_v30 = vld [vmem:[%s11921_s7 + $0x148] sm:$0xff] }
 0x180   :  { %6677 = vmatpush1.bf16.msra.mxu0 %v8978_v33  ;;  %6709 = vmatpush1.bf16.msra.mxu1 %v9029_v56  ;;  %v1564_v41 = vld [vmem:[%s11921_s7 + $0x168] sm:$0xff] }
 0x181   :  { %6679 = vmatprep.subr.bf16.mxu0 %v8982_v34  ;;  %6711 = vmatprep.subr.bf16.mxu1 %v9039_v61 }
 0x184   :  { %6681 = vmatpush1.bf16.msra.mxu0 %v9018_v52  ;;  %6713 = vmatpush1.bf16.msra.mxu1 %v9062_v6 }
 0x185   :  { %6683 = vmatprep.subr.bf16.mxu0 %v9027_v53  ;;  %6715 = vmatprep.subr.bf16.mxu1 %v9066_v7 }
 0x188   :  { %6685 = vmatpush1.bf16.msra.mxu0 %v9058_v2  ;;  %6717 = vmatpush1.bf16.msra.mxu1 %v9081_v63  ;;  %v9233_v2 = vpop.permute.xlu0 %1243 }
 0x189   :  { %11953 = vst [vmem:[#allocation10_spill] sm:$0xff] %v9233_v2  ;;  %vm1245_vm9 = vcmp.eq.s32.totalorder %v9233_v2, 1  ;;  %6719 = vmatprep.subr.bf16.mxu0 %v9263_v14  ;;  %6751 = vmatprep.subr.bf16.mxu1 %v9274_v17 }
 0x23e   :  { %v1137_v50 = vpop.f32.mrb[28].mxu0  ;;  %v1208_v54 = vpop.f32.mrb[28].mxu1 }
 0x23f   :  { %v7850_v55 = vadd.f32 %v1137_v50, %v9149_v32  ;;  %v1139_v59 = vpop.f32.mrb[29].mxu0  ;;  %v1210_v62 = vpop.f32.mrb[29].mxu1  ;;  %v7866_v18 = vadd.f32 %v1208_v54, %v9166_v1  ;;  %v1529_v50 = vld [vmem:[%s11921_s7 + $0x50] sm:$0xff] }
 0x240   :  { %v7851_v4 = vadd.f32 %v1139_v59, %v9153_v19  ;;  %v7867_v8 = vadd.f32 %v1210_v62, %v9160_v51  ;;  %v1533_v54 = vld [vmem:[%s11921_s7 + $0x70] sm:$0xff]  ;;  %v1536_v59 = vld [vmem:[%s11921_s7 + $0x88] sm:$0xff] }
 0x241   :  { %v6023_v5 = vmul.f32 -1.442695, %v7850_v55  ;;  %v9321_v55 = vpack.c.bf16 %v1533_v54, %v1529_v50  ;;  %v1540_v62 = vld [vmem:[%s11921_s7 + $0xa8] sm:$0xff]  ;;  %v1562_v50 = vld [vmem:[%s11921_s7 + $0x158] sm:$0xff]  ;;  %v9443_v54 = vpack.c.bf16 %v1564_v41, %v1560_v30  ;;  %v1575_v41 = vld [vmem:[%s11921_s7 + $0x1c0] sm:$0xff] }
 0x242   :  { %v6024_v10 = vmul.f32 -1.442695, %v7851_v4  ;;  %v6025_v13 = vmul.f32 -1.442695, %v7867_v8  ;;  %v1538_v4 = vld [vmem:[%s11921_s7 + $0x98] sm:$0xff]  ;;  %v1535_v8 = vld [vmem:[%s11921_s7 + $0x80] sm:$0xff] }
 0x243   :  { %7954 = vpow2.f32 %v6023_v5  ;;  %v9335_v5 = vpack.c.bf16 %v1540_v62, %v1536_v59  ;;  %v1566_v59 = vld [vmem:[%s11921_s7 + $0x178] sm:$0xff]  ;;  %v1559_v62 = vld [vmem:[%s11921_s7 + $0x140] sm:$0xff] }
 0x244   :  { %7956 = vpow2.f32 %v6024_v10  ;;  %v1542_v10 = vld [vmem:[%s11921_s7 + $0xb8] sm:$0xff] }
 0x245   :  { %7958 = vpow2.f32 %v6025_v13  ;;  %v1539_v13 = vld [vmem:[%s11921_s7 + $0xa0] sm:$0xff]  ;;  %v1582_v30 = vld [vmem:[%s11921_s7 + $0x1f8] sm:$0xff] }
 0x246   :  { %7960 = vtanh.f32 %v7866_v18  ;;  %v9346_v18 = vpack.c.bf16 %v1542_v10, %v1538_v4  ;;  %v1563_v4 = vld [vmem:[%s11921_s7 + $0x160] sm:$0xff]  ;;  %v9454_v10 = vpack.c.bf16 %v1566_v59, %v1562_v50  ;;  %v9521_v50 = vpack.c.bf16 %v1582_v30, %v1578_v44 }
 0x247   :  { %v1579_v59 = vld [vmem:[%s11921_s7 + $0x1e0] sm:$0xff] }
 0x24d   :  { %v7955_v20 = vpop.eup %7954 }
 0x24e   :  { %v7957_v24 = vpop.eup %7956  ;;  %v1220_v27 = vadd.f32 1.0, %v7955_v20  ;;  %v9348_v20 = vpack.c.bf16 %v1539_v13, %v1535_v8  ;;  %v9456_v8 = vpack.c.bf16 %v1563_v4, %v1559_v62  ;;  %v1561_v13 = vld [vmem:[%s11921_s7 + $0x150] sm:$0xff] }
 0x24f   :  { %v1226_v33 = vadd.f32 1.0, %v7957_v24  ;;  %v7959_v34 = vpop.eup %7958  ;;  %v1537_v24 = vld [vmem:[%s11921_s7 + $0x90] sm:$0xff] }
 0x250   :  { %7962 = vrcp.f32 %v1220_v27  ;;  %v7961_v39 = vpop.eup %7960  ;;  %v1233_v56 = vadd.f32 1.0, %v7959_v34  ;;  %v1541_v27 = vld [vmem:[%s11921_s7 + $0xb0] sm:$0xff]  ;;  %v1544_v34 = vld [vmem:[%s11921_s7 + $0xc8] sm:$0xff] }
 0x251   :  { %7964 = vrcp.f32 %v1226_v33  ;;  %v9357_v33 = vpack.c.bf16 %v1541_v27, %v1537_v24  ;;  %v1565_v24 = vld [vmem:[%s11921_s7 + $0x170] sm:$0xff]  ;;  %v1568_v27 = vld [vmem:[%s11921_s7 + $0x188] sm:$0xff] }
 0x252   :  { %7966 = vrcp.f32 %v1233_v56  ;;  %v1547_v56 = vld [vmem:[%s11921_s7 + $0xe0] sm:$0xff]  ;;  %v1577_v62 = vld [vmem:[%s11921_s7 + $0x1d0] sm:$0xff] }
 0x253   :  { %v1581_v4 = vld [vmem:[%s11921_s7 + $0x1f0] sm:$0xff] }
 0x25a   :  { %v7963_v43 = vpop.eup %7962 }
 0x25b   :  { %v7965_v52 = vpop.eup %7964  ;;  %v1237_v53 = vmul.f32 %v7963_v43, %v7961_v39  ;;  %v1548_v39 = vld [vmem:[%s11921_s7 + $0xe8] sm:$0xff]  ;;  %v1546_v43 = vld [vmem:[%s11921_s7 + $0xd8] sm:$0xff] }
 0x25c   :  { %v1236_v61 = vmul.f32 %v7965_v52, %v993_v45  ;;  %v7967_v63 = vpop.eup %7966  ;;  %v9371_v52 = vpack.c.bf16 %v1548_v39, %v1544_v34  ;;  %v9468_v34 = vpack.c.bf16 %v1565_v24, %v1561_v13  ;;  %v1572_v39 = vld [vmem:[%s11921_s7 + $0x1a8] sm:$0xff]  ;;  %v9533_v13 = vpack.c.bf16 %v1579_v59, %v1575_v41 }
 0x25d   :  { %v9537_v24 = vpack.c.bf16 %v1581_v4, %v1577_v62 }
 0x25e   :  { %v1238_v6 = vadd.f32 %v1237_v53, %v1236_v61  ;;  %v1543_v53 = vld [vmem:[%s11921_s7 + $0xc0] sm:$0xff] }
 0x260   :  { %7968 = vtanh.f32 %v1238_v6  ;;  %v9238_v7 = vsel %vm1245_vm9, %v1238_v6, %v993_v45  ;;  %v1550_v45 = vld [vmem:[%s11921_s7 + $0xf8] sm:$0xff]  ;;  %v9384_v6 = vpack.c.bf16 %v1547_v56, %v1543_v53  ;;  %v9481_v53 = vpack.c.bf16 %v1572_v39, %v1568_v27 }
 0x261   :  { %v9382_v61 = vpack.c.bf16 %v1550_v45, %v1546_v43  ;;  %v1570_v43 = vld [vmem:[%s11921_s7 + $0x198] sm:$0xff] }
 0x262   :  { %v1574_v45 = vld [vmem:[%s11921_s7 + $0x1b8] sm:$0xff] }
 0x263   :  { %v9483_v56 = vpack.c.bf16 %v1574_v45, %v1570_v43 }
 0x26a   :  { %v7969_v35 = vpop.eup %7968 }
 0x26b   :  { %v1240_v57 = vmul.f32 %v7969_v35, %v7967_v63  ;;  %v1545_v63 = vld [vmem:[%s11921_s7 + $0xd0] sm:$0xff] }
 0x26c   :  { %v1549_v35 = vld [vmem:[%s11921_s7 + $0xf0] sm:$0xff] }
 0x26d   :  { %v9248_v49 = vsel %vm1245_vm9, %v1240_v57, %v9243_v0  ;;  %v9393_v57 = vpack.c.bf16 %v1549_v35, %v1545_v63  ;;  %v1567_v63 = vld [vmem:[%s11921_s7 + $0x180] sm:$0xff] }
 0x26e   :  { %11955 = vst [vmem:[#allocation12_spill] sm:$0xff] %v9248_v49  ;;  %1392 = vmatmul.mubr.f32.vlgmr.msra.gmra.mrb[26].mxu0 %v9248_v49  ;;  %1463 = vmatmul.mubr.f32.vlgmr.msra.gmra.mrb[26].mxu1 %v9248_v49  ;;  %v1571_v35 = vld [vmem:[%s11921_s7 + $0x1a0] sm:$0xff] }
 0x26f   :  { %1647 = vmatprep.mubr.f32.mxu0 %v11933_v3  ;;  %1718 = vmatprep.mubr.f32.mxu1 %v11933_v3  ;;  %v9495_v11 = vpack.c.bf16 %v1571_v35, %v1567_v63 }
 0x270   :  { %6721 = vmatpush1.bf16.msra.mxu0 %v9276_v21  ;;  %6753 = vmatpush1.bf16.msra.mxu1 %v9285_v38 }
 0x271   :  { %6723 = vmatprep.subr.bf16.mxu0 %v9299_v48  ;;  %6755 = vmatprep.subr.bf16.mxu1 %v9310_v42 }
 0x274   :  { %6725 = vmatpush1.bf16.msra.mxu0 %v9312_v46  ;;  %6757 = vmatpush1.bf16.msra.mxu1 %v9321_v55 }
 0x275   :  { %6727 = vmatprep.subr.bf16.mxu0 %v9335_v5  ;;  %6759 = vmatprep.subr.bf16.mxu1 %v9346_v18 }
 0x278   :  { %6729 = vmatpush1.bf16.msra.mxu0 %v9348_v20  ;;  %6761 = vmatpush1.bf16.msra.mxu1 %v9357_v33 }
 0x279   :  { %6731 = vmatprep.subr.bf16.mxu0 %v9371_v52  ;;  %6763 = vmatprep.subr.bf16.mxu1 %v9382_v61 }
 0x27c   :  { %6733 = vmatpush1.bf16.msra.mxu0 %v9384_v6  ;;  %6765 = vmatpush1.bf16.msra.mxu1 %v9393_v57 }
 0x27d   :  { %6735 = vmatprep.subr.bf16.mxu0 %v9407_v16  ;;  %6767 = vmatprep.subr.bf16.mxu1 %v9418_v36 }
 0x280   :  { %6737 = vmatpush1.bf16.msra.mxu0 %v9420_v31  ;;  %6769 = vmatpush1.bf16.msra.mxu1 %v9429_v29 }
 0x281   :  { %6739 = vmatprep.subr.bf16.mxu0 %v9443_v54  ;;  %6771 = vmatprep.subr.bf16.mxu1 %v9454_v10 }
 0x284   :  { %6741 = vmatpush1.bf16.msra.mxu0 %v9456_v8  ;;  %6773 = vmatpush1.bf16.msra.mxu1 %v9468_v34 }
 0x285   :  { %6743 = vmatprep.subr.bf16.mxu0 %v9481_v53  ;;  %6775 = vmatprep.subr.bf16.mxu1 %v9483_v56 }
 0x288   :  { %6745 = vmatpush1.bf16.msra.mxu0 %v9495_v11  ;;  %6777 = vmatpush1.bf16.msra.mxu1 %v9508_v23 }
 0x289   :  { %6747 = vmatprep.subr.bf16.mxu0 %v9510_v40  ;;  %6779 = vmatprep.subr.bf16.mxu1 %v9521_v50 }
 0x28c   :  { %6749 = vmatpush1.bf16.msra.mxu0 %v9533_v13  ;;  %6781 = vmatpush1.bf16.msra.mxu1 %v9537_v24 }
 0x28d   :  { %6783 = vmatprep.subr.bf16.mxu0 %v9263_v14  ;;  %6815 = vmatprep.subr.bf16.mxu1 %v9274_v17 }
 0x341   :  { %v1393_v27 = vpop.f32.mrb[26].mxu0  ;;  %v1464_v39 = vpop.f32.mrb[26].mxu1 }
 0x342   :  { %v7848_v43 = vadd.f32 %v1393_v27, %v9149_v32  ;;  %v1395_v45 = vpop.f32.mrb[27].mxu0  ;;  %v1466_v63 = vpop.f32.mrb[27].mxu1  ;;  %v7864_v44 = vadd.f32 %v1464_v39, %v9166_v1 }
 0x343   :  { %v7849_v35 = vadd.f32 %v1395_v45, %v9153_v19  ;;  %v7865_v9 = vadd.f32 %v1466_v63, %v9160_v51 }
 0x344   :  { %v6026_v58 = vmul.f32 -1.442695, %v7848_v43 }
 0x345   :  { %v6027_v12 = vmul.f32 -1.442695, %v7849_v35  ;;  %v6028_v15 = vmul.f32 -1.442695, %v7865_v9 }
 0x346   :  { %7970 = vpow2.f32 %v6026_v58 }
 0x347   :  { %7972 = vpow2.f32 %v6027_v12  ;;  %v9548_v12 = vpop.permute.xlu1 %1499 }
 0x348   :  { %7974 = vpow2.f32 %v6028_v15  ;;  %11956 = vst [vmem:[#allocation13_spill] sm:$0xff] %v9548_v12  ;;  %vm1501_vm10 = vcmp.eq.s32.totalorder %v9548_v12, 1 }
 0x349   :  { %7976 = vtanh.f32 %v7864_v44 }
 0x350   :  { %v7971_v30 = vpop.eup %7970 }
 0x351   :  { %v7973_v41 = vpop.eup %7972  ;;  %v1476_v59 = vadd.f32 1.0, %v7971_v30 }
 0x352   :  { %v1482_v62 = vadd.f32 1.0, %v7973_v41  ;;  %v7975_v4 = vpop.eup %7974 }
 0x353   :  { %7978 = vrcp.f32 %v1476_v59  ;;  %v7977_v27 = vpop.eup %7976  ;;  %v1489_v58 = vadd.f32 1.0, %v7975_v4 }
 0x354   :  { %7980 = vrcp.f32 %v1482_v62 }
 0x355   :  { %7982 = vrcp.f32 %v1489_v58 }
 0x35d   :  { %v7979_v45 = vpop.eup %7978 }
 0x35e   :  { %v7981_v43 = vpop.eup %7980  ;;  %v1493_v35 = vmul.f32 %v7979_v45, %v7977_v27 }
 0x35f   :  { %v1492_v63 = vmul.f32 %v7981_v43, %v9238_v7  ;;  %v7983_v15 = vpop.eup %7982 }
 0x361   :  { %v1494_v39 = vadd.f32 %v1493_v35, %v1492_v63 }
 0x363   :  { %7984 = vtanh.f32 %v1494_v39  ;;  %v9555_v9 = vsel %vm1501_vm10, %v1494_v39, %v9238_v7 }
 0x36d   :  { %v7985_v44 = vpop.eup %7984 }
 0x36e   :  { %v1496_v30 = vmul.f32 %v7985_v44, %v7983_v15 }
 0x370   :  { %v9560_v41 = vsel %vm1501_vm10, %v1496_v30, %v9248_v49 }
 0x371   :  { %11957 = vst [vmem:[#allocation14_spill] sm:$0xff] %v9560_v41  ;;  %1648 = vmatmul.mubr.f32.vlgmr.msra.gmra.mrb[24].mxu0 %v9560_v41  ;;  %1719 = vmatmul.mubr.f32.vlgmr.msra.gmra.mrb[24].mxu1 %v9560_v41 }
 0x372   :  { %6785 = vmatpush1.bf16.msra.mxu0 %v9276_v21  ;;  %6817 = vmatpush1.bf16.msra.mxu1 %v9285_v38 }
 0x373   :  { %6787 = vmatprep.subr.bf16.mxu0 %v9299_v48  ;;  %6819 = vmatprep.subr.bf16.mxu1 %v9310_v42 }
 0x374   :  { %1903 = vmatprep.mubr.f32.mxu0 %v11933_v3  ;;  %1974 = vmatprep.mubr.f32.mxu1 %v11933_v3 }
 0x376   :  { %6789 = vmatpush1.bf16.msra.mxu0 %v9312_v46  ;;  %6821 = vmatpush1.bf16.msra.mxu1 %v9321_v55 }
 0x377   :  { %6791 = vmatprep.subr.bf16.mxu0 %v9335_v5  ;;  %6823 = vmatprep.subr.bf16.mxu1 %v9346_v18 }
 0x37a   :  { %6793 = vmatpush1.bf16.msra.mxu0 %v9348_v20  ;;  %6825 = vmatpush1.bf16.msra.mxu1 %v9357_v33 }
 0x37b   :  { %6795 = vmatprep.subr.bf16.mxu0 %v9371_v52  ;;  %6827 = vmatprep.subr.bf16.mxu1 %v9382_v61 }
 0x37e   :  { %6797 = vmatpush1.bf16.msra.mxu0 %v9384_v6  ;;  %6829 = vmatpush1.bf16.msra.mxu1 %v9393_v57 }
 0x37f   :  { %6799 = vmatprep.subr.bf16.mxu0 %v9407_v16  ;;  %6831 = vmatprep.subr.bf16.mxu1 %v9418_v36 }
 0x382   :  { %6801 = vmatpush1.bf16.msra.mxu0 %v9420_v31  ;;  %6833 = vmatpush1.bf16.msra.mxu1 %v9429_v29 }
 0x383   :  { %6803 = vmatprep.subr.bf16.mxu0 %v9443_v54  ;;  %6835 = vmatprep.subr.bf16.mxu1 %v9454_v10 }
 0x386   :  { %6805 = vmatpush1.bf16.msra.mxu0 %v9456_v8  ;;  %6837 = vmatpush1.bf16.msra.mxu1 %v9468_v34 }
 0x387   :  { %6807 = vmatprep.subr.bf16.mxu0 %v9481_v53  ;;  %6839 = vmatprep.subr.bf16.mxu1 %v9483_v56 }
 0x38a   :  { %6809 = vmatpush1.bf16.msra.mxu0 %v9495_v11  ;;  %6841 = vmatpush1.bf16.msra.mxu1 %v9508_v23 }
 0x38b   :  { %6811 = vmatprep.subr.bf16.mxu0 %v9510_v40  ;;  %6843 = vmatprep.subr.bf16.mxu1 %v9521_v50 }
 0x38e   :  { %6813 = vmatpush1.bf16.msra.mxu0 %v9533_v13  ;;  %6845 = vmatpush1.bf16.msra.mxu1 %v9537_v24 }
 0x38f   :  { %6847 = vmatprep.subr.bf16.mxu0 %v9263_v14  ;;  %6879 = vmatprep.subr.bf16.mxu1 %v9274_v17 }
 0x444   :  { %v1649_v7 = vpop.f32.mrb[24].mxu0  ;;  %v1720_v59 = vpop.f32.mrb[24].mxu1 }
 0x445   :  { %v7846_v62 = vadd.f32 %v1649_v7, %v9149_v32  ;;  %v1651_v4 = vpop.f32.mrb[25].mxu0  ;;  %v1722_v27 = vpop.f32.mrb[25].mxu1  ;;  %v7862_v39 = vadd.f32 %v1720_v59, %v9166_v1 }
 0x446   :  { %v7847_v45 = vadd.f32 %v1651_v4, %v9153_v19  ;;  %v7863_v58 = vadd.f32 %v1722_v27, %v9160_v51  ;;  %v9603_v27 = vpop.permute.xlu1 %1755 }
 0x447   :  { %v6029_v43 = vmul.f32 -1.442695, %v7846_v62  ;;  %11958 = vst [vmem:[#allocation15_spill] sm:$0xff] %v9603_v27  ;;  %vm1757_vm11 = vcmp.eq.s32.totalorder %v9603_v27, 1 }
 0x448   :  { %v6030_v35 = vmul.f32 -1.442695, %v7847_v45  ;;  %v6031_v63 = vmul.f32 -1.442695, %v7863_v58 }
 0x449   :  { %7986 = vpow2.f32 %v6029_v43 }
 0x44a   :  { %7988 = vpow2.f32 %v6030_v35 }
 0x44b   :  { %7990 = vpow2.f32 %v6031_v63 }
 0x44c   :  { %7992 = vtanh.f32 %v7862_v39 }
 0x453   :  { %v7987_v15 = vpop.eup %7986 }
 0x454   :  { %v7989_v44 = vpop.eup %7988  ;;  %v1732_v30 = vadd.f32 1.0, %v7987_v15 }
 0x455   :  { %v1738_v25 = vadd.f32 1.0, %v7989_v44  ;;  %v7991_v7 = vpop.eup %7990 }
 0x456   :  { %7994 = vrcp.f32 %v1732_v30  ;;  %v7993_v60 = vpop.eup %7992  ;;  %v1745_v43 = vadd.f32 1.0, %v7991_v7 }
 0x457   :  { %7996 = vrcp.f32 %v1738_v25 }
 0x458   :  { %7998 = vrcp.f32 %v1745_v43 }
 0x460   :  { %v7995_v4 = vpop.eup %7994 }
 0x461   :  { %v7997_v62 = vpop.eup %7996  ;;  %v1749_v45 = vmul.f32 %v7995_v4, %v7993_v60 }
 0x462   :  { %v1748_v35 = vmul.f32 %v7997_v62, %v9555_v9  ;;  %v7999_v25 = vpop.eup %7998 }
 0x464   :  { %v1750_v58 = vadd.f32 %v1749_v45, %v1748_v35 }
 0x466   :  { %8000 = vtanh.f32 %v1750_v58  ;;  %v9609_v59 = vsel %vm1757_vm11, %v1750_v58, %v9555_v9 }
 0x470   :  { %v8001_v63 = vpop.eup %8000 }
 0x471   :  { %v1752_v39 = vmul.f32 %v8001_v63, %v7999_v25 }
 0x473   :  { %v9614_v60 = vsel %vm1757_vm11, %v1752_v39, %v9560_v41 }
 0x474   :  { %1904 = vmatmul.mubr.f32.vlgmr.msra.gmra.mrb[22].mxu0 %v9614_v60  ;;  %1975 = vmatmul.mubr.f32.vlgmr.msra.gmra.mrb[22].mxu1 %v9614_v60 }
 0x475   :  { %6849 = vmatpush1.bf16.msra.mxu0 %v9276_v21  ;;  %6881 = vmatpush1.bf16.msra.mxu1 %v9285_v38 }
 0x476   :  { %6851 = vmatprep.subr.bf16.mxu0 %v9299_v48  ;;  %6883 = vmatprep.subr.bf16.mxu1 %v9310_v42 }
 0x477   :  { %2159 = vmatprep.mubr.f32.mxu0 %v11933_v3  ;;  %2230 = vmatprep.mubr.f32.mxu1 %v11933_v3 }
 0x479   :  { %6853 = vmatpush1.bf16.msra.mxu0 %v9312_v46  ;;  %6885 = vmatpush1.bf16.msra.mxu1 %v9321_v55 }
 0x47a   :  { %6855 = vmatprep.subr.bf16.mxu0 %v9335_v5  ;;  %6887 = vmatprep.subr.bf16.mxu1 %v9346_v18 }
 0x47d   :  { %6857 = vmatpush1.bf16.msra.mxu0 %v9348_v20  ;;  %6889 = vmatpush1.bf16.msra.mxu1 %v9357_v33 }
 0x47e   :  { %6859 = vmatprep.subr.bf16.mxu0 %v9371_v52  ;;  %6891 = vmatprep.subr.bf16.mxu1 %v9382_v61 }
 0x481   :  { %6861 = vmatpush1.bf16.msra.mxu0 %v9384_v6  ;;  %6893 = vmatpush1.bf16.msra.mxu1 %v9393_v57 }
 0x482   :  { %6863 = vmatprep.subr.bf16.mxu0 %v9407_v16  ;;  %6895 = vmatprep.subr.bf16.mxu1 %v9418_v36 }
 0x485   :  { %6865 = vmatpush1.bf16.msra.mxu0 %v9420_v31  ;;  %6897 = vmatpush1.bf16.msra.mxu1 %v9429_v29 }
 0x486   :  { %6867 = vmatprep.subr.bf16.mxu0 %v9443_v54  ;;  %6899 = vmatprep.subr.bf16.mxu1 %v9454_v10 }
 0x489   :  { %6869 = vmatpush1.bf16.msra.mxu0 %v9456_v8  ;;  %6901 = vmatpush1.bf16.msra.mxu1 %v9468_v34 }
 0x48a   :  { %6871 = vmatprep.subr.bf16.mxu0 %v9481_v53  ;;  %6903 = vmatprep.subr.bf16.mxu1 %v9483_v56 }
 0x48d   :  { %6873 = vmatpush1.bf16.msra.mxu0 %v9495_v11  ;;  %6905 = vmatpush1.bf16.msra.mxu1 %v9508_v23 }
 0x48e   :  { %6875 = vmatprep.subr.bf16.mxu0 %v9510_v40  ;;  %6907 = vmatprep.subr.bf16.mxu1 %v9521_v50 }
 0x491   :  { %6877 = vmatpush1.bf16.msra.mxu0 %v9533_v13  ;;  %6909 = vmatpush1.bf16.msra.mxu1 %v9537_v24 }
 0x492   :  { %6911 = vmatprep.subr.bf16.mxu0 %v9263_v14  ;;  %6943 = vmatprep.subr.bf16.mxu1 %v9274_v17 }
 0x547   :  { %v1905_v9 = vpop.f32.mrb[22].mxu0  ;;  %v1976_v15 = vpop.f32.mrb[22].mxu1 }
 0x548   :  { %v7844_v44 = vadd.f32 %v1905_v9, %v9149_v32  ;;  %v1907_v30 = vpop.f32.mrb[23].mxu0  ;;  %v1978_v7 = vpop.f32.mrb[23].mxu1  ;;  %v7860_v58 = vadd.f32 %v1976_v15, %v9166_v1 }
 0x549   :  { %v7845_v4 = vadd.f32 %v1907_v30, %v9153_v19  ;;  %v7861_v43 = vadd.f32 %v1978_v7, %v9160_v51  ;;  %v9657_v7 = vpop.permute.xlu0 %2011 }
 0x54a   :  { %v6032_v62 = vmul.f32 -1.442695, %v7844_v44  ;;  %vm2013_vm12 = vcmp.eq.s32.totalorder %v9657_v7, 1  ;;  %v4429_v7 = vld [vmem:[%s11925_s4 + $0xb0] sm:$0xff] }
 0x54b   :  { %v6033_v45 = vmul.f32 -1.442695, %v7845_v4  ;;  %v6034_v35 = vmul.f32 -1.442695, %v7861_v43 }
 0x54c   :  { %8002 = vpow2.f32 %v6032_v62 }
 0x54d   :  { %8004 = vpow2.f32 %v6033_v45 }
 0x54e   :  { %8006 = vpow2.f32 %v6034_v35 }
 0x54f   :  { %8008 = vtanh.f32 %v7860_v58 }
 0x556   :  { %v8003_v14 = vpop.eup %8002 }
 0x557   :  { %v8005_v25 = vpop.eup %8004  ;;  %v1988_v17 = vadd.f32 1.0, %v8003_v14 }
 0x558   :  { %v1994_v63 = vadd.f32 1.0, %v8005_v25  ;;  %v8007_v39 = vpop.eup %8006 }
 0x559   :  { %8010 = vrcp.f32 %v1988_v17  ;;  %v8009_v9 = vpop.eup %8008  ;;  %v2001_v62 = vadd.f32 1.0, %v8007_v39  ;;  %v2545_v17 = vld [vmem:[%s11921_s7 + $0x18] sm:$0xff] }
 0x55a   :  { %8012 = vrcp.f32 %v1994_v63  ;;  %v2549_v39 = vld [vmem:[%s11921_s7 + $0x38] sm:$0xff] }
 0x55b   :  { %8014 = vrcp.f32 %v2001_v62  ;;  %v2544_v62 = vld [vmem:[%s11921_s7 + $0x10] sm:$0xff] }
 0x563   :  { %v8011_v30 = vpop.eup %8010 }
 0x564   :  { %v8013_v44 = vpop.eup %8012  ;;  %v2005_v4 = vmul.f32 %v8011_v30, %v8009_v9  ;;  %v2542_v9 = vld [vmem:[%s11921_s7] sm:$0xff] }
 0x565   :  { %v2004_v45 = vmul.f32 %v8013_v44, %v9609_v59  ;;  %v8015_v35 = vpop.eup %8014  ;;  %v2546_v30 = vld [vmem:[%s11921_s7 + $0x20] sm:$0xff]  ;;  %v7006_v44 = vpack.c.bf16 %v2549_v39, %v2545_v17  ;;  %v2572_v39 = vld [vmem:[%s11921_s7 + $0xf0] sm:$0xff] }
 0x567   :  { %v2006_v43 = vadd.f32 %v2005_v4, %v2004_v45  ;;  %v6976_v4 = vpack.c.bf16 %v2546_v30, %v2542_v9  ;;  %v2548_v45 = vld [vmem:[%s11921_s7 + $0x30] sm:$0xff]  ;;  %v2575_v30 = vld [vmem:[%s11921_s7 + $0x108] sm:$0xff] }
 0x569   :  { %8016 = vtanh.f32 %v2006_v43  ;;  %v9663_v15 = vsel %vm2013_vm12, %v2006_v43, %v9609_v59  ;;  %v2547_v59 = vld [vmem:[%s11921_s7 + $0x28] sm:$0xff]  ;;  %v7008_v43 = vpack.c.bf16 %v2548_v45, %v2544_v62  ;;  %v2581_v45 = vld [vmem:[%s11921_s7 + $0x138] sm:$0xff] }
 0x573   :  { %v8017_v58 = vpop.eup %8016 }
 0x574   :  { %v2008_v14 = vmul.f32 %v8017_v58, %v8015_v35  ;;  %v2555_v35 = vld [vmem:[%s11921_s7 + $0x68] sm:$0xff]  ;;  %v2553_v58 = vld [vmem:[%s11921_s7 + $0x58] sm:$0xff] }
 0x576   :  { %v9668_v25 = vsel %vm2013_vm12, %v2008_v14, %v9614_v60 }
 0x577   :  { %2160 = vmatmul.mubr.f32.vlgmr.msra.gmra.mrb[20].mxu0 %v9668_v25  ;;  %2231 = vmatmul.mubr.f32.vlgmr.msra.gmra.mrb[20].mxu1 %v9668_v25 }
 0x578   :  { %6913 = vmatpush1.bf16.msra.mxu0 %v9276_v21  ;;  %6945 = vmatpush1.bf16.msra.mxu1 %v9285_v38 }
 0x579   :  { %6915 = vmatprep.subr.bf16.mxu0 %v9299_v48  ;;  %6947 = vmatprep.subr.bf16.mxu1 %v9310_v42 }
 0x57a   :  { %2415 = vmatprep.mubr.f32.mxu0 %v11933_v3  ;;  %2486 = vmatprep.mubr.f32.mxu1 %v11933_v3 }
 0x57c   :  { %6917 = vmatpush1.bf16.msra.mxu0 %v9312_v46  ;;  %6949 = vmatpush1.bf16.msra.mxu1 %v9321_v55 }
 0x57d   :  { %6919 = vmatprep.subr.bf16.mxu0 %v9335_v5  ;;  %6951 = vmatprep.subr.bf16.mxu1 %v9346_v18 }
 0x580   :  { %6921 = vmatpush1.bf16.msra.mxu0 %v9348_v20  ;;  %6953 = vmatpush1.bf16.msra.mxu1 %v9357_v33 }
 0x581   :  { %6923 = vmatprep.subr.bf16.mxu0 %v9371_v52  ;;  %6955 = vmatprep.subr.bf16.mxu1 %v9382_v61 }
 0x584   :  { %6925 = vmatpush1.bf16.msra.mxu0 %v9384_v6  ;;  %6957 = vmatpush1.bf16.msra.mxu1 %v9393_v57 }
 0x585   :  { %6927 = vmatprep.subr.bf16.mxu0 %v9407_v16  ;;  %6959 = vmatprep.subr.bf16.mxu1 %v9418_v36 }
 0x588   :  { %6929 = vmatpush1.bf16.msra.mxu0 %v9420_v31  ;;  %6961 = vmatpush1.bf16.msra.mxu1 %v9429_v29 }
 0x589   :  { %6931 = vmatprep.subr.bf16.mxu0 %v9443_v54  ;;  %6963 = vmatprep.subr.bf16.mxu1 %v9454_v10 }
 0x58c   :  { %6933 = vmatpush1.bf16.msra.mxu0 %v9456_v8  ;;  %6965 = vmatpush1.bf16.msra.mxu1 %v9468_v34 }
 0x58d   :  { %6935 = vmatprep.subr.bf16.mxu0 %v9481_v53  ;;  %6967 = vmatprep.subr.bf16.mxu1 %v9483_v56  ;;  %v9709_v53 = vpop.permute.xlu1 %2267 }
 0x58e   :  { %vm2269_vm13 = vcmp.eq.s32.totalorder %v9709_v53, 1  ;;  %v4024_v53 = vld [vmem:[%s11925_s4 + $0xa0] sm:$0xff] }
 0x590   :  { %6937 = vmatpush1.bf16.msra.mxu0 %v9495_v11  ;;  %6969 = vmatpush1.bf16.msra.mxu1 %v9508_v23 }
 0x591   :  { %6939 = vmatprep.subr.bf16.mxu0 %v9510_v40  ;;  %6971 = vmatprep.subr.bf16.mxu1 %v9521_v50 }
 0x594   :  { %6941 = vmatpush1.bf16.msra.mxu0 %v9533_v13  ;;  %6973 = vmatpush1.bf16.msra.mxu1 %v9537_v24  ;;  %v2543_v24 = vld [vmem:[%s11921_s7 + $0x8] sm:$0xff] }
 0x595   :  { %v6974_v63 = vpack.c.bf16 %v2547_v59, %v2543_v24  ;;  %7007 = vmatprep.subr.bf16.mxu1 %v7006_v44  ;;  %v2570_v24 = vld [vmem:[%s11921_s7 + $0xe0] sm:$0xff]  ;;  %v2579_v44 = vld [vmem:[%s11921_s7 + $0x128] sm:$0xff] }
 0x596   :  { %v6990_v62 = vpack.c.bf16 %v2579_v44, %v2575_v30  ;;  %v2602_v44 = vld [vmem:[%s11921_s7 + $0x1e0] sm:$0xff] }
 0x597   :  { %6975 = vmatprep.subr.bf16.mxu0 %v6974_v63  ;;  %v2568_v63 = vld [vmem:[%s11921_s7 + $0xd0] sm:$0xff] }
 0x598   :  { %v7020_v9 = vpack.c.bf16 %v2572_v39, %v2568_v63  ;;  %v2601_v63 = vld [vmem:[%s11921_s7 + $0x1d8] sm:$0xff] }
 0x599   :  { %v2605_v39 = vld [vmem:[%s11921_s7 + $0x1f8] sm:$0xff] }
 0x59a   :  { %v7034_v30 = vpack.c.bf16 %v2605_v39, %v2601_v63  ;;  %v2799_v63 = vld [vmem:[%s11925_s4 + $0x10] sm:$0xff] }
 0x59b   :  { %v2803_v39 = vld [vmem:[%s11925_s4 + $0x30] sm:$0xff] }
 0x64a   :  { %v2161_v21 = vpop.f32.mrb[20].mxu0  ;;  %v2232_v38 = vpop.f32.mrb[20].mxu1 }
 0x64b   :  { %v7842_v48 = vadd.f32 %v2161_v21, %v9149_v32  ;;  %v2163_v42 = vpop.f32.mrb[21].mxu0  ;;  %v2234_v46 = vpop.f32.mrb[21].mxu1  ;;  %v7858_v52 = vadd.f32 %v2232_v38, %v9166_v1  ;;  %v2557_v21 = vld [vmem:[%s11921_s7 + $0x78] sm:$0xff]  ;;  %v2550_v38 = vld [vmem:[%s11921_s7 + $0x40] sm:$0xff] }
 0x64c   :  { %v7843_v55 = vadd.f32 %v2163_v42, %v9153_v19  ;;  %v7859_v20 = vadd.f32 %v2234_v46, %v9160_v51  ;;  %v7010_v42 = vpack.c.bf16 %v2557_v21, %v2553_v58  ;;  %v2580_v21 = vld [vmem:[%s11921_s7 + $0x130] sm:$0xff] }
 0x64d   :  { %v6035_v5 = vmul.f32 -1.442695, %v7842_v48  ;;  %v2554_v48 = vld [vmem:[%s11921_s7 + $0x60] sm:$0xff] }
 0x64e   :  { %v6036_v18 = vmul.f32 -1.442695, %v7843_v55  ;;  %v6037_v33 = vmul.f32 -1.442695, %v7859_v20  ;;  %v6980_v46 = vpack.c.bf16 %v2554_v48, %v2550_v38  ;;  %v2552_v55 = vld [vmem:[%s11921_s7 + $0x50] sm:$0xff]  ;;  %v2559_v20 = vld [vmem:[%s11921_s7 + $0x88] sm:$0xff] }
 0x64f   :  { %8018 = vpow2.f32 %v6035_v5  ;;  %v2556_v5 = vld [vmem:[%s11921_s7 + $0x70] sm:$0xff]  ;;  %v2583_v48 = vld [vmem:[%s11921_s7 + $0x148] sm:$0xff] }
 0x650   :  { %8020 = vpow2.f32 %v6036_v18  ;;  %v7012_v18 = vpack.c.bf16 %v2556_v5, %v2552_v55  ;;  %v2589_v5 = vld [vmem:[%s11921_s7 + $0x178] sm:$0xff] }
 0x651   :  { %8022 = vpow2.f32 %v6037_v33  ;;  %v2563_v33 = vld [vmem:[%s11921_s7 + $0xa8] sm:$0xff] }
 0x652   :  { %8024 = vtanh.f32 %v7858_v52  ;;  %v2561_v52 = vld [vmem:[%s11921_s7 + $0x98] sm:$0xff] }
 0x659   :  { %v8019_v61 = vpop.eup %8018 }
 0x65a   :  { %v8021_v6 = vpop.eup %8020  ;;  %v2244_v57 = vadd.f32 1.0, %v8019_v61  ;;  %v6982_v61 = vpack.c.bf16 %v2563_v33, %v2559_v20  ;;  %v2586_v20 = vld [vmem:[%s11921_s7 + $0x160] sm:$0xff] }
 0x65b   :  { %v2250_v16 = vadd.f32 1.0, %v8021_v6  ;;  %v8023_v36 = vpop.eup %8022  ;;  %v2565_v6 = vld [vmem:[%s11921_s7 + $0xb8] sm:$0xff] }
 0x65c   :  { %8026 = vrcp.f32 %v2244_v57  ;;  %v8025_v31 = vpop.eup %8024  ;;  %v2257_v8 = vadd.f32 1.0, %v8023_v36  ;;  %v2558_v57 = vld [vmem:[%s11921_s7 + $0x80] sm:$0xff]  ;;  %v7014_v36 = vpack.c.bf16 %v2565_v6, %v2561_v52  ;;  %v2588_v6 = vld [vmem:[%s11921_s7 + $0x170] sm:$0xff] }
 0x65d   :  { %8028 = vrcp.f32 %v2250_v16  ;;  %v2562_v16 = vld [vmem:[%s11921_s7 + $0xa0] sm:$0xff] }
 0x65e   :  { %8030 = vrcp.f32 %v2257_v8  ;;  %v2567_v8 = vld [vmem:[%s11921_s7 + $0xc8] sm:$0xff] }
 0x666   :  { %v8027_v29 = vpop.eup %8026 }
 0x667   :  { %v8029_v54 = vpop.eup %8028  ;;  %v2261_v10 = vmul.f32 %v8027_v29, %v8025_v31  ;;  %v6984_v31 = vpack.c.bf16 %v2562_v16, %v2558_v57  ;;  %v2560_v29 = vld [vmem:[%s11921_s7 + $0x90] sm:$0xff]  ;;  %v2591_v57 = vld [vmem:[%s11921_s7 + $0x188] sm:$0xff] }
 0x668   :  { %v2260_v34 = vmul.f32 %v8029_v54, %v9663_v15  ;;  %v8031_v23 = vpop.eup %8030  ;;  %v2564_v54 = vld [vmem:[%s11921_s7 + $0xb0] sm:$0xff] }
 0x66a   :  { %v2262_v56 = vadd.f32 %v2261_v10, %v2260_v34  ;;  %v7016_v10 = vpack.c.bf16 %v2564_v54, %v2560_v29  ;;  %v2571_v34 = vld [vmem:[%s11921_s7 + $0xe8] sm:$0xff]  ;;  %v2597_v29 = vld [vmem:[%s11921_s7 + $0x1b8] sm:$0xff] }
 0x66c   :  { %8032 = vtanh.f32 %v2262_v56  ;;  %v9715_v11 = vsel %vm2269_vm13, %v2262_v56, %v9663_v15  ;;  %v2551_v15 = vld [vmem:[%s11921_s7 + $0x48] sm:$0xff]  ;;  %v2569_v56 = vld [vmem:[%s11921_s7 + $0xd8] sm:$0xff] }
 0x66d   :  { %v6978_v14 = vpack.c.bf16 %v2555_v35, %v2551_v15  ;;  %v2578_v15 = vld [vmem:[%s11921_s7 + $0x120] sm:$0xff] }
 0x676   :  { %v8033_v40 = vpop.eup %8032 }
 0x677   :  { %v2264_v50 = vmul.f32 %v8033_v40, %v8031_v23  ;;  %v6986_v23 = vpack.c.bf16 %v2571_v34, %v2567_v8  ;;  %v2573_v40 = vld [vmem:[%s11921_s7 + $0xf8] sm:$0xff]  ;;  %v2590_v8 = vld [vmem:[%s11921_s7 + $0x180] sm:$0xff] }
 0x678   :  { %v7018_v59 = vpack.c.bf16 %v2573_v40, %v2569_v56  ;;  %v2594_v34 = vld [vmem:[%s11921_s7 + $0x1a0] sm:$0xff]  ;;  %v2592_v56 = vld [vmem:[%s11921_s7 + $0x190] sm:$0xff] }
 0x679   :  { %v9720_v13 = vsel %vm2269_vm13, %v2264_v50, %v9668_v25  ;;  %v2566_v50 = vld [vmem:[%s11921_s7 + $0xc0] sm:$0xff]  ;;  %v2596_v40 = vld [vmem:[%s11921_s7 + $0x1b0] sm:$0xff] }
 0x67a   :  { %2416 = vmatmul.mubr.f32.vlgmr.msra.gmra.mrb[18].mxu0 %v9720_v13  ;;  %2487 = vmatmul.mubr.f32.vlgmr.msra.gmra.mrb[18].mxu1 %v9720_v13  ;;  %v6988_v17 = vpack.c.bf16 %v2570_v24, %v2566_v50  ;;  %v2599_v50 = vld [vmem:[%s11921_s7 + $0x1c8] sm:$0xff] }
 0x67b   :  { %2670 = vmatprep.mubr.f32.mxu0 %v11933_v3  ;;  %2741 = vmatprep.mubr.f32.mxu1 %v11933_v3  ;;  %v2603_v24 = vld [vmem:[%s11921_s7 + $0x1e8] sm:$0xff] }
 0x67c   :  { %6977 = vmatpush1.bf16.msra.mxu0 %v6976_v4  ;;  %7009 = vmatpush1.bf16.msra.mxu1 %v7008_v43  ;;  %v2577_v4 = vld [vmem:[%s11921_s7 + $0x118] sm:$0xff]  ;;  %v2574_v43 = vld [vmem:[%s11921_s7 + $0x100] sm:$0xff] }
 0x67d   :  { %6979 = vmatprep.subr.bf16.mxu0 %v6978_v14  ;;  %7011 = vmatprep.subr.bf16.mxu1 %v7010_v42  ;;  %v7022_v35 = vpack.c.bf16 %v2581_v45, %v2577_v4  ;;  %v6992_v58 = vpack.c.bf16 %v2578_v15, %v2574_v43  ;;  %v2576_v14 = vld [vmem:[%s11921_s7 + $0x110] sm:$0xff]  ;;  %v2587_v42 = vld [vmem:[%s11921_s7 + $0x168] sm:$0xff]  ;;  %v2800_v15 = vld [vmem:[%s11925_s4 + $0x18] sm:$0xff] }
 0x67e   :  { %v7024_v38 = vpack.c.bf16 %v2580_v21, %v2576_v14  ;;  %v6994_v55 = vpack.c.bf16 %v2587_v42, %v2583_v48  ;;  %v2600_v4 = vld [vmem:[%s11921_s7 + $0x1d0] sm:$0xff]  ;;  %v2798_v45 = vld [vmem:[%s11925_s4 + $0x8] sm:$0xff] }
 0x67f   :  { %v2802_v43 = vld [vmem:[%s11925_s4 + $0x28] sm:$0xff] }
 0x680   :  { %6981 = vmatpush1.bf16.msra.mxu0 %v6980_v46  ;;  %7013 = vmatpush1.bf16.msra.mxu1 %v7012_v18  ;;  %v2585_v46 = vld [vmem:[%s11921_s7 + $0x158] sm:$0xff]  ;;  %v2582_v18 = vld [vmem:[%s11921_s7 + $0x140] sm:$0xff]  ;;  %v9930_v21 = vpack.c.bf16 %v2802_v43, %v2798_v45 }
 0x681   :  { %6983 = vmatprep.subr.bf16.mxu0 %v6982_v61  ;;  %7015 = vmatprep.subr.bf16.mxu1 %v7014_v36  ;;  %v7026_v33 = vpack.c.bf16 %v2589_v5, %v2585_v46  ;;  %v6996_v52 = vpack.c.bf16 %v2586_v20, %v2582_v18  ;;  %v2584_v61 = vld [vmem:[%s11921_s7 + $0x150] sm:$0xff]  ;;  %v2595_v36 = vld [vmem:[%s11921_s7 + $0x1a8] sm:$0xff] }
 0x682   :  { %v7028_v16 = vpack.c.bf16 %v2588_v6, %v2584_v61  ;;  %v6998_v54 = vpack.c.bf16 %v2595_v36, %v2591_v57 }
 0x684   :  { %6985 = vmatpush1.bf16.msra.mxu0 %v6984_v31  ;;  %7017 = vmatpush1.bf16.msra.mxu1 %v7016_v10  ;;  %v2593_v31 = vld [vmem:[%s11921_s7 + $0x198] sm:$0xff] }
 0x685   :  { %6987 = vmatprep.subr.bf16.mxu0 %v6986_v23  ;;  %7019 = vmatprep.subr.bf16.mxu1 %v7018_v59  ;;  %v7030_v10 = vpack.c.bf16 %v2597_v29, %v2593_v31  ;;  %v7000_v23 = vpack.c.bf16 %v2594_v34, %v2590_v8  ;;  %v7032_v59 = vpack.c.bf16 %v2596_v40, %v2592_v56  ;;  %v9941_v40 = vpop.permute.xlu0 %2523 }
 0x686   :  { %vm2525_vm14 = vcmp.eq.s32.totalorder %v9941_v40, 1  ;;  %v3623_v40 = vld [vmem:[%s11925_s4 + $0xb0] sm:$0xff] }
 0x688   :  { %6989 = vmatpush1.bf16.msra.mxu0 %v6988_v17  ;;  %7021 = vmatpush1.bf16.msra.mxu1 %v7020_v9  ;;  %v7002_v17 = vpack.c.bf16 %v2603_v24, %v2599_v50  ;;  %v2598_v9 = vld [vmem:[%s11921_s7 + $0x1c0] sm:$0xff] }
 0x689   :  { %6991 = vmatprep.subr.bf16.mxu0 %v6990_v62  ;;  %7023 = vmatprep.subr.bf16.mxu1 %v7022_v35  ;;  %v2604_v62 = vld [vmem:[%s11921_s7 + $0x1f0] sm:$0xff]  ;;  %v7004_v35 = vpack.c.bf16 %v2602_v44, %v2598_v9  ;;  %v2808_v44 = vld [vmem:[%s11925_s4 + $0x58] sm:$0xff] }
 0x68a   :  { %v7036_v14 = vpack.c.bf16 %v2604_v62, %v2600_v4  ;;  %v2812_v4 = vld [vmem:[%s11925_s4 + $0x78] sm:$0xff] }
 0x68c   :  { %6993 = vmatpush1.bf16.msra.mxu0 %v6992_v58  ;;  %7025 = vmatpush1.bf16.msra.mxu1 %v7024_v38  ;;  %v2804_v58 = vld [vmem:[%s11925_s4 + $0x38] sm:$0xff] }
 0x68d   :  { %6995 = vmatprep.subr.bf16.mxu0 %v6994_v55  ;;  %7027 = vmatprep.subr.bf16.mxu1 %v7026_v33  ;;  %v9932_v38 = vpack.c.bf16 %v2804_v58, %v2800_v15  ;;  %v9975_v15 = vpack.c.bf16 %v2803_v39, %v2799_v63  ;;  %v2809_v58 = vld [vmem:[%s11925_s4 + $0x60] sm:$0xff]  ;;  %v2823_v39 = vld [vmem:[%s11925_s4 + $0xd0] sm:$0xff] }
 0x690   :  { %6997 = vmatpush1.bf16.msra.mxu0 %v6996_v52  ;;  %7029 = vmatpush1.bf16.msra.mxu1 %v7028_v16 }
 0x691   :  { %6999 = vmatprep.subr.bf16.mxu0 %v6998_v54  ;;  %7031 = vmatprep.subr.bf16.mxu1 %v7030_v10 }
 0x694   :  { %7001 = vmatpush1.bf16.msra.mxu0 %v7000_v23  ;;  %7033 = vmatpush1.bf16.msra.mxu1 %v7032_v59  ;;  %v2797_v59 = vld [vmem:[%s11925_s4] sm:$0xff] }
 0x695   :  { %7003 = vmatprep.subr.bf16.mxu0 %v7002_v17  ;;  %7035 = vmatprep.subr.bf16.mxu1 %v7034_v30  ;;  %v2801_v17 = vld [vmem:[%s11925_s4 + $0x20] sm:$0xff]  ;;  %v2810_v30 = vld [vmem:[%s11925_s4 + $0x68] sm:$0xff] }
 0x696   :  { %v9973_v43 = vpack.c.bf16 %v2801_v17, %v2797_v59  ;;  %v2825_v59 = vld [vmem:[%s11925_s4 + $0xe0] sm:$0xff] }
 0x698   :  { %7005 = vmatpush1.bf16.msra.mxu0 %v7004_v35  ;;  %7037 = vmatpush1.bf16.msra.mxu1 %v7036_v14  ;;  %v2805_v35 = vld [vmem:[%s11925_s4 + $0x40] sm:$0xff] }
 0x699   :  { %7039 = vmatprep.subr.bf16.mxu0 %v9930_v21  ;;  %7071 = vmatprep.subr.bf16.mxu1 %v9932_v38 }
 0x74d   :  { %v2417_v48 = vpop.f32.mrb[18].mxu0  ;;  %v2488_v42 = vpop.f32.mrb[18].mxu1 }
 0x74e   :  { %v7840_v46 = vadd.f32 %v2417_v48, %v9149_v32  ;;  %v2419_v55 = vpop.f32.mrb[19].mxu0  ;;  %v2490_v5 = vpop.f32.mrb[19].mxu1  ;;  %v7856_v6 = vadd.f32 %v2488_v42, %v9166_v1  ;;  %v9985_v48 = vpack.c.bf16 %v2812_v4, %v2808_v44  ;;  %v2807_v42 = vld [vmem:[%s11925_s4 + $0x50] sm:$0xff]  ;;  %v2832_v44 = vld [vmem:[%s11925_s4 + $0x118] sm:$0xff] }
 0x74f   :  { %v7841_v18 = vadd.f32 %v2419_v55, %v9153_v19  ;;  %v7857_v52 = vadd.f32 %v2490_v5, %v9160_v51  ;;  %v2814_v55 = vld [vmem:[%s11925_s4 + $0x88] sm:$0xff]  ;;  %v2836_v4 = vld [vmem:[%s11925_s4 + $0x138] sm:$0xff] }
 0x750   :  { %v6038_v20 = vmul.f32 -1.442695, %v7840_v46  ;;  %v2811_v46 = vld [vmem:[%s11925_s4 + $0x70] sm:$0xff] }
 0x751   :  { %v6039_v33 = vmul.f32 -1.442695, %v7841_v18  ;;  %v6040_v61 = vmul.f32 -1.442695, %v7857_v52  ;;  %v2818_v18 = vld [vmem:[%s11925_s4 + $0xa8] sm:$0xff]  ;;  %v10014_v52 = vpack.c.bf16 %v2809_v58, %v2805_v35  ;;  %v2829_v35 = vld [vmem:[%s11925_s4 + $0x100] sm:$0xff] }
 0x752   :  { %8034 = vpow2.f32 %v6038_v20  ;;  %v2816_v20 = vld [vmem:[%s11925_s4 + $0x98] sm:$0xff]  ;;  %v2833_v58 = vld [vmem:[%s11925_s4 + $0x120] sm:$0xff] }
 0x753   :  { %8036 = vpow2.f32 %v6039_v33  ;;  %v2820_v33 = vld [vmem:[%s11925_s4 + $0xb8] sm:$0xff] }
 0x754   :  { %8038 = vpow2.f32 %v6040_v61  ;;  %v10016_v61 = vpack.c.bf16 %v2811_v46, %v2807_v42  ;;  %v10102_v46 = vpack.c.bf16 %v2836_v4, %v2832_v44 }
 0x755   :  { %8040 = vtanh.f32 %v7856_v6  ;;  %v2813_v6 = vld [vmem:[%s11925_s4 + $0x80] sm:$0xff] }
 0x75c   :  { %v8035_v57 = vpop.eup %8034 }
 0x75d   :  { %v8037_v16 = vpop.eup %8036  ;;  %v2500_v36 = vadd.f32 1.0, %v8035_v57  ;;  %v2817_v57 = vld [vmem:[%s11925_s4 + $0xa0] sm:$0xff] }
 0x75e   :  { %v2506_v31 = vadd.f32 1.0, %v8037_v16  ;;  %v8039_v29 = vpop.eup %8038  ;;  %v10026_v16 = vpack.c.bf16 %v2818_v18, %v2814_v55  ;;  %v2831_v55 = vld [vmem:[%s11925_s4 + $0x110] sm:$0xff] }
 0x75f   :  { %8042 = vrcp.f32 %v2500_v36  ;;  %v8041_v54 = vpop.eup %8040  ;;  %v2513_v56 = vadd.f32 1.0, %v8039_v29  ;;  %v10028_v36 = vpack.c.bf16 %v2820_v33, %v2816_v20  ;;  %v2819_v29 = vld [vmem:[%s11925_s4 + $0xb0] sm:$0xff]  ;;  %v2838_v20 = vld [vmem:[%s11925_s4 + $0x148] sm:$0xff] }
 0x760   :  { %8044 = vrcp.f32 %v2506_v31  ;;  %v2815_v31 = vld [vmem:[%s11925_s4 + $0x90] sm:$0xff]  ;;  %v2842_v33 = vld [vmem:[%s11925_s4 + $0x168] sm:$0xff] }
 0x761   :  { %8046 = vrcp.f32 %v2513_v56  ;;  %v10052_v56 = vpack.c.bf16 %v2817_v57, %v2813_v6  ;;  %v2835_v18 = vld [vmem:[%s11925_s4 + $0x130] sm:$0xff]  ;;  %v2840_v6 = vld [vmem:[%s11925_s4 + $0x158] sm:$0xff] }
 0x762   :  { %v2844_v57 = vld [vmem:[%s11925_s4 + $0x178] sm:$0xff] }
 0x769   :  { %v8043_v10 = vpop.eup %8042 }
 0x76a   :  { %v8045_v8 = vpop.eup %8044  ;;  %v2517_v34 = vmul.f32 %v8043_v10, %v8041_v54  ;;  %v2822_v54 = vld [vmem:[%s11925_s4 + $0xc8] sm:$0xff] }
 0x76b   :  { %v2516_v23 = vmul.f32 %v8045_v8, %v9715_v11  ;;  %v8047_v9 = vpop.eup %8046  ;;  %v2826_v10 = vld [vmem:[%s11925_s4 + $0xe8] sm:$0xff]  ;;  %v2824_v8 = vld [vmem:[%s11925_s4 + $0xd8] sm:$0xff] }
 0x76c   :  { %v10064_v17 = vpack.c.bf16 %v2826_v10, %v2822_v54  ;;  %v2837_v54 = vld [vmem:[%s11925_s4 + $0x140] sm:$0xff] }
 0x76d   :  { %v2518_v50 = vadd.f32 %v2517_v34, %v2516_v23  ;;  %v2828_v34 = vld [vmem:[%s11925_s4 + $0xf8] sm:$0xff]  ;;  %v10054_v23 = vpack.c.bf16 %v2819_v29, %v2815_v31  ;;  %v10124_v31 = vpack.c.bf16 %v2833_v58, %v2829_v35  ;;  %v7088_v29 = vpack.c.bf16 %v2835_v18, %v2831_v55  ;;  %v2841_v10 = vld [vmem:[%s11925_s4 + $0x160] sm:$0xff] }
 0x76e   :  { %v10066_v63 = vpack.c.bf16 %v2828_v34, %v2824_v8  ;;  %v10134_v8 = vpack.c.bf16 %v2842_v33, %v2838_v20  ;;  %v7090_v34 = vpack.c.bf16 %v2844_v57, %v2840_v6  ;;  %v10155_v44 = vpack.c.bf16 %v2841_v10, %v2837_v54  ;;  %v2845_v35 = vld [vmem:[%s11925_s4 + $0x180] sm:$0xff]  ;;  %v2847_v20 = vld [vmem:[%s11925_s4 + $0x190] sm:$0xff]  ;;  %v2854_v6 = vld [vmem:[%s11925_s4 + $0x1c8] sm:$0xff] }
 0x76f   :  { %8048 = vtanh.f32 %v2518_v50  ;;  %v9947_v24 = vsel %vm2525_vm14, %v2518_v50, %v9715_v11  ;;  %v2806_v11 = vld [vmem:[%s11925_s4 + $0x48] sm:$0xff]  ;;  %v2821_v50 = vld [vmem:[%s11925_s4 + $0xc0] sm:$0xff]  ;;  %v2851_v33 = vld [vmem:[%s11925_s4 + $0x1b0] sm:$0xff] }
 0x770   :  { %v9983_v14 = vpack.c.bf16 %v2810_v30, %v2806_v11  ;;  %v2827_v11 = vld [vmem:[%s11925_s4 + $0xf0] sm:$0xff]  ;;  %v2834_v30 = vld [vmem:[%s11925_s4 + $0x128] sm:$0xff]  ;;  %v2849_v58 = vld [vmem:[%s11925_s4 + $0x1a0] sm:$0xff] }
 0x771   :  { %v2858_v57 = vld [vmem:[%s11925_s4 + $0x1e8] sm:$0xff]  ;;  %v2856_v54 = vld [vmem:[%s11925_s4 + $0x1d8] sm:$0xff] }
 0x772   :  { %v2860_v10 = vld [vmem:[%s11925_s4 + $0x1f8] sm:$0xff] }
 0x779   :  { %v8049_v62 = vpop.eup %8048 }
 0x77a   :  { %v2520_v45 = vmul.f32 %v8049_v62, %v8047_v9  ;;  %v2830_v9 = vld [vmem:[%s11925_s4 + $0x108] sm:$0xff]  ;;  %v10088_v62 = vpack.c.bf16 %v2825_v59, %v2821_v50  ;;  %v2839_v50 = vld [vmem:[%s11925_s4 + $0x150] sm:$0xff] }
 0x77b   :  { %v10100_v42 = vpack.c.bf16 %v2834_v30, %v2830_v9  ;;  %v2843_v59 = vld [vmem:[%s11925_s4 + $0x170] sm:$0xff]  ;;  %v2848_v9 = vld [vmem:[%s11925_s4 + $0x198] sm:$0xff] }
 0x77c   :  { %v9999_v5 = vsel %vm2525_vm14, %v2520_v45, %v9720_v13  ;;  %v10090_v45 = vpack.c.bf16 %v2827_v11, %v2823_v39  ;;  %v2846_v39 = vld [vmem:[%s11925_s4 + $0x188] sm:$0xff]  ;;  %v2852_v30 = vld [vmem:[%s11925_s4 + $0x1b8] sm:$0xff]  ;;  %v7092_v4 = vpack.c.bf16 %v2843_v59, %v2839_v50  ;;  %v10187_v50 = vpack.c.bf16 %v2849_v58, %v2845_v35  ;;  %v2855_v35 = vld [vmem:[%s11925_s4 + $0x1d0] sm:$0xff] }
 0x77d   :  { %2671 = vmatmul.mubr.f32.vlgmr.msra.gmra.mrb[16].mxu0 %v9999_v5  ;;  %2742 = vmatmul.mubr.f32.vlgmr.msra.gmra.mrb[16].mxu1 %v9999_v5  ;;  %v2850_v11 = vld [vmem:[%s11925_s4 + $0x1a8] sm:$0xff]  ;;  %v10166_v18 = vpack.c.bf16 %v2852_v30, %v2848_v9  ;;  %v10189_v59 = vpack.c.bf16 %v2851_v33, %v2847_v20  ;;  %v10198_v9 = vpack.c.bf16 %v2860_v10, %v2856_v54  ;;  %v2857_v30 = vld [vmem:[%s11925_s4 + $0x1e0] sm:$0xff]  ;;  %v2859_v58 = vld [vmem:[%s11925_s4 + $0x1f0] sm:$0xff] }
 0x77e   :  { %7041 = vmatpush1.bf16.msra.mxu0 %v9973_v43  ;;  %7073 = vmatpush1.bf16.msra.mxu1 %v9975_v15  ;;  %v10164_v55 = vpack.c.bf16 %v2850_v11, %v2846_v39  ;;  %v2853_v39 = vld [vmem:[%s11925_s4 + $0x1c0] sm:$0xff]  ;;  %v10196_v11 = vpack.c.bf16 %v2858_v57, %v2854_v6  ;;  %v10213_v33 = vpack.c.bf16 %v2859_v58, %v2855_v35  ;;  %v3060_v57 = vld [vmem:[%s11926_s9 + $0xa8] sm:$0xff]  ;;  %v3061_v35 = vld [vmem:[%s11926_s9 + $0xb0] sm:$0xff] }
 0x77f   :  { %7043 = vmatprep.subr.bf16.mxu0 %v9983_v14  ;;  %7075 = vmatprep.subr.bf16.mxu1 %v9985_v48  ;;  %v10211_v20 = vpack.c.bf16 %v2857_v30, %v2853_v39  ;;  %v3059_v6 = vld [vmem:[%s11926_s9 + $0xa0] sm:$0xff]  ;;  %v3044_v39 = vld [vmem:[%s11926_s9 + $0x28] sm:$0xff]  ;;  %v3062_v58 = vld [vmem:[%s11926_s9 + $0xb8] sm:$0xff] }
 0x780   :  { %2925 = vmatprep.mubr.f32.mxu0 %v11933_v3  ;;  %2996 = vmatprep.mubr.f32.mxu1 %v11933_v3  ;;  %v10278_v54 = vpack.c.bf16 %v3060_v57, %v3059_v6  ;;  %v3043_v10 = vld [vmem:[%s11926_s9 + $0x20] sm:$0xff]  ;;  %v3048_v6 = vld [vmem:[%s11926_s9 + $0x48] sm:$0xff] }
 0x781   :  { %v10286_v30 = vpack.c.bf16 %v3044_v39, %v3043_v10  ;;  %v3065_v10 = vld [vmem:[%s11926_s9 + $0xd0] sm:$0xff]  ;;  %v3066_v39 = vld [vmem:[%s11926_s9 + $0xd8] sm:$0xff] }
 0x782   :  { %7045 = vmatpush1.bf16.msra.mxu0 %v10014_v52  ;;  %7077 = vmatpush1.bf16.msra.mxu1 %v10016_v61 }
 0x783   :  { %7047 = vmatprep.subr.bf16.mxu0 %v10026_v16  ;;  %7079 = vmatprep.subr.bf16.mxu1 %v10028_v36 }
 0x786   :  { %7049 = vmatpush1.bf16.msra.mxu0 %v10052_v56  ;;  %7081 = vmatpush1.bf16.msra.mxu1 %v10054_v23 }
 0x787   :  { %7051 = vmatprep.subr.bf16.mxu0 %v10064_v17  ;;  %7083 = vmatprep.subr.bf16.mxu1 %v10066_v63 }
 0x78a   :  { %7053 = vmatpush1.bf16.msra.mxu0 %v10088_v62  ;;  %7085 = vmatpush1.bf16.msra.mxu1 %v10090_v45 }
 0x78b   :  { %7055 = vmatprep.subr.bf16.mxu0 %v10100_v42  ;;  %7087 = vmatprep.subr.bf16.mxu1 %v10102_v46 }
 0x78e   :  { %7057 = vmatpush1.bf16.msra.mxu0 %v10124_v31  ;;  %7089 = vmatpush1.bf16.msra.mxu1 %v7088_v29 }
 0x78f   :  { %7059 = vmatprep.subr.bf16.mxu0 %v10134_v8  ;;  %7091 = vmatprep.subr.bf16.mxu1 %v7090_v34 }
 0x792   :  { %7061 = vmatpush1.bf16.msra.mxu0 %v10155_v44  ;;  %7093 = vmatpush1.bf16.msra.mxu1 %v7092_v4 }
 0x793   :  { %7063 = vmatprep.subr.bf16.mxu0 %v10164_v55  ;;  %7095 = vmatprep.subr.bf16.mxu1 %v10166_v18 }
 0x796   :  { %7065 = vmatpush1.bf16.msra.mxu0 %v10187_v50  ;;  %7097 = vmatpush1.bf16.msra.mxu1 %v10189_v59 }
 0x797   :  { %7067 = vmatprep.subr.bf16.mxu0 %v10196_v11  ;;  %7099 = vmatprep.subr.bf16.mxu1 %v10198_v9 }
 0x79a   :  { %7069 = vmatpush1.bf16.msra.mxu0 %v10211_v20  ;;  %7101 = vmatpush1.bf16.msra.mxu1 %v10213_v33 }
 0x79b   :  { %7167 = vmatprep.subr.bf16.mxu1 %v9932_v38  ;;  %v3055_v38 = vld [vmem:[%s11926_s9 + $0x80] sm:$0xff] }
 0x79d   :  { %2926 = vmatmul.mubr.f32.vlgmr.msra.gmra.mrb[0].mxu0 %v11933_v3  ;;  %2997 = vmatmul.mubr.f32.vlgmr.msra.gmra.mrb[0].mxu1 %v11933_v3 }
 0x79e   :  { %7169 = vmatpush1.bf16.msra.mxu1 %v9975_v15  ;;  %3397 = vmatprep.mubr.f32.mxu1 %v11933_v3  ;;  %v3056_v15 = vld [vmem:[%s11926_s9 + $0x88] sm:$0xff] }
 0x79f   :  { %7171 = vmatprep.subr.bf16.mxu1 %v9985_v48  ;;  %v10241_v48 = vpack.c.bf16 %v3056_v15, %v3055_v38  ;;  %v10296_v38 = vpack.c.bf16 %v3062_v58, %v3061_v35  ;;  %v3045_v15 = vld [vmem:[%s11926_s9 + $0x30] sm:$0xff]  ;;  %v10332_v35 = vpack.c.bf16 %v3066_v39, %v3065_v10 }
 0x7a0   :  { %v3049_v58 = vld [vmem:[%s11926_s9 + $0x50] sm:$0xff] }
 0x7a1   :  { %7103 = vmatprep.subr.bf16.mxu0 %v10241_v48  ;;  %v3069_v39 = vld [vmem:[%s11926_s9 + $0xf0] sm:$0xff] }
 0x7a2   :  { %7173 = vmatpush1.bf16.msra.mxu1 %v10016_v61  ;;  %v3039_v61 = vld [vmem:[%s11926_s9] sm:$0xff] }
 0x7a3   :  { %7175 = vmatprep.subr.bf16.mxu1 %v10028_v36  ;;  %v3040_v36 = vld [vmem:[%s11926_s9 + $0x8] sm:$0xff] }
 0x7a6   :  { %7177 = vmatpush1.bf16.msra.mxu1 %v10054_v23  ;;  %v10249_v23 = vpack.c.bf16 %v3040_v36, %v3039_v61  ;;  %v3046_v61 = vld [vmem:[%s11926_s9 + $0x38] sm:$0xff] }
 0x7a7   :  { %7179 = vmatprep.subr.bf16.mxu1 %v10066_v63  ;;  %v3057_v63 = vld [vmem:[%s11926_s9 + $0x90] sm:$0xff]  ;;  %v10304_v36 = vpack.c.bf16 %v3046_v61, %v3045_v15  ;;  %v3050_v15 = vld [vmem:[%s11926_s9 + $0x58] sm:$0xff]  ;;  %v3067_v61 = vld [vmem:[%s11926_s9 + $0xe0] sm:$0xff] }
 0x7a8   :  { %7105 = vmatpush3.bf16.msra.mxu0 %v10249_v23 }
 0x7aa   :  { %7181 = vmatpush1.bf16.msra.mxu1 %v10090_v45  ;;  %v3058_v45 = vld [vmem:[%s11926_s9 + $0x98] sm:$0xff] }
 0x7ab   :  { %7183 = vmatprep.subr.bf16.mxu1 %v10102_v46  ;;  %v10260_v46 = vpack.c.bf16 %v3058_v45, %v3057_v63  ;;  %v3063_v63 = vld [vmem:[%s11926_s9 + $0xc0] sm:$0xff]  ;;  %v3064_v45 = vld [vmem:[%s11926_s9 + $0xc8] sm:$0xff] }
 0x7ad   :  { %7107 = vmatprep.subr.bf16.mxu0 %v10260_v46 }
 0x7ae   :  { %7185 = vmatpush1.bf16.msra.mxu1 %v7088_v29  ;;  %v3041_v29 = vld [vmem:[%s11926_s9 + $0x10] sm:$0xff] }
 0x7af   :  { %7187 = vmatprep.subr.bf16.mxu1 %v7090_v34  ;;  %v3042_v34 = vld [vmem:[%s11926_s9 + $0x18] sm:$0xff] }
 0x7b2   :  { %7189 = vmatpush1.bf16.msra.mxu1 %v7092_v4  ;;  %v10268_v4 = vpack.c.bf16 %v3042_v34, %v3041_v29  ;;  %v10314_v29 = vpack.c.bf16 %v3064_v45, %v3063_v63  ;;  %v3047_v34 = vld [vmem:[%s11926_s9 + $0x40] sm:$0xff]  ;;  %v10343_v63 = vpack.c.bf16 %v3050_v15, %v3049_v58  ;;  %v3068_v45 = vld [vmem:[%s11926_s9 + $0xe8] sm:$0xff]  ;;  %v3070_v58 = vld [vmem:[%s11926_s9 + $0xf8] sm:$0xff] }
 0x7b3   :  { %7191 = vmatprep.subr.bf16.mxu1 %v10166_v18  ;;  %v10322_v57 = vpack.c.bf16 %v3048_v6, %v3047_v34  ;;  %v3051_v34 = vld [vmem:[%s11926_s9 + $0x60] sm:$0xff]  ;;  %v3052_v6 = vld [vmem:[%s11926_s9 + $0x68] sm:$0xff]  ;;  %v10355_v10 = vpack.c.bf16 %v3068_v45, %v3067_v61  ;;  %v10367_v3 = vpack.c.bf16 %v3070_v58, %v3069_v39  ;;  %v3053_v61 = vld [vmem:[%s11926_s9 + $0x70] sm:$0xff] }
 0x7b4   :  { %7109 = vmatpush3.bf16.msra.mxu0 %v10268_v4  ;;  %v10364_v15 = vpack.c.bf16 %v3052_v6, %v3051_v34  ;;  %v3054_v45 = vld [vmem:[%s11926_s9 + $0x78] sm:$0xff] }
 0x7b5   :  { %7111 = vmatprep.subr.bf16.mxu0 %v10278_v54  ;;  %v10376_v37 = vpack.c.bf16 %v3054_v45, %v3053_v61 }
 0x7b6   :  { %7193 = vmatpush1.bf16.msra.mxu1 %v10189_v59 }
 0x7b7   :  { %7195 = vmatprep.subr.bf16.mxu1 %v10198_v9 }
 0x7b8   :  { %7113 = vmatpush3.bf16.msra.mxu0 %v10286_v30 }
 0x7b9   :  { %7115 = vmatprep.subr.bf16.mxu0 %v10296_v38 }
 0x7ba   :  { %7197 = vmatpush1.bf16.msra.mxu1 %v10213_v33 }
 0x7bb   :  { %7199 = vmatprep.subr.bf16.mxu1 %v10241_v48 }
 0x7bc   :  { %7117 = vmatpush3.bf16.msra.mxu0 %v10304_v36 }
 0x7bd   :  { %7119 = vmatprep.subr.bf16.mxu0 %v10314_v29 }
 0x7c0   :  { %7121 = vmatpush3.bf16.msra.mxu0 %v10322_v57 }
 0x7c1   :  { %7123 = vmatprep.subr.bf16.mxu0 %v10332_v35 }
 0x7c4   :  { %7125 = vmatpush3.bf16.msra.mxu0 %v10343_v63 }
 0x7c5   :  { %7127 = vmatprep.subr.bf16.mxu0 %v10355_v10 }
 0x7c8   :  { %7129 = vmatpush3.bf16.msra.mxu0 %v10364_v15 }
 0x7c9   :  { %7131 = vmatprep.subr.bf16.mxu0 %v10367_v3 }
 0x7cc   :  { %7133 = vmatpush3.bf16.msra.mxu0 %v10376_v37 }
 0x7cd   :  { %7135 = vmatprep.subr.bf16.mxu0 %v9930_v21 }
 0x850   :  { %v2672_v34 = vpop.f32.mrb[16].mxu0  ;;  %v2743_v6 = vpop.f32.mrb[16].mxu1 }
 0x851   :  { %v7838_v39 = vadd.f32 %v2672_v34, %v9149_v32  ;;  %v2674_v58 = vpop.f32.mrb[17].mxu0  ;;  %v2745_v22 = vpop.f32.mrb[17].mxu1  ;;  %v7854_v2 = vadd.f32 %v2743_v6, %v9166_v1  ;;  %v11959_v1 = vsub.s32 0, %v9140_v26 }
 0x852   :  { %v7839_v28 = vadd.f32 %v2674_v58, %v9153_v19  ;;  %v7855_v61 = vadd.f32 %v2745_v22, %v9160_v51 }
 0x853   :  { %v6041_v47 = vmul.f32 -1.442695, %v7838_v39 }
 0x854   :  { %v6042_v0 = vmul.f32 -1.442695, %v7839_v28  ;;  %v6043_v45 = vmul.f32 -1.442695, %v7855_v61  ;;  %v112_v28 = vld [vmem:[%s11927_s5] sm:$0xf] }
 0x855   :  { %8050 = vpow2.f32 %v6041_v47  ;;  %v10390_v34 = vrot.slane %v112_v28, %v11959_v1 }
 0x856   :  { %8052 = vpow2.f32 %v6042_v0 }
 0x857   :  { %8054 = vpow2.f32 %v6043_v45 }
 0x858   :  { %8056 = vtanh.f32 %v7854_v2  ;;  %v11960_v2 = vsub.s32 1, %v9140_v26 }
 0x85f   :  { %v8051_v49 = vpop.eup %8050 }
 0x860   :  { %v8053_v12 = vpop.eup %8052  ;;  %v2755_v41 = vadd.f32 1.0, %v8051_v49 }
 0x861   :  { %v2761_v27 = vadd.f32 1.0, %v8053_v12  ;;  %v8055_v32 = vpop.eup %8054  ;;  %v10395_v12 = vrot.slane %v112_v28, %v11960_v2 }
 0x862   :  { %8058 = vrcp.f32 %v2755_v41  ;;  %v8057_v19 = vpop.eup %8056  ;;  %v2768_v51 = vadd.f32 1.0, %v8055_v32 }
 0x863   :  { %8060 = vrcp.f32 %v2761_v27 }
 0x864   :  { %8062 = vrcp.f32 %v2768_v51 }
 0x86c   :  { %v8059_v47 = vpop.eup %8058 }
 0x86d   :  { %v8061_v0 = vpop.eup %8060  ;;  %v2772_v22 = vmul.f32 %v8059_v47, %v8057_v19  ;;  %v11961_v47 = vsub.s32 3, %v9140_v26 }
 0x86e   :  { %v2771_v49 = vmul.f32 %v8061_v0, %v9947_v24  ;;  %v8063_v1 = vpop.eup %8062 }
 0x86f   :  { %v10401_v24 = vrot.slane %v112_v28, %v11961_v47 }
 0x870   :  { %v2773_v41 = vadd.f32 %v2772_v22, %v2771_v49  ;;  %v2927_v27 = vpop.f32.mrb[0].mxu0  ;;  %v2998_v6 = vpop.f32.mrb[0].mxu1  ;;  %v11962_v22 = vsub.s32 2, %v9140_v26 }
 0x871   :  { %v7806_v39 = vadd.f32 %v2927_v27, %v10390_v34  ;;  %v2929_v58 = vpop.f32.mrb[1].mxu0  ;;  %v3000_v61 = vpop.f32.mrb[1].mxu1 }
 0x872   :  { %8064 = vtanh.f32 %v2773_v41  ;;  %v7807_v45 = vadd.f32 %v2929_v58, %v10395_v12  ;;  %v7823_v0 = vadd.f32 %v3000_v61, %v10401_v24  ;;  %v10406_v51 = vrot.slane %v112_v28, %v11962_v22  ;;  %v10408_v41 = vpop.permute.xlu1 %2778 }
 0x873   :  { %v6044_v32 = vmul.f32 -1.442695, %v7806_v39  ;;  %vm2780_vm15 = vcmp.eq.s32.totalorder %v10408_v41, 1 }
 0x874   :  { %v6045_v19 = vmul.f32 -1.442695, %v7807_v45  ;;  %v6046_v2 = vmul.f32 -1.442695, %v7823_v0  ;;  %v7822_v27 = vadd.f32 %v2998_v6, %v10406_v51 }
 0x875   :  { %8066 = vpow2.f32 %v6044_v32 }
 0x876   :  { %8068 = vpow2.f32 %v6045_v19 }
 0x877   :  { %8070 = vpow2.f32 %v6046_v2 }
 0x878   :  { %8072 = vtanh.f32 %v7822_v27 }
 0x87c   :  { %v8065_v49 = vpop.eup %8064 }
 0x87d   :  { %v2775_v39 = vmul.f32 %v8065_v49, %v8063_v1 }
 0x87f   :  { %v8067_v58 = vpop.eup %8066  ;;  %v2781_v45 = vsel %vm2780_vm15, %v2775_v39, %v9999_v5 }
 0x880   :  { %v8069_v61 = vpop.eup %8068  ;;  %v3010_v32 = vadd.f32 1.0, %v8067_v58  ;;  %6108 = vmatprep.mubr.msk.f32.mxu0 %vm2780_vm15, %v2781_v45  ;;  %v11963_v45 = vmov 0.0  }
 0x881   :  { %v3016_v26 = vadd.f32 1.0, %v8069_v61  ;;  %v8071_v28 = vpop.eup %8070  ;;  %741 = vst.msk [vmem:[%s11929_s11] sm:$0xff] %vm740_vm2, %v11963_v45 }
 0x882   :  { %8074 = vrcp.f32 %v3010_v32  ;;  %v8073_v6 = vpop.eup %8072  ;;  %v3023_v22 = vadd.f32 1.0, %v8071_v28 }
 0x883   :  { %8076 = vrcp.f32 %v3016_v26 }
 0x884   :  { %8078 = vrcp.f32 %v3023_v22 }
 0x88c   :  { %v8075_v19 = vpop.eup %8074 }
 0x88d   :  { %v8077_v47 = vpop.eup %8076  ;;  %v3027_v0 = vmul.f32 %v8075_v19, %v8073_v6 }
 0x88e   :  { %v3026_v1 = vmul.f32 0.0, %v8077_v47  ;;  %v8079_v2 = vpop.eup %8078 }
 0x890   :  { %v10417_v49 = vadd.f32 %v3027_v0, %v3026_v1 }
 0x892   :  { %8080 = vtanh.f32 %v10417_v49 }
 0x89c   :  { %v8081_v39 = vpop.eup %8080 }
 0x89d   :  { %v3030_v58 = vmul.f32 %v8081_v39, %v8079_v2 }
 0x89f   :  { %6110 = vmatmul.mubr.msk.f32.vlgmr.msra.gmra.mrb[2].mxu1 %vm2780_vm15, %v3030_v58  ;;  %v10424_v27 = vsel %vm2780_vm15, %v3030_v58, 0.0 }
 0x8a0   :  { %6048 = vmatmul.mubr.msk.f32.vlgmr.msra.gmra.mrb[32].mxu0 %vm2780_vm15, %v10424_v27  ;;  %6111 = vmatprep.mubr.msk.f32.mxu1 %vm2525_vm14, %v9999_v5 }
 0x8a1   :  { %7137 = vmatpush1.bf16.msra.mxu0 %v9973_v43  ;;  %3326 = vmatprep.mubr.f32.mxu0 %v11963_v45 }
 0x8a2   :  { %7139 = vmatprep.subr.bf16.mxu0 %v9983_v14  ;;  %7201 = vmatpush3.bf16.msra.mxu1 %v10249_v23 }
 0x8a3   :  { %7203 = vmatprep.subr.bf16.mxu1 %v10260_v46 }
 0x8a5   :  { %7141 = vmatpush1.bf16.msra.mxu0 %v10014_v52 }
 0x8a6   :  { %7143 = vmatprep.subr.bf16.mxu0 %v10026_v16  ;;  %7205 = vmatpush3.bf16.msra.mxu1 %v10268_v4 }
 0x8a7   :  { %7207 = vmatprep.subr.bf16.mxu1 %v10278_v54 }
 0x8a9   :  { %7145 = vmatpush1.bf16.msra.mxu0 %v10052_v56 }
 0x8aa   :  { %7147 = vmatprep.subr.bf16.mxu0 %v10064_v17  ;;  %7209 = vmatpush3.bf16.msra.mxu1 %v10286_v30 }
 0x8ab   :  { %7211 = vmatprep.subr.bf16.mxu1 %v10296_v38 }
 0x8ad   :  { %7149 = vmatpush1.bf16.msra.mxu0 %v10088_v62 }
 0x8ae   :  { %7151 = vmatprep.subr.bf16.mxu0 %v10100_v42  ;;  %7213 = vmatpush3.bf16.msra.mxu1 %v10304_v36 }
 0x8af   :  { %7215 = vmatprep.subr.bf16.mxu1 %v10314_v29 }
 0x8b1   :  { %7153 = vmatpush1.bf16.msra.mxu0 %v10124_v31 }
 0x8b2   :  { %7155 = vmatprep.subr.bf16.mxu0 %v10134_v8  ;;  %7217 = vmatpush3.bf16.msra.mxu1 %v10322_v57 }
 0x8b3   :  { %7219 = vmatprep.subr.bf16.mxu1 %v10332_v35 }
 0x8b5   :  { %7157 = vmatpush1.bf16.msra.mxu0 %v10155_v44 }
 0x8b6   :  { %7159 = vmatprep.subr.bf16.mxu0 %v10164_v55  ;;  %7221 = vmatpush3.bf16.msra.mxu1 %v10343_v63 }
 0x8b7   :  { %7223 = vmatprep.subr.bf16.mxu1 %v10355_v10 }
 0x8b9   :  { %7161 = vmatpush1.bf16.msra.mxu0 %v10187_v50 }
 0x8ba   :  { %7163 = vmatprep.subr.bf16.mxu0 %v10196_v11  ;;  %7225 = vmatpush3.bf16.msra.mxu1 %v10364_v15 }
 0x8bb   :  { %7227 = vmatprep.subr.bf16.mxu1 %v10367_v3 }
 0x8bd   :  { %7165 = vmatpush1.bf16.msra.mxu0 %v10211_v20 }
 0x8be   :  { %7231 = vmatprep.subr.bf16.mxu0 %v9930_v21  ;;  %7229 = vmatpush3.bf16.msra.mxu1 %v10376_v37  ;;  %v3604_v21 = vld [vmem:[%s11925_s4 + $0x18] sm:$0xff] }
 0x8c0   :  { %6109 = vmatmul.mubr.msk.f32.vlgmr.msra.gmra.mrb[2].mxu0 %vm2780_vm15, %v3030_v58 }
 0x8c1   :  { %7233 = vmatpush1.bf16.msra.mxu0 %v9973_v43  ;;  %3729 = vmatprep.mubr.f32.mxu0 %v11963_v45  ;;  %v3608_v43 = vld [vmem:[%s11925_s4 + $0x38] sm:$0xff] }
 0x8c2   :  { %7235 = vmatprep.subr.bf16.mxu0 %v9983_v14  ;;  %v10489_v14 = vpack.c.bf16 %v3608_v43, %v3604_v21  ;;  %v3034_v21 = vsel %vm2780_vm15, %v10417_v49, 0.0  ;;  %v3612_v49 = vld [vmem:[%s11925_s4 + $0x58] sm:$0xff] }
 0x8c4   :  { %7263 = vmatprep.subr.bf16.mxu1 %v10489_v14 }
 0x8c5   :  { %7237 = vmatpush1.bf16.msra.mxu0 %v10014_v52 }
 0x8c6   :  { %7239 = vmatprep.subr.bf16.mxu0 %v10026_v16 }
 0x8c9   :  { %7241 = vmatpush1.bf16.msra.mxu0 %v10052_v56  ;;  %v11964_v56 = vlaneseq }
 0x8ca   :  { %7243 = vmatprep.subr.bf16.mxu0 %v10064_v17 }
 0x8cb   :  { %v10493_v17 = vand.u32 127, %v11964_v56 }
 0x8cd   :  { %7245 = vmatpush1.bf16.msra.mxu0 %v10088_v62  ;;  %11965 = vst [vmem:[#allocation16_spill] sm:$0xff] %v10493_v17  ;;  %v10498_v62 = vld [vmem:[%s11928_s10] ss:$0 sm:$0xff] }
 0x8ce   :  { %7247 = vmatprep.subr.bf16.mxu0 %v10100_v42 }
 0x8d1   :  { %7249 = vmatpush1.bf16.msra.mxu0 %v10124_v31 }
 0x8d2   :  { %7251 = vmatprep.subr.bf16.mxu0 %v10134_v8  ;;  %v3161_v8 = vpop.permute.xlu0 %3160 }
 0x8d3   :  { %vm3162_vm0 = vcmp.eq.s32.totalorder %v10493_v17, %v3161_v8  ;;  %v3616_v8 = vld [vmem:[%s11925_s4 + $0x78] sm:$0xff] }
 0x8d5   :  { %7253 = vmatpush1.bf16.msra.mxu0 %v10155_v44 }
 0x8d6   :  { %7255 = vmatprep.subr.bf16.mxu0 %v10164_v55 }
 0x8d9   :  { %7257 = vmatpush1.bf16.msra.mxu0 %v10187_v50 }
 0x8da   :  { %7259 = vmatprep.subr.bf16.mxu0 %v10196_v11 }
 0x8dd   :  { %7261 = vmatpush1.bf16.msra.mxu0 %v10211_v20 }
 0x8de   :  { %7295 = vmatprep.subr.bf16.mxu0 %v10241_v48 }
 0x972   :  { %v3399_v5 = vpop.f32.mrb[2].mxu1 }
 0x973   :  { %v6150_v52 = vpop.f32.mrb[32].mxu0  ;;  %v3401_v16 = vpop.f32.mrb[3].mxu1  ;;  %v7824_v6 = vadd.f32 %v3399_v5, %v10406_v51 }
 0x974   :  { %v6151_v42 = vpop.f32.mrb[33].mxu0  ;;  %v7825_v26 = vadd.f32 %v3401_v16, %v10401_v24 }
 0x975   :  { %v6152_v31 = vadd.f32 %v6151_v42, %v6150_v52  ;;  %v3603_v42 = vld [vmem:[%s11925_s4 + $0x10] sm:$0xff] }
 0x976   :  { %v6052_v28 = vmul.f32 -1.442695, %v7825_v26  ;;  %v3620_v26 = vld [vmem:[%s11925_s4 + $0x98] sm:$0xff] }
 0x977   :  { %v10501_v44 = vadd.f32 %v6152_v31, %v10498_v62  ;;  %v3607_v31 = vld [vmem:[%s11925_s4 + $0x30] sm:$0xff] }
 0x979   :  { %3149 = vmax.xlane.f32.xlu0 %v10501_v44  ;;  %v3163_v55 = vsel %vm3162_vm0, %v10501_v44, 0.0 }
 0x97a   :  { %3164 = vadd.xlane.f32.xlu1 %v3163_v55 }
 0x993   :  { %v3328_v50 = vpop.f32.mrb[2].mxu0 }
 0x994   :  { %v7808_v11 = vadd.f32 %v3328_v50, %v10390_v34  ;;  %v3330_v20 = vpop.f32.mrb[3].mxu0 }
 0x995   :  { %v7809_v48 = vadd.f32 %v3330_v20, %v10395_v12  ;;  %v10531_v20 = vpack.c.bf16 %v3616_v8, %v3612_v49  ;;  %v4062_v49 = vld [vmem:[%s11925_s4 + $0x1d0] sm:$0xff] }
 0x996   :  { %v6050_v61 = vmul.f32 -1.442695, %v7808_v11  ;;  %v10529_v11 = vpack.c.bf16 %v3607_v31, %v3603_v42  ;;  %v3647_v42 = vld [vmem:[%s11925_s4 + $0x170] sm:$0xff] }
 0x997   :  { %v6051_v32 = vmul.f32 -1.442695, %v7809_v48  ;;  %v3611_v48 = vld [vmem:[%s11925_s4 + $0x50] sm:$0xff] }
 0x998   :  { %8082 = vpow2.f32 %v6050_v61  ;;  %v3615_v61 = vld [vmem:[%s11925_s4 + $0x70] sm:$0xff] }
 0x999   :  { %8084 = vpow2.f32 %v6051_v32  ;;  %v4066_v8 = vld [vmem:[%s11925_s4 + $0x1f0] sm:$0xff] }
 0x99a   :  { %8086 = vpow2.f32 %v6052_v28  ;;  %v3624_v28 = vld [vmem:[%s11925_s4 + $0xb8] sm:$0xff] }
 0x99b   :  { %8088 = vtanh.f32 %v7824_v6  ;;  %v7270_v6 = vpack.c.bf16 %v3624_v28, %v3620_v26 }
 0x9a2   :  { %v8083_v19 = vpop.eup %8082 }
 0x9a3   :  { %v8085_v47 = vpop.eup %8084  ;;  %v3411_v0 = vadd.f32 1.0, %v8083_v19  ;;  %v3619_v19 = vld [vmem:[%s11925_s4 + $0x90] sm:$0xff] }
 0x9a4   :  { %v3417_v22 = vadd.f32 1.0, %v8085_v47  ;;  %v8087_v1 = vpop.eup %8086  ;;  %v3628_v47 = vld [vmem:[%s11925_s4 + $0xd8] sm:$0xff] }
 0x9a5   :  { %8090 = vrcp.f32 %v3411_v0  ;;  %v8089_v2 = vpop.eup %8088  ;;  %v3424_v43 = vadd.f32 1.0, %v8087_v1  ;;  %v7272_v0 = vpack.c.bf16 %v3623_v40, %v3619_v19  ;;  %v3627_v1 = vld [vmem:[%s11925_s4 + $0xd0] sm:$0xff] }
 0x9a6   :  { %8092 = vrcp.f32 %v3417_v22 }
 0x9a7   :  { %8094 = vrcp.f32 %v3424_v43  ;;  %v3639_v43 = vld [vmem:[%s11925_s4 + $0x130] sm:$0xff] }
 0x9af   :  { %v8091_v39 = vpop.eup %8090 }
 0x9b0   :  { %v8093_v58 = vpop.eup %8092  ;;  %v3428_v52 = vmul.f32 %v8091_v39, %v8089_v2  ;;  %v3631_v2 = vld [vmem:[%s11925_s4 + $0xf0] sm:$0xff]  ;;  %v3636_v39 = vld [vmem:[%s11925_s4 + $0x118] sm:$0xff] }
 0x9b1   :  { %v3427_v16 = vmul.f32 %v8093_v58, %v3034_v21  ;;  %v8095_v41 = vpop.eup %8094 }
 0x9b3   :  { %v3429_v5 = vadd.f32 %v3428_v52, %v3427_v16  ;;  %v3644_v52 = vld [vmem:[%s11925_s4 + $0x158] sm:$0xff] }
 0x9b5   :  { %8096 = vtanh.f32 %v3429_v5  ;;  %v10515_v56 = vsel %vm2525_vm14, %v3429_v5, %v3034_v21  ;;  %v3635_v21 = vld [vmem:[%s11925_s4 + $0x110] sm:$0xff] }
 0x9b6   :  { %v3643_v5 = vld [vmem:[%s11925_s4 + $0x150] sm:$0xff] }
 0x9bf   :  { %v8097_v55 = vpop.eup %8096 }
 0x9c0   :  { %v3431_v50 = vmul.f32 %v8097_v55, %v8095_v41  ;;  %v4005_v55 = vld [vmem:[%s11925_s4 + $0x8] sm:$0xff] }
 0x9c2   :  { %v10542_v32 = vsel %vm2525_vm14, %v3431_v50, %v10424_v27  ;;  %v7268_v27 = vpack.c.bf16 %v3615_v61, %v3611_v48  ;;  %v4009_v50 = vld [vmem:[%s11925_s4 + $0x28] sm:$0xff]  ;;  %v10685_v48 = vpop.permute.xlu1 %3965 }
 0x9c3   :  { %6054 = vmatmul.mubr.msk.f32.vlgmr.msra.gmra.mrb[32].mxu1 %vm2525_vm14, %v10542_v32  ;;  %3730 = vmatmul.mubr.f32.vlgmr.msra.gmra.mrb[4].mxu0 %v10542_v32  ;;  %vm3967_vm8 = vcmp.eq.s32.totalorder %v10493_v17, %v10685_v48 }
 0x9c4   :  { %7265 = vmatpush1.bf16.msra.mxu1 %v10529_v11  ;;  %6112 = vmatprep.mubr.msk.f32.mxu0 %vm2269_vm13, %v9720_v13  ;;  %v3632_v13 = vld [vmem:[%s11925_s4 + $0xf8] sm:$0xff] }
 0x9c5   :  { %7267 = vmatprep.subr.bf16.mxu1 %v10531_v20  ;;  %3800 = vmatprep.mubr.f32.mxu1 %v11963_v45  ;;  %v7274_v22 = vpack.c.bf16 %v3632_v13, %v3628_v47 }
 0x9c6   :  { %7297 = vmatpush3.bf16.msra.mxu0 %v10249_v23  ;;  %v3640_v23 = vld [vmem:[%s11925_s4 + $0x138] sm:$0xff] }
 0x9c7   :  { %7299 = vmatprep.subr.bf16.mxu0 %v10260_v46  ;;  %v7276_v46 = vpack.c.bf16 %v3631_v2, %v3627_v1  ;;  %v7278_v58 = vpack.c.bf16 %v3640_v23, %v3636_v39 }
 0x9c8   :  { %7269 = vmatpush1.bf16.msra.mxu1 %v7268_v27 }
 0x9c9   :  { %7271 = vmatprep.subr.bf16.mxu1 %v7270_v6 }
 0x9ca   :  { %7301 = vmatpush3.bf16.msra.mxu0 %v10268_v4  ;;  %v3648_v4 = vld [vmem:[%s11925_s4 + $0x178] sm:$0xff] }
 0x9cb   :  { %7303 = vmatprep.subr.bf16.mxu0 %v10278_v54  ;;  %v7280_v54 = vpack.c.bf16 %v3639_v43, %v3635_v21  ;;  %v7282_v16 = vpack.c.bf16 %v3648_v4, %v3644_v52  ;;  %v8226_v4 = vld [vmem:[%s11923_s2] sm:$0xff] }
 0x9cc   :  { %7273 = vmatpush1.bf16.msra.mxu1 %v7272_v0  ;;  %vm3166_vm6 = vcmp.ne.s32.totalorder %v8226_v4, 0  ;;  %v4028_v4 = vld [vmem:[%s11925_s4 + $0xc0] sm:$0xff] }
 0x9cd   :  { %7275 = vmatprep.subr.bf16.mxu1 %v7274_v22 }
 0x9ce   :  { %7305 = vmatpush3.bf16.msra.mxu0 %v10286_v30  ;;  %v7284_v30 = vpack.c.bf16 %v3647_v42, %v3643_v5  ;;  %v6049_v42 = vsel %vm3166_vm6, 1.0, %v11963_v45 }
 0x9cf   :  { %7307 = vmatprep.subr.bf16.mxu0 %v10296_v38 }
 0x9d0   :  { %7277 = vmatpush1.bf16.msra.mxu1 %v7276_v46 }
 0x9d1   :  { %7279 = vmatprep.subr.bf16.mxu1 %v7278_v58 }
 0x9d2   :  { %7309 = vmatpush3.bf16.msra.mxu0 %v10304_v36 }
 0x9d3   :  { %7311 = vmatprep.subr.bf16.mxu0 %v10314_v29 }
 0x9d4   :  { %7281 = vmatpush1.bf16.msra.mxu1 %v7280_v54 }
 0x9d5   :  { %7283 = vmatprep.subr.bf16.mxu1 %v7282_v16 }
 0x9d6   :  { %7313 = vmatpush3.bf16.msra.mxu0 %v10322_v57  ;;  %v4055_v57 = vld [vmem:[%s11925_s4 + $0x198] sm:$0xff] }
 0x9d7   :  { %7315 = vmatprep.subr.bf16.mxu0 %v10332_v35  ;;  %v4059_v35 = vld [vmem:[%s11925_s4 + $0x1b8] sm:$0xff] }
 0x9d8   :  { %7285 = vmatpush1.bf16.msra.mxu1 %v7284_v30 }
 0x9d9   :  { %7287 = vmatprep.subr.bf16.mxu1 %v10166_v18 }
 0x9da   :  { %7317 = vmatpush3.bf16.msra.mxu0 %v10343_v63  ;;  %v4054_v63 = vld [vmem:[%s11925_s4 + $0x190] sm:$0xff] }
 0x9db   :  { %7319 = vmatprep.subr.bf16.mxu0 %v10355_v10  ;;  %v10649_v10 = vpack.c.bf16 %v4059_v35, %v4055_v57 }
 0x9dc   :  { %7289 = vmatpush1.bf16.msra.mxu1 %v10189_v59 }
 0x9dd   :  { %7291 = vmatprep.subr.bf16.mxu1 %v10198_v9 }
 0x9de   :  { %7321 = vmatpush3.bf16.msra.mxu0 %v10364_v15  ;;  %v4058_v15 = vld [vmem:[%s11925_s4 + $0x1b0] sm:$0xff] }
 0x9df   :  { %7323 = vmatprep.subr.bf16.mxu0 %v10367_v3  ;;  %v3563_v3 = vpop.permute.xlu0 %3562  ;;  %v10660_v31 = vpack.c.bf16 %v4058_v15, %v4054_v63 }
 0x9e0   :  { %7293 = vmatpush1.bf16.msra.mxu1 %v10213_v33  ;;  %vm3564_vm3 = vcmp.eq.s32.totalorder %v10493_v17, %v3563_v3 }
 0x9e1   :  { %7359 = vmatprep.subr.bf16.mxu1 %v10489_v14  ;;  %v4063_v14 = vld [vmem:[%s11925_s4 + $0x1d8] sm:$0xff] }
 0x9e2   :  { %7325 = vmatpush3.bf16.msra.mxu0 %v10376_v37 }
 0x9e3   :  { %3801 = vmatmul.mubr.f32.vlgmr.msra.gmra.mrb[4].mxu1 %v10542_v32  ;;  %v10626_v18 = vpop.permute.xlu0 %4368 }
 0x9e4   :  { %7361 = vmatpush1.bf16.msra.mxu1 %v10529_v11  ;;  %4203 = vmatprep.mubr.f32.mxu1 %v11963_v45  ;;  %v10678_v11 = vpack.c.bf16 %v4066_v8, %v4062_v49  ;;  %vm4370_vm15 = vcmp.eq.s32.totalorder %v10493_v17, %v10626_v18 }
 0x9e5   :  { %7363 = vmatprep.subr.bf16.mxu1 %v10531_v20  ;;  %v10680_v20 = vpack.c.bf16 %v4009_v50, %v4005_v55 }
 0x9e7   :  { %7327 = vmatprep.subr.bf16.mxu0 %v10680_v20 }
 0x9e8   :  { %7365 = vmatpush1.bf16.msra.mxu1 %v7268_v27 }
 0x9e9   :  { %7367 = vmatprep.subr.bf16.mxu1 %v7270_v6 }
 0x9ec   :  { %7369 = vmatpush1.bf16.msra.mxu1 %v7272_v0 }
 0x9ed   :  { %7371 = vmatprep.subr.bf16.mxu1 %v7274_v22 }
 0x9f0   :  { %7373 = vmatpush1.bf16.msra.mxu1 %v7276_v46 }
 0x9f1   :  { %7375 = vmatprep.subr.bf16.mxu1 %v7278_v58 }
 0x9f4   :  { %7377 = vmatpush1.bf16.msra.mxu1 %v7280_v54 }
 0x9f5   :  { %7379 = vmatprep.subr.bf16.mxu1 %v7282_v16 }
 0x9f8   :  { %7381 = vmatpush1.bf16.msra.mxu1 %v7284_v30 }
 0x9f9   :  { %7383 = vmatprep.subr.bf16.mxu1 %v10649_v10 }
 0x9fc   :  { %7385 = vmatpush1.bf16.msra.mxu1 %v10660_v31 }
 0xa06   :  { %v10628_v37 = vpop.xlane.xlu0 %3149 }
 0xa07   :  { %v3151_v59 = vsub.f32 %v10501_v44, %v10628_v37  ;;  %vm3174_vm1 = vcmp.eq.f32.partialorder %v10501_v44, %v10628_v37  ;;  %v4067_v44 = vld [vmem:[%s11925_s4 + $0x1f8] sm:$0xff]  ;;  %v3165_v40 = vpop.xlane.xlu1 %3164 }
 0xa08   :  { %v3175_v9 = vsel %vm3174_vm1, %v10493_v17, 128  ;;  %v10662_v41 = vpack.c.bf16 %v4067_v44, %v4063_v14 }
 0xa09   :  { %v3152_v33 = vmul.f32 1.442695, %v3151_v59  ;;  %v3177_v38 = vshra.s32 %v3175_v9, 16  ;;  %v3176_v22 = vand.u32 65535, %v3175_v9 }
 0xa0a   :  { %7387 = vmatprep.subr.bf16.mxu1 %v10662_v41 }
 0xa0b   :  { %8098 = vpow2.f32 %v3152_v33  ;;  %v3179_v36 = vcvt.s32.f32 %v3177_v38  ;;  %7389 = vmatpush1.bf16.msra.mxu1 %v10678_v11  ;;  %v3178_v39 = vcvt.s32.f32 %v3176_v22  ;;  %v3169_v33 = vld [vmem:[%s11929_s11] sm:$0xff] }
 0xa0c   :  { %v4012_v22 = vld [vmem:[%s11925_s4 + $0x40] sm:$0xff] }
 0xa0d   :  { %3180 = vmin.xlane.f32.xlu1 %v3179_v36 }
 0xa15   :  { %v8099_v29 = vpop.eup %8098 }
 0xa16   :  { %3154 = vadd.xlane.f32.xlu1 %v8099_v29 }
 0xa96   :  { %v6185_v61 = vpop.f32.mrb[32].mxu1  ;;  %v3731_v26 = vpop.f32.mrb[4].mxu0 }
 0xa97   :  { %v6186_v28 = vpop.f32.mrb[33].mxu1  ;;  %v3733_v27 = vpop.f32.mrb[5].mxu0  ;;  %v7810_v1 = vadd.f32 %v3731_v26, %v10390_v34  ;;  %v4008_v26 = vld [vmem:[%s11925_s4 + $0x20] sm:$0xff] }
 0xa98   :  { %v6187_v6 = vadd.f32 %v6186_v28, %v6185_v61  ;;  %v7811_v19 = vadd.f32 %v3733_v27, %v10395_v12  ;;  %v4004_v61 = vld [vmem:[%s11925_s4] sm:$0xff]  ;;  %v4013_v27 = vld [vmem:[%s11925_s4 + $0x48] sm:$0xff] }
 0xa99   :  { %v6058_v23 = vmul.f32 -1.442695, %v7810_v1  ;;  %v4016_v1 = vld [vmem:[%s11925_s4 + $0x60] sm:$0xff] }
 0xa9a   :  { %v10689_v47 = vadd.f32 %v6187_v6, %v10498_v62  ;;  %v6059_v13 = vmul.f32 -1.442695, %v7811_v19  ;;  %v10692_v0 = vpop.xlane.xlu1 %3180  ;;  %v4017_v6 = vld [vmem:[%s11925_s4 + $0x68] sm:$0xff] }
 0xa9b   :  { %vm3182_vm5 = vcmp.eq.f32.partialorder %v3179_v36, %v10692_v0 }
 0xa9c   :  { %8100 = vpow2.f32 %v6059_v13  ;;  %3551 = vmax.xlane.f32.xlu1 %v10689_v47  ;;  %v3565_v2 = vsel %vm3564_vm3, %v10689_v47, 0.0  ;;  %v3183_v46 = vsel %vm3182_vm5, %v3178_v39, inf  ;;  %v10730_v13 = vpack.c.bf16 %v4017_v6, %v4013_v27  ;;  %v4021_v39 = vld [vmem:[%s11925_s4 + $0x88] sm:$0xff] }
 0xaa0   :  { %3566 = vadd.xlane.f32.xlu1 %v3565_v2 }
 0xaa3   :  { %v3155_v58 = vpop.xlane.xlu1 %3154 }
 0xaa4   :  { %3184 = vmin.xlane.f32.xlu1 %v3183_v46  ;;  %8102 = vlog2.f32 %v3155_v58  ;;  %v4020_v58 = vld [vmem:[%s11925_s4 + $0x80] sm:$0xff] }
 0xaa5   :  { %8104 = vpow2.f32 %v6058_v23  ;;  %v4025_v23 = vld [vmem:[%s11925_s4 + $0xa8] sm:$0xff] }
 0xaa6   :  { %v8101_v21 = vpop.eup %8100  ;;  %v7334_v46 = vpack.c.bf16 %v4025_v23, %v4021_v39 }
 0xaa7   :  { %v3820_v43 = vadd.f32 1.0, %v8101_v21  ;;  %v4029_v21 = vld [vmem:[%s11925_s4 + $0xc8] sm:$0xff] }
 0xaa9   :  { %8106 = vrcp.f32 %v3820_v43  ;;  %v7336_v43 = vpack.c.bf16 %v4024_v53, %v4020_v58  ;;  %v4262_v58 = vld [vmem:[%s11926_s9 + $0x80] sm:$0xff]  ;;  %v4263_v53 = vld [vmem:[%s11926_s9 + $0x88] sm:$0xff] }
 0xaae   :  { %v8103_v52 = vpop.eup %8102 }
 0xaaf   :  { %v3157_v54 = vmul.f32 0.6931472, %v8103_v52  ;;  %v8105_v16 = vpop.eup %8104 }
 0xab0   :  { %v3814_v59 = vadd.f32 1.0, %v8105_v16  ;;  %v4037_v16 = vld [vmem:[%s11925_s4 + $0x108] sm:$0xff] }
 0xab1   :  { %v3158_v5 = vadd.f32 %v3157_v54, %v10628_v37  ;;  %v4032_v54 = vld [vmem:[%s11925_s4 + $0xe0] sm:$0xff] }
 0xab2   :  { %8108 = vrcp.f32 %v3814_v59  ;;  %v4040_v59 = vld [vmem:[%s11925_s4 + $0x120] sm:$0xff] }
 0xab3   :  { %v8107_v30 = vpop.eup %8106  ;;  %v3170_v3 = vsub.f32 %v3158_v5, %v3165_v40  ;;  %v7328_v40 = vpack.c.bf16 %v4008_v26, %v4004_v61  ;;  %v4041_v5 = vld [vmem:[%s11925_s4 + $0x128] sm:$0xff]  ;;  %v4060_v26 = vld [vmem:[%s11925_s4 + $0x1c0] sm:$0xff] }
 0xab4   :  { %v3830_v9 = vmul.f32 %v8107_v30, %v10515_v56  ;;  %v7342_v30 = vpack.c.bf16 %v4041_v5, %v4037_v16  ;;  %v4248_v5 = vld [vmem:[%s11926_s9 + $0x10] sm:$0xff] }
 0xab5   :  { %v3171_v38 = vmul.f32 %v6049_v42, %v3170_v3  ;;  %v7340_v42 = vpack.c.bf16 %v4032_v54, %v4028_v4  ;;  %v4036_v3 = vld [vmem:[%s11925_s4 + $0x100] sm:$0xff]  ;;  %v4264_v4 = vld [vmem:[%s11926_s9 + $0x90] sm:$0xff]  ;;  %v4265_v54 = vld [vmem:[%s11926_s9 + $0x98] sm:$0xff] }
 0xab6   :  { %v3802_v36 = vpop.f32.mrb[4].mxu1  ;;  %v10872_v16 = vpack.c.bf16 %v4265_v54, %v4264_v4  ;;  %v4414_v4 = vld [vmem:[%s11925_s4 + $0x38] sm:$0xff] }
 0xab7   :  { %v3172_v29 = vadd.f32 %v3171_v38, %v3169_v33  ;;  %v7826_v57 = vadd.f32 %v3802_v36, %v10406_v51  ;;  %v3804_v35 = vpop.f32.mrb[5].mxu1  ;;  %v4049_v33 = vld [vmem:[%s11925_s4 + $0x168] sm:$0xff]  ;;  %v7344_v38 = vpack.c.bf16 %v4040_v59, %v4036_v3  ;;  %v4266_v3 = vld [vmem:[%s11926_s9 + $0xa0] sm:$0xff] }
 0xab8   :  { %v7827_v37 = vadd.f32 %v3804_v35, %v10401_v24  ;;  %v4053_v35 = vld [vmem:[%s11925_s4 + $0x188] sm:$0xff] }
 0xab9   :  { %3173 = vst.msk [vmem:[%s11929_s11] sm:$0xff] %vm740_vm2, %v3172_v29  ;;  %8110 = vtanh.f32 %v7826_v57  ;;  %v4044_v29 = vld [vmem:[%s11925_s4 + $0x140] sm:$0xff]  ;;  %v4267_v59 = vld [vmem:[%s11926_s9 + $0xa8] sm:$0xff] }
 0xaba   :  { %v6060_v63 = vmul.f32 -1.442695, %v7827_v37  ;;  %v4048_v57 = vld [vmem:[%s11925_s4 + $0x160] sm:$0xff]  ;;  %v4057_v37 = vld [vmem:[%s11925_s4 + $0x1a8] sm:$0xff] }
 0xabc   :  { %8112 = vpow2.f32 %v6060_v63  ;;  %v8109_v15 = vpop.eup %8108  ;;  %v7348_v63 = vpack.c.bf16 %v4048_v57, %v4044_v29  ;;  %v4268_v29 = vld [vmem:[%s11926_s9 + $0xb0] sm:$0xff]  ;;  %v4269_v57 = vld [vmem:[%s11926_s9 + $0xb8] sm:$0xff] }
 0xac3   :  { %v8111_v14 = vpop.eup %8110 }
 0xac4   :  { %v3831_v44 = vmul.f32 %v8111_v14, %v8109_v15  ;;  %v7350_v15 = vpack.c.bf16 %v4057_v37, %v4053_v35  ;;  %v4052_v14 = vld [vmem:[%s11925_s4 + $0x180] sm:$0xff]  ;;  %v10908_v35 = vpack.c.bf16 %v4269_v57, %v4268_v29  ;;  %v4252_v37 = vld [vmem:[%s11926_s9 + $0x30] sm:$0xff] }
 0xac6   :  { %v8113_v49 = vpop.eup %8112  ;;  %v3832_v8 = vadd.f32 %v3831_v44, %v3830_v9  ;;  %v4045_v9 = vld [vmem:[%s11925_s4 + $0x148] sm:$0xff]  ;;  %v4056_v44 = vld [vmem:[%s11925_s4 + $0x1a0] sm:$0xff] }
 0xac7   :  { %v3827_v55 = vadd.f32 1.0, %v8113_v49  ;;  %v7346_v36 = vpack.c.bf16 %v4049_v33, %v4045_v9  ;;  %v4061_v49 = vld [vmem:[%s11925_s4 + $0x1c8] sm:$0xff]  ;;  %v10890_v9 = vpack.c.bf16 %v4267_v59, %v4266_v3  ;;  %v4250_v33 = vld [vmem:[%s11926_s9 + $0x20] sm:$0xff] }
 0xac8   :  { %8114 = vtanh.f32 %v3832_v8  ;;  %v10716_v50 = vsel %vm2269_vm13, %v3832_v8, %v10515_v56  ;;  %v4065_v8 = vld [vmem:[%s11925_s4 + $0x1e8] sm:$0xff] }
 0xac9   :  { %8116 = vrcp.f32 %v3827_v55  ;;  %v7352_v55 = vpack.c.bf16 %v4056_v44, %v4052_v14  ;;  %v7354_v61 = vpack.c.bf16 %v4065_v8, %v4061_v49  ;;  %v4270_v14 = vld [vmem:[%s11926_s9 + $0xc0] sm:$0xff]  ;;  %v4271_v44 = vld [vmem:[%s11926_s9 + $0xc8] sm:$0xff] }
 0xaca   :  { %v10926_v49 = vpack.c.bf16 %v4271_v44, %v4270_v14  ;;  %v4254_v8 = vld [vmem:[%s11926_s9 + $0x40] sm:$0xff] }
 0xad2   :  { %v8115_v28 = vpop.eup %8114 }
 0xad3   :  { %v8117_v56 = vpop.eup %8116 }
 0xad4   :  { %v3834_v19 = vmul.f32 %v8117_v56, %v8115_v28  ;;  %v4064_v28 = vld [vmem:[%s11925_s4 + $0x1e0] sm:$0xff] }
 0xad5   :  { %v7356_v27 = vpack.c.bf16 %v4064_v28, %v4060_v26  ;;  %v4272_v26 = vld [vmem:[%s11926_s9 + $0xd0] sm:$0xff]  ;;  %v4273_v28 = vld [vmem:[%s11926_s9 + $0xd8] sm:$0xff] }
 0xad6   :  { %v10741_v2 = vsel %vm2269_vm13, %v3834_v19, %v10542_v32  ;;  %v7332_v32 = vpack.c.bf16 %v4016_v1, %v4012_v22  ;;  %v3187_v22 = vcvt.f32.s32 %v10692_v0  ;;  %v6087_v0 = vld [vmem:[%s11923_s2 + $0x28] sm:$0xff] }
 0xad7   :  { %6062 = vmatmul.mubr.msk.f32.vlgmr.msra.gmra.mrb[34].mxu0 %vm2269_vm13, %v10741_v2  ;;  %4204 = vmatmul.mubr.f32.vlgmr.msra.gmra.mrb[6].mxu1 %v10741_v2 }
 0xad8   :  { %7329 = vmatpush1.bf16.msra.mxu0 %v7328_v40  ;;  %6113 = vmatprep.mubr.msk.f32.mxu1 %vm2013_vm12, %v9668_v25  ;;  %v4033_v25 = vld [vmem:[%s11925_s4 + $0xe8] sm:$0xff]  ;;  %v3188_v23 = vshll.u32 %v3187_v22, 16  ;;  %v4274_v22 = vld [vmem:[%s11926_s9 + $0xe0] sm:$0xff] }
 0xad9   :  { %7331 = vmatprep.subr.bf16.mxu0 %v10730_v13  ;;  %4132 = vmatprep.mubr.f32.mxu0 %v11963_v45  ;;  %v7338_v52 = vpack.c.bf16 %v4033_v25, %v4029_v21  ;;  %v7390_v21 = vpack.c.bf16 %v4263_v53, %v4262_v58  ;;  %v4246_v25 = vld [vmem:[%s11926_s9] sm:$0xff] }
 0xadb   :  { %7391 = vmatprep.subr.bf16.mxu1 %v7390_v21 }
 0xadc   :  { %7333 = vmatpush1.bf16.msra.mxu0 %v7332_v32 }
 0xadd   :  { %7335 = vmatprep.subr.bf16.mxu0 %v7334_v46 }
 0xae0   :  { %7337 = vmatpush1.bf16.msra.mxu0 %v7336_v43 }
 0xae1   :  { %7339 = vmatprep.subr.bf16.mxu0 %v7338_v52 }
 0xae4   :  { %7341 = vmatpush1.bf16.msra.mxu0 %v7340_v42 }
 0xae5   :  { %7343 = vmatprep.subr.bf16.mxu0 %v7342_v30 }
 0xae8   :  { %7345 = vmatpush1.bf16.msra.mxu0 %v7344_v38 }
 0xae9   :  { %7347 = vmatprep.subr.bf16.mxu0 %v7346_v36 }
 0xaec   :  { %7349 = vmatpush1.bf16.msra.mxu0 %v7348_v63 }
 0xaed   :  { %7351 = vmatprep.subr.bf16.mxu0 %v7350_v15 }
 0xaf0   :  { %7353 = vmatpush1.bf16.msra.mxu0 %v7352_v55 }
 0xaf1   :  { %7355 = vmatprep.subr.bf16.mxu0 %v7354_v61 }
 0xaf4   :  { %7357 = vmatpush1.bf16.msra.mxu0 %v7356_v27 }
 0xaf5   :  { %7423 = vmatprep.subr.bf16.mxu0 %v10680_v20 }
 0xaf7   :  { %4133 = vmatmul.mubr.f32.vlgmr.msra.gmra.mrb[6].mxu0 %v10741_v2 }
 0xaf8   :  { %7425 = vmatpush1.bf16.msra.mxu0 %v7328_v40  ;;  %4535 = vmatprep.mubr.f32.mxu0 %v11963_v45 }
 0xaf9   :  { %7427 = vmatprep.subr.bf16.mxu0 %v10730_v13 }
 0xafc   :  { %7429 = vmatpush1.bf16.msra.mxu0 %v7332_v32 }
 0xafd   :  { %7431 = vmatprep.subr.bf16.mxu0 %v7334_v46 }
 0xb00   :  { %7433 = vmatpush1.bf16.msra.mxu0 %v7336_v43  ;;  %v4247_v43 = vld [vmem:[%s11926_s9 + $0x8] sm:$0xff] }
 0xb01   :  { %7435 = vmatprep.subr.bf16.mxu0 %v7338_v52  ;;  %v10863_v52 = vpack.c.bf16 %v4247_v43, %v4246_v25  ;;  %v4261_v25 = vld [vmem:[%s11926_s9 + $0x78] sm:$0xff] }
 0xb02   :  { %v4410_v43 = vld [vmem:[%s11925_s4 + $0x18] sm:$0xff] }
 0xb03   :  { %7393 = vmatpush3.bf16.msra.mxu1 %v10863_v52 }
 0xb04   :  { %7437 = vmatpush1.bf16.msra.mxu0 %v7340_v42  ;;  %v4249_v42 = vld [vmem:[%s11926_s9 + $0x18] sm:$0xff]  ;;  %7395 = vmatprep.subr.bf16.mxu1 %v10872_v16 }
 0xb05   :  { %7439 = vmatprep.subr.bf16.mxu0 %v7342_v30  ;;  %v10880_v30 = vpack.c.bf16 %v4249_v42, %v4248_v5  ;;  %v10997_v5 = vpack.c.bf16 %v4414_v4, %v4410_v43 }
 0xb07   :  { %7397 = vmatpush3.bf16.msra.mxu1 %v10880_v30 }
 0xb08   :  { %7441 = vmatpush1.bf16.msra.mxu0 %v7344_v38  ;;  %v4251_v38 = vld [vmem:[%s11926_s9 + $0x28] sm:$0xff]  ;;  %7399 = vmatprep.subr.bf16.mxu1 %v10890_v9 }
 0xb09   :  { %7443 = vmatprep.subr.bf16.mxu0 %v7346_v36  ;;  %v10898_v36 = vpack.c.bf16 %v4251_v38, %v4250_v33 }
 0xb0b   :  { %7401 = vmatpush3.bf16.msra.mxu1 %v10898_v36 }
 0xb0c   :  { %7445 = vmatpush1.bf16.msra.mxu0 %v7348_v63  ;;  %v4253_v63 = vld [vmem:[%s11926_s9 + $0x38] sm:$0xff]  ;;  %7403 = vmatprep.subr.bf16.mxu1 %v10908_v35 }
 0xb0d   :  { %7447 = vmatprep.subr.bf16.mxu0 %v7350_v15  ;;  %v10916_v15 = vpack.c.bf16 %v4253_v63, %v4252_v37  ;;  %v6079_v37 = vld [vmem:[%s11923_s2 + $0x20] sm:$0xff] }
 0xb0f   :  { %7405 = vmatpush3.bf16.msra.mxu1 %v10916_v15 }
 0xb10   :  { %7449 = vmatpush1.bf16.msra.mxu0 %v7352_v55  ;;  %v4255_v55 = vld [vmem:[%s11926_s9 + $0x48] sm:$0xff]  ;;  %7407 = vmatprep.subr.bf16.mxu1 %v10926_v49 }
 0xb11   :  { %7451 = vmatprep.subr.bf16.mxu0 %v7354_v61  ;;  %v10934_v61 = vpack.c.bf16 %v4255_v55, %v4254_v8 }
 0xb13   :  { %7409 = vmatpush3.bf16.msra.mxu1 %v10934_v61 }
 0xb14   :  { %7453 = vmatpush1.bf16.msra.mxu0 %v7356_v27  ;;  %v10944_v27 = vpack.c.bf16 %v4273_v28, %v4272_v26  ;;  %v8227_v28 = vld [vmem:[%s11923_s2 + $0x8] sm:$0xff] }
 0xb15   :  { %7487 = vmatprep.subr.bf16.mxu0 %v7390_v21  ;;  %v4260_v21 = vld [vmem:[%s11926_s9 + $0x70] sm:$0xff]  ;;  %vm3568_vm13 = vcmp.ne.s32.totalorder %v8227_v28, 0  ;;  %v4422_v28 = vld [vmem:[%s11925_s4 + $0x78] sm:$0xff] }
 0xb16   :  { %7411 = vmatprep.subr.bf16.mxu1 %v10944_v27  ;;  %v10994_v54 = vpack.c.bf16 %v4261_v25, %v4260_v21  ;;  %v3571_v25 = vld [vmem:[%s11929_s11] sm:$0xff] }
 0xb29   :  { %v10828_v20 = vpop.xlane.xlu1 %3551 }
 0xb2a   :  { %v3553_v6 = vsub.f32 %v10689_v47, %v10828_v20  ;;  %vm3576_vm7 = vcmp.eq.f32.partialorder %v10689_v47, %v10828_v20 }
 0xb2b   :  { %v10835_v56 = vsel %vm3576_vm7, %v10493_v17, 128 }
 0xb2c   :  { %v3554_v19 = vmul.f32 1.442695, %v3553_v6  ;;  %v3579_v40 = vshra.s32 %v10835_v56, 16  ;;  %v4256_v6 = vld [vmem:[%s11926_s9 + $0x50] sm:$0xff] }
 0xb2d   :  { %v10838_v13 = vpop.xlane.xlu1 %3566 }
 0xb2e   :  { %8118 = vpow2.f32 %v3554_v19  ;;  %v10841_v1 = vcvt.s32.f32 %v3579_v40  ;;  %v4257_v19 = vld [vmem:[%s11926_s9 + $0x58] sm:$0xff] }
 0xb2f   :  { %v10952_v40 = vpack.c.bf16 %v4257_v19, %v4256_v6 }
 0xb30   :  { %3582 = vmin.xlane.f32.xlu0 %v10841_v1 }
 0xb31   :  { %v3185_v39 = vpop.xlane.xlu1 %3184  ;;  %7413 = vmatpush3.bf16.msra.mxu1 %v10952_v40 }
 0xb32   :  { %v3186_v32 = vcvt.f32.s32 %v3185_v39  ;;  %v4275_v39 = vld [vmem:[%s11926_s9 + $0xe8] sm:$0xff] }
 0xb34   :  { %v3189_v46 = vadd.s32 %v3188_v23, %v3186_v32  ;;  %v4258_v23 = vld [vmem:[%s11926_s9 + $0x60] sm:$0xff]  ;;  %v10964_v32 = vpack.c.bf16 %v4275_v39, %v4274_v22  ;;  %v6056_v39 = vsel %vm3568_vm13, 1.0, %v11963_v45 }
 0xb36   :  { %3190 = vst.msk [vmem:[%s11930_s12] sm:$0xff] %vm740_vm2, %v3189_v46  ;;  %v4259_v46 = vld [vmem:[%s11926_s9 + $0x68] sm:$0xff]  ;;  %7415 = vmatprep.subr.bf16.mxu1 %v10964_v32 }
 0xb37   :  { %v10976_v58 = vpack.c.bf16 %v4259_v46, %v4258_v23 }
 0xb38   :  { %v8119_v47 = vpop.eup %8118 }
 0xb39   :  { %3556 = vadd.xlane.f32.xlu1 %v8119_v47  ;;  %v4276_v47 = vld [vmem:[%s11926_s9 + $0xf0] sm:$0xff]  ;;  %7417 = vmatpush3.bf16.msra.mxu1 %v10976_v58 }
 0xb46   :  { %5174 = vperm.xlu0 %7936, %v6087_v0   ;;  %v4277_v0 = vld [vmem:[%s11926_s9 + $0xf8] sm:$0xff] }
 0xb47   :  { %v10979_v53 = vpack.c.bf16 %v4277_v0, %v4276_v47 }
 0xb49   :  { %7419 = vmatprep.subr.bf16.mxu1 %v10979_v53 }
 0xb4a   :  { %7421 = vmatpush3.bf16.msra.mxu1 %v10994_v54 }
 0xb4b   :  { %7455 = vmatprep.subr.bf16.mxu1 %v10997_v5 }
 0xbaa   :  { %v6220_v42 = vpop.f32.mrb[34].mxu0  ;;  %v4205_v3 = vpop.f32.mrb[6].mxu1 }
 0xbab   :  { %v6221_v59 = vpop.f32.mrb[35].mxu0  ;;  %v4207_v33 = vpop.f32.mrb[7].mxu1  ;;  %v7828_v47 = vadd.f32 %v4205_v3, %v10406_v51 }
 0xbac   :  { %v6222_v38 = vadd.f32 %v6221_v59, %v6220_v42  ;;  %v7829_v6 = vadd.f32 %v4207_v33, %v10401_v24 }
 0xbae   :  { %v11002_v29 = vadd.f32 %v6222_v38, %v10498_v62  ;;  %v6068_v23 = vmul.f32 -1.442695, %v7829_v6 }
 0xbb0   :  { %3954 = vmax.xlane.f32.xlu1 %v11002_v29  ;;  %v3968_v57 = vsel %vm3967_vm8, %v11002_v29, 0.0 }
 0xbb1   :  { %3969 = vadd.xlane.f32.xlu0 %v3968_v57 }
 0xbc1   :  { %4771 = vperm.xlu1 %7937, %v6079_v37  }
 0xbc6   :  { %v3557_v63 = vpop.xlane.xlu1 %3556 }
 0xbc7   :  { %8120 = vlog2.f32 %v3557_v63 }
 0xbca   :  { %v4134_v14 = vpop.f32.mrb[6].mxu0 }
 0xbcb   :  { %v7812_v44 = vadd.f32 %v4134_v14, %v10390_v34  ;;  %v4136_v62 = vpop.f32.mrb[7].mxu0 }
 0xbcc   :  { %v7813_v8 = vadd.f32 %v4136_v62, %v10395_v12 }
 0xbcd   :  { %v6066_v55 = vmul.f32 -1.442695, %v7812_v44 }
 0xbce   :  { %v6067_v48 = vmul.f32 -1.442695, %v7813_v8 }
 0xbcf   :  { %8122 = vpow2.f32 %v6066_v55  ;;  %v4413_v55 = vld [vmem:[%s11925_s4 + $0x30] sm:$0xff] }
 0xbd0   :  { %8124 = vpow2.f32 %v6067_v48 }
 0xbd1   :  { %v8121_v26 = vpop.eup %8120  ;;  %8126 = vpow2.f32 %v6068_v23  ;;  %v4421_v23 = vld [vmem:[%s11925_s4 + $0x70] sm:$0xff] }
 0xbd2   :  { %v3559_v19 = vmul.f32 0.6931472, %v8121_v26  ;;  %8128 = vtanh.f32 %v7828_v47  ;;  %v4418_v26 = vld [vmem:[%s11925_s4 + $0x58] sm:$0xff] }
 0xbd3   :  { %v4426_v47 = vld [vmem:[%s11925_s4 + $0x98] sm:$0xff] }
 0xbd4   :  { %v3560_v22 = vadd.f32 %v3559_v19, %v10828_v20  ;;  %v11028_v20 = vpop.xlane.xlu0 %3582 }
 0xbd5   :  { %vm3584_vm14 = vcmp.eq.f32.partialorder %v10841_v1, %v11028_v20  ;;  %v4409_v1 = vld [vmem:[%s11925_s4 + $0x10] sm:$0xff] }
 0xbd6   :  { %v3572_v46 = vsub.f32 %v3560_v22, %v10838_v13  ;;  %v3578_v13 = vand.u32 65535, %v10835_v56  ;;  %v11051_v19 = vpack.c.bf16 %v4413_v55, %v4409_v1  ;;  %v11053_v22 = vpack.c.bf16 %v4422_v28, %v4418_v26  ;;  %v4869_v1 = vld [vmem:[%s11925_s4 + $0x1d8] sm:$0xff]  ;;  %v4868_v28 = vld [vmem:[%s11925_s4 + $0x1d0] sm:$0xff] }
 0xbd7   :  { %v4873_v55 = vld [vmem:[%s11925_s4 + $0x1f8] sm:$0xff] }
 0xbd8   :  { %v3573_v0 = vmul.f32 %v6056_v39, %v3572_v46  ;;  %v3580_v3 = vcvt.s32.f32 %v3578_v13  ;;  %v4417_v39 = vld [vmem:[%s11925_s4 + $0x50] sm:$0xff]  ;;  %v11184_v26 = vpack.c.bf16 %v4873_v55, %v4869_v1 }
 0xbd9   :  { %v8123_v21 = vpop.eup %8122  ;;  %v4433_v13 = vld [vmem:[%s11925_s4 + $0xd0] sm:$0xff] }
 0xbda   :  { %v8125_v43 = vpop.eup %8124  ;;  %v3574_v4 = vadd.f32 %v3573_v0, %v3571_v25  ;;  %v4217_v42 = vadd.f32 1.0, %v8123_v21  ;;  %v3585_v38 = vsel %vm3584_vm14, %v3580_v3, inf  ;;  %v4430_v0 = vld [vmem:[%s11925_s4 + $0xb8] sm:$0xff]  ;;  %v4437_v3 = vld [vmem:[%s11925_s4 + $0xf0] sm:$0xff]  ;;  %v4830_v21 = vld [vmem:[%s11925_s4 + $0xa0] sm:$0xff] }
 0xbdb   :  { %v4223_v59 = vadd.f32 1.0, %v8125_v43  ;;  %v8127_v33 = vpop.eup %8126  ;;  %v7462_v25 = vpack.c.bf16 %v4430_v0, %v4426_v47  ;;  %v4425_v43 = vld [vmem:[%s11925_s4 + $0x90] sm:$0xff]  ;;  %v11210_v0 = vld [vmem:[%s11928_s10] ss:$0 sm:$0xff] }
 0xbdc   :  { %3575 = vst.msk [vmem:[%s11929_s11] sm:$0xff] %vm740_vm2, %v3574_v4  ;;  %8130 = vrcp.f32 %v4217_v42  ;;  %v8129_v57 = vpop.eup %8128  ;;  %v4230_v14 = vadd.f32 1.0, %v8127_v33  ;;  %v4434_v4 = vld [vmem:[%s11925_s4 + $0xd8] sm:$0xff]  ;;  %v7464_v42 = vpack.c.bf16 %v4429_v7, %v4425_v43 }
 0xbdd   :  { %8132 = vrcp.f32 %v4223_v59  ;;  %v4442_v33 = vld [vmem:[%s11925_s4 + $0x118] sm:$0xff] }
 0xbde   :  { %8134 = vrcp.f32 %v4230_v14 }
 0xbe5   :  { %3586 = vmin.xlane.f32.xlu1 %v3585_v38 }
 0xbe6   :  { %v8131_v37 = vpop.eup %8130 }
 0xbe7   :  { %v8133_v63 = vpop.eup %8132  ;;  %v4234_v44 = vmul.f32 %v8131_v37, %v8129_v57  ;;  %v4441_v57 = vld [vmem:[%s11925_s4 + $0x110] sm:$0xff] }
 0xbe8   :  { %v4233_v62 = vmul.f32 %v8133_v63, %v10716_v50  ;;  %v8135_v48 = vpop.eup %8134  ;;  %v4445_v37 = vld [vmem:[%s11925_s4 + $0x130] sm:$0xff]  ;;  %v4450_v63 = vld [vmem:[%s11925_s4 + $0x158] sm:$0xff] }
 0xbea   :  { %v4235_v8 = vadd.f32 %v4234_v44, %v4233_v62  ;;  %v4449_v44 = vld [vmem:[%s11925_s4 + $0x150] sm:$0xff] }
 0xbeb   :  { %v4453_v62 = vld [vmem:[%s11925_s4 + $0x170] sm:$0xff] }
 0xbec   :  { %8136 = vtanh.f32 %v4235_v8  ;;  %v11037_v56 = vsel %vm2013_vm12, %v4235_v8, %v10716_v50  ;;  %v4864_v8 = vld [vmem:[%s11925_s4 + $0x1b0] sm:$0xff] }
 0xbf6   :  { %v8137_v6 = vpop.eup %8136 }
 0xbf7   :  { %v4237_v50 = vmul.f32 %v8137_v6, %v8135_v48  ;;  %v4872_v6 = vld [vmem:[%s11925_s4 + $0x1f0] sm:$0xff] }
 0xbf9   :  { %v11064_v46 = vsel %vm2013_vm12, %v4237_v50, %v10741_v2  ;;  %v7460_v2 = vpack.c.bf16 %v4421_v23, %v4417_v39  ;;  %v4811_v50 = vld [vmem:[%s11925_s4 + $0x8] sm:$0xff] }
 0xbfa   :  { %6070 = vmatmul.mubr.msk.f32.vlgmr.msra.gmra.mrb[34].mxu1 %vm2013_vm12, %v11064_v46  ;;  %4536 = vmatmul.mubr.f32.vlgmr.msra.gmra.mrb[8].mxu0 %v11064_v46 }
 0xbfb   :  { %7457 = vmatpush1.bf16.msra.mxu1 %v11051_v19  ;;  %6114 = vmatprep.mubr.msk.f32.mxu0 %vm1757_vm11, %v9614_v60  ;;  %v4438_v60 = vld [vmem:[%s11925_s4 + $0xf8] sm:$0xff] }
 0xbfc   :  { %7459 = vmatprep.subr.bf16.mxu1 %v11053_v22  ;;  %4606 = vmatprep.mubr.f32.mxu1 %v11963_v45  ;;  %v7466_v59 = vpack.c.bf16 %v4438_v60, %v4434_v4 }
 0xbfd   :  { %7489 = vmatpush3.bf16.msra.mxu0 %v10863_v52  ;;  %v4446_v52 = vld [vmem:[%s11925_s4 + $0x138] sm:$0xff] }
 0xbfe   :  { %7491 = vmatprep.subr.bf16.mxu0 %v10872_v16  ;;  %v7468_v16 = vpack.c.bf16 %v4437_v3, %v4433_v13  ;;  %v7470_v38 = vpack.c.bf16 %v4446_v52, %v4442_v33 }
 0xbff   :  { %7461 = vmatpush1.bf16.msra.mxu1 %v7460_v2 }
 0xc00   :  { %7463 = vmatprep.subr.bf16.mxu1 %v7462_v25 }
 0xc01   :  { %7493 = vmatpush3.bf16.msra.mxu0 %v10880_v30  ;;  %v4454_v30 = vld [vmem:[%s11925_s4 + $0x178] sm:$0xff] }
 0xc02   :  { %7495 = vmatprep.subr.bf16.mxu0 %v10890_v9  ;;  %v7472_v9 = vpack.c.bf16 %v4445_v37, %v4441_v57  ;;  %v7474_v14 = vpack.c.bf16 %v4454_v30, %v4450_v63  ;;  %v11224_v63 = vpop.permute.xlu0 %5174  ;;  %v8228_v30 = vld [vmem:[%s11923_s2 + $0x10] sm:$0xff] }
 0xc03   :  { %7465 = vmatpush1.bf16.msra.mxu1 %v7464_v42  ;;  %11968 = vst [vmem:[#allocation17_spill] sm:$0xff] %v11224_v63  ;;  %vm3971_vm1 = vcmp.ne.s32.totalorder %v8228_v30, 0 }
 0xc04   :  { %7467 = vmatprep.subr.bf16.mxu1 %v7466_v59 }
 0xc05   :  { %7497 = vmatpush3.bf16.msra.mxu0 %v10898_v36  ;;  %v7476_v36 = vpack.c.bf16 %v4453_v62, %v4449_v44  ;;  %v6064_v62 = vsel %vm3971_vm1, 1.0, %v11963_v45 }
 0xc06   :  { %7499 = vmatprep.subr.bf16.mxu0 %v10908_v35 }
 0xc07   :  { %7469 = vmatpush1.bf16.msra.mxu1 %v7468_v16 }
 0xc08   :  { %7471 = vmatprep.subr.bf16.mxu1 %v7470_v38 }
 0xc09   :  { %7501 = vmatpush3.bf16.msra.mxu0 %v10916_v15 }
 0xc0a   :  { %7503 = vmatprep.subr.bf16.mxu0 %v10926_v49 }
 0xc0b   :  { %7473 = vmatpush1.bf16.msra.mxu1 %v7472_v9 }
 0xc0c   :  { %7475 = vmatprep.subr.bf16.mxu1 %v7474_v14 }
 0xc0d   :  { %7505 = vmatpush3.bf16.msra.mxu0 %v10934_v61 }
 0xc0e   :  { %7507 = vmatprep.subr.bf16.mxu0 %v10944_v27  ;;  %v3589_v27 = vcvt.f32.s32 %v11028_v20 }
 0xc0f   :  { %7477 = vmatpush1.bf16.msra.mxu1 %v7476_v36 }
 0xc10   :  { %7479 = vmatprep.subr.bf16.mxu1 %v10649_v10 }
 0xc11   :  { %7509 = vmatpush3.bf16.msra.mxu0 %v10952_v40 }
 0xc12   :  { %7511 = vmatprep.subr.bf16.mxu0 %v10964_v32  ;;  %v3590_v32 = vshll.u32 %v3589_v27, 16 }
 0xc13   :  { %7481 = vmatpush1.bf16.msra.mxu1 %v10660_v31 }
 0xc14   :  { %7483 = vmatprep.subr.bf16.mxu1 %v10662_v41 }
 0xc15   :  { %7513 = vmatpush3.bf16.msra.mxu0 %v10976_v58 }
 0xc16   :  { %7515 = vmatprep.subr.bf16.mxu0 %v10979_v53 }
 0xc17   :  { %7485 = vmatpush1.bf16.msra.mxu1 %v10678_v11 }
 0xc18   :  { %7551 = vmatprep.subr.bf16.mxu1 %v10997_v5  ;;  %v4865_v5 = vld [vmem:[%s11925_s4 + $0x1b8] sm:$0xff] }
 0xc19   :  { %7517 = vmatpush3.bf16.msra.mxu0 %v10994_v54  ;;  %v4861_v54 = vld [vmem:[%s11925_s4 + $0x198] sm:$0xff] }
 0xc1a   :  { %4607 = vmatmul.mubr.f32.vlgmr.msra.gmra.mrb[8].mxu1 %v11064_v46  ;;  %v11171_v20 = vpack.c.bf16 %v4865_v5, %v4861_v54 }
 0xc1b   :  { %7553 = vmatpush1.bf16.msra.mxu1 %v11051_v19  ;;  %5009 = vmatprep.mubr.f32.mxu1 %v11963_v45  ;;  %v4815_v19 = vld [vmem:[%s11925_s4 + $0x28] sm:$0xff] }
 0xc1c   :  { %7555 = vmatprep.subr.bf16.mxu1 %v11053_v22  ;;  %v11200_v22 = vpack.c.bf16 %v4872_v6, %v4868_v28  ;;  %v11202_v39 = vpack.c.bf16 %v4815_v19, %v4811_v50  ;;  %v4810_v6 = vld [vmem:[%s11925_s4] sm:$0xff] }
 0xc1d   :  { %v4814_v50 = vld [vmem:[%s11925_s4 + $0x20] sm:$0xff] }
 0xc1e   :  { %7519 = vmatprep.subr.bf16.mxu0 %v11202_v39 }
 0xc1f   :  { %7557 = vmatpush1.bf16.msra.mxu1 %v7460_v2 }
 0xc20   :  { %7559 = vmatprep.subr.bf16.mxu1 %v7462_v25 }
 0xc23   :  { %7561 = vmatpush1.bf16.msra.mxu1 %v7464_v42 }
 0xc24   :  { %7563 = vmatprep.subr.bf16.mxu1 %v7466_v59 }
 0xc27   :  { %7565 = vmatpush1.bf16.msra.mxu1 %v7468_v16 }
 0xc28   :  { %7567 = vmatprep.subr.bf16.mxu1 %v7470_v38 }
 0xc2b   :  { %7569 = vmatpush1.bf16.msra.mxu1 %v7472_v9 }
 0xc2c   :  { %7571 = vmatprep.subr.bf16.mxu1 %v7474_v14 }
 0xc2f   :  { %7573 = vmatpush1.bf16.msra.mxu1 %v7476_v36 }
 0xc30   :  { %7575 = vmatprep.subr.bf16.mxu1 %v11171_v20 }
 0xc3d   :  { %v11148_v10 = vpop.xlane.xlu1 %3954 }
 0xc3e   :  { %v3956_v31 = vsub.f32 %v11002_v29, %v11148_v10  ;;  %vm3979_vm12 = vcmp.eq.f32.partialorder %v11002_v29, %v11148_v10  ;;  %v4860_v29 = vld [vmem:[%s11925_s4 + $0x190] sm:$0xff]  ;;  %v3970_v36 = vpop.xlane.xlu0 %3969 }
 0xc3f   :  { %v3980_v41 = vsel %vm3979_vm12, %v10493_v17, 128  ;;  %v11182_v48 = vpack.c.bf16 %v4864_v8, %v4860_v29 }
 0xc40   :  { %v3957_v11 = vmul.f32 1.442695, %v3956_v31  ;;  %v3982_v35 = vshra.s32 %v3980_v41, 16  ;;  %v3981_v4 = vand.u32 65535, %v3980_v41 }
 0xc41   :  { %v11155_v61 = vpop.permute.xlu1 %4771  ;;  %7577 = vmatpush1.bf16.msra.mxu1 %v11182_v48 }
 0xc42   :  { %8138 = vpow2.f32 %v3957_v11  ;;  %v3984_v15 = vcvt.s32.f32 %v3982_v35  ;;  %11967 = vst [vmem:[#allocation15_spill] sm:$0xff] %v11155_v61  ;;  %7579 = vmatprep.subr.bf16.mxu1 %v11184_v26  ;;  %v3983_v3 = vcvt.s32.f32 %v3981_v4  ;;  %v4822_v4 = vld [vmem:[%s11925_s4 + $0x60] sm:$0xff] }
 0xc44   :  { %3985 = vmin.xlane.f32.xlu1 %v3984_v15 }
 0xc45   :  { %7581 = vmatpush1.bf16.msra.mxu1 %v11200_v22 }
 0xc4c   :  { %v8139_v49 = vpop.eup %8138 }
 0xc4d   :  { %3959 = vadd.xlane.f32.xlu1 %v8139_v49  ;;  %v3974_v49 = vld [vmem:[%s11929_s11] sm:$0xff] }
 0xc72   :  { %v3587_v40 = vpop.xlane.xlu1 %3586 }
 0xc73   :  { %v3588_v58 = vcvt.f32.s32 %v3587_v40 }
 0xc75   :  { %v3591_v53 = vadd.s32 %v3590_v32, %v3588_v58 }
 0xc77   :  { %6057 = vst.msk [vmem:[%s11930_s12 + $0x8] sm:$0xff] %vm740_vm2, %v3591_v53 }
 0xccd   :  { %v6255_v23 = vpop.f32.mrb[34].mxu1  ;;  %v4537_v47 = vpop.f32.mrb[8].mxu0 }
 0xcce   :  { %v6256_v2 = vpop.f32.mrb[35].mxu1  ;;  %v4539_v25 = vpop.f32.mrb[9].mxu0  ;;  %v7814_v33 = vadd.f32 %v4537_v47, %v10390_v34  ;;  %v4823_v47 = vld [vmem:[%s11925_s4 + $0x68] sm:$0xff] }
 0xccf   :  { %v6257_v43 = vadd.f32 %v6256_v2, %v6255_v23  ;;  %v7815_v7 = vadd.f32 %v4539_v25, %v10395_v12  ;;  %v4819_v23 = vld [vmem:[%s11925_s4 + $0x48] sm:$0xff]  ;;  %v11258_v25 = vpack.c.bf16 %v4814_v50, %v4810_v6  ;;  %v4866_v50 = vld [vmem:[%s11925_s4 + $0x1c0] sm:$0xff] }
 0xcd0   :  { %v6074_v16 = vmul.f32 -1.442695, %v7814_v33  ;;  %v11969_v33 = vld [vmem:[#allocation14_spill] sm:$0xff] }
 0xcd1   :  { %v11214_v60 = vadd.f32 %v6257_v43, %v11210_v0  ;;  %v6075_v42 = vmul.f32 -1.442695, %v7815_v7  ;;  %v11216_v59 = vpop.xlane.xlu1 %3985  ;;  %v11260_v43 = vpack.c.bf16 %v4823_v47, %v4819_v23  ;;  %v4818_v7 = vld [vmem:[%s11925_s4 + $0x40] sm:$0xff] }
 0xcd2   :  { %vm3987_vm0 = vcmp.eq.f32.partialorder %v3984_v15, %v11216_v59 }
 0xcd3   :  { %8140 = vpow2.f32 %v6075_v42  ;;  %4357 = vmax.xlane.f32.xlu0 %v11214_v60  ;;  %v4371_v13 = vsel %vm4370_vm15, %v11214_v60, 0.0  ;;  %v3988_v52 = vsel %vm3987_vm0, %v3983_v3, inf  ;;  %v4831_v3 = vld [vmem:[%s11925_s4 + $0xa8] sm:$0xff] }
 0xcd4   :  { %4372 = vadd.xlane.f32.xlu1 %v4371_v13  ;;  %v4827_v13 = vld [vmem:[%s11925_s4 + $0x88] sm:$0xff] }
 0xcd7   :  { %3989 = vmin.xlane.f32.xlu0 %v3988_v52  ;;  %v5235_v52 = vld [vmem:[%s11925_s4 + $0xb0] sm:$0xff] }
 0xcda   :  { %v3960_v38 = vpop.xlane.xlu1 %3959 }
 0xcdb   :  { %8142 = vlog2.f32 %v3960_v38  ;;  %v4826_v38 = vld [vmem:[%s11925_s4 + $0x80] sm:$0xff] }
 0xcdc   :  { %8144 = vpow2.f32 %v6074_v16  ;;  %v11290_v16 = vpack.c.bf16 %v4831_v3, %v4827_v13 }
 0xcdd   :  { %v8141_v57 = vpop.eup %8140 }
 0xcde   :  { %v4626_v37 = vadd.f32 1.0, %v8141_v57  ;;  %v4835_v57 = vld [vmem:[%s11925_s4 + $0xc8] sm:$0xff] }
 0xce0   :  { %8146 = vrcp.f32 %v4626_v37  ;;  %v4839_v37 = vld [vmem:[%s11925_s4 + $0xe8] sm:$0xff] }
 0xce1   :  { %v11309_v30 = vpack.c.bf16 %v4839_v37, %v4835_v57  ;;  %v5069_v37 = vld [vmem:[%s11926_s9 + $0x88] sm:$0xff] }
 0xce5   :  { %v8143_v18 = vpop.eup %8142 }
 0xce6   :  { %v3962_v9 = vmul.f32 0.6931472, %v8143_v18  ;;  %v8145_v14 = vpop.eup %8144  ;;  %v11306_v18 = vpack.c.bf16 %v4830_v21, %v4826_v38 }
 0xce7   :  { %v4620_v11 = vadd.f32 1.0, %v8145_v14  ;;  %v4838_v14 = vld [vmem:[%s11925_s4 + $0xe0] sm:$0xff] }
 0xce8   :  { %v3963_v44 = vadd.f32 %v3962_v9, %v11148_v10  ;;  %v4834_v9 = vld [vmem:[%s11925_s4 + $0xc0] sm:$0xff] }
 0xce9   :  { %8148 = vrcp.f32 %v4620_v11  ;;  %v4846_v11 = vld [vmem:[%s11925_s4 + $0x120] sm:$0xff] }
 0xcea   :  { %v8147_v31 = vpop.eup %8146  ;;  %v3975_v41 = vsub.f32 %v3963_v44, %v3970_v36  ;;  %v4843_v44 = vld [vmem:[%s11925_s4 + $0x108] sm:$0xff]  ;;  %v11324_v36 = vpack.c.bf16 %v4838_v14, %v4834_v9  ;;  %v5052_v14 = vld [vmem:[%s11926_s9] sm:$0xff] }
 0xceb   :  { %v4636_v35 = vmul.f32 %v8147_v31, %v11037_v56 }
 0xcec   :  { %v3976_v15 = vmul.f32 %v6064_v62, %v3975_v41  ;;  %v4847_v62 = vld [vmem:[%s11925_s4 + $0x128] sm:$0xff]  ;;  %v4842_v41 = vld [vmem:[%s11925_s4 + $0x100] sm:$0xff] }
 0xced   :  { %v4608_v27 = vpop.f32.mrb[8].mxu1  ;;  %v11327_v31 = vpack.c.bf16 %v4847_v62, %v4843_v44  ;;  %v5053_v44 = vld [vmem:[%s11926_s9 + $0x8] sm:$0xff] }
 0xcee   :  { %v3977_v40 = vadd.f32 %v3976_v15, %v3974_v49  ;;  %v7830_v32 = vadd.f32 %v4608_v27, %v10406_v51  ;;  %v4610_v58 = vpop.f32.mrb[9].mxu1  ;;  %v4855_v15 = vld [vmem:[%s11925_s4 + $0x168] sm:$0xff]  ;;  %v11342_v49 = vpack.c.bf16 %v4846_v11, %v4842_v41  ;;  %v11444_v62 = vpack.c.bf16 %v5053_v44, %v5052_v14  ;;  %v5070_v41 = vld [vmem:[%s11926_s9 + $0x90] sm:$0xff]  ;;  %v5071_v11 = vld [vmem:[%s11926_s9 + $0x98] sm:$0xff] }
 0xcef   :  { %v7831_v10 = vadd.f32 %v4610_v58, %v10401_v24  ;;  %v4859_v58 = vld [vmem:[%s11925_s4 + $0x188] sm:$0xff]  ;;  %v5079_v14 = vld [vmem:[%s11926_s9 + $0xd8] sm:$0xff] }
 0xcf0   :  { %3978 = vst.msk [vmem:[%s11929_s11] sm:$0xff] %vm740_vm2, %v3977_v40  ;;  %8150 = vtanh.f32 %v7830_v32  ;;  %v4850_v40 = vld [vmem:[%s11925_s4 + $0x140] sm:$0xff] }
 0xcf1   :  { %v6076_v53 = vmul.f32 -1.442695, %v7831_v10  ;;  %v4854_v32 = vld [vmem:[%s11925_s4 + $0x160] sm:$0xff]  ;;  %v4863_v10 = vld [vmem:[%s11925_s4 + $0x1a8] sm:$0xff] }
 0xcf3   :  { %8152 = vpow2.f32 %v6076_v53  ;;  %v8149_v54 = vpop.eup %8148  ;;  %v11360_v53 = vpack.c.bf16 %v4854_v32, %v4850_v40  ;;  %v5055_v40 = vld [vmem:[%s11926_s9 + $0x18] sm:$0xff] }
 0xcfa   :  { %v8151_v5 = vpop.eup %8150 }
 0xcfb   :  { %v4637_v29 = vmul.f32 %v8151_v5, %v8149_v54  ;;  %v11363_v54 = vpack.c.bf16 %v4863_v10, %v4859_v58  ;;  %v4858_v5 = vld [vmem:[%s11925_s4 + $0x180] sm:$0xff]  ;;  %v5073_v10 = vld [vmem:[%s11926_s9 + $0xa8] sm:$0xff] }
 0xcfc   :  { %v5072_v58 = vld [vmem:[%s11926_s9 + $0xa0] sm:$0xff] }
 0xcfd   :  { %v8153_v8 = vpop.eup %8152  ;;  %v4638_v1 = vadd.f32 %v4637_v29, %v4636_v35  ;;  %v4851_v35 = vld [vmem:[%s11925_s4 + $0x148] sm:$0xff]  ;;  %v4862_v29 = vld [vmem:[%s11925_s4 + $0x1a0] sm:$0xff] }
 0xcfe   :  { %v4633_v55 = vadd.f32 1.0, %v8153_v8  ;;  %v11345_v27 = vpack.c.bf16 %v4855_v15, %v4851_v35  ;;  %v4867_v8 = vld [vmem:[%s11925_s4 + $0x1c8] sm:$0xff]  ;;  %v11455_v35 = vpack.c.bf16 %v5071_v11, %v5070_v41  ;;  %v5054_v15 = vld [vmem:[%s11926_s9 + $0x10] sm:$0xff]  ;;  %v5063_v11 = vld [vmem:[%s11926_s9 + $0x58] sm:$0xff] }
 0xcff   :  { %8154 = vtanh.f32 %v4638_v1  ;;  %v11244_v28 = vsel %vm1757_vm11, %v4638_v1, %v11037_v56  ;;  %v4871_v1 = vld [vmem:[%s11925_s4 + $0x1e8] sm:$0xff]  ;;  %v11463_v32 = vpack.c.bf16 %v5055_v40, %v5054_v15  ;;  %v5062_v41 = vld [vmem:[%s11926_s9 + $0x50] sm:$0xff]  ;;  %v5080_v40 = vld [vmem:[%s11926_s9 + $0xe0] sm:$0xff] }
 0xd00   :  { %8156 = vrcp.f32 %v4633_v55  ;;  %v11378_v55 = vpack.c.bf16 %v4862_v29, %v4858_v5  ;;  %v11381_v6 = vpack.c.bf16 %v4871_v1, %v4867_v8  ;;  %v11473_v5 = vpack.c.bf16 %v5073_v10, %v5072_v58  ;;  %v5056_v29 = vld [vmem:[%s11926_s9 + $0x20] sm:$0xff]  ;;  %v5057_v8 = vld [vmem:[%s11926_s9 + $0x28] sm:$0xff] }
 0xd01   :  { %v11481_v1 = vpack.c.bf16 %v5057_v8, %v5056_v29  ;;  %v11535_v15 = vpack.c.bf16 %v5063_v11, %v5062_v41  ;;  %v5081_v58 = vld [vmem:[%s11926_s9 + $0xe8] sm:$0xff]  ;;  %v5064_v10 = vld [vmem:[%s11926_s9 + $0x60] sm:$0xff] }
 0xd02   :  { %v11547_v29 = vpack.c.bf16 %v5081_v58, %v5080_v40  ;;  %v5065_v8 = vld [vmem:[%s11926_s9 + $0x68] sm:$0xff] }
 0xd09   :  { %v8155_v19 = vpop.eup %8154 }
 0xd0a   :  { %v8157_v56 = vpop.eup %8156 }
 0xd0b   :  { %v4640_v2 = vmul.f32 %v8157_v56, %v8155_v19  ;;  %v4870_v19 = vld [vmem:[%s11925_s4 + $0x1e0] sm:$0xff]  ;;  %v3992_v56 = vcvt.f32.s32 %v11216_v59 }
 0xd0c   :  { %v11390_v23 = vpack.c.bf16 %v4870_v19, %v4866_v50  ;;  %v5068_v59 = vld [vmem:[%s11926_s9 + $0x80] sm:$0xff]  ;;  %v5074_v50 = vld [vmem:[%s11926_s9 + $0xb0] sm:$0xff]  ;;  %v5075_v19 = vld [vmem:[%s11926_s9 + $0xb8] sm:$0xff] }
 0xd0d   :  { %v11271_v42 = vsel %vm1757_vm11, %v4640_v2, %v11064_v46  ;;  %v11287_v46 = vpack.c.bf16 %v4822_v4, %v4818_v7  ;;  %v11436_v9 = vpack.c.bf16 %v5069_v37, %v5068_v59  ;;  %v5078_v37 = vld [vmem:[%s11926_s9 + $0xd0] sm:$0xff] }
 0xd0e   :  { %6078 = vmatmul.mubr.msk.f32.vlgmr.msra.gmra.mrb[36].mxu0 %vm1757_vm11, %v11271_v42  ;;  %5010 = vmatmul.mubr.f32.vlgmr.msra.gmra.mrb[10].mxu1 %v11271_v42  ;;  %11971 = vst [vmem:[#allocation14_spill] sm:$0xff] %v11390_v23  ;;  %v11527_v44 = vpack.c.bf16 %v5079_v14, %v5078_v37 }
 0xd0f   :  { %7521 = vmatpush1.bf16.msra.mxu0 %v11258_v25  ;;  %6115 = vmatprep.mubr.msk.f32.mxu1 %vm1501_vm10, %v11969_v33  ;;  %v3993_v33 = vshll.u32 %v3992_v56, 16  ;;  %v11491_v56 = vpack.c.bf16 %v5075_v19, %v5074_v50  ;;  %v5082_v50 = vld [vmem:[%s11926_s9 + $0xf0] sm:$0xff]  ;;  %v5083_v19 = vld [vmem:[%s11926_s9 + $0xf8] sm:$0xff] }
 0xd10   :  { %7523 = vmatprep.subr.bf16.mxu0 %v11260_v43  ;;  %4938 = vmatprep.mubr.f32.mxu0 %v11963_v45 }
 0xd11   :  { %7583 = vmatprep.subr.bf16.mxu1 %v11436_v9 }
 0xd12   :  { %7585 = vmatpush3.bf16.msra.mxu1 %v11444_v62 }
 0xd13   :  { %7525 = vmatpush1.bf16.msra.mxu0 %v11287_v46  ;;  %7587 = vmatprep.subr.bf16.mxu1 %v11455_v35 }
 0xd14   :  { %7527 = vmatprep.subr.bf16.mxu0 %v11290_v16 }
 0xd16   :  { %7589 = vmatpush3.bf16.msra.mxu1 %v11463_v32 }
 0xd17   :  { %7529 = vmatpush1.bf16.msra.mxu0 %v11306_v18  ;;  %7591 = vmatprep.subr.bf16.mxu1 %v11473_v5 }
 0xd18   :  { %7531 = vmatprep.subr.bf16.mxu0 %v11309_v30 }
 0xd1a   :  { %7593 = vmatpush3.bf16.msra.mxu1 %v11481_v1 }
 0xd1b   :  { %7533 = vmatpush1.bf16.msra.mxu0 %v11324_v36  ;;  %7595 = vmatprep.subr.bf16.mxu1 %v11491_v56 }
 0xd1c   :  { %7535 = vmatprep.subr.bf16.mxu0 %v11327_v31 }
 0xd1f   :  { %7537 = vmatpush1.bf16.msra.mxu0 %v11342_v49 }
 0xd20   :  { %7539 = vmatprep.subr.bf16.mxu0 %v11345_v27 }
 0xd23   :  { %7541 = vmatpush1.bf16.msra.mxu0 %v11360_v53 }
 0xd24   :  { %7543 = vmatprep.subr.bf16.mxu0 %v11363_v54 }
 0xd27   :  { %7545 = vmatpush1.bf16.msra.mxu0 %v11378_v55 }
 0xd28   :  { %7547 = vmatprep.subr.bf16.mxu0 %v11381_v6 }
 0xd2b   :  { %7549 = vmatpush1.bf16.msra.mxu0 %v11390_v23 }
 0xd2c   :  { %7615 = vmatprep.subr.bf16.mxu0 %v11202_v39 }
 0xd2e   :  { %4939 = vmatmul.mubr.f32.vlgmr.msra.gmra.mrb[10].mxu0 %v11271_v42 }
 0xd2f   :  { %7617 = vmatpush1.bf16.msra.mxu0 %v11258_v25  ;;  %5341 = vmatprep.mubr.f32.mxu0 %v11963_v45 }
 0xd30   :  { %7619 = vmatprep.subr.bf16.mxu0 %v11260_v43 }
 0xd33   :  { %7621 = vmatpush1.bf16.msra.mxu0 %v11287_v46 }
 0xd34   :  { %7623 = vmatprep.subr.bf16.mxu0 %v11290_v16 }
 0xd37   :  { %7625 = vmatpush1.bf16.msra.mxu0 %v11306_v18 }
 0xd38   :  { %7627 = vmatprep.subr.bf16.mxu0 %v11309_v30 }
 0xd3b   :  { %7629 = vmatpush1.bf16.msra.mxu0 %v11324_v36 }
 0xd3c   :  { %7631 = vmatprep.subr.bf16.mxu0 %v11327_v31 }
 0xd3f   :  { %7633 = vmatpush1.bf16.msra.mxu0 %v11342_v49 }
 0xd40   :  { %7635 = vmatprep.subr.bf16.mxu0 %v11345_v27 }
 0xd43   :  { %7637 = vmatpush1.bf16.msra.mxu0 %v11360_v53 }
 0xd44   :  { %7639 = vmatprep.subr.bf16.mxu0 %v11363_v54 }
 0xd47   :  { %7641 = vmatpush1.bf16.msra.mxu0 %v11378_v55 }
 0xd48   :  { %7643 = vmatprep.subr.bf16.mxu0 %v11381_v6 }
 0xd4b   :  { %7645 = vmatpush1.bf16.msra.mxu0 %v11390_v23 }
 0xd4c   :  { %7679 = vmatprep.subr.bf16.mxu0 %v11436_v9 }
 0xd60   :  { %v11412_v47 = vpop.xlane.xlu0 %4357 }
 0xd61   :  { %v4359_v2 = vsub.f32 %v11214_v60, %v11412_v47  ;;  %vm4382_vm11 = vcmp.eq.f32.partialorder %v11214_v60, %v11412_v47 }
 0xd62   :  { %v11420_v7 = vsel %vm4382_vm11, %v10493_v17, 128 }
 0xd63   :  { %v4360_v4 = vmul.f32 1.442695, %v4359_v2  ;;  %v4385_v13 = vshra.s32 %v11420_v7, 16  ;;  %v5058_v2 = vld [vmem:[%s11926_s9 + $0x30] sm:$0xff] }
 0xd64   :  { %v3990_v3 = vpop.xlane.xlu0 %3989 }
 0xd65   :  { %8158 = vpow2.f32 %v4360_v4  ;;  %v3991_v38 = vcvt.f32.s32 %v3990_v3  ;;  %v11423_v21 = vcvt.s32.f32 %v4385_v13  ;;  %v5059_v4 = vld [vmem:[%s11926_s9 + $0x38] sm:$0xff]  ;;  %v5076_v3 = vld [vmem:[%s11926_s9 + $0xc0] sm:$0xff] }
 0xd66   :  { %v11499_v13 = vpack.c.bf16 %v5059_v4, %v5058_v2  ;;  %v11559_v2 = vpack.c.bf16 %v5065_v8, %v5064_v10  ;;  %v11562_v4 = vpack.c.bf16 %v5083_v19, %v5082_v50  ;;  %v4373_v50 = vpop.xlane.xlu1 %4372  ;;  %v4384_v19 = vand.u32 65535, %v11420_v7 }
 0xd67   :  { %v3994_v57 = vadd.s32 %v3993_v33, %v3991_v38  ;;  %4388 = vmin.xlane.f32.xlu1 %v11423_v21  ;;  %v5077_v33 = vld [vmem:[%s11926_s9 + $0xc8] sm:$0xff] }
 0xd68   :  { %7597 = vmatpush3.bf16.msra.mxu1 %v11499_v13  ;;  %v11509_v38 = vpack.c.bf16 %v5077_v33, %v5076_v3  ;;  %v5066_v3 = vld [vmem:[%s11926_s9 + $0x70] sm:$0xff]  ;;  %v5067_v33 = vld [vmem:[%s11926_s9 + $0x78] sm:$0xff] }
 0xd69   :  { %6065 = vst.msk [vmem:[%s11930_s12 + $0x10] sm:$0xff] %vm740_vm2, %v3994_v57  ;;  %v5060_v57 = vld [vmem:[%s11926_s9 + $0x40] sm:$0xff]  ;;  %v11577_v37 = vpack.c.bf16 %v5067_v33, %v5066_v3  ;;  %v4386_v33 = vcvt.s32.f32 %v4384_v19  ;;  %v8229_v19 = vld [vmem:[%s11923_s2 + $0x18] sm:$0xff] }
 0xd6a   :  { %7599 = vmatprep.subr.bf16.mxu1 %v11509_v38  ;;  %vm4374_vm5 = vcmp.ne.s32.totalorder %v8229_v19, 0 }
 0xd6f   :  { %v8159_v60 = vpop.eup %8158 }
 0xd70   :  { %4362 = vadd.xlane.f32.xlu0 %v8159_v60  ;;  %v5061_v60 = vld [vmem:[%s11926_s9 + $0x48] sm:$0xff] }
 0xd71   :  { %v11517_v59 = vpack.c.bf16 %v5061_v60, %v5060_v57  ;;  %v5216_v57 = vld [vmem:[%s11925_s4 + $0x18] sm:$0xff] }
 0xd72   :  { %v5220_v60 = vld [vmem:[%s11925_s4 + $0x38] sm:$0xff] }
 0xd73   :  { %7601 = vmatpush3.bf16.msra.mxu1 %v11517_v59  ;;  %v11580_v14 = vpack.c.bf16 %v5220_v60, %v5216_v57 }
 0xd74   :  { %7603 = vmatprep.subr.bf16.mxu1 %v11527_v44 }
 0xd77   :  { %7605 = vmatpush3.bf16.msra.mxu1 %v11535_v15 }
 0xd78   :  { %7607 = vmatprep.subr.bf16.mxu1 %v11547_v29 }
 0xd7b   :  { %7609 = vmatpush3.bf16.msra.mxu1 %v11559_v2 }
 0xd7c   :  { %7611 = vmatprep.subr.bf16.mxu1 %v11562_v4 }
 0xd7f   :  { %7613 = vmatpush3.bf16.msra.mxu1 %v11577_v37 }
 0xd80   :  { %7647 = vmatprep.subr.bf16.mxu1 %v11580_v14 }
 0xde1   :  { %v6290_v41 = vpop.f32.mrb[36].mxu0  ;;  %v5011_v11 = vpop.f32.mrb[10].mxu1 }
 0xde2   :  { %v6291_v40 = vpop.f32.mrb[37].mxu0  ;;  %v5013_v58 = vpop.f32.mrb[11].mxu1 }
 0xde3   :  { %v6292_v10 = vadd.f32 %v6291_v40, %v6290_v41 }
 0xde5   :  { %v11585_v8 = vadd.f32 %v6292_v10, %v11210_v0 }
 0xde7   :  { %4760 = vmax.xlane.f32.xlu0 %v11585_v8 }
 0xdf4   :  { %v11589_v3 = vpop.xlane.xlu1 %4388 }
 0xdf5   :  { %vm4390_vm3 = vcmp.eq.f32.partialorder %v11423_v21, %v11589_v3  ;;  %v7833_v21 = vadd.f32 %v5013_v58, %v10401_v24 }
 0xdf6   :  { %v4391_v57 = vsel %vm4390_vm3, %v4386_v33, inf }
 0xdf7   :  { %4392 = vmin.xlane.f32.xlu1 %v4391_v57 }
 0xdfd   :  { %v4363_v60 = vpop.xlane.xlu0 %4362 }
 0xdfe   :  { %8160 = vlog2.f32 %v4363_v60  ;;  %v6084_v60 = vmul.f32 -1.442695, %v7833_v21 }
 0xe01   :  { %v4940_v63 = vpop.f32.mrb[10].mxu0 }
 0xe02   :  { %v7816_v41 = vadd.f32 %v4940_v63, %v10390_v34  ;;  %v4942_v0 = vpop.f32.mrb[11].mxu0  ;;  %v6072_v63 = vsel %vm4374_vm5, 1.0, %v11963_v45 }
 0xe03   :  { %v7817_v40 = vadd.f32 %v4942_v0, %v10395_v12 }
 0xe04   :  { %v6082_v10 = vmul.f32 -1.442695, %v7816_v41  ;;  %v7832_v41 = vadd.f32 %v5011_v11, %v10406_v51 }
 0xe05   :  { %v6083_v61 = vmul.f32 -1.442695, %v7817_v40 }
 0xe06   :  { %8162 = vpow2.f32 %v6082_v10 }
 0xe07   :  { %8164 = vpow2.f32 %v6083_v61  ;;  %v4377_v61 = vld [vmem:[%s11929_s11] sm:$0xff] }
 0xe08   :  { %v8161_v7 = vpop.eup %8160  ;;  %8166 = vpow2.f32 %v6084_v60  ;;  %v5219_v60 = vld [vmem:[%s11925_s4 + $0x30] sm:$0xff] }
 0xe09   :  { %v4365_v33 = vmul.f32 0.6931472, %v8161_v7  ;;  %8168 = vtanh.f32 %v7832_v41 }
 0xe0b   :  { %v4366_v57 = vadd.f32 %v4365_v33, %v11412_v47 }
 0xe0d   :  { %v4378_v17 = vsub.f32 %v4366_v57, %v4373_v50 }
 0xe0f   :  { %v4379_v0 = vmul.f32 %v6072_v63, %v4378_v17 }
 0xe10   :  { %v8163_v40 = vpop.eup %8162 }
 0xe11   :  { %v8165_v10 = vpop.eup %8164  ;;  %v4380_v19 = vadd.f32 %v4379_v0, %v4377_v61  ;;  %v5023_v23 = vadd.f32 1.0, %v8163_v40  ;;  %v5224_v0 = vld [vmem:[%s11925_s4 + $0x58] sm:$0xff] }
 0xe12   :  { %v5029_v58 = vadd.f32 1.0, %v8165_v10  ;;  %v8167_v47 = vpop.eup %8166  ;;  %v5228_v40 = vld [vmem:[%s11925_s4 + $0x78] sm:$0xff] }
 0xe13   :  { %4381 = vst.msk [vmem:[%s11929_s11] sm:$0xff] %vm740_vm2, %v4380_v19  ;;  %8170 = vrcp.f32 %v5023_v23  ;;  %v8169_v17 = vpop.eup %8168  ;;  %v5036_v7 = vadd.f32 1.0, %v8167_v47  ;;  %v5215_v23 = vld [vmem:[%s11925_s4 + $0x10] sm:$0xff]  ;;  %v11629_v19 = vpack.c.bf16 %v5228_v40, %v5224_v0 }
 0xe14   :  { %8172 = vrcp.f32 %v5029_v58  ;;  %v11627_v10 = vpack.c.bf16 %v5219_v60, %v5215_v23  ;;  %v5223_v58 = vld [vmem:[%s11925_s4 + $0x50] sm:$0xff]  ;;  %v5240_v23 = vld [vmem:[%s11925_s4 + $0xd8] sm:$0xff] }
 0xe15   :  { %8174 = vrcp.f32 %v5036_v7  ;;  %v5227_v47 = vld [vmem:[%s11925_s4 + $0x70] sm:$0xff]  ;;  %v11972_v7 = vld [vmem:[#allocation12_spill] sm:$0xff] }
 0xe16   :  { %v5244_v60 = vld [vmem:[%s11925_s4 + $0xf8] sm:$0xff]  ;;  %v5239_v40 = vld [vmem:[%s11925_s4 + $0xd0] sm:$0xff] }
 0xe17   :  { %v7658_v0 = vpack.c.bf16 %v5244_v60, %v5240_v23 }
 0xe1d   :  { %v8171_v11 = vpop.eup %8170 }
 0xe1e   :  { %v8173_v50 = vpop.eup %8172  ;;  %v5040_v21 = vmul.f32 %v8171_v11, %v8169_v17  ;;  %v5232_v11 = vld [vmem:[%s11925_s4 + $0x98] sm:$0xff] }
 0xe1f   :  { %v5039_v33 = vmul.f32 %v8173_v50, %v11244_v28  ;;  %v8175_v41 = vpop.eup %8174  ;;  %v5236_v50 = vld [vmem:[%s11925_s4 + $0xb8] sm:$0xff] }
 0xe21   :  { %v5041_v57 = vadd.f32 %v5040_v21, %v5039_v33  ;;  %v7654_v33 = vpack.c.bf16 %v5236_v50, %v5232_v11  ;;  %v5247_v50 = vld [vmem:[%s11925_s4 + $0x110] sm:$0xff] }
 0xe23   :  { %8176 = vtanh.f32 %v5041_v57  ;;  %v11613_v63 = vsel %vm1501_vm10, %v5041_v57, %v11244_v28  ;;  %v5231_v57 = vld [vmem:[%s11925_s4 + $0x90] sm:$0xff] }
 0xe2d   :  { %v8177_v61 = vpop.eup %8176 }
 0xe2e   :  { %v5043_v28 = vmul.f32 %v8177_v61, %v8175_v41  ;;  %v7656_v41 = vpack.c.bf16 %v5235_v52, %v5231_v57  ;;  %v5243_v61 = vld [vmem:[%s11925_s4 + $0xf0] sm:$0xff]  ;;  %v5256_v57 = vld [vmem:[%s11925_s4 + $0x158] sm:$0xff] }
 0xe2f   :  { %v5260_v52 = vld [vmem:[%s11925_s4 + $0x178] sm:$0xff] }
 0xe30   :  { %v11640_v17 = vsel %vm1501_vm10, %v5043_v28, %v11271_v42  ;;  %v7652_v42 = vpack.c.bf16 %v5227_v47, %v5223_v58  ;;  %v5248_v28 = vld [vmem:[%s11925_s4 + $0x118] sm:$0xff]  ;;  %v7660_v47 = vpack.c.bf16 %v5243_v61, %v5239_v40  ;;  %v7666_v60 = vpack.c.bf16 %v5260_v52, %v5256_v57  ;;  %v5255_v40 = vld [vmem:[%s11925_s4 + $0x150] sm:$0xff] }
 0xe31   :  { %6086 = vmatmul.mubr.msk.f32.vlgmr.msra.gmra.mrb[36].mxu1 %vm1501_vm10, %v11640_v17  ;;  %5342 = vmatmul.mubr.f32.vlgmr.msra.gmra.mrb[12].mxu0 %v11640_v17  ;;  %v5252_v58 = vld [vmem:[%s11925_s4 + $0x138] sm:$0xff]  ;;  %v5259_v61 = vld [vmem:[%s11925_s4 + $0x170] sm:$0xff] }
 0xe32   :  { %7649 = vmatpush1.bf16.msra.mxu1 %v11627_v10  ;;  %6116 = vmatprep.mubr.msk.f32.mxu0 %vm1245_vm9, %v11972_v7  ;;  %v7662_v11 = vpack.c.bf16 %v5252_v58, %v5248_v28  ;;  %v5251_v7 = vld [vmem:[%s11925_s4 + $0x130] sm:$0xff]  ;;  %v7668_v28 = vpack.c.bf16 %v5259_v61, %v5255_v40 }
 0xe33   :  { %7651 = vmatprep.subr.bf16.mxu1 %v11629_v19  ;;  %5412 = vmatprep.mubr.f32.mxu1 %v11963_v45  ;;  %v7664_v23 = vpack.c.bf16 %v5251_v7, %v5247_v50 }
 0xe34   :  { %7681 = vmatpush3.bf16.msra.mxu0 %v11444_v62 }
 0xe35   :  { %7683 = vmatprep.subr.bf16.mxu0 %v11455_v35 }
 0xe36   :  { %7653 = vmatpush1.bf16.msra.mxu1 %v7652_v42 }
 0xe37   :  { %7655 = vmatprep.subr.bf16.mxu1 %v7654_v33 }
 0xe38   :  { %7685 = vmatpush3.bf16.msra.mxu0 %v11463_v32 }
 0xe39   :  { %7687 = vmatprep.subr.bf16.mxu0 %v11473_v5 }
 0xe3a   :  { %7657 = vmatpush1.bf16.msra.mxu1 %v7656_v41 }
 0xe3b   :  { %7659 = vmatprep.subr.bf16.mxu1 %v7658_v0 }
 0xe3c   :  { %7689 = vmatpush3.bf16.msra.mxu0 %v11481_v1 }
 0xe3d   :  { %7691 = vmatprep.subr.bf16.mxu0 %v11491_v56 }
 0xe3e   :  { %7661 = vmatpush1.bf16.msra.mxu1 %v7660_v47 }
 0xe3f   :  { %7663 = vmatprep.subr.bf16.mxu1 %v7662_v11 }
 0xe40   :  { %7693 = vmatpush3.bf16.msra.mxu0 %v11499_v13 }
 0xe41   :  { %7695 = vmatprep.subr.bf16.mxu0 %v11509_v38 }
 0xe42   :  { %7665 = vmatpush1.bf16.msra.mxu1 %v7664_v23 }
 0xe43   :  { %7667 = vmatprep.subr.bf16.mxu1 %v7666_v60 }
 0xe44   :  { %7697 = vmatpush3.bf16.msra.mxu0 %v11517_v59 }
 0xe45   :  { %7699 = vmatprep.subr.bf16.mxu0 %v11527_v44 }
 0xe46   :  { %7669 = vmatpush1.bf16.msra.mxu1 %v7668_v28 }
 0xe47   :  { %7671 = vmatprep.subr.bf16.mxu1 %v11171_v20 }
 0xe48   :  { %7701 = vmatpush3.bf16.msra.mxu0 %v11535_v15 }
 0xe49   :  { %7703 = vmatprep.subr.bf16.mxu0 %v11547_v29 }
 0xe4a   :  { %7673 = vmatpush1.bf16.msra.mxu1 %v11182_v48 }
 0xe4b   :  { %7675 = vmatprep.subr.bf16.mxu1 %v11184_v26 }
 0xe4c   :  { %7705 = vmatpush3.bf16.msra.mxu0 %v11559_v2 }
 0xe4d   :  { %7707 = vmatprep.subr.bf16.mxu0 %v11562_v4 }
 0xe4e   :  { %7677 = vmatpush1.bf16.msra.mxu1 %v11200_v22 }
 0xe4f   :  { %7743 = vmatprep.subr.bf16.mxu1 %v11580_v14 }
 0xe50   :  { %7709 = vmatpush3.bf16.msra.mxu0 %v11577_v37 }
 0xe51   :  { %5413 = vmatmul.mubr.f32.vlgmr.msra.gmra.mrb[12].mxu1 %v11640_v17  ;;  %7711 = vmatprep.subr.bf16.mxu0 %v11202_v39 }
 0xe52   :  { %7745 = vmatpush1.bf16.msra.mxu1 %v11627_v10  ;;  %5815 = vmatprep.mubr.f32.mxu1 %v11963_v45 }
 0xe53   :  { %7747 = vmatprep.subr.bf16.mxu1 %v11629_v19  ;;  %v4395_v19 = vcvt.f32.s32 %v11589_v3 }
 0xe56   :  { %7749 = vmatpush1.bf16.msra.mxu1 %v7652_v42 }
 0xe57   :  { %7751 = vmatprep.subr.bf16.mxu1 %v7654_v33  ;;  %v4396_v33 = vshll.u32 %v4395_v19, 16 }
 0xe5a   :  { %7753 = vmatpush1.bf16.msra.mxu1 %v7656_v41 }
 0xe5b   :  { %7755 = vmatprep.subr.bf16.mxu1 %v7658_v0 }
 0xe5e   :  { %7757 = vmatpush1.bf16.msra.mxu1 %v7660_v47 }
 0xe5f   :  { %7759 = vmatprep.subr.bf16.mxu1 %v7662_v11 }
 0xe62   :  { %7761 = vmatpush1.bf16.msra.mxu1 %v7664_v23 }
 0xe63   :  { %7763 = vmatprep.subr.bf16.mxu1 %v7666_v60 }
 0xe66   :  { %7765 = vmatpush1.bf16.msra.mxu1 %v7668_v28 }
 0xe67   :  { %7767 = vmatprep.subr.bf16.mxu1 %v11171_v20 }
 0xe6a   :  { %7769 = vmatpush1.bf16.msra.mxu1 %v11182_v48 }
 0xe6b   :  { %7771 = vmatprep.subr.bf16.mxu1 %v11184_v26 }
 0xe6e   :  { %7773 = vmatpush1.bf16.msra.mxu1 %v11200_v22 }
 0xe6f   :  { %7775 = vmatprep.subr.bf16.mxu1 %v11436_v9  ;;  %v11742_v9 = vld [vmem:[%s11928_s10] ss:$0 sm:$0xff] }
 0xe74   :  { %v11730_v39 = vpop.xlane.xlu0 %4760 }
 0xe75   :  { %v4762_v14 = vsub.f32 %v11585_v8, %v11730_v39  ;;  %vm4785_vm13 = vcmp.eq.f32.partialorder %v11585_v8, %v11730_v39 }
 0xe77   :  { %v4763_v10 = vmul.f32 1.442695, %v4762_v14 }
 0xe79   :  { %8178 = vpow2.f32 %v4763_v10 }
 0xe83   :  { %v8179_v42 = vpop.eup %8178 }
 0xe84   :  { %4765 = vadd.xlane.f32.xlu1 %v8179_v42  ;;  %v4393_v20 = vpop.xlane.xlu1 %4392 }
 0xe85   :  { %v4394_v48 = vcvt.f32.s32 %v4393_v20 }
 0xe87   :  { %v4397_v41 = vadd.s32 %v4396_v33, %v4394_v48 }
 0xe89   :  { %6073 = vst.msk [vmem:[%s11930_s12 + $0x18] sm:$0xff] %vm740_vm2, %v4397_v41 }
 0xf04   :  { %v6325_v26 = vpop.f32.mrb[36].mxu1  ;;  %v5343_v22 = vpop.f32.mrb[12].mxu0 }
 0xf05   :  { %v6326_v0 = vpop.f32.mrb[37].mxu1  ;;  %v5345_v3 = vpop.f32.mrb[13].mxu0  ;;  %v7818_v7 = vadd.f32 %v5343_v22, %v10390_v34 }
 0xf06   :  { %v6327_v58 = vadd.f32 %v6326_v0, %v6325_v26  ;;  %v7819_v47 = vadd.f32 %v5345_v3, %v10395_v12 }
 0xf07   :  { %v6090_v57 = vmul.f32 -1.442695, %v7818_v7 }
 0xf08   :  { %v11746_v11 = vadd.f32 %v6327_v58, %v11742_v9  ;;  %v6091_v50 = vmul.f32 -1.442695, %v7819_v47 }
 0xf0a   :  { %8180 = vpow2.f32 %v6091_v50  ;;  %5163 = vmax.xlane.f32.xlu0 %v11746_v11 }
 0xf0b   :  { %8182 = vpow2.f32 %v6090_v57  ;;  %v11974_v57 = vld [vmem:[#allocation11_spill] sm:$0xff] }
 0xf14   :  { %v8181_v52 = vpop.eup %8180 }
 0xf15   :  { %v5432_v23 = vadd.f32 1.0, %v8181_v52  ;;  %v8183_v60 = vpop.eup %8182 }
 0xf16   :  { %v5426_v61 = vadd.f32 1.0, %v8183_v60 }
 0xf17   :  { %8184 = vrcp.f32 %v5432_v23 }
 0xf18   :  { %8186 = vrcp.f32 %v5426_v61 }
 0xf21   :  { %v8185_v40 = vpop.eup %8184 }
 0xf22   :  { %v5442_v28 = vmul.f32 %v8185_v40, %v11613_v63  ;;  %v8187_v33 = vpop.eup %8186 }
 0xf24   :  { %v5414_v14 = vpop.f32.mrb[12].mxu1 }
 0xf25   :  { %v7834_v10 = vadd.f32 %v5414_v14, %v10406_v51  ;;  %v5416_v19 = vpop.f32.mrb[13].mxu1  ;;  %v4780_v14 = vld [vmem:[%s11929_s11] sm:$0xff] }
 0xf26   :  { %v7835_v42 = vadd.f32 %v5416_v19, %v10401_v24 }
 0xf27   :  { %8188 = vtanh.f32 %v7834_v10 }
 0xf28   :  { %v6092_v20 = vmul.f32 -1.442695, %v7835_v42 }
 0xf2a   :  { %8190 = vpow2.f32 %v6092_v20 }
 0xf31   :  { %v8189_v48 = vpop.eup %8188 }
 0xf32   :  { %v5443_v41 = vmul.f32 %v8189_v48, %v8187_v33 }
 0xf34   :  { %v8191_v26 = vpop.eup %8190  ;;  %v5444_v22 = vadd.f32 %v5443_v41, %v5442_v28 }
 0xf35   :  { %v5439_v0 = vadd.f32 1.0, %v8191_v26 }
 0xf36   :  { %8192 = vtanh.f32 %v5444_v22  ;;  %v11756_v3 = vsel %vm1245_vm9, %v5444_v22, %v11613_v63 }
 0xf37   :  { %8194 = vrcp.f32 %v5439_v0 }
 0xf40   :  { %v8193_v58 = vpop.eup %8192 }
 0xf41   :  { %v8195_v47 = vpop.eup %8194 }
 0xf42   :  { %v5446_v50 = vmul.f32 %v8195_v47, %v8193_v58 }
 0xf44   :  { %v11761_v7 = vsel %vm1245_vm9, %v5446_v50, %v11640_v17 }
 0xf45   :  { %6094 = vmatmul.mubr.msk.f32.vlgmr.msra.gmra.mrb[38].mxu0 %vm1245_vm9, %v11761_v7  ;;  %5816 = vmatmul.mubr.f32.vlgmr.msra.gmra.mrb[14].mxu1 %v11761_v7 }
 0xf46   :  { %7713 = vmatpush1.bf16.msra.mxu0 %v11258_v25  ;;  %6117 = vmatprep.mubr.msk.f32.mxu1 %vm989_vm4, %v11974_v57  ;;  %v11976_v25 = vld [vmem:[#allocation14_spill] sm:$0xff] }
 0xf47   :  { %7715 = vmatprep.subr.bf16.mxu0 %v11260_v43  ;;  %5744 = vmatprep.mubr.f32.mxu0 %v11963_v45 }
 0xf48   :  { %7777 = vmatpush3.bf16.msra.mxu1 %v11444_v62 }
 0xf49   :  { %7779 = vmatprep.subr.bf16.mxu1 %v11455_v35 }
 0xf4a   :  { %7717 = vmatpush1.bf16.msra.mxu0 %v11287_v46 }
 0xf4b   :  { %7719 = vmatprep.subr.bf16.mxu0 %v11290_v16  ;;  %v11977_v16 = vld [vmem:[#allocation16_spill] sm:$0xff] }
 0xf4c   :  { %7781 = vmatpush3.bf16.msra.mxu1 %v11463_v32 }
 0xf4d   :  { %7783 = vmatprep.subr.bf16.mxu1 %v11473_v5  ;;  %v4766_v5 = vpop.xlane.xlu1 %4765 }
 0xf4e   :  { %7721 = vmatpush1.bf16.msra.mxu0 %v11306_v18 }
 0xf4f   :  { %7723 = vmatprep.subr.bf16.mxu0 %v11309_v30 }
 0xf50   :  { %7785 = vmatpush3.bf16.msra.mxu1 %v11481_v1 }
 0xf51   :  { %7787 = vmatprep.subr.bf16.mxu1 %v11491_v56 }
 0xf52   :  { %7725 = vmatpush1.bf16.msra.mxu0 %v11324_v36 }
 0xf53   :  { %7727 = vmatprep.subr.bf16.mxu0 %v11327_v31 }
 0xf54   :  { %7789 = vmatpush3.bf16.msra.mxu1 %v11499_v13 }
 0xf55   :  { %7791 = vmatprep.subr.bf16.mxu1 %v11509_v38 }
 0xf56   :  { %7729 = vmatpush1.bf16.msra.mxu0 %v11342_v49 }
 0xf57   :  { %7731 = vmatprep.subr.bf16.mxu0 %v11345_v27  ;;  %v11978_v27 = vld [vmem:[#allocation15_spill] sm:$0xff] }
 0xf58   :  { %7793 = vmatpush3.bf16.msra.mxu1 %v11517_v59  ;;  %vm4773_vm10 = vcmp.eq.s32.totalorder %v11977_v16, %v11978_v27 }
 0xf59   :  { %7795 = vmatprep.subr.bf16.mxu1 %v11527_v44 }
 0xf5a   :  { %7733 = vmatpush1.bf16.msra.mxu0 %v11360_v53  ;;  %v4774_v53 = vsel %vm4773_vm10, %v11585_v8, 0.0 }
 0xf5b   :  { %7735 = vmatprep.subr.bf16.mxu0 %v11363_v54 }
 0xf5c   :  { %7797 = vmatpush3.bf16.msra.mxu1 %v11535_v15 }
 0xf5d   :  { %7799 = vmatprep.subr.bf16.mxu1 %v11547_v29  ;;  %v8230_v29 = vld [vmem:[%s11923_s2 + $0x20] sm:$0xff] }
 0xf5e   :  { %7737 = vmatpush1.bf16.msra.mxu0 %v11378_v55  ;;  %vm4777_vm7 = vcmp.ne.s32.totalorder %v8230_v29, 0 }
 0xf5f   :  { %7739 = vmatprep.subr.bf16.mxu0 %v11381_v6 }
 0xf60   :  { %7801 = vmatpush3.bf16.msra.mxu1 %v11559_v2 }
 0xf61   :  { %7803 = vmatprep.subr.bf16.mxu1 %v11562_v4 }
 0xf62   :  { %7741 = vmatpush1.bf16.msra.mxu0 %v11976_v25 }
 0xf64   :  { %7805 = vmatpush3.bf16.msra.mxu1 %v11577_v37  ;;  %v6080_v37 = vsel %vm4777_vm7, 1.0, %v11963_v45 }
 0xf65   :  { %5745 = vmatmul.mubr.f32.vlgmr.msra.gmra.mrb[14].mxu0 %v11761_v7 }
 0xf97   :  { %v11802_v43 = vpop.xlane.xlu0 %5163 }
 0xf98   :  { %v5165_v46 = vsub.f32 %v11746_v11, %v11802_v43  ;;  %vm5188_vm9 = vcmp.eq.f32.partialorder %v11746_v11, %v11802_v43 }
 0xf99   :  { %v5189_v18 = vsel %vm5188_vm9, %v11977_v16, 128 }
 0xf9a   :  { %v5166_v30 = vmul.f32 1.442695, %v5165_v46  ;;  %v5191_v36 = vshra.s32 %v5189_v18, 16  ;;  %v5190_v1 = vand.u32 65535, %v5189_v18 }
 0xf9c   :  { %8196 = vpow2.f32 %v5166_v30  ;;  %v5193_v31 = vcvt.s32.f32 %v5191_v36  ;;  %v5192_v13 = vcvt.s32.f32 %v5190_v1 }
 0xf9d   :  { %8198 = vlog2.f32 %v4766_v5 }
 0xf9e   :  { %5194 = vmin.xlane.f32.xlu1 %v5193_v31 }
 0xfa6   :  { %v8197_v49 = vpop.eup %8196 }
 0xfa7   :  { %5168 = vadd.xlane.f32.xlu1 %v8197_v49  ;;  %v8199_v59 = vpop.eup %8198 }
 0xfa8   :  { %v4768_v44 = vmul.f32 0.6931472, %v8199_v59 }
 0xfaa   :  { %v4769_v2 = vadd.f32 %v4768_v44, %v11730_v39  ;;  %v6095_v44 = vld [vmem:[%s11923_s2 + $0x30] sm:$0xff] }
 0xfab   :  { %4775 = vadd.xlane.f32.xlu1 %v4774_v53  ;;  %vm5583_vm5 = vcmp.ne.s32.totalorder %v6095_v44, 0 }
0x1018   :  { %v6360_v54 = vpop.f32.mrb[38].mxu0  ;;  %v5817_v55 = vpop.f32.mrb[14].mxu1 }
0x1019   :  { %v6361_v6 = vpop.f32.mrb[39].mxu0  ;;  %v5819_v62 = vpop.f32.mrb[15].mxu1 }
0x101a   :  { %v6362_v35 = vadd.f32 %v6361_v6, %v6360_v54 }
0x101c   :  { %v11813_v32 = vadd.f32 %v6362_v35, %v11742_v9 }
0x101e   :  { %5566 = vmax.xlane.f32.xlu0 %v11813_v32 }
0x102b   :  { %v11816_v56 = vpop.xlane.xlu1 %5194 }
0x102c   :  { %vm5196_vm6 = vcmp.eq.f32.partialorder %v5193_v31, %v11816_v56  ;;  %v11979_v31 = vld [vmem:[#allocation17_spill] sm:$0xff] }
0x102d   :  { %v11819_v38 = vsel %vm5196_vm6, %v5192_v13, inf  ;;  %vm5176_vm8 = vcmp.eq.s32.totalorder %v11977_v16, %v11979_v31 }
0x102e   :  { %v5177_v49 = vsel %vm5176_vm8, %v11746_v11, 0.0 }
0x1034   :  { %v5169_v15 = vpop.xlane.xlu1 %5168 }
0x1038   :  { %v5746_v4 = vpop.f32.mrb[14].mxu0  ;;  %v4776_v17 = vpop.xlane.xlu1 %4775 }
0x1039   :  { %v7820_v21 = vadd.f32 %v5746_v4, %v10390_v34  ;;  %v5748_v52 = vpop.f32.mrb[15].mxu0  ;;  %v4781_v23 = vsub.f32 %v4769_v2, %v4776_v17  ;;  %v7837_v34 = vadd.f32 %v5819_v62, %v10401_v24  ;;  %v8231_v62 = vld [vmem:[%s11923_s2 + $0x28] sm:$0xff] }
0x103a   :  { %v7821_v60 = vadd.f32 %v5748_v52, %v10395_v12  ;;  %v7836_v12 = vadd.f32 %v5817_v55, %v10406_v51 }
0x103b   :  { %v6098_v40 = vmul.f32 -1.442695, %v7820_v21  ;;  %v4782_v61 = vmul.f32 %v6080_v37, %v4781_v23  ;;  %v6100_v19 = vmul.f32 -1.442695, %v7837_v34 }
0x103c   :  { %v6099_v28 = vmul.f32 -1.442695, %v7821_v60 }
0x103d   :  { %8200 = vpow2.f32 %v6098_v40  ;;  %v4783_v10 = vadd.f32 %v4782_v61, %v4780_v14  ;;  %v6103_v40 = vld [vmem:[%s11923_s2 + $0x38] sm:$0xff] }
0x103e   :  { %8202 = vpow2.f32 %v6099_v28  ;;  %vm5986_vm9 = vcmp.ne.s32.totalorder %v6103_v40, 0 }
0x103f   :  { %4784 = vst.msk [vmem:[%s11929_s11] sm:$0xff] %vm740_vm2, %v4783_v10  ;;  %8204 = vpow2.f32 %v6100_v19 }
0x1040   :  { %8206 = vtanh.f32 %v7836_v12 }
0x1047   :  { %v8201_v42 = vpop.eup %8200 }
0x1048   :  { %v8203_v20 = vpop.eup %8202  ;;  %v5829_v33 = vadd.f32 1.0, %v8201_v42 }
0x1049   :  { %v5835_v48 = vadd.f32 1.0, %v8203_v20  ;;  %v8205_v41 = vpop.eup %8204 }
0x104a   :  { %8208 = vrcp.f32 %v5829_v33  ;;  %v8207_v26 = vpop.eup %8206  ;;  %v5842_v58 = vadd.f32 1.0, %v8205_v41 }
0x104b   :  { %8210 = vrcp.f32 %v5835_v48 }
0x104c   :  { %8212 = vrcp.f32 %v5842_v58 }
0x1054   :  { %v8209_v22 = vpop.eup %8208 }
0x1055   :  { %v8211_v0 = vpop.eup %8210  ;;  %v5846_v47 = vmul.f32 %v8209_v22, %v8207_v26 }
0x1056   :  { %v5845_v50 = vmul.f32 %v8211_v0, %v11756_v3  ;;  %v8213_v51 = vpop.eup %8212 }
0x1058   :  { %v5847_v24 = vadd.f32 %v5846_v47, %v5845_v50  ;;  %v6096_v50 = vsel %vm5583_vm5, 1.0, %v11963_v45 }
0x105a   :  { %8214 = vtanh.f32 %v5847_v24 }
0x1064   :  { %v8215_v57 = vpop.eup %8214 }
0x1065   :  { %v5849_v25 = vmul.f32 %v8215_v57, %v8213_v51 }
0x1067   :  { %v5850_v46 = vsel %vm989_vm4, %v5849_v25, %v11761_v7 }
0x1068   :  { %6102 = vmatmul.mubr.msk.f32.vlgmr.msra.gmra.mrb[38].mxu1 %vm989_vm4, %v5850_v46  ;;  %vm5180_vm4 = vcmp.ne.s32.totalorder %v8231_v62, 0 }
0x1069   :  { %v6088_v11 = vsel %vm5180_vm4, 1.0, %v11963_v45 }
0x10ab   :  { %v11843_v18 = vpop.xlane.xlu0 %5566 }
0x10ac   :  { %v5568_v30 = vsub.f32 %v11813_v32, %v11843_v18  ;;  %vm5591_vm14 = vcmp.eq.f32.partialorder %v11813_v32, %v11843_v18 }
0x10ad   :  { %v5592_v29 = vsel %vm5591_vm14, %v11977_v16, 128 }
0x10ae   :  { %v5569_v36 = vmul.f32 1.442695, %v5568_v30  ;;  %v5594_v4 = vshra.s32 %v5592_v29, 16  ;;  %v5593_v48 = vand.u32 65535, %v5592_v29 }
0x10b0   :  { %8216 = vpow2.f32 %v5569_v36  ;;  %v5596_v37 = vcvt.s32.f32 %v5594_v4 }
0x10b1   :  { %8218 = vlog2.f32 %v5169_v15 }
0x10ba   :  { %v8217_v3 = vpop.eup %8216 }
0x10bb   :  { %5571 = vadd.xlane.f32.xlu1 %v8217_v3  ;;  %v8219_v54 = vpop.eup %8218  ;;  %v6104_v3 = vsel %vm5986_vm9, 1.0, %v11963_v45 }
0x10bc   :  { %v5171_v55 = vmul.f32 0.6931472, %v8219_v54  ;;  %v5201_v54 = vcvt.f32.s32 %v11816_v56 }
0x10be   :  { %v5172_v35 = vadd.f32 %v5171_v55, %v11802_v43  ;;  %v4786_v43 = vsel %vm4785_vm13, %v11977_v16, 128 }
0x10bf   :  { %5178 = vadd.xlane.f32.xlu1 %v5177_v49  ;;  %v4788_v15 = vshra.s32 %v4786_v43, 16  ;;  %v4787_v12 = vand.u32 65535, %v4786_v43 }
0x10c1   :  { %v4790_v2 = vcvt.s32.f32 %v4788_v15  ;;  %v4789_v20 = vcvt.s32.f32 %v4787_v12 }
0x113b   :  { %v6395_v7 = vpop.f32.mrb[38].mxu1 }
0x113c   :  { %v6396_v27 = vpop.f32.mrb[39].mxu1 }
0x113d   :  { %v6397_v63 = vadd.f32 %v6396_v27, %v6395_v7 }
0x113f   :  { %v5964_v53 = vadd.f32 %v6397_v63, %v11742_v9  ;;  %v5183_v9 = vld [vmem:[%s11929_s11] sm:$0xff] }
0x1141   :  { %5969 = vmax.xlane.f32.xlu0 %v5964_v53 }
0x1148   :  { %v5572_v6 = vpop.xlane.xlu1 %5571 }
0x114c   :  { %v5179_v5 = vpop.xlane.xlu1 %5178 }
0x114d   :  { %v5184_v1 = vsub.f32 %v5172_v35, %v5179_v5 }
0x114f   :  { %v5185_v13 = vmul.f32 %v6088_v11, %v5184_v1  ;;  %v5202_v11 = vshll.u32 %v5201_v54, 16 }
0x1151   :  { %v5186_v59 = vadd.f32 %v5185_v13, %v5183_v9 }
0x1153   :  { %5187 = vst.msk [vmem:[%s11929_s11] sm:$0xff] %vm740_vm2, %v5186_v59 }
0x1157   :  { %5577 = vperm.xlu0 %7936, %v6095_v44  }
0x115a   :  { %v5586_v57 = vld [vmem:[%s11929_s11] sm:$0xff] }
0x1176   :  { %4791 = vmin.xlane.f32.xlu0 %v4790_v2 }
0x117a   :  { %5597 = vmin.xlane.f32.xlu0 %v5596_v37 }
0x11ce   :  { %v5970_v17 = vpop.xlane.xlu0 %5969 }
0x11cf   :  { %v5971_v21 = vsub.f32 %v5964_v53, %v5970_v17  ;;  %vm5994_vm12 = vcmp.eq.f32.partialorder %v5964_v53, %v5970_v17 }
0x11d0   :  { %v5995_v52 = vsel %vm5994_vm12, %v11977_v16, 128 }
0x11d1   :  { %v5972_v23 = vmul.f32 1.442695, %v5971_v21  ;;  %v5997_v8 = vshra.s32 %v5995_v52, 16  ;;  %v5996_v41 = vand.u32 65535, %v5995_v52 }
0x11d3   :  { %8220 = vpow2.f32 %v5972_v23  ;;  %v5999_v39 = vcvt.s32.f32 %v5997_v8  ;;  %v5998_v22 = vcvt.s32.f32 %v5996_v41 }
0x11d4   :  { %8222 = vlog2.f32 %v5572_v6 }
0x11d5   :  { %6000 = vmin.xlane.f32.xlu0 %v5999_v39 }
0x11d6   :  { %v5578_v61 = vpop.permute.xlu0 %5577 }
0x11d7   :  { %vm5579_vm15 = vcmp.eq.s32.totalorder %v11977_v16, %v5578_v61 }
0x11d8   :  { %v5580_v28 = vsel %vm5579_vm15, %v11813_v32, 0.0  ;;  %v5595_v32 = vcvt.s32.f32 %v5593_v48 }
0x11dd   :  { %v8221_v60 = vpop.eup %8220 }
0x11de   :  { %5974 = vadd.xlane.f32.xlu1 %v8221_v60 }
0x11eb   :  { %5980 = vperm.xlu0 %7936, %v6103_v40  }
0x1203   :  { %v4792_v14 = vpop.xlane.xlu0 %4791 }
0x1204   :  { %vm4793_vm1 = vcmp.eq.f32.partialorder %v4790_v2, %v4792_v14  ;;  %v4798_v49 = vcvt.f32.s32 %v4792_v14 }
0x1205   :  { %v4794_v33 = vsel %vm4793_vm1, %v4789_v20, inf }
0x1206   :  { %v4799_v55 = vshll.u32 %v4798_v49, 16 }
0x1207   :  { %v5598_v10 = vpop.xlane.xlu0 %5597 }
0x1208   :  { %vm5599_vm11 = vcmp.eq.f32.partialorder %v5596_v37, %v5598_v10  ;;  %v5604_v5 = vcvt.f32.s32 %v5598_v10 }
0x1209   :  { %v5600_v26 = vsel %vm5599_vm11, %v5595_v32, inf }
0x120a   :  { %5581 = vadd.xlane.f32.xlu0 %v5580_v28  ;;  %v5605_v9 = vshll.u32 %v5604_v5, 16 }
0x1262   :  { %v11878_v34 = vpop.xlane.xlu0 %6000 }
0x1263   :  { %vm6002_vm3 = vcmp.eq.f32.partialorder %v5999_v39, %v11878_v34  ;;  %v6007_v59 = vcvt.f32.s32 %v11878_v34 }
0x1264   :  { %v6003_v0 = vsel %vm6002_vm3, %v5998_v22, inf }
0x1265   :  { %v6008_v29 = vshll.u32 %v6007_v59, 16 }
0x126a   :  { %v5981_v19 = vpop.permute.xlu0 %5980 }
0x126b   :  { %vm5982_vm0 = vcmp.eq.s32.totalorder %v11977_v16, %v5981_v19  ;;  %v8223_v16 = vpop.eup %8222  ;;  %v5975_v46 = vpop.xlane.xlu1 %5974 }
0x126c   :  { %v5983_v42 = vsel %vm5982_vm0, %v5964_v53, 0.0  ;;  %v5574_v58 = vmul.f32 0.6931472, %v8223_v16  ;;  %8224 = vlog2.f32 %v5975_v46 }
0x126d   :  { %5984 = vadd.xlane.f32.xlu1 %v5983_v42 }
0x126e   :  { %v5575_v47 = vadd.f32 %v5574_v58, %v11843_v18 }
0x1271   :  { %4795 = vmin.xlane.f32.xlu1 %v4794_v33 }
0x1275   :  { %5198 = vmin.xlane.f32.xlu1 %v11819_v38 }
0x1276   :  { %v8225_v30 = vpop.eup %8224 }
0x1277   :  { %v5977_v36 = vmul.f32 0.6931472, %v8225_v30 }
0x1279   :  { %5601 = vmin.xlane.f32.xlu1 %v5600_v26  ;;  %v5978_v18 = vadd.f32 %v5977_v36, %v5970_v17 }
0x127d   :  { %6004 = vmin.xlane.f32.xlu1 %v6003_v0 }
0x1297   :  { %v5582_v24 = vpop.xlane.xlu0 %5581 }
0x1298   :  { %v5587_v38 = vsub.f32 %v5575_v47, %v5582_v24 }
0x129a   :  { %v5588_v51 = vmul.f32 %v6096_v50, %v5587_v38 }
0x129c   :  { %v5589_v25 = vadd.f32 %v5588_v51, %v5586_v57 }
0x129e   :  { %5590 = vst.msk [vmem:[%s11929_s11] sm:$0xff] %vm740_vm2, %v5589_v25 }
0x12a5   :  { %v5989_v63 = vld [vmem:[%s11929_s11] sm:$0xff] }
0x12fa   :  { %v5985_v31 = vpop.xlane.xlu1 %5984 }
0x12fb   :  { %v5990_v7 = vsub.f32 %v5978_v18, %v5985_v31 }
0x12fd   :  { %v5991_v27 = vmul.f32 %v6104_v3, %v5990_v7 }
0x12fe   :  { %v4796_v53 = vpop.xlane.xlu1 %4795 }
0x12ff   :  { %v5992_v6 = vadd.f32 %v5991_v27, %v5989_v63  ;;  %v4797_v62 = vcvt.f32.s32 %v4796_v53 }
0x1301   :  { %5993 = vst.msk [vmem:[%s11929_s11] sm:$0xff] %vm740_vm2, %v5992_v6  ;;  %v4800_v45 = vadd.s32 %v4799_v55, %v4797_v62 }
0x1302   :  { %v5199_v35 = vpop.xlane.xlu1 %5198 }
0x1303   :  { %6081 = vst.msk [vmem:[%s11930_s12 + $0x20] sm:$0xff] %vm740_vm2, %v4800_v45  ;;  %v5200_v1 = vcvt.f32.s32 %v5199_v35 }
0x1305   :  { %v5203_v13 = vadd.s32 %v5202_v11, %v5200_v1 }
0x1306   :  { %v5602_v56 = vpop.xlane.xlu1 %5601 }
0x1307   :  { %6089 = vst.msk [vmem:[%s11930_s12 + $0x28] sm:$0xff] %vm740_vm2, %v5203_v13  ;;  %v5603_v44 = vcvt.f32.s32 %v5602_v56 }
0x1309   :  { %v5606_v43 = vadd.s32 %v5605_v9, %v5603_v44 }
0x130a   :  { %v6005_v15 = vpop.xlane.xlu1 %6004 }
0x130b   :  { %6097 = vst.msk [vmem:[%s11930_s12 + $0x30] sm:$0xff] %vm740_vm2, %v5606_v43  ;;  %v6006_v2 = vcvt.f32.s32 %v6005_v15 }
0x130d   :  { %v6009_v4 = vadd.s32 %v6008_v29, %v6006_v2 }
0x130f   :  { %6105 = vst.msk [vmem:[%s11930_s12 + $0x38] sm:$0xff] %vm740_vm2, %v6009_v4 }

</bundles_post_ra>
